<compile_context>
chip_gen: v7x
topology: tpu7x:2x2x1
jax: 0.10.0
libtpu: 0.0.40
codegen_flags: <defaults>
</compile_context>

<pallas_src>
import jax
import jax.numpy as jnp
from jax.experimental import pallas as pl
from jax.experimental.pallas import tpu as pltpu

# Flat (row-major) spatial bookkeeping.  Row index conventions:
#   input x     20x20 : row = 20*h + w                      (400 rows)
#   conv1 out   18x18 : full-width, stride 20               (358 rows computed)
#   conv2 out   16x16 : full-width, stride 20               (316 rows computed)
#   pool1 out    8x8  : value for (ph,pw) at row 40*ph+2*pw (295 rows computed)
#   conv3 out    6x6  : value for (oh,ow) at row 40*oh+2*ow (211 rows computed)
#   pool2 out    3x3  : value for (ph,pw) at row 80*ph+4*pw (169 rows computed)
# Rows outside the valid positions hold harmless finite junk that never feeds a
# valid output; the row counts are the exact minimum so no slice ever reads an
# unwritten or out-of-bounds row.
_R_A1, _R_A2, _R_PF, _R_A3, _R_P2 = 358, 316, 295, 211, 169


def _net_kernel(x_ref, w1_ref, b1_ref, w2_ref, b2_ref, w3_ref, b3_ref,
                fc1w_ref, fc1b_ref, fc2w_ref, fc2b_ref, o_ref,
                a1_ref, a2_ref, pf_ref, a3_ref, p2_ref):
    f32 = jnp.float32
    bf16 = jnp.bfloat16

    # ---- conv1 (1 -> 32 ch, 3x3) + relu: nine shifted multiply-accumulates (VPU).
    acc1 = jnp.zeros((_R_A1, 32), f32) + b1_ref[...]
    for kh in range(3):
        for kw in range(3):
            d = 20 * kh + kw
            xs = x_ref[0, pl.ds(d, _R_A1), :]                # [358, 1]
            wrow = w1_ref[pl.ds(3 * kh + kw, 1), :]          # [1, 32]
            acc1 = acc1 + xs * wrow
    a1_ref[...] = jnp.maximum(acc1, 0.0)

    # ---- conv2 (32 -> 64 ch): nine shifted-slice MXU matmuls, bf16 in / f32 acc.
    acc2 = jnp.zeros((_R_A2, 64), f32) + b2_ref[...]
    for kh in range(3):
        for kw in range(3):
            d = 20 * kh + kw
            lhs = a1_ref[pl.ds(d, _R_A2), :].astype(bf16)    # [316, 32]
            acc2 = acc2 + jnp.dot(lhs, w2_ref[3 * kh + kw],
                                  preferred_element_type=f32)
    a2_ref[...] = acc2

    # ---- maxpool 2x2 + relu (2x2 window = flat offsets {0, 1, 20, 21}).
    pf = jnp.maximum(
        jnp.maximum(a2_ref[pl.ds(0, _R_PF), :], a2_ref[pl.ds(1, _R_PF), :]),
        jnp.maximum(a2_ref[pl.ds(20, _R_PF), :], a2_ref[pl.ds(21, _R_PF), :]))
    pf_ref[...] = jnp.maximum(pf, 0.0)

    # ---- conv3 (64 -> 64 ch) over the spread pooled layout (offsets 40*kh+2*kw).
    acc3 = jnp.zeros((_R_A3, 64), f32) + b3_ref[...]
    for kh in range(3):
        for kw in range(3):
            d = 40 * kh + 2 * kw
            lhs = pf_ref[pl.ds(d, _R_A3), :].astype(bf16)    # [211, 64]
            acc3 = acc3 + jnp.dot(lhs, w3_ref[3 * kh + kw],
                                  preferred_element_type=f32)
    a3_ref[...] = acc3

    # ---- maxpool 2x2 + relu (2x2 window = flat offsets {0, 2, 40, 42}).
    p2 = jnp.maximum(
        jnp.maximum(a3_ref[pl.ds(0, _R_P2), :], a3_ref[pl.ds(2, _R_P2), :]),
        jnp.maximum(a3_ref[pl.ds(40, _R_P2), :], a3_ref[pl.ds(42, _R_P2), :]))
    p2_ref[...] = jnp.maximum(p2, 0.0)

    # ---- fc1 (576 -> 128) + relu.  PyTorch's (c, h, w) flatten order is baked
    # into the packed weight, so we just accumulate the 9 spatial positions.
    h1 = fc1b_ref[...]                                       # [1, 128]
    for ph in range(3):
        for pw in range(3):
            row = p2_ref[pl.ds(80 * ph + 4 * pw, 1), :].astype(bf16)   # [1, 64]
            h1 = h1 + jnp.dot(row, fc1w_ref[3 * ph + pw],
                              preferred_element_type=f32)
    h1 = jnp.maximum(h1, 0.0)

    # ---- fc2 (128 -> 10) + log_softmax (f32 epilogue).
    logits = jnp.dot(h1, fc2w_ref[...], preferred_element_type=f32) + fc2b_ref[...]
    m = jnp.max(logits, axis=-1, keepdims=True)
    s = logits - m
    lse = jnp.log(jnp.sum(jnp.exp(s), axis=-1, keepdims=True))
    o_ref[0] = s - lse


def net_forward(params, x_nchw):
    """Forward pass matching Net.forward; x_nchw: [N, 1, 20, 20]."""
    n = x_nchw.shape[0]
    x_flat = x_nchw.astype(jnp.float32).reshape(n, 400, 1)   # rows = 20*h + w

    const2 = lambda i: (0, 0)
    const3 = lambda i: (0, 0, 0)
    out = pl.pallas_call(
        _net_kernel,
        out_shape=jax.ShapeDtypeStruct((n, 1, 10), jnp.float32),
        grid_spec=pltpu.PrefetchScalarGridSpec(
            num_scalar_prefetch=0,
            grid=(n,),
            in_specs=[
                pl.BlockSpec((1, 400, 1), lambda i: (i, 0, 0)),   # x (one image/step)
                pl.BlockSpec((9, 32), const2),                    # conv1 weight
                pl.BlockSpec((1, 32), const2),                    # conv1 bias
                pl.BlockSpec((9, 32, 64), const3),                # conv2 weight
                pl.BlockSpec((1, 64), const2),                    # conv2 bias
                pl.BlockSpec((9, 64, 64), const3),                # conv3 weight
                pl.BlockSpec((1, 64), const2),                    # conv3 bias
                pl.BlockSpec((9, 64, 128), const3),               # fc1 weight
                pl.BlockSpec((1, 128), const2),                   # fc1 bias
                pl.BlockSpec((128, 10), const2),                  # fc2 weight
                pl.BlockSpec((1, 10), const2),                    # fc2 bias
            ],
            out_specs=pl.BlockSpec((1, 1, 10), lambda i: (i, 0, 0)),
            scratch_shapes=[
                pltpu.VMEM((_R_A1, 32), jnp.float32),   # conv1 activation
                pltpu.VMEM((_R_A2, 64), jnp.float32),   # conv2 pre-pool
                pltpu.VMEM((_R_PF, 64), jnp.float32),   # pool1 activation
                pltpu.VMEM((_R_A3, 64), jnp.float32),   # conv3 pre-pool
                pltpu.VMEM((_R_P2, 64), jnp.float32),   # pool2 activation
            ]),
        compiler_params=pltpu.CompilerParams(
            dimension_semantics=("parallel",)),
    )(x_flat, params["w1"], params["b1"], params["w2"], params["b2"],
      params["w3"], params["b3"], params["fc1w"], params["fc1b"],
      params["fc2w"], params["fc2b"])
    return out.reshape(n, 10)


# ---------------------------------------------------------------------------
# Parameters: deterministic synthetic init in PyTorch layouts + one-time packing
# ---------------------------------------------------------------------------
def init_torch_params(key):
    ks = jax.random.split(key, 10)

    def u(k, shape, fan_in):
        bound = 1.0 / jnp.sqrt(jnp.float32(fan_in))
        return jax.random.uniform(k, shape, jnp.float32, -bound, bound)

    return {
        "conv1_w": u(ks[0], (32, 1, 3, 3), 9),
        "conv1_b": u(ks[1], (32,), 9),
        "conv2_w": u(ks[2], (64, 32, 3, 3), 32 * 9),
        "conv2_b": u(ks[3], (64,), 32 * 9),
        "conv3_w": u(ks[4], (64, 64, 3, 3), 64 * 9),
        "conv3_b": u(ks[5], (64,), 64 * 9),
        "fc1_w": u(ks[6], (128, 64 * 3 * 3), 64 * 9),
        "fc1_b": u(ks[7], (128,), 64 * 9),
        "fc2_w": u(ks[8], (10, 128), 128),
        "fc2_b": u(ks[9], (10,), 128),
    }


def pack_params(tp, mm_dtype=jnp.bfloat16):
    """One-time repack of PyTorch-layout weights into the kernel layouts.

    Conv weights -> [kh*3+kw, in_ch, out_ch]; fc1 columns are reordered so the
    kernel's (h, w, c) activation order matches PyTorch's (c, h, w) flatten.
    MXU right-hand sides are stored in bf16 (f32 accumulation in-kernel).
    """
    return {
        "w1": jnp.transpose(tp["conv1_w"].reshape(32, 9), (1, 0)),             # [9, 32]
        "b1": tp["conv1_b"].reshape(1, 32),
        "w2": jnp.transpose(tp["conv2_w"], (2, 3, 1, 0)).reshape(9, 32, 64).astype(mm_dtype),
        "b2": tp["conv2_b"].reshape(1, 64),
        "w3": jnp.transpose(tp["conv3_w"], (2, 3, 1, 0)).reshape(9, 64, 64).astype(mm_dtype),
        "b3": tp["conv3_b"].reshape(1, 64),
        "fc1w": jnp.transpose(tp["fc1_w"].reshape(128, 64, 3, 3),
                              (2, 3, 1, 0)).reshape(9, 64, 128).astype(mm_dtype),
        "fc1b": tp["fc1_b"].reshape(1, 128),
        "fc2w": jnp.transpose(tp["fc2_w"], (1, 0)),                            # [128, 10]
        "fc2b": tp["fc2_b"].reshape(1, 10),
    }


def _reference_forward(tp, x):
    """Pure-JAX/XLA reference used only as a correctness check in __main__."""
    def pool2x2(y):  # NCHW, even H/W
        return jnp.maximum(
            jnp.maximum(y[:, :, 0::2, 0::2], y[:, :, 0::2, 1::2]),
            jnp.maximum(y[:, :, 1::2, 0::2], y[:, :, 1::2, 1::2]))

    y = jax.lax.conv(x, tp["conv1_w"], (1, 1), "VALID") + tp["conv1_b"].reshape(1, -1, 1, 1)
    y = jax.nn.relu(y)
    y = jax.lax.conv(y, tp["conv2_w"], (1, 1), "VALID") + tp["conv2_b"].reshape(1, -1, 1, 1)
    y = jax.nn.relu(pool2x2(y))
    y = jax.lax.conv(y, tp["conv3_w"], (1, 1), "VALID") + tp["conv3_b"].reshape(1, -1, 1, 1)
    y = jax.nn.relu(pool2x2(y))
    y = y.reshape(y.shape[0], -1)                     # PyTorch (c, h, w) flatten
    y = jax.nn.relu(y @ tp["fc1_w"].T + tp["fc1_b"])
    y = y @ tp["fc2_w"].T + tp["fc2_b"]
    return jax.nn.log_softmax(y, axis=-1)


if __name__ == "__main__":
    key = jax.random.PRNGKey(0)
    pkey, xkey = jax.random.split(key)
    torch_params = init_torch_params(pkey)
    params = pack_params(torch_params)

    # 20x20 single-channel input: 20 ->(conv)18 ->(conv)16 ->(pool)8 ->(conv)6 ->(pool)3
    x = jax.random.normal(xkey, (2, 1, 20, 20), dtype=jnp.float32)

    out = jax.block_until_ready(jax.jit(net_forward)(params, x))

    assert out.shape == (2, 10), out.shape
    row_sums = jnp.sum(jnp.exp(out), axis=1)          # log_softmax rows sum to 1
    assert bool(jnp.all(jnp.abs(row_sums - 1.0) < 1e-3)), row_sums

    ref = _reference_forward(torch_params, x)
    max_err = float(jnp.max(jnp.abs(out - ref)))
    assert max_err < 5e-2, f"mismatch vs XLA reference: {max_err}"
    print("KERNEL_OK")
</pallas_src>

<mosaic_0001>
module attributes {stable_mosaic.version = 11 : i64} {
  func.func @_net_kernel(%arg0: i32, %arg1: memref<1x400x1xf32, #tpu.memory_space<vmem>>, %arg2: memref<9x32xf32, #tpu.memory_space<vmem>>, %arg3: memref<1x32xf32, #tpu.memory_space<vmem>>, %arg4: memref<9x32x64xbf16, #tpu.memory_space<vmem>>, %arg5: memref<1x64xf32, #tpu.memory_space<vmem>>, %arg6: memref<9x64x64xbf16, #tpu.memory_space<vmem>>, %arg7: memref<1x64xf32, #tpu.memory_space<vmem>>, %arg8: memref<9x64x128xbf16, #tpu.memory_space<vmem>>, %arg9: memref<1x128xf32, #tpu.memory_space<vmem>>, %arg10: memref<128x10xf32, #tpu.memory_space<vmem>>, %arg11: memref<1x10xf32, #tpu.memory_space<vmem>>, %arg12: memref<1x1x10xf32, #tpu.memory_space<vmem>>, %arg13: memref<358x32xf32, #tpu.memory_space<vmem>>, %arg14: memref<316x64xf32, #tpu.memory_space<vmem>>, %arg15: memref<295x64xf32, #tpu.memory_space<vmem>>, %arg16: memref<211x64xf32, #tpu.memory_space<vmem>>, %arg17: memref<169x64xf32, #tpu.memory_space<vmem>>) attributes {dimension_semantics = [#tpu.dimension_semantics<parallel>], iteration_bounds = array<i64: 2>, scalar_prefetch = 0 : i64, scratch_operands = 5 : i64, tpu.core_type = #tpu.core_type<tc>, window_params = [{transform_indices = @transform_0, window_bounds = array<i64: 1, 400, 1>}, {pipeline_mode = #tpu.pipeline_mode<synchronous>, transform_indices = @transform_1, window_bounds = array<i64: 9, 32>}, {pipeline_mode = #tpu.pipeline_mode<synchronous>, transform_indices = @transform_2, window_bounds = array<i64: 1, 32>}, {pipeline_mode = #tpu.pipeline_mode<synchronous>, transform_indices = @transform_3, window_bounds = array<i64: 9, 32, 64>}, {pipeline_mode = #tpu.pipeline_mode<synchronous>, transform_indices = @transform_4, window_bounds = array<i64: 1, 64>}, {pipeline_mode = #tpu.pipeline_mode<synchronous>, transform_indices = @transform_5, window_bounds = array<i64: 9, 64, 64>}, {pipeline_mode = #tpu.pipeline_mode<synchronous>, transform_indices = @transform_6, window_bounds = array<i64: 1, 64>}, {pipeline_mode = #tpu.pipeline_mode<synchronous>, transform_indices = @transform_7, window_bounds = array<i64: 9, 64, 128>}, {pipeline_mode = #tpu.pipeline_mode<synchronous>, transform_indices = @transform_8, window_bounds = array<i64: 1, 128>}, {pipeline_mode = #tpu.pipeline_mode<synchronous>, transform_indices = @transform_9, window_bounds = array<i64: 128, 10>}, {pipeline_mode = #tpu.pipeline_mode<synchronous>, transform_indices = @transform_10, window_bounds = array<i64: 1, 10>}, {transform_indices = @transform_11, window_bounds = array<i64: 1, 1, 10>}]} {
    %cst = arith.constant 0.000000e+00 : f32
    %0 = vector.broadcast %cst : f32 to vector<358x32xf32>
    %c0 = arith.constant 0 : index
    %c0_0 = arith.constant 0 : index
    %1 = vector.load %arg3[%c0, %c0_0] : memref<1x32xf32, #tpu.memory_space<vmem>>, vector<1x32xf32>
    %2 = vector.broadcast %1 : vector<1x32xf32> to vector<358x32xf32>
    %3 = arith.addf %0, %2 : vector<358x32xf32>
    %c0_1 = arith.constant 0 : index
    %c0_2 = arith.constant 0 : index
    %c0_3 = arith.constant 0 : index
    %4 = vector.load %arg1[%c0_1, %c0_2, %c0_3] : memref<1x400x1xf32, #tpu.memory_space<vmem>>, vector<1x358x1xf32>
    %5 = vector.shape_cast %4 : vector<1x358x1xf32> to vector<358x1xf32>
    %c0_4 = arith.constant 0 : index
    %c0_5 = arith.constant 0 : index
    %6 = vector.load %arg2[%c0_4, %c0_5] : memref<9x32xf32, #tpu.memory_space<vmem>>, vector<1x32xf32>
    %7 = vector.broadcast %5 : vector<358x1xf32> to vector<358x32xf32>
    %8 = vector.broadcast %6 : vector<1x32xf32> to vector<358x32xf32>
    %9 = arith.mulf %7, %8 : vector<358x32xf32>
    %10 = arith.addf %3, %9 : vector<358x32xf32>
    %c0_6 = arith.constant 0 : index
    %c1 = arith.constant 1 : index
    %c0_7 = arith.constant 0 : index
    %11 = vector.load %arg1[%c0_6, %c1, %c0_7] : memref<1x400x1xf32, #tpu.memory_space<vmem>>, vector<1x358x1xf32>
    %12 = vector.shape_cast %11 : vector<1x358x1xf32> to vector<358x1xf32>
    %c1_8 = arith.constant 1 : index
    %c0_9 = arith.constant 0 : index
    %13 = vector.load %arg2[%c1_8, %c0_9] : memref<9x32xf32, #tpu.memory_space<vmem>>, vector<1x32xf32>
    %14 = vector.broadcast %12 : vector<358x1xf32> to vector<358x32xf32>
    %15 = vector.broadcast %13 : vector<1x32xf32> to vector<358x32xf32>
    %16 = arith.mulf %14, %15 : vector<358x32xf32>
    %17 = arith.addf %10, %16 : vector<358x32xf32>
    %c0_10 = arith.constant 0 : index
    %c2 = arith.constant 2 : index
    %c0_11 = arith.constant 0 : index
    %18 = vector.load %arg1[%c0_10, %c2, %c0_11] : memref<1x400x1xf32, #tpu.memory_space<vmem>>, vector<1x358x1xf32>
    %19 = vector.shape_cast %18 : vector<1x358x1xf32> to vector<358x1xf32>
    %c2_12 = arith.constant 2 : index
    %c0_13 = arith.constant 0 : index
    %20 = vector.load %arg2[%c2_12, %c0_13] : memref<9x32xf32, #tpu.memory_space<vmem>>, vector<1x32xf32>
    %21 = vector.broadcast %19 : vector<358x1xf32> to vector<358x32xf32>
    %22 = vector.broadcast %20 : vector<1x32xf32> to vector<358x32xf32>
    %23 = arith.mulf %21, %22 : vector<358x32xf32>
    %24 = arith.addf %17, %23 : vector<358x32xf32>
    %c0_14 = arith.constant 0 : index
    %c20 = arith.constant 20 : index
    %c0_15 = arith.constant 0 : index
    %25 = vector.load %arg1[%c0_14, %c20, %c0_15] : memref<1x400x1xf32, #tpu.memory_space<vmem>>, vector<1x358x1xf32>
    %26 = vector.shape_cast %25 : vector<1x358x1xf32> to vector<358x1xf32>
    %c3 = arith.constant 3 : index
    %c0_16 = arith.constant 0 : index
    %27 = vector.load %arg2[%c3, %c0_16] : memref<9x32xf32, #tpu.memory_space<vmem>>, vector<1x32xf32>
    %28 = vector.broadcast %26 : vector<358x1xf32> to vector<358x32xf32>
    %29 = vector.broadcast %27 : vector<1x32xf32> to vector<358x32xf32>
    %30 = arith.mulf %28, %29 : vector<358x32xf32>
    %31 = arith.addf %24, %30 : vector<358x32xf32>
    %c0_17 = arith.constant 0 : index
    %c21 = arith.constant 21 : index
    %c0_18 = arith.constant 0 : index
    %32 = vector.load %arg1[%c0_17, %c21, %c0_18] : memref<1x400x1xf32, #tpu.memory_space<vmem>>, vector<1x358x1xf32>
    %33 = vector.shape_cast %32 : vector<1x358x1xf32> to vector<358x1xf32>
    %c4 = arith.constant 4 : index
    %c0_19 = arith.constant 0 : index
    %34 = vector.load %arg2[%c4, %c0_19] : memref<9x32xf32, #tpu.memory_space<vmem>>, vector<1x32xf32>
    %35 = vector.broadcast %33 : vector<358x1xf32> to vector<358x32xf32>
    %36 = vector.broadcast %34 : vector<1x32xf32> to vector<358x32xf32>
    %37 = arith.mulf %35, %36 : vector<358x32xf32>
    %38 = arith.addf %31, %37 : vector<358x32xf32>
    %c0_20 = arith.constant 0 : index
    %c22 = arith.constant 22 : index
    %c0_21 = arith.constant 0 : index
    %39 = vector.load %arg1[%c0_20, %c22, %c0_21] : memref<1x400x1xf32, #tpu.memory_space<vmem>>, vector<1x358x1xf32>
    %40 = vector.shape_cast %39 : vector<1x358x1xf32> to vector<358x1xf32>
    %c5 = arith.constant 5 : index
    %c0_22 = arith.constant 0 : index
    %41 = vector.load %arg2[%c5, %c0_22] : memref<9x32xf32, #tpu.memory_space<vmem>>, vector<1x32xf32>
    %42 = vector.broadcast %40 : vector<358x1xf32> to vector<358x32xf32>
    %43 = vector.broadcast %41 : vector<1x32xf32> to vector<358x32xf32>
    %44 = arith.mulf %42, %43 : vector<358x32xf32>
    %45 = arith.addf %38, %44 : vector<358x32xf32>
    %c0_23 = arith.constant 0 : index
    %c40 = arith.constant 40 : index
    %c0_24 = arith.constant 0 : index
    %46 = vector.load %arg1[%c0_23, %c40, %c0_24] : memref<1x400x1xf32, #tpu.memory_space<vmem>>, vector<1x358x1xf32>
    %47 = vector.shape_cast %46 : vector<1x358x1xf32> to vector<358x1xf32>
    %c6 = arith.constant 6 : index
    %c0_25 = arith.constant 0 : index
    %48 = vector.load %arg2[%c6, %c0_25] : memref<9x32xf32, #tpu.memory_space<vmem>>, vector<1x32xf32>
    %49 = vector.broadcast %47 : vector<358x1xf32> to vector<358x32xf32>
    %50 = vector.broadcast %48 : vector<1x32xf32> to vector<358x32xf32>
    %51 = arith.mulf %49, %50 : vector<358x32xf32>
    %52 = arith.addf %45, %51 : vector<358x32xf32>
    %c0_26 = arith.constant 0 : index
    %c41 = arith.constant 41 : index
    %c0_27 = arith.constant 0 : index
    %53 = vector.load %arg1[%c0_26, %c41, %c0_27] : memref<1x400x1xf32, #tpu.memory_space<vmem>>, vector<1x358x1xf32>
    %54 = vector.shape_cast %53 : vector<1x358x1xf32> to vector<358x1xf32>
    %c7 = arith.constant 7 : index
    %c0_28 = arith.constant 0 : index
    %55 = vector.load %arg2[%c7, %c0_28] : memref<9x32xf32, #tpu.memory_space<vmem>>, vector<1x32xf32>
    %56 = vector.broadcast %54 : vector<358x1xf32> to vector<358x32xf32>
    %57 = vector.broadcast %55 : vector<1x32xf32> to vector<358x32xf32>
    %58 = arith.mulf %56, %57 : vector<358x32xf32>
    %59 = arith.addf %52, %58 : vector<358x32xf32>
    %c0_29 = arith.constant 0 : index
    %c42 = arith.constant 42 : index
    %c0_30 = arith.constant 0 : index
    %60 = vector.load %arg1[%c0_29, %c42, %c0_30] : memref<1x400x1xf32, #tpu.memory_space<vmem>>, vector<1x358x1xf32>
    %61 = vector.shape_cast %60 : vector<1x358x1xf32> to vector<358x1xf32>
    %c8 = arith.constant 8 : index
    %c0_31 = arith.constant 0 : index
    %62 = vector.load %arg2[%c8, %c0_31] : memref<9x32xf32, #tpu.memory_space<vmem>>, vector<1x32xf32>
    %63 = vector.broadcast %61 : vector<358x1xf32> to vector<358x32xf32>
    %64 = vector.broadcast %62 : vector<1x32xf32> to vector<358x32xf32>
    %65 = arith.mulf %63, %64 : vector<358x32xf32>
    %66 = arith.addf %59, %65 : vector<358x32xf32>
    %cst_32 = arith.constant 0.000000e+00 : f32
    %67 = vector.broadcast %cst_32 : f32 to vector<358x32xf32>
    %68 = arith.maximumf %66, %67 : vector<358x32xf32>
    %c0_33 = arith.constant 0 : index
    %c0_34 = arith.constant 0 : index
    %69 = vector.load %arg13[%c0_33, %c0_34] : memref<358x32xf32, #tpu.memory_space<vmem>>, vector<358x32xf32>
    tpu.vector_store %arg13[%c0_33, %c0_34], %68 {strides = array<i32>} : memref<358x32xf32, #tpu.memory_space<vmem>>, vector<358x32xf32>,
    %cst_35 = arith.constant 0.000000e+00 : f32
    %70 = vector.broadcast %cst_35 : f32 to vector<316x64xf32>
    %c0_36 = arith.constant 0 : index
    %c0_37 = arith.constant 0 : index
    %71 = vector.load %arg5[%c0_36, %c0_37] : memref<1x64xf32, #tpu.memory_space<vmem>>, vector<1x64xf32>
    %72 = vector.broadcast %71 : vector<1x64xf32> to vector<316x64xf32>
    %73 = arith.addf %70, %72 : vector<316x64xf32>
    %c0_38 = arith.constant 0 : index
    %c0_39 = arith.constant 0 : index
    %74 = vector.load %arg13[%c0_38, %c0_39] : memref<358x32xf32, #tpu.memory_space<vmem>>, vector<316x32xf32>
    %75 = arith.truncf %74 : vector<316x32xf32> to vector<316x32xbf16>
    %c0_40 = arith.constant 0 : index
    %c0_41 = arith.constant 0 : index
    %c0_42 = arith.constant 0 : index
    %76 = vector.load %arg4[%c0_40, %c0_41, %c0_42] : memref<9x32x64xbf16, #tpu.memory_space<vmem>>, vector<1x32x64xbf16>
    %77 = vector.shape_cast %76 : vector<1x32x64xbf16> to vector<32x64xbf16>
    %cst_43 = arith.constant dense<0.000000e+00> : vector<316x64xf32>
    %78 = tpu.matmul %75, %77, %cst_43 {dimension_numbers = #tpu.dot_dimension_numbers<[1], [0], [0], [1], [0, 0, 1, 1], [], []>} : vector<316x32xbf16>, vector<32x64xbf16>, vector<316x64xf32> -> vector<316x64xf32>
    %79 = arith.addf %73, %78 : vector<316x64xf32>
    %c1_44 = arith.constant 1 : index
    %c0_45 = arith.constant 0 : index
    %80 = vector.load %arg13[%c1_44, %c0_45] : memref<358x32xf32, #tpu.memory_space<vmem>>, vector<316x32xf32>
    %81 = arith.truncf %80 : vector<316x32xf32> to vector<316x32xbf16>
    %c1_46 = arith.constant 1 : index
    %c0_47 = arith.constant 0 : index
    %c0_48 = arith.constant 0 : index
    %82 = vector.load %arg4[%c1_46, %c0_47, %c0_48] : memref<9x32x64xbf16, #tpu.memory_space<vmem>>, vector<1x32x64xbf16>
    %83 = vector.shape_cast %82 : vector<1x32x64xbf16> to vector<32x64xbf16>
    %cst_49 = arith.constant dense<0.000000e+00> : vector<316x64xf32>
    %84 = tpu.matmul %81, %83, %cst_49 {dimension_numbers = #tpu.dot_dimension_numbers<[1], [0], [0], [1], [0, 0, 1, 1], [], []>} : vector<316x32xbf16>, vector<32x64xbf16>, vector<316x64xf32> -> vector<316x64xf32>
    %85 = arith.addf %79, %84 : vector<316x64xf32>
    %c2_50 = arith.constant 2 : index
    %c0_51 = arith.constant 0 : index
    %86 = vector.load %arg13[%c2_50, %c0_51] : memref<358x32xf32, #tpu.memory_space<vmem>>, vector<316x32xf32>
    %87 = arith.truncf %86 : vector<316x32xf32> to vector<316x32xbf16>
    %c2_52 = arith.constant 2 : index
    %c0_53 = arith.constant 0 : index
    %c0_54 = arith.constant 0 : index
    %88 = vector.load %arg4[%c2_52, %c0_53, %c0_54] : memref<9x32x64xbf16, #tpu.memory_space<vmem>>, vector<1x32x64xbf16>
    %89 = vector.shape_cast %88 : vector<1x32x64xbf16> to vector<32x64xbf16>
    %cst_55 = arith.constant dense<0.000000e+00> : vector<316x64xf32>
    %90 = tpu.matmul %87, %89, %cst_55 {dimension_numbers = #tpu.dot_dimension_numbers<[1], [0], [0], [1], [0, 0, 1, 1], [], []>} : vector<316x32xbf16>, vector<32x64xbf16>, vector<316x64xf32> -> vector<316x64xf32>
    %91 = arith.addf %85, %90 : vector<316x64xf32>
    %c20_56 = arith.constant 20 : index
    %c0_57 = arith.constant 0 : index
    %92 = vector.load %arg13[%c20_56, %c0_57] : memref<358x32xf32, #tpu.memory_space<vmem>>, vector<316x32xf32>
    %93 = arith.truncf %92 : vector<316x32xf32> to vector<316x32xbf16>
    %c3_58 = arith.constant 3 : index
    %c0_59 = arith.constant 0 : index
    %c0_60 = arith.constant 0 : index
    %94 = vector.load %arg4[%c3_58, %c0_59, %c0_60] : memref<9x32x64xbf16, #tpu.memory_space<vmem>>, vector<1x32x64xbf16>
    %95 = vector.shape_cast %94 : vector<1x32x64xbf16> to vector<32x64xbf16>
    %cst_61 = arith.constant dense<0.000000e+00> : vector<316x64xf32>
    %96 = tpu.matmul %93, %95, %cst_61 {dimension_numbers = #tpu.dot_dimension_numbers<[1], [0], [0], [1], [0, 0, 1, 1], [], []>} : vector<316x32xbf16>, vector<32x64xbf16>, vector<316x64xf32> -> vector<316x64xf32>
    %97 = arith.addf %91, %96 : vector<316x64xf32>
    %c21_62 = arith.constant 21 : index
    %c0_63 = arith.constant 0 : index
    %98 = vector.load %arg13[%c21_62, %c0_63] : memref<358x32xf32, #tpu.memory_space<vmem>>, vector<316x32xf32>
    %99 = arith.truncf %98 : vector<316x32xf32> to vector<316x32xbf16>
    %c4_64 = arith.constant 4 : index
    %c0_65 = arith.constant 0 : index
    %c0_66 = arith.constant 0 : index
    %100 = vector.load %arg4[%c4_64, %c0_65, %c0_66] : memref<9x32x64xbf16, #tpu.memory_space<vmem>>, vector<1x32x64xbf16>
    %101 = vector.shape_cast %100 : vector<1x32x64xbf16> to vector<32x64xbf16>
    %cst_67 = arith.constant dense<0.000000e+00> : vector<316x64xf32>
    %102 = tpu.matmul %99, %101, %cst_67 {dimension_numbers = #tpu.dot_dimension_numbers<[1], [0], [0], [1], [0, 0, 1, 1], [], []>} : vector<316x32xbf16>, vector<32x64xbf16>, vector<316x64xf32> -> vector<316x64xf32>
    %103 = arith.addf %97, %102 : vector<316x64xf32>
    %c22_68 = arith.constant 22 : index
    %c0_69 = arith.constant 0 : index
    %104 = vector.load %arg13[%c22_68, %c0_69] : memref<358x32xf32, #tpu.memory_space<vmem>>, vector<316x32xf32>
    %105 = arith.truncf %104 : vector<316x32xf32> to vector<316x32xbf16>
    %c5_70 = arith.constant 5 : index
    %c0_71 = arith.constant 0 : index
    %c0_72 = arith.constant 0 : index
    %106 = vector.load %arg4[%c5_70, %c0_71, %c0_72] : memref<9x32x64xbf16, #tpu.memory_space<vmem>>, vector<1x32x64xbf16>
    %107 = vector.shape_cast %106 : vector<1x32x64xbf16> to vector<32x64xbf16>
    %cst_73 = arith.constant dense<0.000000e+00> : vector<316x64xf32>
    %108 = tpu.matmul %105, %107, %cst_73 {dimension_numbers = #tpu.dot_dimension_numbers<[1], [0], [0], [1], [0, 0, 1, 1], [], []>} : vector<316x32xbf16>, vector<32x64xbf16>, vector<316x64xf32> -> vector<316x64xf32>
    %109 = arith.addf %103, %108 : vector<316x64xf32>
    %c40_74 = arith.constant 40 : index
    %c0_75 = arith.constant 0 : index
    %110 = vector.load %arg13[%c40_74, %c0_75] : memref<358x32xf32, #tpu.memory_space<vmem>>, vector<316x32xf32>
    %111 = arith.truncf %110 : vector<316x32xf32> to vector<316x32xbf16>
    %c6_76 = arith.constant 6 : index
    %c0_77 = arith.constant 0 : index
    %c0_78 = arith.constant 0 : index
    %112 = vector.load %arg4[%c6_76, %c0_77, %c0_78] : memref<9x32x64xbf16, #tpu.memory_space<vmem>>, vector<1x32x64xbf16>
    %113 = vector.shape_cast %112 : vector<1x32x64xbf16> to vector<32x64xbf16>
    %cst_79 = arith.constant dense<0.000000e+00> : vector<316x64xf32>
    %114 = tpu.matmul %111, %113, %cst_79 {dimension_numbers = #tpu.dot_dimension_numbers<[1], [0], [0], [1], [0, 0, 1, 1], [], []>} : vector<316x32xbf16>, vector<32x64xbf16>, vector<316x64xf32> -> vector<316x64xf32>
    %115 = arith.addf %109, %114 : vector<316x64xf32>
    %c41_80 = arith.constant 41 : index
    %c0_81 = arith.constant 0 : index
    %116 = vector.load %arg13[%c41_80, %c0_81] : memref<358x32xf32, #tpu.memory_space<vmem>>, vector<316x32xf32>
    %117 = arith.truncf %116 : vector<316x32xf32> to vector<316x32xbf16>
    %c7_82 = arith.constant 7 : index
    %c0_83 = arith.constant 0 : index
    %c0_84 = arith.constant 0 : index
    %118 = vector.load %arg4[%c7_82, %c0_83, %c0_84] : memref<9x32x64xbf16, #tpu.memory_space<vmem>>, vector<1x32x64xbf16>
    %119 = vector.shape_cast %118 : vector<1x32x64xbf16> to vector<32x64xbf16>
    %cst_85 = arith.constant dense<0.000000e+00> : vector<316x64xf32>
    %120 = tpu.matmul %117, %119, %cst_85 {dimension_numbers = #tpu.dot_dimension_numbers<[1], [0], [0], [1], [0, 0, 1, 1], [], []>} : vector<316x32xbf16>, vector<32x64xbf16>, vector<316x64xf32> -> vector<316x64xf32>
    %121 = arith.addf %115, %120 : vector<316x64xf32>
    %c42_86 = arith.constant 42 : index
    %c0_87 = arith.constant 0 : index
    %122 = vector.load %arg13[%c42_86, %c0_87] : memref<358x32xf32, #tpu.memory_space<vmem>>, vector<316x32xf32>
    %123 = arith.truncf %122 : vector<316x32xf32> to vector<316x32xbf16>
    %c8_88 = arith.constant 8 : index
    %c0_89 = arith.constant 0 : index
    %c0_90 = arith.constant 0 : index
    %124 = vector.load %arg4[%c8_88, %c0_89, %c0_90] : memref<9x32x64xbf16, #tpu.memory_space<vmem>>, vector<1x32x64xbf16>
    %125 = vector.shape_cast %124 : vector<1x32x64xbf16> to vector<32x64xbf16>
    %cst_91 = arith.constant dense<0.000000e+00> : vector<316x64xf32>
    %126 = tpu.matmul %123, %125, %cst_91 {dimension_numbers = #tpu.dot_dimension_numbers<[1], [0], [0], [1], [0, 0, 1, 1], [], []>} : vector<316x32xbf16>, vector<32x64xbf16>, vector<316x64xf32> -> vector<316x64xf32>
    %127 = arith.addf %121, %126 : vector<316x64xf32>
    %c0_92 = arith.constant 0 : index
    %c0_93 = arith.constant 0 : index
    %128 = vector.load %arg14[%c0_92, %c0_93] : memref<316x64xf32, #tpu.memory_space<vmem>>, vector<316x64xf32>
    tpu.vector_store %arg14[%c0_92, %c0_93], %127 {strides = array<i32>} : memref<316x64xf32, #tpu.memory_space<vmem>>, vector<316x64xf32>,
    %c0_94 = arith.constant 0 : index
    %c0_95 = arith.constant 0 : index
    %129 = vector.load %arg14[%c0_94, %c0_95] : memref<316x64xf32, #tpu.memory_space<vmem>>, vector<295x64xf32>
    %c1_96 = arith.constant 1 : index
    %c0_97 = arith.constant 0 : index
    %130 = vector.load %arg14[%c1_96, %c0_97] : memref<316x64xf32, #tpu.memory_space<vmem>>, vector<295x64xf32>
    %131 = arith.maximumf %129, %130 : vector<295x64xf32>
    %c20_98 = arith.constant 20 : index
    %c0_99 = arith.constant 0 : index
    %132 = vector.load %arg14[%c20_98, %c0_99] : memref<316x64xf32, #tpu.memory_space<vmem>>, vector<295x64xf32>
    %c21_100 = arith.constant 21 : index
    %c0_101 = arith.constant 0 : index
    %133 = vector.load %arg14[%c21_100, %c0_101] : memref<316x64xf32, #tpu.memory_space<vmem>>, vector<295x64xf32>
    %134 = arith.maximumf %132, %133 : vector<295x64xf32>
    %135 = arith.maximumf %131, %134 : vector<295x64xf32>
    %cst_102 = arith.constant 0.000000e+00 : f32
    %136 = vector.broadcast %cst_102 : f32 to vector<295x64xf32>
    %137 = arith.maximumf %135, %136 : vector<295x64xf32>
    %c0_103 = arith.constant 0 : index
    %c0_104 = arith.constant 0 : index
    %138 = vector.load %arg15[%c0_103, %c0_104] : memref<295x64xf32, #tpu.memory_space<vmem>>, vector<295x64xf32>
    tpu.vector_store %arg15[%c0_103, %c0_104], %137 {strides = array<i32>} : memref<295x64xf32, #tpu.memory_space<vmem>>, vector<295x64xf32>,
    %cst_105 = arith.constant 0.000000e+00 : f32
    %139 = vector.broadcast %cst_105 : f32 to vector<211x64xf32>
    %c0_106 = arith.constant 0 : index
    %c0_107 = arith.constant 0 : index
    %140 = vector.load %arg7[%c0_106, %c0_107] : memref<1x64xf32, #tpu.memory_space<vmem>>, vector<1x64xf32>
    %141 = vector.broadcast %140 : vector<1x64xf32> to vector<211x64xf32>
    %142 = arith.addf %139, %141 : vector<211x64xf32>
    %c0_108 = arith.constant 0 : index
    %c0_109 = arith.constant 0 : index
    %143 = vector.load %arg15[%c0_108, %c0_109] : memref<295x64xf32, #tpu.memory_space<vmem>>, vector<211x64xf32>
    %144 = arith.truncf %143 : vector<211x64xf32> to vector<211x64xbf16>
    %c0_110 = arith.constant 0 : index
    %c0_111 = arith.constant 0 : index
    %c0_112 = arith.constant 0 : index
    %145 = vector.load %arg6[%c0_110, %c0_111, %c0_112] : memref<9x64x64xbf16, #tpu.memory_space<vmem>>, vector<1x64x64xbf16>
    %146 = vector.shape_cast %145 : vector<1x64x64xbf16> to vector<64x64xbf16>
    %cst_113 = arith.constant dense<0.000000e+00> : vector<211x64xf32>
    %147 = tpu.matmul %144, %146, %cst_113 {dimension_numbers = #tpu.dot_dimension_numbers<[1], [0], [0], [1], [0, 0, 1, 1], [], []>} : vector<211x64xbf16>, vector<64x64xbf16>, vector<211x64xf32> -> vector<211x64xf32>
    %148 = arith.addf %142, %147 : vector<211x64xf32>
    %c2_114 = arith.constant 2 : index
    %c0_115 = arith.constant 0 : index
    %149 = vector.load %arg15[%c2_114, %c0_115] : memref<295x64xf32, #tpu.memory_space<vmem>>, vector<211x64xf32>
    %150 = arith.truncf %149 : vector<211x64xf32> to vector<211x64xbf16>
    %c1_116 = arith.constant 1 : index
    %c0_117 = arith.constant 0 : index
    %c0_118 = arith.constant 0 : index
    %151 = vector.load %arg6[%c1_116, %c0_117, %c0_118] : memref<9x64x64xbf16, #tpu.memory_space<vmem>>, vector<1x64x64xbf16>
    %152 = vector.shape_cast %151 : vector<1x64x64xbf16> to vector<64x64xbf16>
    %cst_119 = arith.constant dense<0.000000e+00> : vector<211x64xf32>
    %153 = tpu.matmul %150, %152, %cst_119 {dimension_numbers = #tpu.dot_dimension_numbers<[1], [0], [0], [1], [0, 0, 1, 1], [], []>} : vector<211x64xbf16>, vector<64x64xbf16>, vector<211x64xf32> -> vector<211x64xf32>
    %154 = arith.addf %148, %153 : vector<211x64xf32>
    %c4_120 = arith.constant 4 : index
    %c0_121 = arith.constant 0 : index
    %155 = vector.load %arg15[%c4_120, %c0_121] : memref<295x64xf32, #tpu.memory_space<vmem>>, vector<211x64xf32>
    %156 = arith.truncf %155 : vector<211x64xf32> to vector<211x64xbf16>
    %c2_122 = arith.constant 2 : index
    %c0_123 = arith.constant 0 : index
    %c0_124 = arith.constant 0 : index
    %157 = vector.load %arg6[%c2_122, %c0_123, %c0_124] : memref<9x64x64xbf16, #tpu.memory_space<vmem>>, vector<1x64x64xbf16>
    %158 = vector.shape_cast %157 : vector<1x64x64xbf16> to vector<64x64xbf16>
    %cst_125 = arith.constant dense<0.000000e+00> : vector<211x64xf32>
    %159 = tpu.matmul %156, %158, %cst_125 {dimension_numbers = #tpu.dot_dimension_numbers<[1], [0], [0], [1], [0, 0, 1, 1], [], []>} : vector<211x64xbf16>, vector<64x64xbf16>, vector<211x64xf32> -> vector<211x64xf32>
    %160 = arith.addf %154, %159 : vector<211x64xf32>
    %c40_126 = arith.constant 40 : index
    %c0_127 = arith.constant 0 : index
    %161 = vector.load %arg15[%c40_126, %c0_127] : memref<295x64xf32, #tpu.memory_space<vmem>>, vector<211x64xf32>
    %162 = arith.truncf %161 : vector<211x64xf32> to vector<211x64xbf16>
    %c3_128 = arith.constant 3 : index
    %c0_129 = arith.constant 0 : index
    %c0_130 = arith.constant 0 : index
    %163 = vector.load %arg6[%c3_128, %c0_129, %c0_130] : memref<9x64x64xbf16, #tpu.memory_space<vmem>>, vector<1x64x64xbf16>
    %164 = vector.shape_cast %163 : vector<1x64x64xbf16> to vector<64x64xbf16>
    %cst_131 = arith.constant dense<0.000000e+00> : vector<211x64xf32>
    %165 = tpu.matmul %162, %164, %cst_131 {dimension_numbers = #tpu.dot_dimension_numbers<[1], [0], [0], [1], [0, 0, 1, 1], [], []>} : vector<211x64xbf16>, vector<64x64xbf16>, vector<211x64xf32> -> vector<211x64xf32>
    %166 = arith.addf %160, %165 : vector<211x64xf32>
    %c42_132 = arith.constant 42 : index
    %c0_133 = arith.constant 0 : index
    %167 = vector.load %arg15[%c42_132, %c0_133] : memref<295x64xf32, #tpu.memory_space<vmem>>, vector<211x64xf32>
    %168 = arith.truncf %167 : vector<211x64xf32> to vector<211x64xbf16>
    %c4_134 = arith.constant 4 : index
    %c0_135 = arith.constant 0 : index
    %c0_136 = arith.constant 0 : index
    %169 = vector.load %arg6[%c4_134, %c0_135, %c0_136] : memref<9x64x64xbf16, #tpu.memory_space<vmem>>, vector<1x64x64xbf16>
    %170 = vector.shape_cast %169 : vector<1x64x64xbf16> to vector<64x64xbf16>
    %cst_137 = arith.constant dense<0.000000e+00> : vector<211x64xf32>
    %171 = tpu.matmul %168, %170, %cst_137 {dimension_numbers = #tpu.dot_dimension_numbers<[1], [0], [0], [1], [0, 0, 1, 1], [], []>} : vector<211x64xbf16>, vector<64x64xbf16>, vector<211x64xf32> -> vector<211x64xf32>
    %172 = arith.addf %166, %171 : vector<211x64xf32>
    %c44 = arith.constant 44 : index
    %c0_138 = arith.constant 0 : index
    %173 = vector.load %arg15[%c44, %c0_138] : memref<295x64xf32, #tpu.memory_space<vmem>>, vector<211x64xf32>
    %174 = arith.truncf %173 : vector<211x64xf32> to vector<211x64xbf16>
    %c5_139 = arith.constant 5 : index
    %c0_140 = arith.constant 0 : index
    %c0_141 = arith.constant 0 : index
    %175 = vector.load %arg6[%c5_139, %c0_140, %c0_141] : memref<9x64x64xbf16, #tpu.memory_space<vmem>>, vector<1x64x64xbf16>
    %176 = vector.shape_cast %175 : vector<1x64x64xbf16> to vector<64x64xbf16>
    %cst_142 = arith.constant dense<0.000000e+00> : vector<211x64xf32>
    %177 = tpu.matmul %174, %176, %cst_142 {dimension_numbers = #tpu.dot_dimension_numbers<[1], [0], [0], [1], [0, 0, 1, 1], [], []>} : vector<211x64xbf16>, vector<64x64xbf16>, vector<211x64xf32> -> vector<211x64xf32>
    %178 = arith.addf %172, %177 : vector<211x64xf32>
    %c80 = arith.constant 80 : index
    %c0_143 = arith.constant 0 : index
    %179 = vector.load %arg15[%c80, %c0_143] : memref<295x64xf32, #tpu.memory_space<vmem>>, vector<211x64xf32>
    %180 = arith.truncf %179 : vector<211x64xf32> to vector<211x64xbf16>
    %c6_144 = arith.constant 6 : index
    %c0_145 = arith.constant 0 : index
    %c0_146 = arith.constant 0 : index
    %181 = vector.load %arg6[%c6_144, %c0_145, %c0_146] : memref<9x64x64xbf16, #tpu.memory_space<vmem>>, vector<1x64x64xbf16>
    %182 = vector.shape_cast %181 : vector<1x64x64xbf16> to vector<64x64xbf16>
    %cst_147 = arith.constant dense<0.000000e+00> : vector<211x64xf32>
    %183 = tpu.matmul %180, %182, %cst_147 {dimension_numbers = #tpu.dot_dimension_numbers<[1], [0], [0], [1], [0, 0, 1, 1], [], []>} : vector<211x64xbf16>, vector<64x64xbf16>, vector<211x64xf32> -> vector<211x64xf32>
    %184 = arith.addf %178, %183 : vector<211x64xf32>
    %c82 = arith.constant 82 : index
    %c0_148 = arith.constant 0 : index
    %185 = vector.load %arg15[%c82, %c0_148] : memref<295x64xf32, #tpu.memory_space<vmem>>, vector<211x64xf32>
    %186 = arith.truncf %185 : vector<211x64xf32> to vector<211x64xbf16>
    %c7_149 = arith.constant 7 : index
    %c0_150 = arith.constant 0 : index
    %c0_151 = arith.constant 0 : index
    %187 = vector.load %arg6[%c7_149, %c0_150, %c0_151] : memref<9x64x64xbf16, #tpu.memory_space<vmem>>, vector<1x64x64xbf16>
    %188 = vector.shape_cast %187 : vector<1x64x64xbf16> to vector<64x64xbf16>
    %cst_152 = arith.constant dense<0.000000e+00> : vector<211x64xf32>
    %189 = tpu.matmul %186, %188, %cst_152 {dimension_numbers = #tpu.dot_dimension_numbers<[1], [0], [0], [1], [0, 0, 1, 1], [], []>} : vector<211x64xbf16>, vector<64x64xbf16>, vector<211x64xf32> -> vector<211x64xf32>
    %190 = arith.addf %184, %189 : vector<211x64xf32>
    %c84 = arith.constant 84 : index
    %c0_153 = arith.constant 0 : index
    %191 = vector.load %arg15[%c84, %c0_153] : memref<295x64xf32, #tpu.memory_space<vmem>>, vector<211x64xf32>
    %192 = arith.truncf %191 : vector<211x64xf32> to vector<211x64xbf16>
    %c8_154 = arith.constant 8 : index
    %c0_155 = arith.constant 0 : index
    %c0_156 = arith.constant 0 : index
    %193 = vector.load %arg6[%c8_154, %c0_155, %c0_156] : memref<9x64x64xbf16, #tpu.memory_space<vmem>>, vector<1x64x64xbf16>
    %194 = vector.shape_cast %193 : vector<1x64x64xbf16> to vector<64x64xbf16>
    %cst_157 = arith.constant dense<0.000000e+00> : vector<211x64xf32>
    %195 = tpu.matmul %192, %194, %cst_157 {dimension_numbers = #tpu.dot_dimension_numbers<[1], [0], [0], [1], [0, 0, 1, 1], [], []>} : vector<211x64xbf16>, vector<64x64xbf16>, vector<211x64xf32> -> vector<211x64xf32>
    %196 = arith.addf %190, %195 : vector<211x64xf32>
    %c0_158 = arith.constant 0 : index
    %c0_159 = arith.constant 0 : index
    %197 = vector.load %arg16[%c0_158, %c0_159] : memref<211x64xf32, #tpu.memory_space<vmem>>, vector<211x64xf32>
    tpu.vector_store %arg16[%c0_158, %c0_159], %196 {strides = array<i32>} : memref<211x64xf32, #tpu.memory_space<vmem>>, vector<211x64xf32>,
    %c0_160 = arith.constant 0 : index
    %c0_161 = arith.constant 0 : index
    %198 = vector.load %arg16[%c0_160, %c0_161] : memref<211x64xf32, #tpu.memory_space<vmem>>, vector<169x64xf32>
    %c2_162 = arith.constant 2 : index
    %c0_163 = arith.constant 0 : index
    %199 = vector.load %arg16[%c2_162, %c0_163] : memref<211x64xf32, #tpu.memory_space<vmem>>, vector<169x64xf32>
    %200 = arith.maximumf %198, %199 : vector<169x64xf32>
    %c40_164 = arith.constant 40 : index
    %c0_165 = arith.constant 0 : index
    %201 = vector.load %arg16[%c40_164, %c0_165] : memref<211x64xf32, #tpu.memory_space<vmem>>, vector<169x64xf32>
    %c42_166 = arith.constant 42 : index
    %c0_167 = arith.constant 0 : index
    %202 = vector.load %arg16[%c42_166, %c0_167] : memref<211x64xf32, #tpu.memory_space<vmem>>, vector<169x64xf32>
    %203 = arith.maximumf %201, %202 : vector<169x64xf32>
    %204 = arith.maximumf %200, %203 : vector<169x64xf32>
    %cst_168 = arith.constant 0.000000e+00 : f32
    %205 = vector.broadcast %cst_168 : f32 to vector<169x64xf32>
    %206 = arith.maximumf %204, %205 : vector<169x64xf32>
    %c0_169 = arith.constant 0 : index
    %c0_170 = arith.constant 0 : index
    %207 = vector.load %arg17[%c0_169, %c0_170] : memref<169x64xf32, #tpu.memory_space<vmem>>, vector<169x64xf32>
    tpu.vector_store %arg17[%c0_169, %c0_170], %206 {strides = array<i32>} : memref<169x64xf32, #tpu.memory_space<vmem>>, vector<169x64xf32>,
    %c0_171 = arith.constant 0 : index
    %c0_172 = arith.constant 0 : index
    %208 = vector.load %arg9[%c0_171, %c0_172] : memref<1x128xf32, #tpu.memory_space<vmem>>, vector<1x128xf32>
    %c0_173 = arith.constant 0 : index
    %c0_174 = arith.constant 0 : index
    %209 = vector.load %arg17[%c0_173, %c0_174] : memref<169x64xf32, #tpu.memory_space<vmem>>, vector<1x64xf32>
    %210 = arith.truncf %209 : vector<1x64xf32> to vector<1x64xbf16>
    %c0_175 = arith.constant 0 : index
    %c0_176 = arith.constant 0 : index
    %c0_177 = arith.constant 0 : index
    %211 = vector.load %arg8[%c0_175, %c0_176, %c0_177] : memref<9x64x128xbf16, #tpu.memory_space<vmem>>, vector<1x64x128xbf16>
    %212 = vector.shape_cast %211 : vector<1x64x128xbf16> to vector<64x128xbf16>
    %cst_178 = arith.constant dense<0.000000e+00> : vector<1x128xf32>
    %213 = tpu.matmul %210, %212, %cst_178 {dimension_numbers = #tpu.dot_dimension_numbers<[1], [0], [0], [1], [0, 0, 1, 1], [], []>} : vector<1x64xbf16>, vector<64x128xbf16>, vector<1x128xf32> -> vector<1x128xf32>
    %214 = arith.addf %208, %213 : vector<1x128xf32>
    %c4_179 = arith.constant 4 : index
    %c0_180 = arith.constant 0 : index
    %215 = vector.load %arg17[%c4_179, %c0_180] : memref<169x64xf32, #tpu.memory_space<vmem>>, vector<1x64xf32>
    %216 = arith.truncf %215 : vector<1x64xf32> to vector<1x64xbf16>
    %c1_181 = arith.constant 1 : index
    %c0_182 = arith.constant 0 : index
    %c0_183 = arith.constant 0 : index
    %217 = vector.load %arg8[%c1_181, %c0_182, %c0_183] : memref<9x64x128xbf16, #tpu.memory_space<vmem>>, vector<1x64x128xbf16>
    %218 = vector.shape_cast %217 : vector<1x64x128xbf16> to vector<64x128xbf16>
    %cst_184 = arith.constant dense<0.000000e+00> : vector<1x128xf32>
    %219 = tpu.matmul %216, %218, %cst_184 {dimension_numbers = #tpu.dot_dimension_numbers<[1], [0], [0], [1], [0, 0, 1, 1], [], []>} : vector<1x64xbf16>, vector<64x128xbf16>, vector<1x128xf32> -> vector<1x128xf32>
    %220 = arith.addf %214, %219 : vector<1x128xf32>
    %c8_185 = arith.constant 8 : index
    %c0_186 = arith.constant 0 : index
    %221 = vector.load %arg17[%c8_185, %c0_186] : memref<169x64xf32, #tpu.memory_space<vmem>>, vector<1x64xf32>
    %222 = arith.truncf %221 : vector<1x64xf32> to vector<1x64xbf16>
    %c2_187 = arith.constant 2 : index
    %c0_188 = arith.constant 0 : index
    %c0_189 = arith.constant 0 : index
    %223 = vector.load %arg8[%c2_187, %c0_188, %c0_189] : memref<9x64x128xbf16, #tpu.memory_space<vmem>>, vector<1x64x128xbf16>
    %224 = vector.shape_cast %223 : vector<1x64x128xbf16> to vector<64x128xbf16>
    %cst_190 = arith.constant dense<0.000000e+00> : vector<1x128xf32>
    %225 = tpu.matmul %222, %224, %cst_190 {dimension_numbers = #tpu.dot_dimension_numbers<[1], [0], [0], [1], [0, 0, 1, 1], [], []>} : vector<1x64xbf16>, vector<64x128xbf16>, vector<1x128xf32> -> vector<1x128xf32>
    %226 = arith.addf %220, %225 : vector<1x128xf32>
    %c80_191 = arith.constant 80 : index
    %c0_192 = arith.constant 0 : index
    %227 = vector.load %arg17[%c80_191, %c0_192] : memref<169x64xf32, #tpu.memory_space<vmem>>, vector<1x64xf32>
    %228 = arith.truncf %227 : vector<1x64xf32> to vector<1x64xbf16>
    %c3_193 = arith.constant 3 : index
    %c0_194 = arith.constant 0 : index
    %c0_195 = arith.constant 0 : index
    %229 = vector.load %arg8[%c3_193, %c0_194, %c0_195] : memref<9x64x128xbf16, #tpu.memory_space<vmem>>, vector<1x64x128xbf16>
    %230 = vector.shape_cast %229 : vector<1x64x128xbf16> to vector<64x128xbf16>
    %cst_196 = arith.constant dense<0.000000e+00> : vector<1x128xf32>
    %231 = tpu.matmul %228, %230, %cst_196 {dimension_numbers = #tpu.dot_dimension_numbers<[1], [0], [0], [1], [0, 0, 1, 1], [], []>} : vector<1x64xbf16>, vector<64x128xbf16>, vector<1x128xf32> -> vector<1x128xf32>
    %232 = arith.addf %226, %231 : vector<1x128xf32>
    %c84_197 = arith.constant 84 : index
    %c0_198 = arith.constant 0 : index
    %233 = vector.load %arg17[%c84_197, %c0_198] : memref<169x64xf32, #tpu.memory_space<vmem>>, vector<1x64xf32>
    %234 = arith.truncf %233 : vector<1x64xf32> to vector<1x64xbf16>
    %c4_199 = arith.constant 4 : index
    %c0_200 = arith.constant 0 : index
    %c0_201 = arith.constant 0 : index
    %235 = vector.load %arg8[%c4_199, %c0_200, %c0_201] : memref<9x64x128xbf16, #tpu.memory_space<vmem>>, vector<1x64x128xbf16>
    %236 = vector.shape_cast %235 : vector<1x64x128xbf16> to vector<64x128xbf16>
    %cst_202 = arith.constant dense<0.000000e+00> : vector<1x128xf32>
    %237 = tpu.matmul %234, %236, %cst_202 {dimension_numbers = #tpu.dot_dimension_numbers<[1], [0], [0], [1], [0, 0, 1, 1], [], []>} : vector<1x64xbf16>, vector<64x128xbf16>, vector<1x128xf32> -> vector<1x128xf32>
    %238 = arith.addf %232, %237 : vector<1x128xf32>
    %c88 = arith.constant 88 : index
    %c0_203 = arith.constant 0 : index
    %239 = vector.load %arg17[%c88, %c0_203] : memref<169x64xf32, #tpu.memory_space<vmem>>, vector<1x64xf32>
    %240 = arith.truncf %239 : vector<1x64xf32> to vector<1x64xbf16>
    %c5_204 = arith.constant 5 : index
    %c0_205 = arith.constant 0 : index
    %c0_206 = arith.constant 0 : index
    %241 = vector.load %arg8[%c5_204, %c0_205, %c0_206] : memref<9x64x128xbf16, #tpu.memory_space<vmem>>, vector<1x64x128xbf16>
    %242 = vector.shape_cast %241 : vector<1x64x128xbf16> to vector<64x128xbf16>
    %cst_207 = arith.constant dense<0.000000e+00> : vector<1x128xf32>
    %243 = tpu.matmul %240, %242, %cst_207 {dimension_numbers = #tpu.dot_dimension_numbers<[1], [0], [0], [1], [0, 0, 1, 1], [], []>} : vector<1x64xbf16>, vector<64x128xbf16>, vector<1x128xf32> -> vector<1x128xf32>
    %244 = arith.addf %238, %243 : vector<1x128xf32>
    %c160 = arith.constant 160 : index
    %c0_208 = arith.constant 0 : index
    %245 = vector.load %arg17[%c160, %c0_208] : memref<169x64xf32, #tpu.memory_space<vmem>>, vector<1x64xf32>
    %246 = arith.truncf %245 : vector<1x64xf32> to vector<1x64xbf16>
    %c6_209 = arith.constant 6 : index
    %c0_210 = arith.constant 0 : index
    %c0_211 = arith.constant 0 : index
    %247 = vector.load %arg8[%c6_209, %c0_210, %c0_211] : memref<9x64x128xbf16, #tpu.memory_space<vmem>>, vector<1x64x128xbf16>
    %248 = vector.shape_cast %247 : vector<1x64x128xbf16> to vector<64x128xbf16>
    %cst_212 = arith.constant dense<0.000000e+00> : vector<1x128xf32>
    %249 = tpu.matmul %246, %248, %cst_212 {dimension_numbers = #tpu.dot_dimension_numbers<[1], [0], [0], [1], [0, 0, 1, 1], [], []>} : vector<1x64xbf16>, vector<64x128xbf16>, vector<1x128xf32> -> vector<1x128xf32>
    %250 = arith.addf %244, %249 : vector<1x128xf32>
    %c164 = arith.constant 164 : index
    %c0_213 = arith.constant 0 : index
    %251 = vector.load %arg17[%c164, %c0_213] : memref<169x64xf32, #tpu.memory_space<vmem>>, vector<1x64xf32>
    %252 = arith.truncf %251 : vector<1x64xf32> to vector<1x64xbf16>
    %c7_214 = arith.constant 7 : index
    %c0_215 = arith.constant 0 : index
    %c0_216 = arith.constant 0 : index
    %253 = vector.load %arg8[%c7_214, %c0_215, %c0_216] : memref<9x64x128xbf16, #tpu.memory_space<vmem>>, vector<1x64x128xbf16>
    %254 = vector.shape_cast %253 : vector<1x64x128xbf16> to vector<64x128xbf16>
    %cst_217 = arith.constant dense<0.000000e+00> : vector<1x128xf32>
    %255 = tpu.matmul %252, %254, %cst_217 {dimension_numbers = #tpu.dot_dimension_numbers<[1], [0], [0], [1], [0, 0, 1, 1], [], []>} : vector<1x64xbf16>, vector<64x128xbf16>, vector<1x128xf32> -> vector<1x128xf32>
    %256 = arith.addf %250, %255 : vector<1x128xf32>
    %c168 = arith.constant 168 : index
    %c0_218 = arith.constant 0 : index
    %257 = vector.load %arg17[%c168, %c0_218] : memref<169x64xf32, #tpu.memory_space<vmem>>, vector<1x64xf32>
    %258 = arith.truncf %257 : vector<1x64xf32> to vector<1x64xbf16>
    %c8_219 = arith.constant 8 : index
    %c0_220 = arith.constant 0 : index
    %c0_221 = arith.constant 0 : index
    %259 = vector.load %arg8[%c8_219, %c0_220, %c0_221] : memref<9x64x128xbf16, #tpu.memory_space<vmem>>, vector<1x64x128xbf16>
    %260 = vector.shape_cast %259 : vector<1x64x128xbf16> to vector<64x128xbf16>
    %cst_222 = arith.constant dense<0.000000e+00> : vector<1x128xf32>
    %261 = tpu.matmul %258, %260, %cst_222 {dimension_numbers = #tpu.dot_dimension_numbers<[1], [0], [0], [1], [0, 0, 1, 1], [], []>} : vector<1x64xbf16>, vector<64x128xbf16>, vector<1x128xf32> -> vector<1x128xf32>
    %262 = arith.addf %256, %261 : vector<1x128xf32>
    %cst_223 = arith.constant 0.000000e+00 : f32
    %263 = vector.broadcast %cst_223 : f32 to vector<1x128xf32>
    %264 = arith.maximumf %262, %263 : vector<1x128xf32>
    %c0_224 = arith.constant 0 : index
    %c0_225 = arith.constant 0 : index
    %265 = vector.load %arg10[%c0_224, %c0_225] : memref<128x10xf32, #tpu.memory_space<vmem>>, vector<128x10xf32>
    %cst_226 = arith.constant dense<0.000000e+00> : vector<1x10xf32>
    %266 = tpu.matmul %264, %265, %cst_226 {dimension_numbers = #tpu.dot_dimension_numbers<[1], [0], [0], [1], [0, 0, 1, 1], [], []>} : vector<1x128xf32>, vector<128x10xf32>, vector<1x10xf32> -> vector<1x10xf32>
    %c0_227 = arith.constant 0 : index
    %c0_228 = arith.constant 0 : index
    %267 = vector.load %arg11[%c0_227, %c0_228] : memref<1x10xf32, #tpu.memory_space<vmem>>, vector<1x10xf32>
    %268 = arith.addf %266, %267 : vector<1x10xf32>
    %cst_229 = arith.constant dense<0xFF800000> : vector<1xf32>
    %269 = vector.multi_reduction <maximumf>, %268, %cst_229 [1] : vector<1x10xf32> to vector<1xf32>
    %270 = vector.shape_cast %269 : vector<1xf32> to vector<1x1xf32>
    %271 = vector.broadcast %270 : vector<1x1xf32> to vector<1x10xf32>
    %272 = arith.subf %268, %271 : vector<1x10xf32>
    %273 = math.exp %272 : vector<1x10xf32>
    %cst_230 = arith.constant dense<0.000000e+00> : vector<1xf32>
    %274 = vector.multi_reduction <add>, %273, %cst_230 [1] : vector<1x10xf32> to vector<1xf32>
    %275 = vector.shape_cast %274 : vector<1xf32> to vector<1x1xf32>
    %276 = math.log %275 : vector<1x1xf32>
    %277 = vector.broadcast %276 : vector<1x1xf32> to vector<1x10xf32>
    %278 = arith.subf %272, %277 : vector<1x10xf32>
    %c0_231 = arith.constant 0 : index
    %c0_232 = arith.constant 0 : index
    %c0_233 = arith.constant 0 : index
    %279 = vector.load %arg12[%c0_231, %c0_232, %c0_233] : memref<1x1x10xf32, #tpu.memory_space<vmem>>, vector<1x1x10xf32>
    %280 = vector.shape_cast %279 : vector<1x1x10xf32> to vector<1x10xf32>
    %281 = vector.shape_cast %278 : vector<1x10xf32> to vector<1x1x10xf32>
    tpu.vector_store %arg12[%c0_231, %c0_232, %c0_233], %281 {strides = array<i32>} : memref<1x1x10xf32, #tpu.memory_space<vmem>>, vector<1x1x10xf32>,
    return
  }
  func.func @transform_0(%arg0: i32) -> (i32, i32, i32) {
    %c0_i32 = arith.constant 0 : i32
    %c0_i32_0 = arith.constant 0 : i32
    %c0_i32_1 = arith.constant 0 : i32
    return %arg0, %c0_i32, %c0_i32_0 : i32, i32, i32
  }
  func.func @transform_1(%arg0: i32) -> (i32, i32) {
    %c0_i32 = arith.constant 0 : i32
    %c0_i32_0 = arith.constant 0 : i32
    %c0_i32_1 = arith.constant 0 : i32
    return %c0_i32, %c0_i32_0 : i32, i32
  }
  func.func @transform_2(%arg0: i32) -> (i32, i32) {
    %c0_i32 = arith.constant 0 : i32
    %c0_i32_0 = arith.constant 0 : i32
    %c0_i32_1 = arith.constant 0 : i32
    return %c0_i32, %c0_i32_0 : i32, i32
  }
  func.func @transform_3(%arg0: i32) -> (i32, i32, i32) {
    %c0_i32 = arith.constant 0 : i32
    %c0_i32_0 = arith.constant 0 : i32
    %c0_i32_1 = arith.constant 0 : i32
    %c0_i32_2 = arith.constant 0 : i32
    return %c0_i32, %c0_i32_0, %c0_i32_1 : i32, i32, i32
  }
  func.func @transform_4(%arg0: i32) -> (i32, i32) {
    %c0_i32 = arith.constant 0 : i32
    %c0_i32_0 = arith.constant 0 : i32
    %c0_i32_1 = arith.constant 0 : i32
    return %c0_i32, %c0_i32_0 : i32, i32
  }
  func.func @transform_5(%arg0: i32) -> (i32, i32, i32) {
    %c0_i32 = arith.constant 0 : i32
    %c0_i32_0 = arith.constant 0 : i32
    %c0_i32_1 = arith.constant 0 : i32
    %c0_i32_2 = arith.constant 0 : i32
    return %c0_i32, %c0_i32_0, %c0_i32_1 : i32, i32, i32
  }
  func.func @transform_6(%arg0: i32) -> (i32, i32) {
    %c0_i32 = arith.constant 0 : i32
    %c0_i32_0 = arith.constant 0 : i32
    %c0_i32_1 = arith.constant 0 : i32
    return %c0_i32, %c0_i32_0 : i32, i32
  }
  func.func @transform_7(%arg0: i32) -> (i32, i32, i32) {
    %c0_i32 = arith.constant 0 : i32
    %c0_i32_0 = arith.constant 0 : i32
    %c0_i32_1 = arith.constant 0 : i32
    %c0_i32_2 = arith.constant 0 : i32
    return %c0_i32, %c0_i32_0, %c0_i32_1 : i32, i32, i32
  }
  func.func @transform_8(%arg0: i32) -> (i32, i32) {
    %c0_i32 = arith.constant 0 : i32
    %c0_i32_0 = arith.constant 0 : i32
    %c0_i32_1 = arith.constant 0 : i32
    return %c0_i32, %c0_i32_0 : i32, i32
  }
  func.func @transform_9(%arg0: i32) -> (i32, i32) {
    %c0_i32 = arith.constant 0 : i32
    %c0_i32_0 = arith.constant 0 : i32
    %c0_i32_1 = arith.constant 0 : i32
    return %c0_i32, %c0_i32_0 : i32, i32
  }
  func.func @transform_10(%arg0: i32) -> (i32, i32) {
    %c0_i32 = arith.constant 0 : i32
    %c0_i32_0 = arith.constant 0 : i32
    %c0_i32_1 = arith.constant 0 : i32
    return %c0_i32, %c0_i32_0 : i32, i32
  }
  func.func @transform_11(%arg0: i32) -> (i32, i32, i32) {
    %c0_i32 = arith.constant 0 : i32
    %c0_i32_0 = arith.constant 0 : i32
    %c0_i32_1 = arith.constant 0 : i32
    return %arg0, %c0_i32, %c0_i32_0 : i32, i32, i32
  }
}

</mosaic_0001>

<bundles_post_ra>
// kernel: net_forward.1
= control target key start
LH: loop header
LB: loop body
LE: loop exit
PB: predicated region body
PF: predicated region fallthrough
CT: control target
= control target key end

     0   :  { %s17711_s0 = inlined_call_operand.vmem [shape: f32[2,400,1], index: 0, kind: input, shape index: {}]   ;;  %s17712_s1 = inlined_call_operand.vmem [shape: f32[9,32], index: 1, kind: input, shape index: {}]   ;;  %s17713_s2 = inlined_call_operand.vmem [shape: f32[1,32], index: 2, kind: input, shape index: {}]   ;;  %s17714_s3 = inlined_call_operand.vmem [shape: bf16[9,32,64], index: 3, kind: input, shape index: {}]   ;;  %s17715_s4 = inlined_call_operand.vmem [shape: f32[1,64], index: 4, kind: input, shape index: {}]   ;;  %s17716_s5 = inlined_call_operand.vmem [shape: bf16[9,64,64], index: 5, kind: input, shape index: {}]   ;;  %s17717_s6 = inlined_call_operand.vmem [shape: f32[1,64], index: 6, kind: input, shape index: {}]   ;;  %s17718_s7 = inlined_call_operand.vmem [shape: bf16[9,64,128], index: 7, kind: input, shape index: {}]   ;;  %s17719_s8 = inlined_call_operand.vmem [shape: f32[1,128], index: 8, kind: input, shape index: {}]   ;;  %s17720_s9 = inlined_call_operand.vmem [shape: f32[128,10], index: 9, kind: input, shape index: {}]   ;;  %s17721_s10 = inlined_call_operand.vmem [shape: f32[1,10], index: 10, kind: input, shape index: {}]   ;;  %s17722_s11 = inlined_call_operand.hbm [shape: f32[2,1,10], index: 11, kind: output, shape index: {}]  }
   0x1   :  { %17773 = sst [smem:[#allocation48_spill]] %s17711_s0 }
   0x2   :  { %16 = vsyncpa [#allocation8], 0 }
   0x3   :  { %18 = vsyncpa [#allocation8 + $0x1], 0  ;;  %s13974_s17 = smov 0   ;;  %s13976_s18 = smov 0  }
   0x4   :  { %s13978_s19 = smov 0   ;;  %s13980_s20 = smov 0  }
   0x5 LB: > { %s13995_s21 = sadd.s32 4294967295, %s13907_s20   ;;  %s11133_s22 = sadd.s32 4294967294, %s13907_s20   ;;  %s13907_s20 = sphi %s13980_s20, %s17986_s20   ;;  %s13903_s19 = sphi %s13978_s19, %s17985_s19   ;;  %s13899_s18 = sphi %s13976_s18, %s17984_s18   ;;  %s13895_s17 = sphi %s13974_s17, %s17983_s17  }
   0x6   : > { %s13999_s23 = sadd.s32 1, %s13907_s20   ;;  %s267_s24 = sadd.s32 1, %s13903_s19 }
   0x7   : > { %s264_s25 = ssub.s32 %s13907_s20, %s13999_s23  ;;  %p277_p0 = scmp.ne.s32.totalorder %s13903_s19, %s13899_s18 }
   0x8   : > { %p265_p1 = scmp.eq.s32.totalorder %s264_s25, 0  ;;  %p278_p2 = scmp.eq.s32.totalorder %s13995_s21, 1 }
   0x9   : > { %p283_p3 = scmp.ne.s32.totalorder %s13899_s18, %s13895_s17  ;;  %p284_p4 = scmp.eq.s32.totalorder %s11133_s22, 1 }
   0xa   : > { %s14010_s26 = scalar_select %p265_p1, %s13903_s19, %s267_s24  }
   0xb   : > { %p14012_p5 = por %p278_p2, %p277_p0  ;;  %p14016_p6 = por %p284_p4, %p283_p3 }
   0xc   : > { %p11136_p7 = scmp.ge.s32.totalorder %s13907_s20, 1  ;;  %p340_p8 = scmp.lt.s32.totalorder %s13907_s20, 3 }
   0xe   : > { %p341_p9 = pnand %p11136_p7, %p340_p8 }
  0x10   : > { %344 = sbr.rel (%p341_p9) target bundleno = 3231 (0xc9f), region = 64 }
  0x17   : > { %p379_p10 = scmp.lt.s32.totalorder %s13995_s21, 1  ;;  %v13909_v0 = vmov 0   ;;  %s17776_s0 = sld [smem:[#allocation48_spill]]  ;;  %v13721_v54 = vld [vmem:[%s17714_s3] sm:$0xff]   ;;  %v13722_v59 = vld [vmem:[%s17714_s3 + $0x8] sm:$0xff]   ;;  %vm3723_vm0 = vcmask 261120  }
  0x18   : > { %13720 = vset.pattern.permute.xlu1 %v13909_v0  ;;  %13719 = vset.pattern.permute.xlu0 %v13909_v0  ;;  %vm3768_vm1 = vcmask 259072   ;;  %vm7107_vm2 = vcmask 523264   ;;  %vm7147_vm3 = vcmask 519168   ;;  %vm7481_vm4 = vcmask 522240   ;;  %s11715_s15 = sshll.u32 %s13995_s21, 4 }
  0x19   : > { %s380_s29 = scalar_select %p379_p10, %s13995_s21, 1  ;;  %12140 = vmatprep.subr.bf16.mxu0 %v13721_v54  ;;  %13027 = vmatprep.subr.bf16.mxu1 %v13721_v54  ;;  %vm13911_vm5 = vmmov 0   ;;  %vm10099_vm6 = vcmask 518144   ;;  %vm10250_vm7 = vcmask 516096   ;;  %vm11051_vm8 = vcmask 73728  }
  0x1a   : > { %12141 = vmatpush3.bf16.msra.mxu0 %v13721_v54  ;;  %13029 = vmatpush3.bf16.msra.mxu1 %v13721_v54  ;;  %s13913_s21 = smov [#allocation7]  }
  0x1b   : > { %s13675_s30 = smul.u32 400, %s380_s29  ;;  %12142 = vmatprep.subr.bf16.mxu0 %v13722_v59  ;;  %13028 = vmatprep.subr.bf16.mxu1 %v13722_v59  ;;  %s17668_s29 = scalar_lea.hbm %s17722_s11, %s11715_s15 }
  0x1c   : > { %s13849_s13 = sshll.u32 %s13913_s21, 4  ;;  %s13850_s13 = int_to_ptr.vmem [resolvable:$false] %s13849_s13 }
  0x1d   : > { %s14027_s14 = scalar_lea.vmem %s17776_s0, %s13675_s30  ;;  %s13851_s0 = scalar_lea.vmem %s13850_s13, 32 }
  0x1e   : > { %v395_v1 = vld [vmem:[%s14027_s14 + $0x10] sm:$0xff]  ;;  %v393_v2 = vld [vmem:[%s14027_s14] sm:$0xff]  ;;  %v396_v3 = vld [vmem:[%s14027_s14 + $0x18] sm:$0xff]  ;;  %12143 = vmatpush3.bf16.msra.mxu0 %v13722_v59  ;;  %13030 = vmatpush3.bf16.msra.mxu1 %v13722_v59 }
  0x1f   : > { %451 = vperm.xlu1 %13720, %v395_v1   ;;  %441 = vperm.xlu0 %13719, %v393_v2   ;;  %v394_v4 = vld [vmem:[%s14027_s14 + $0x8] sm:$0xff]  ;;  %v761_v7 = vld [vmem:[%s14027_s14 + $0x19] sm:$0xff]  ;;  %v760_v8 = vld [vmem:[%s14027_s14 + $0x11] sm:$0xff] }
  0x20   : > { %v759_v5 = vld [vmem:[%s14027_s14 + $0x9] sm:$0xff]  ;;  %v758_v6 = vld [vmem:[%s14027_s14 + $0x1] sm:$0xff]  ;;  %v1125_v12 = vld [vmem:[%s14027_s14 + $0x12] sm:$0xff] }
  0x21   : > { %v1124_v9 = vld [vmem:[%s14027_s14 + $0xa] sm:$0xff]  ;;  %v1123_v10 = vld [vmem:[%s14027_s14 + $0x2] sm:$0xff]  ;;  %v1126_v11 = vld [vmem:[%s14027_s14 + $0x1a] sm:$0xff] }
  0x22   : > { %v1489_v13 = vld [vmem:[%s14027_s14 + $0x1c] sm:$0xff]  ;;  %v1488_v14 = vld [vmem:[%s14027_s14 + $0x14] sm:$0xff]  ;;  %v1491_v15 = vld [vmem:[%s14027_s14 + $0x2c] sm:$0xff] }
  0x23   : > { %456 = vperm.xlu1 %13720, %v396_v3   ;;  %446 = vperm.xlu0 %13719, %v394_v4   ;;  %v1490_v16 = vld [vmem:[%s14027_s14 + $0x24] sm:$0xff]  ;;  %v1853_v20 = vld [vmem:[%s14027_s14 + $0x15] sm:$0xff]  ;;  %v1856_v23 = vld [vmem:[%s14027_s14 + $0x2d] sm:$0xff] }
  0x24   : > { %v398_v17 = vld [vmem:[%s14027_s14 + $0x28] sm:$0xff]  ;;  %v397_v18 = vld [vmem:[%s14027_s14 + $0x20] sm:$0xff]  ;;  %v400_v21 = vld [vmem:[%s14027_s14 + $0x38] sm:$0xff] }
  0x25   : > { %v1854_v19 = vld [vmem:[%s14027_s14 + $0x1d] sm:$0xff]  ;;  %v399_v22 = vld [vmem:[%s14027_s14 + $0x30] sm:$0xff]  ;;  %v1855_v24 = vld [vmem:[%s14027_s14 + $0x25] sm:$0xff] }
  0x26   : > { %v763_v25 = vld [vmem:[%s14027_s14 + $0x29] sm:$0xff]  ;;  %v762_v26 = vld [vmem:[%s14027_s14 + $0x21] sm:$0xff]  ;;  %v2218_v28 = vld [vmem:[%s14027_s14 + $0x16] sm:$0xff] }
  0x27   : > { %811 = vperm.xlu1 %13720, %v759_v5   ;;  %806 = vperm.xlu0 %13719, %v758_v6   ;;  %v2219_v27 = vld [vmem:[%s14027_s14 + $0x1e] sm:$0xff]  ;;  %v764_v30 = vld [vmem:[%s14027_s14 + $0x31] sm:$0xff]  ;;  %v2220_v32 = vld [vmem:[%s14027_s14 + $0x26] sm:$0xff] }
  0x28   : > { %v765_v29 = vld [vmem:[%s14027_s14 + $0x39] sm:$0xff]  ;;  %v2221_v31 = vld [vmem:[%s14027_s14 + $0x2e] sm:$0xff]  ;;  %v1127_v34 = vld [vmem:[%s14027_s14 + $0x22] sm:$0xff] }
  0x29   : > { %v1128_v33 = vld [vmem:[%s14027_s14 + $0x2a] sm:$0xff]  ;;  %v1130_v35 = vld [vmem:[%s14027_s14 + $0x3a] sm:$0xff]  ;;  %v1129_v36 = vld [vmem:[%s14027_s14 + $0x32] sm:$0xff] }
  0x2a   : > { %v2586_v37 = vld [vmem:[%s14027_s14 + $0x40] sm:$0xff]  ;;  %v1492_v39 = vld [vmem:[%s14027_s14 + $0x34] sm:$0xff]  ;;  %v1495_v40 = vld [vmem:[%s14027_s14 + $0x4c] sm:$0xff] }
  0x2b   : > { %821 = vperm.xlu1 %13720, %v761_v7   ;;  %816 = vperm.xlu0 %13719, %v760_v8   ;;  %v1493_v38 = vld [vmem:[%s14027_s14 + $0x3c] sm:$0xff]  ;;  %v1494_v41 = vld [vmem:[%s14027_s14 + $0x44] sm:$0xff]  ;;  %v403_v47 = vld [vmem:[%s14027_s14 + $0x50] sm:$0xff] }
  0x2c   : > { %v2951_v42 = vld [vmem:[%s14027_s14 + $0x41] sm:$0xff]  ;;  %v1857_v45 = vld [vmem:[%s14027_s14 + $0x35] sm:$0xff]  ;;  %v1860_v48 = vld [vmem:[%s14027_s14 + $0x4d] sm:$0xff] }
  0x2d   : > { %v402_v43 = vld [vmem:[%s14027_s14 + $0x48] sm:$0xff]  ;;  %v1858_v44 = vld [vmem:[%s14027_s14 + $0x3d] sm:$0xff]  ;;  %v768_v56 = vld [vmem:[%s14027_s14 + $0x51] sm:$0xff] }
  0x2e   : > { %v404_v46 = vld [vmem:[%s14027_s14 + $0x58] sm:$0xff]  ;;  %v1859_v49 = vld [vmem:[%s14027_s14 + $0x45] sm:$0xff]  ;;  %v2225_v60 = vld [vmem:[%s14027_s14 + $0x4e] sm:$0xff] }
  0x2f   : > { %1176 = vperm.xlu1 %13720, %v1124_v9   ;;  %1171 = vperm.xlu0 %13719, %v1123_v10   ;;  %v3316_v50 = vld [vmem:[%s14027_s14 + $0x42] sm:$0xff]  ;;  %v2222_v53 = vld [vmem:[%s14027_s14 + $0x36] sm:$0xff]  ;;  %v1132_v0 = vld [vmem:[%s14027_s14 + $0x4a] sm:$0xff] }
  0x30   : > { %v767_v51 = vld [vmem:[%s14027_s14 + $0x49] sm:$0xff]  ;;  %v2223_v52 = vld [vmem:[%s14027_s14 + $0x3e] sm:$0xff]  ;;  %v1133_v6 = vld [vmem:[%s14027_s14 + $0x52] sm:$0xff] }
  0x31   : > { %v769_v55 = vld [vmem:[%s14027_s14 + $0x59] sm:$0xff]  ;;  %v2224_v61 = vld [vmem:[%s14027_s14 + $0x46] sm:$0xff] }
  0x32   : > { %v1134_v5 = vld [vmem:[%s14027_s14 + $0x5a] sm:$0xff]  ;;  %v2228_v59 = vld [vmem:[%s14027_s14 + $0x66] sm:$0xff] }
  0x33   : > { %1186 = vperm.xlu1 %13720, %v1126_v11   ;;  %1181 = vperm.xlu0 %13719, %v1125_v12   ;;  %v2590_v9 = vld [vmem:[%s14027_s14 + $0x60] sm:$0xff] }
  0x34   : > { %v1497_v12 = vld [vmem:[%s14027_s14 + $0x5c] sm:$0xff] }
  0x37   : > { %1541 = vperm.xlu1 %13720, %v1489_v13   ;;  %1536 = vperm.xlu0 %13719, %v1488_v14   ;;  %v1496_v13 = vld [vmem:[%s14027_s14 + $0x54] sm:$0xff] }
  0x3b   : > { %1551 = vperm.xlu1 %13720, %v1491_v15   ;;  %1546 = vperm.xlu0 %13719, %v1490_v16  }
  0x3f   : > { %466 = vperm.xlu1 %13720, %v398_v17   ;;  %461 = vperm.xlu0 %13719, %v397_v18   ;;  %v1499_v18 = vld [vmem:[%s14027_s14 + $0x6c] sm:$0xff] }
  0x43   : > { %1906 = vperm.xlu1 %13720, %v1854_v19   ;;  %1901 = vperm.xlu0 %13719, %v1853_v20   ;;  %v1498_v19 = vld [vmem:[%s14027_s14 + $0x64] sm:$0xff] }
  0x47   : > { %476 = vperm.xlu1 %13720, %v400_v21   ;;  %471 = vperm.xlu0 %13719, %v399_v22  }
  0x4b   : > { %1916 = vperm.xlu1 %13720, %v1856_v23   ;;  %1911 = vperm.xlu0 %13719, %v1855_v24  }
  0x4f   : > { %831 = vperm.xlu1 %13720, %v763_v25   ;;  %826 = vperm.xlu0 %13719, %v762_v26  }
  0x53   : > { %2271 = vperm.xlu1 %13720, %v2219_v27   ;;  %2266 = vperm.xlu0 %13719, %v2218_v28   ;;  %v1862_v28 = vld [vmem:[%s14027_s14 + $0x5d] sm:$0xff] }
  0x57   : > { %841 = vperm.xlu1 %13720, %v765_v29   ;;  %836 = vperm.xlu0 %13719, %v764_v30  }
  0x5b   : > { %2281 = vperm.xlu1 %13720, %v2221_v31   ;;  %2276 = vperm.xlu0 %13719, %v2220_v32  }
  0x5f   : > { %1196 = vperm.xlu1 %13720, %v1128_v33   ;;  %1191 = vperm.xlu0 %13719, %v1127_v34   ;;  %v14160_v34 = vld [vmem:[%s14027_s14 + $0x78] sm:$0xff] }
  0x63   : > { %2636 = vperm.xlu1 %13720, %v399_v22   ;;  %2631 = vperm.xlu0 %13719, %v398_v17   ;;  %v2955_v22 = vld [vmem:[%s14027_s14 + $0x61] sm:$0xff] }
  0x67   : > { %1206 = vperm.xlu1 %13720, %v1130_v35   ;;  %1201 = vperm.xlu0 %13719, %v1129_v36  }
  0x6b   : > { %2646 = vperm.xlu1 %13720, %v2586_v37   ;;  %2641 = vperm.xlu0 %13719, %v400_v21  }
  0x6f   : > { %1561 = vperm.xlu1 %13720, %v1493_v38   ;;  %1556 = vperm.xlu0 %13719, %v1492_v39   ;;  %v1864_v38 = vld [vmem:[%s14027_s14 + $0x6d] sm:$0xff]  ;;  %v1863_v39 = vld [vmem:[%s14027_s14 + $0x65] sm:$0xff] }
  0x73   : > { %3001 = vperm.xlu1 %13720, %v764_v30   ;;  %2996 = vperm.xlu0 %13719, %v763_v25   ;;  %v14142_v25 = vld [vmem:[%s14027_s14 + $0x68] sm:$0xff] }
  0x77   : > { %1571 = vperm.xlu1 %13720, %v1495_v40   ;;  %1566 = vperm.xlu0 %13719, %v1494_v41  }
  0x7b   : > { %3011 = vperm.xlu1 %13720, %v2951_v42   ;;  %3006 = vperm.xlu0 %13719, %v765_v29   ;;  %v1861_v29 = vld [vmem:[%s14027_s14 + $0x55] sm:$0xff] }
  0x7f   : > { %486 = vperm.xlu1 %13720, %v402_v43   ;;  %481 = vperm.xlu0 %13719, %v2586_v37  }
  0x83   : > { %1926 = vperm.xlu1 %13720, %v1858_v44   ;;  %1921 = vperm.xlu0 %13719, %v1857_v45   ;;  %v14180_v45 = vld [vmem:[%s14027_s14 + $0x69] sm:$0xff] }
  0x87   : > { %3366 = vperm.xlu1 %13720, %v1129_v36   ;;  %3361 = vperm.xlu0 %13719, %v1128_v33  }
  0x8b   : > { %496 = vperm.xlu1 %13720, %v404_v46   ;;  %491 = vperm.xlu0 %13719, %v403_v47  }
  0x8f   : > { %1936 = vperm.xlu1 %13720, %v1860_v48   ;;  %1931 = vperm.xlu0 %13719, %v1859_v49   ;;  %v2227_v48 = vld [vmem:[%s14027_s14 + $0x5e] sm:$0xff]  ;;  %v2226_v49 = vld [vmem:[%s14027_s14 + $0x56] sm:$0xff] }
  0x93   : > { %3376 = vperm.xlu1 %13720, %v3316_v50   ;;  %3371 = vperm.xlu0 %13719, %v1130_v35   ;;  %v407_v35 = vld [vmem:[%s14027_s14 + $0x70] sm:$0xff] }
  0x97   : > { %851 = vperm.xlu1 %13720, %v767_v51   ;;  %846 = vperm.xlu0 %13719, %v2951_v42   ;;  %v3320_v42 = vld [vmem:[%s14027_s14 + $0x62] sm:$0xff] }
  0x9b   : > { %2291 = vperm.xlu1 %13720, %v2223_v52   ;;  %2286 = vperm.xlu0 %13719, %v2222_v53   ;;  %v14194_v52 = vld [vmem:[%s14027_s14 + $0x79] sm:$0xff]  ;;  %v14197_v53 = vld [vmem:[%s14027_s14 + $0x71] sm:$0xff] }
  0x9e   : > { %v14087_v57 = vpop.permute.xlu1 %451  ;;  %v14089_v58 = vpop.permute.xlu0 %441 }
  0x9f   : > { %861 = vperm.xlu1 %13720, %v769_v55   ;;  %856 = vperm.xlu0 %13719, %v768_v56  }
  0xa2   : > { %v14096_v62 = vpop.permute.xlu1 %456  ;;  %v14098_v63 = vpop.permute.xlu0 %446 }
  0xa3   : > { %2301 = vperm.xlu1 %13720, %v2225_v60   ;;  %2296 = vperm.xlu0 %13719, %v2224_v61  }
  0xa6   : > { %v14101_v1 = vpop.permute.xlu1 %811  ;;  %v14103_v2 = vpop.permute.xlu0 %806 }
  0xa7   : > { %1216 = vperm.xlu1 %13720, %v1132_v0   ;;  %1211 = vperm.xlu0 %13719, %v3316_v50  }
  0xaa   : > { %v14105_v3 = vpop.permute.xlu1 %821  ;;  %v14107_v4 = vpop.permute.xlu0 %816 }
  0xab   : > { %2656 = vperm.xlu1 %13720, %v403_v47   ;;  %2651 = vperm.xlu0 %13719, %v402_v43  }
  0xae   : > { %v14111_v7 = vpop.permute.xlu1 %1176  ;;  %v14113_v8 = vpop.permute.xlu0 %1171 }
  0xaf   : > { %1226 = vperm.xlu1 %13720, %v1134_v5   ;;  %1221 = vperm.xlu0 %13719, %v1133_v6  }
  0xb2   : > { %v14116_v10 = vpop.permute.xlu1 %1186  ;;  %v14118_v11 = vpop.permute.xlu0 %1181 }
  0xb3   : > { %2666 = vperm.xlu1 %13720, %v2590_v9   ;;  %2661 = vperm.xlu0 %13719, %v404_v46  }
  0xb6   : > { %v14122_v14 = vpop.permute.xlu1 %1541  ;;  %v14124_v15 = vpop.permute.xlu0 %1536 }
  0xb7   : > { %1581 = vperm.xlu1 %13720, %v1497_v12   ;;  %1576 = vperm.xlu0 %13719, %v1496_v13  }
  0xba   : > { %v14126_v16 = vpop.permute.xlu1 %1551  ;;  %v14128_v17 = vpop.permute.xlu0 %1546 }
  0xbb   : > { %3021 = vperm.xlu1 %13720, %v768_v56   ;;  %3016 = vperm.xlu0 %13719, %v767_v51   ;;  %v2229_v56 = vld [vmem:[%s14027_s14 + $0x6e] sm:$0xff] }
  0xbe   : > { %v14132_v20 = vpop.permute.xlu1 %466  ;;  %v14134_v21 = vpop.permute.xlu0 %461 }
  0xbf   : > { %1591 = vperm.xlu1 %13720, %v1499_v18   ;;  %1586 = vperm.xlu0 %13719, %v1498_v19   ;;  %v14227_v18 = vld [vmem:[%s17712_s1 + $0x1] ss:$0 sm:$0xff] }
  0xc2   : > { %v14137_v23 = vpop.permute.xlu1 %1906  ;;  %v14139_v24 = vpop.permute.xlu0 %1901 }
  0xc3   : > { %3031 = vperm.xlu1 %13720, %v2955_v22   ;;  %3026 = vperm.xlu0 %13719, %v769_v55  }
  0xc6   : > { %v14144_v26 = vpop.permute.xlu1 %476  ;;  %v14146_v27 = vpop.permute.xlu0 %471 }
  0xc7   : > { %506 = vperm.xlu1 %13720, %v14142_v25   ;;  %501 = vperm.xlu0 %13719, %v2590_v9   ;;  %v14222_v9 = vld [vmem:[%s17712_s1] ss:$0 sm:$0xff] }
  0xc8   : > { %v669_v19 = vmul.f32 %v14222_v9, %v14098_v63  ;;  %v1034_v63 = vmul.f32 %v14227_v18, %v14101_v1 }
  0xca   : > { %v14151_v30 = vpop.permute.xlu1 %1916  ;;  %v14153_v31 = vpop.permute.xlu0 %1911 }
  0xcb   : > { %1946 = vperm.xlu1 %13720, %v1862_v28   ;;  %1941 = vperm.xlu0 %13719, %v1861_v29   ;;  %v14236_v28 = vld [vmem:[%s14027_s14 + $0x72] sm:$0xff]  ;;  %v668_v29 = vmul.f32 %v14222_v9, %v14089_v58  ;;  %v1033_v58 = vmul.f32 %v14227_v18, %v14103_v2 }
  0xce   : > { %v14155_v32 = vpop.permute.xlu1 %831  ;;  %v14157_v33 = vpop.permute.xlu0 %826 }
  0xcf   : > { %3386 = vperm.xlu1 %13720, %v1133_v6   ;;  %3381 = vperm.xlu0 %13719, %v1132_v0   ;;  %v14212_v0 = vld [vmem:[%s14027_s14 + $0x6a] sm:$0xff] }
  0xd2   : > { %v14163_v36 = vpop.permute.xlu1 %2271  ;;  %v14165_v37 = vpop.permute.xlu0 %2266 }
  0xd3   : > { %516 = vperm.xlu1 %13720, %v14160_v34   ;;  %511 = vperm.xlu0 %13719, %v407_v35  }
  0xd6   : > { %v14170_v40 = vpop.permute.xlu1 %841  ;;  %v14172_v41 = vpop.permute.xlu0 %836 }
  0xd7   : > { %17777 = vst [vmem:[#allocation10_spill] sm:$0xff] %v14170_v40  ;;  %17778 = vst [vmem:[#allocation11_spill] sm:$0xff] %v14172_v41  ;;  %1956 = vperm.xlu1 %13720, %v1864_v38   ;;  %1951 = vperm.xlu0 %13719, %v1863_v39   ;;  %v14243_v38 = vld [vmem:[%s17712_s1 + $0x2] ss:$0 sm:$0xff] }
  0xd8   : > { %v1399_v1 = vmul.f32 %v14243_v38, %v14111_v7 }
  0xda   : > { %v14175_v43 = vpop.permute.xlu1 %2281  ;;  %v14177_v44 = vpop.permute.xlu0 %2276 }
  0xdb   : > { %3396 = vperm.xlu1 %13720, %v3320_v42   ;;  %3391 = vperm.xlu0 %13719, %v1134_v5  }
  0xde   : > { %v14182_v46 = vpop.permute.xlu1 %1196  ;;  %v14184_v47 = vpop.permute.xlu0 %1191 }
  0xdf   : > { %871 = vperm.xlu1 %13720, %v14180_v45   ;;  %866 = vperm.xlu0 %13719, %v2955_v22   ;;  %v14233_v22 = vld [vmem:[%s14027_s14 + $0x7a] sm:$0xff] }
  0xe2   : > { %v14189_v50 = vpop.permute.xlu1 %2636  ;;  %v14191_v51 = vpop.permute.xlu0 %2631 }
  0xe3   : > { %2311 = vperm.xlu1 %13720, %v2227_v48   ;;  %2306 = vperm.xlu0 %13719, %v2226_v49   ;;  %v14269_v49 = vld [vmem:[%s14027_s14 + $0x80] sm:$0xff] }
  0xe6   : > { %v14199_v54 = vpop.permute.xlu1 %1206  ;;  %v14201_v55 = vpop.permute.xlu0 %1201 }
  0xe7   : > { %17779 = vst [vmem:[#allocation12_spill] sm:$0xff] %v14199_v54  ;;  %17780 = vst [vmem:[#allocation13_spill] sm:$0xff] %v14201_v55  ;;  %881 = vperm.xlu1 %13720, %v14194_v52   ;;  %876 = vperm.xlu0 %13719, %v14197_v53   ;;  %v1500_v54 = vld [vmem:[%s14027_s14 + $0x74] sm:$0xff] }
  0xea   : > { %v14207_v60 = vpop.permute.xlu1 %2646  ;;  %v14209_v61 = vpop.permute.xlu0 %2641 }
  0xeb   : > { %2321 = vperm.xlu1 %13720, %v2229_v56   ;;  %2316 = vperm.xlu0 %13719, %v2228_v59   ;;  %v1398_v56 = vmul.f32 %v14243_v38, %v14113_v8  ;;  %v14277_v59 = vld [vmem:[%s17712_s1 + $0x4] ss:$0 sm:$0xff]  ;;  %v14290_v8 = vld [vmem:[%s17712_s1 + $0x5] ss:$0 sm:$0xff] }
  0xec   : > { %v2494_v40 = vmul.f32 %v14290_v8, %v14163_v36  ;;  %v670_v36 = vmul.f32 %v14222_v9, %v14087_v57 }
  0xee   : > { %v14214_v5 = vpop.permute.xlu1 %1561  ;;  %v14216_v6 = vpop.permute.xlu0 %1556 }
  0xef   : > { %1236 = vperm.xlu1 %13720, %v14212_v0   ;;  %1231 = vperm.xlu0 %13719, %v3320_v42   ;;  %v14261_v42 = vld [vmem:[%s17712_s1 + $0x3] ss:$0 sm:$0xff] }
  0xf2   : > { %v3002_v12 = vpop.permute.xlu1 %3001  ;;  %v2997_v13 = vpop.permute.xlu0 %2996 }
  0xf3   : > { %2676 = vperm.xlu1 %13720, %v407_v35   ;;  %2671 = vperm.xlu0 %13719, %v14142_v25   ;;  %v14248_v25 = vld [vmem:[%s17713_s2] ss:$0 sm:$0xff] }
  0xf4   : > { %v714_v48 = vadd.f32 %v14248_v25, %v669_v19  ;;  %v713_v2 = vadd.f32 %v14248_v25, %v668_v29  ;;  %v1764_v19 = vmul.f32 %v14261_v42, %v14122_v14  ;;  %v1763_v29 = vmul.f32 %v14261_v42, %v14124_v15  ;;  %v14303_v15 = vld [vmem:[%s17712_s1 + $0x6] ss:$0 sm:$0xff] }
  0xf5   : > { %v2129_v14 = vmul.f32 %v14277_v59, %v14137_v23  ;;  %v671_v23 = vmul.f32 %v14222_v9, %v14096_v62  ;;  %v1036_v62 = vmul.f32 %v14227_v18, %v14105_v3 }
  0xf6   : > { %v14252_v35 = vpop.permute.xlu1 %1571  ;;  %v14254_v39 = vpop.permute.xlu0 %1566  ;;  %v1078_v55 = vadd.f32 %v1033_v58, %v713_v2  ;;  %v2128_v58 = vmul.f32 %v14277_v59, %v14139_v24  ;;  %v2493_v24 = vmul.f32 %v14290_v8, %v14165_v37  ;;  %v2858_v37 = vmul.f32 %v14303_v15, %v14191_v51 }
  0xf7   : > { %17781 = vst [vmem:[#allocation14_spill] sm:$0xff] %v14252_v35  ;;  %17782 = vst [vmem:[#allocation15_spill] sm:$0xff] %v14254_v39  ;;  %1246 = vperm.xlu1 %13720, %v14233_v22   ;;  %1241 = vperm.xlu0 %13719, %v14236_v28   ;;  %v1079_v39 = vadd.f32 %v1034_v63, %v714_v48  ;;  %v1501_v48 = vld [vmem:[%s14027_s14 + $0x7c] sm:$0xff]  ;;  %v715_v51 = vadd.f32 %v14248_v25, %v670_v36 }
  0xf8   : > { %v1443_v41 = vadd.f32 %v1398_v56, %v1078_v55 }
  0xf9   : > { %v1444_v63 = vadd.f32 %v1399_v1, %v1079_v39  ;;  %v14318_v1 = vld [vmem:[%s17712_s1 + $0x7] ss:$0 sm:$0xff] }
  0xfa   : > { %v14281_v35 = vpop.permute.xlu1 %3011  ;;  %v14283_v7 = vpop.permute.xlu0 %3006  ;;  %v1808_v55 = vadd.f32 %v1763_v29, %v1443_v41  ;;  %v1035_v29 = vmul.f32 %v14227_v18, %v14107_v4  ;;  %v3223_v3 = vmul.f32 %v14318_v1, %v2997_v13  ;;  %v1401_v4 = vmul.f32 %v14243_v38, %v14116_v10 }
  0xfb   : > { %2686 = vperm.xlu1 %13720, %v14269_v49   ;;  %2681 = vperm.xlu0 %13719, %v14160_v34   ;;  %v1809_v2 = vadd.f32 %v1764_v19, %v1444_v63  ;;  %v2859_v19 = vmul.f32 %v14303_v15, %v14189_v50  ;;  %v3224_v63 = vmul.f32 %v14318_v1, %v3002_v12  ;;  %v14345_v12 = vld [vmem:[%s17712_s1 + $0x8] ss:$0 sm:$0xff] }
  0xfc   : > { %v2173_v41 = vadd.f32 %v2128_v58, %v1808_v55  ;;  %v716_v50 = vadd.f32 %v14248_v25, %v671_v23  ;;  %v1503_v58 = vld [vmem:[%s14027_s14 + $0x8c] sm:$0xff]  ;;  %v1766_v55 = vmul.f32 %v14261_v42, %v14126_v16  ;;  %v1765_v10 = vmul.f32 %v14261_v42, %v14128_v17 }
  0xfd   : > { %v2174_v56 = vadd.f32 %v2129_v14, %v1809_v2  ;;  %v1502_v2 = vld [vmem:[%s14027_s14 + $0x84] sm:$0xff]  ;;  %v2130_v17 = vmul.f32 %v14277_v59, %v14153_v31 }
  0xfe   : > { %v14307_v34 = vpop.permute.xlu1 %486  ;;  %v14309_v39 = vpop.permute.xlu0 %481  ;;  %v1081_v23 = vadd.f32 %v1036_v62, %v716_v50 }
  0xff   : > { %1601 = vperm.xlu1 %13720, %v1501_v48   ;;  %1596 = vperm.xlu0 %13719, %v1500_v54   ;;  %v2539_v54 = vadd.f32 %v2494_v40, %v2174_v56  ;;  %v2538_v48 = vadd.f32 %v2493_v24, %v2173_v41 }
 0x101   : > { %v2904_v40 = vadd.f32 %v2859_v19, %v2539_v54  ;;  %v2903_v13 = vadd.f32 %v2858_v37, %v2538_v48  ;;  %v1446_v54 = vadd.f32 %v1401_v4, %v1081_v23  ;;  %v14360_v37 = vld [vmem:[%s14027_s14 + $0x81] sm:$0xff]  ;;  %v2496_v48 = vmul.f32 %v14290_v8, %v14175_v43 }
 0x102   : > { %v14331_v57 = vpop.permute.xlu1 %1926  ;;  %v14333_v14 = vpop.permute.xlu0 %1921  ;;  %v2861_v43 = vmul.f32 %v14303_v15, %v14207_v60 }
 0x103   : > { %3041 = vperm.xlu1 %13720, %v14197_v53   ;;  %3036 = vperm.xlu0 %13719, %v14180_v45   ;;  %v1400_v53 = vmul.f32 %v14243_v38, %v14118_v11  ;;  %v1080_v45 = vadd.f32 %v1035_v29, %v715_v51  ;;  %v3269_v24 = vadd.f32 %v3224_v63, %v2904_v40 }
 0x104   : > { %v3268_v19 = vadd.f32 %v3223_v3, %v2903_v13  ;;  %v2131_v11 = vmul.f32 %v14277_v59, %v14151_v30  ;;  %v1811_v50 = vadd.f32 %v1766_v55, %v1446_v54  ;;  %v2495_v30 = vmul.f32 %v14290_v8, %v14177_v44 }
 0x105   : > { %v1445_v16 = vadd.f32 %v1400_v53, %v1080_v45  ;;  %v2860_v53 = vmul.f32 %v14303_v15, %v14209_v61  ;;  %v3225_v55 = vmul.f32 %v14318_v1, %v14283_v7 }
 0x106   : > { %v3367_v36 = vpop.permute.xlu1 %3366  ;;  %v3362_v56 = vpop.permute.xlu0 %3361  ;;  %v2176_v31 = vadd.f32 %v2131_v11, %v1811_v50 }
 0x107   : > { %v3589_v41 = vmul.f32 %v14345_v12, %v3367_v36  ;;  %v3588_v62 = vmul.f32 %v14345_v12, %v3362_v56  ;;  %1611 = vperm.xlu1 %13720, %v1503_v58   ;;  %1606 = vperm.xlu0 %13719, %v1502_v2   ;;  %v1810_v4 = vadd.f32 %v1765_v10, %v1445_v16  ;;  %v14377_v2 = vld [vmem:[%s14027_s14 + $0x88] sm:$0xff]  ;;  %v1866_v10 = vld [vmem:[%s14027_s14 + $0x7d] sm:$0xff] }
 0x108   : > { %v2541_v44 = vadd.f32 %v2496_v48, %v2176_v31 }
 0x109   : > { %v3634_v29 = vadd.f32 %v3589_v41, %v3269_v24  ;;  %v3633_v63 = vadd.f32 %v3588_v62, %v3268_v19  ;;  %v2175_v23 = vadd.f32 %v2130_v17, %v1810_v4  ;;  %v1865_v24 = vld [vmem:[%s14027_s14 + $0x75] sm:$0xff] }
 0x10a   : > { %v14366_v3 = vpop.permute.xlu1 %496  ;;  %v14368_v51 = vpop.permute.xlu0 %491  ;;  %v2906_v61 = vadd.f32 %v2861_v43, %v2541_v44  ;;  %v14405_v4 = vld [vmem:[%s14027_s14 + $0x98] sm:$0xff] }
 0x10b   : > { %v3679_v40 = vmax.f32 %v3634_v29, 0.0  ;;  %v3678_v58 = vmax.f32 %v3633_v63, 0.0  ;;  %3051 = vperm.xlu1 %13720, %v14360_v37   ;;  %3046 = vperm.xlu0 %13719, %v14194_v52   ;;  %v3226_v52 = vmul.f32 %v14318_v1, %v14281_v35  ;;  %v2540_v60 = vadd.f32 %v2495_v30, %v2175_v23  ;;  %v411_v30 = vld [vmem:[%s14027_s14 + $0x90] sm:$0xff]  ;;  %v3324_v23 = vld [vmem:[%s14027_s14 + $0x82] sm:$0xff] }
 0x10d   : > { %3725 = vst.msk [vmem:[#allocation2 + $0x8] sm:$0xff] %vm3723_vm0, %v3679_v40  ;;  %3724 = vst.msk [vmem:[#allocation2] sm:$0xff] %vm3723_vm0, %v3678_v58  ;;  %v2905_v36 = vadd.f32 %v2860_v53, %v2540_v60  ;;  %v3271_v56 = vadd.f32 %v3226_v52, %v2906_v61  ;;  %v14429_v61 = vld [vmem:[%s14027_s14 + $0x89] sm:$0xff] }
 0x10e   : > { %v14385_v13 = vpop.permute.xlu1 %1936  ;;  %v14387_v45 = vpop.permute.xlu0 %1931 }
 0x10f   : > { %526 = vperm.xlu1 %13720, %v14377_v2   ;;  %521 = vperm.xlu0 %13719, %v14269_v49   ;;  %v3270_v35 = vadd.f32 %v3225_v55, %v2905_v36  ;;  %v2231_v36 = vld [vmem:[%s14027_s14 + $0x7e] sm:$0xff] }
 0x112   : > { %v3377_v19 = vpop.permute.xlu1 %3376  ;;  %v3372_v41 = vpop.permute.xlu0 %3371 }
 0x113   : > { %v3591_v62 = vmul.f32 %v14345_v12, %v3377_v19  ;;  %v3590_v54 = vmul.f32 %v14345_v12, %v3372_v41  ;;  %1966 = vperm.xlu1 %13720, %v1866_v10   ;;  %1961 = vperm.xlu0 %13719, %v1865_v24   ;;  %v14444_v41 = vld [vmem:[%s14027_s14 + $0x99] sm:$0xff] }
 0x114   : > { %v3778_v7 = vld [vmem:[#allocation2] sm:$0xff]  ;;  %v3779_v11 = vld [vmem:[#allocation2 + $0x8] sm:$0xff] }
 0x115   : > { %v3636_v16 = vadd.f32 %v3591_v62, %v3271_v56  ;;  %v3635_v49 = vadd.f32 %v3590_v54, %v3270_v35  ;;  %v3818_v17 = vpack.c.bf16 %v3779_v11, %v3778_v7  ;;  %v2230_v56 = vld [vmem:[%s14027_s14 + $0x76] sm:$0xff]  ;;  %v2232_v7 = vld [vmem:[%s14027_s14 + $0x86] sm:$0xff] }
 0x116   : > { %v14397_v29 = vpop.permute.xlu1 %851  ;;  %v14399_v63 = vpop.permute.xlu0 %846  ;;  %v14447_v35 = vld [vmem:[%s14027_s14 + $0x91] sm:$0xff] }
 0x117   : > { %v3681_v50 = vmax.f32 %v3636_v16, 0.0  ;;  %v3680_v48 = vmax.f32 %v3635_v49, 0.0  ;;  %3406 = vperm.xlu1 %13720, %v14236_v28   ;;  %3401 = vperm.xlu0 %13719, %v14212_v0   ;;  %v1868_v28 = vld [vmem:[%s14027_s14 + $0x8d] sm:$0xff]  ;;  %v1867_v0 = vld [vmem:[%s14027_s14 + $0x85] sm:$0xff] }
 0x118   : > { %12144 = vmatprep.mubr.msk.bf16.mxu0 %vm3723_vm0, %v3818_v17  ;;  %v14462_v49 = vld [vmem:[%s14027_s14 + $0x8a] sm:$0xff] }
 0x119   : > { %3727 = vst.msk [vmem:[#allocation2 + $0x18] sm:$0xff] %vm3723_vm0, %v3681_v50  ;;  %3726 = vst.msk [vmem:[#allocation2 + $0x10] sm:$0xff] %vm3723_vm0, %v3680_v48 }
 0x11a   : > { %v14410_v40 = vpop.permute.xlu1 %2291  ;;  %v14412_v58 = vpop.permute.xlu0 %2286 }
 0x11b   : > { %536 = vperm.xlu1 %13720, %v14405_v4   ;;  %531 = vperm.xlu0 %13719, %v411_v30  }
 0x11e   : > { %v14417_v31 = vpop.permute.xlu1 %861  ;;  %v14419_v43 = vpop.permute.xlu0 %856 }
 0x11f   : > { %1976 = vperm.xlu1 %13720, %v1868_v28   ;;  %1971 = vperm.xlu0 %13719, %v1867_v0   ;;  %v673_v0 = vmul.f32 %v14222_v9, %v14132_v20 }
 0x120   : > { %v3780_v53 = vld [vmem:[#allocation2 + $0x10] sm:$0xff]  ;;  %v3781_v44 = vld [vmem:[#allocation2 + $0x18] sm:$0xff] }
 0x121   : > { %v3819_v52 = vpack.c.bf16 %v3781_v44, %v3780_v53  ;;  %v14473_v53 = vld [vmem:[%s14027_s14 + $0x9a] sm:$0xff]  ;;  %v14476_v44 = vld [vmem:[%s14027_s14 + $0x92] sm:$0xff]  ;;  %v718_v20 = vadd.f32 %v14248_v25, %v673_v0 }
 0x122   : > { %v14422_v60 = vpop.permute.xlu1 %2301  ;;  %v14424_v55 = vpop.permute.xlu0 %2296 }
 0x123   : > { %3416 = vperm.xlu1 %13720, %v3324_v23   ;;  %3411 = vperm.xlu0 %13719, %v14233_v22  }
 0x124   : > { %12145 = vmatmul.mubr.msk.bf16.vlgmr.msra.gmra.mrb[0].mxu0 %vm3723_vm0, %v3819_v52  ;;  %v672_v52 = vmul.f32 %v14222_v9, %v14134_v21  ;;  %v1403_v21 = vmul.f32 %v14243_v38, %v14182_v46 }
 0x126   : > { %v14431_v10 = vpop.permute.xlu1 %1216  ;;  %v14433_v24 = vpop.permute.xlu0 %1211 }
 0x127   : > { %891 = vperm.xlu1 %13720, %v14429_v61   ;;  %886 = vperm.xlu0 %13719, %v14360_v37   ;;  %v2233_v37 = vld [vmem:[%s14027_s14 + $0x8e] sm:$0xff] }
 0x12a   : > { %v14439_v19 = vpop.permute.xlu1 %2656  ;;  %v14441_v22 = vpop.permute.xlu0 %2651 }
 0x12b   : > { %2331 = vperm.xlu1 %13720, %v2231_v36   ;;  %2326 = vperm.xlu0 %13719, %v2230_v56   ;;  %v1038_v36 = vmul.f32 %v14227_v18, %v14155_v32  ;;  %v717_v32 = vadd.f32 %v14248_v25, %v672_v52  ;;  %v1505_v52 = vld [vmem:[%s14027_s14 + $0x9c] sm:$0xff] }
 0x12e   : > { %v14449_v62 = vpop.permute.xlu1 %1226  ;;  %v14451_v54 = vpop.permute.xlu0 %1221 }
 0x12f   : > { %17783 = vst [vmem:[#allocation16_spill] sm:$0xff] %v14449_v62  ;;  %17784 = vst [vmem:[#allocation17_spill] sm:$0xff] %v14451_v54  ;;  %901 = vperm.xlu1 %13720, %v14444_v41   ;;  %896 = vperm.xlu0 %13719, %v14447_v35   ;;  %v1767_v54 = vmul.f32 %v14261_v42, %v14216_v6 }
 0x132   : > { %v14457_v11 = vpop.permute.xlu1 %2666  ;;  %v14459_v16 = vpop.permute.xlu0 %2661 }
 0x133   : > { %2341 = vperm.xlu1 %13720, %v2233_v37   ;;  %2336 = vperm.xlu0 %13719, %v2232_v7   ;;  %v1402_v37 = vmul.f32 %v14243_v38, %v14184_v47  ;;  %v1083_v7 = vadd.f32 %v1038_v36, %v718_v20  ;;  %v2133_v47 = vmul.f32 %v14277_v59, %v14331_v57  ;;  %v1504_v36 = vld [vmem:[%s14027_s14 + $0x94] sm:$0xff] }
 0x134   : > { %v2497_v57 = vmul.f32 %v14290_v8, %v14412_v58 }
 0x135   : > { %v1448_v46 = vadd.f32 %v1403_v21, %v1083_v7  ;;  %v17789_v7 = vld [vmem:[#allocation10_spill] sm:$0xff] }
 0x136   : > { %v14464_v17 = vpop.permute.xlu1 %1581  ;;  %v14466_v50 = vpop.permute.xlu0 %1576 }
 0x137   : > { %1256 = vperm.xlu1 %13720, %v14462_v49   ;;  %1251 = vperm.xlu0 %13719, %v3324_v23  }
 0x13a   : > { %v3022_v48 = vpop.permute.xlu1 %3021  ;;  %v3017_v28 = vpop.permute.xlu0 %3016 }
 0x13b   : > { %2696 = vperm.xlu1 %13720, %v411_v30   ;;  %2691 = vperm.xlu0 %13719, %v14377_v2   ;;  %v1037_v2 = vmul.f32 %v14227_v18, %v14157_v33  ;;  %v14494_v30 = vld [vmem:[%s14027_s14 + $0xa0] sm:$0xff]  ;;  %v1768_v33 = vmul.f32 %v14261_v42, %v14214_v5  ;;  %v2132_v5 = vmul.f32 %v14277_v59, %v14333_v14 }
 0x13c   : > { %v674_v14 = vmul.f32 %v14222_v9, %v14146_v27 }
 0x13d   : > { %v1082_v0 = vadd.f32 %v1037_v2, %v717_v32  ;;  %v1813_v62 = vadd.f32 %v1768_v33, %v1448_v46  ;;  %v2498_v2 = vmul.f32 %v14290_v8, %v14410_v40  ;;  %v2863_v40 = vmul.f32 %v14303_v15, %v14439_v19 }
 0x13e   : > { %v14482_v23 = vpop.permute.xlu1 %1591  ;;  %v14484_v56 = vpop.permute.xlu0 %1586  ;;  %v1040_v33 = vmul.f32 %v14227_v18, %v17789_v7  ;;  %v17792_v7 = vld [vmem:[#allocation13_spill] sm:$0xff] }
 0x13f   : > { %17785 = vst [vmem:[#allocation18_spill] sm:$0xff] %v14482_v23  ;;  %17786 = vst [vmem:[#allocation19_spill] sm:$0xff] %v14484_v56  ;;  %1266 = vperm.xlu1 %13720, %v14473_v53   ;;  %1261 = vperm.xlu0 %13719, %v14476_v44   ;;  %v1447_v20 = vadd.f32 %v1402_v37, %v1082_v0  ;;  %v2178_v37 = vadd.f32 %v2133_v47, %v1813_v62 }
 0x141   : > { %v1812_v21 = vadd.f32 %v1767_v54, %v1447_v20  ;;  %v17790_v54 = vld [vmem:[#allocation11_spill] sm:$0xff]  ;;  %v2543_v46 = vadd.f32 %v2498_v2, %v2178_v37  ;;  %v17791_v20 = vld [vmem:[#allocation12_spill] sm:$0xff] }
 0x142   : > { %v14501_v56 = vpop.permute.xlu1 %3031  ;;  %v14503_v23 = vpop.permute.xlu0 %3026  ;;  %v1039_v58 = vmul.f32 %v14227_v18, %v17790_v54  ;;  %v17794_v54 = vld [vmem:[#allocation15_spill] sm:$0xff] }
 0x143   : > { %2706 = vperm.xlu1 %13720, %v14494_v30   ;;  %2701 = vperm.xlu0 %13719, %v14405_v4   ;;  %v675_v4 = vmul.f32 %v14222_v9, %v14144_v26  ;;  %v2177_v0 = vadd.f32 %v2132_v5, %v1812_v21  ;;  %v2862_v26 = vmul.f32 %v14303_v15, %v14441_v22  ;;  %v1506_v21 = vld [vmem:[%s14027_s14 + $0xa4] sm:$0xff] }
 0x144   : > { %v719_v22 = vadd.f32 %v14248_v25, %v674_v14  ;;  %v1405_v5 = vmul.f32 %v14243_v38, %v17791_v20  ;;  %v2908_v2 = vadd.f32 %v2863_v40, %v2543_v46 }
 0x145   : > { %v720_v19 = vadd.f32 %v14248_v25, %v675_v4  ;;  %v2542_v47 = vadd.f32 %v2497_v57, %v2177_v0  ;;  %v1404_v4 = vmul.f32 %v14243_v38, %v17792_v7 }
 0x146   : > { %v14517_v32 = vpop.permute.xlu1 %506  ;;  %v14519_v6 = vpop.permute.xlu0 %501  ;;  %v1084_v0 = vadd.f32 %v1039_v58, %v719_v22  ;;  %v14560_v58 = vld [vmem:[%s14027_s14 + $0xa1] sm:$0xff] }
 0x147   : > { %17787 = vst [vmem:[#allocation20_spill] sm:$0xff] %v14517_v32  ;;  %17788 = vst [vmem:[#allocation21_spill] sm:$0xff] %v14519_v6  ;;  %1621 = vperm.xlu1 %13720, %v1505_v52   ;;  %1616 = vperm.xlu0 %13719, %v1504_v36   ;;  %v3228_v52 = vmul.f32 %v14318_v1, %v3022_v48  ;;  %v3227_v36 = vmul.f32 %v14318_v1, %v3017_v28  ;;  %v1507_v48 = vld [vmem:[%s14027_s14 + $0xac] sm:$0xff]  ;;  %v17793_v28 = vld [vmem:[#allocation14_spill] sm:$0xff] }
 0x148   : > { %v1085_v37 = vadd.f32 %v1040_v33, %v720_v19  ;;  %v2907_v57 = vadd.f32 %v2862_v26, %v2542_v47  ;;  %v2135_v26 = vmul.f32 %v14277_v59, %v14385_v13  ;;  %v1449_v19 = vadd.f32 %v1404_v4, %v1084_v0 }
 0x149   : > { %v3273_v14 = vadd.f32 %v3228_v52, %v2908_v2  ;;  %v2134_v52 = vmul.f32 %v14277_v59, %v14387_v45  ;;  %v2499_v13 = vmul.f32 %v14290_v8, %v14424_v55  ;;  %v2864_v4 = vmul.f32 %v14303_v15, %v14459_v16 }
 0x14a   : > { %v14536_v27 = vpop.permute.xlu1 %1946  ;;  %v14538_v62 = vpop.permute.xlu0 %1941  ;;  %v3272_v20 = vadd.f32 %v3227_v36, %v2907_v57  ;;  %v1450_v46 = vadd.f32 %v1405_v5, %v1085_v37  ;;  %v2865_v37 = vmul.f32 %v14303_v15, %v14457_v11 }
 0x14b   : > { %3061 = vperm.xlu1 %13720, %v14447_v35   ;;  %3056 = vperm.xlu0 %13719, %v14429_v61   ;;  %v1770_v35 = vmul.f32 %v14261_v42, %v17793_v28  ;;  %v1769_v61 = vmul.f32 %v14261_v42, %v17794_v54  ;;  %v3229_v28 = vmul.f32 %v14318_v1, %v14503_v23  ;;  %v1869_v54 = vld [vmem:[%s14027_s14 + $0x95] sm:$0xff] }
 0x14d   : > { %v1815_v36 = vadd.f32 %v1770_v35, %v1450_v46  ;;  %v1814_v5 = vadd.f32 %v1769_v61, %v1449_v19  ;;  %v1870_v35 = vld [vmem:[%s14027_s14 + $0x9d] sm:$0xff] }
 0x14e   : > { %v3387_v6 = vpop.permute.xlu1 %3386  ;;  %v3382_v32 = vpop.permute.xlu0 %3381 }
 0x14f   : > { %v3593_v40 = vmul.f32 %v14345_v12, %v3387_v6  ;;  %v3592_v33 = vmul.f32 %v14345_v12, %v3382_v32  ;;  %1631 = vperm.xlu1 %13720, %v1507_v48   ;;  %1626 = vperm.xlu0 %13719, %v1506_v21   ;;  %v2500_v6 = vmul.f32 %v14290_v8, %v14422_v60  ;;  %v14577_v60 = vld [vmem:[%s14027_s14 + $0xa8] sm:$0xff] }
 0x150   : > { %v2180_v45 = vadd.f32 %v2135_v26, %v1815_v36  ;;  %v2179_v7 = vadd.f32 %v2134_v52, %v1814_v5  ;;  %v14605_v5 = vld [vmem:[%s14027_s14 + $0xb8] sm:$0xff] }
 0x151   : > { %v3638_v47 = vadd.f32 %v3593_v40, %v3273_v14  ;;  %v3637_v22 = vadd.f32 %v3592_v33, %v3272_v20 }
 0x152   : > { %v14566_v32 = vpop.permute.xlu1 %516  ;;  %v14568_v2 = vpop.permute.xlu0 %511  ;;  %v2545_v55 = vadd.f32 %v2500_v6, %v2180_v45  ;;  %v2544_v11 = vadd.f32 %v2499_v13, %v2179_v7  ;;  %v415_v13 = vld [vmem:[%s14027_s14 + $0xb0] sm:$0xff]  ;;  %v3328_v7 = vld [vmem:[%s14027_s14 + $0xa2] sm:$0xff] }
 0x153   : > { %v3683_v48 = vmax.f32 %v3638_v47, 0.0  ;;  %v3682_v21 = vmax.f32 %v3637_v22, 0.0  ;;  %3071 = vperm.xlu1 %13720, %v14560_v58   ;;  %3066 = vperm.xlu0 %13719, %v14444_v41   ;;  %v3230_v41 = vmul.f32 %v14318_v1, %v14501_v56 }
 0x154   : > { %v2910_v16 = vadd.f32 %v2865_v37, %v2545_v55  ;;  %v2909_v61 = vadd.f32 %v2864_v4, %v2544_v11 }
 0x155   : > { %3729 = vst.msk [vmem:[#allocation2 + $0x28] sm:$0xff] %vm3723_vm0, %v3683_v48  ;;  %3728 = vst.msk [vmem:[#allocation2 + $0x20] sm:$0xff] %vm3723_vm0, %v3682_v21 }
 0x156   : > { %v14585_v57 = vpop.permute.xlu1 %1956  ;;  %v14587_v0 = vpop.permute.xlu0 %1951  ;;  %v3275_v14 = vadd.f32 %v3230_v41, %v2910_v16  ;;  %v3274_v56 = vadd.f32 %v3229_v28, %v2909_v61  ;;  %v14629_v16 = vld [vmem:[%s14027_s14 + $0xa9] sm:$0xff]  ;;  %v2235_v61 = vld [vmem:[%s14027_s14 + $0x9e] sm:$0xff] }
 0x157   : > { %546 = vperm.xlu1 %13720, %v14577_v60   ;;  %541 = vperm.xlu0 %13719, %v14494_v30  }
 0x15a   : > { %v3397_v20 = vpop.permute.xlu1 %3396  ;;  %v3392_v40 = vpop.permute.xlu0 %3391 }
 0x15b   : > { %v3595_v33 = vmul.f32 %v14345_v12, %v3397_v20  ;;  %v3594_v46 = vmul.f32 %v14345_v12, %v3392_v40  ;;  %1986 = vperm.xlu1 %13720, %v1870_v35   ;;  %1981 = vperm.xlu0 %13719, %v1869_v54   ;;  %v14644_v40 = vld [vmem:[%s14027_s14 + $0xb9] sm:$0xff] }
 0x15c   : > { %v3782_v23 = vld [vmem:[#allocation2 + $0x20] sm:$0xff]  ;;  %v3783_v26 = vld [vmem:[#allocation2 + $0x28] sm:$0xff] }
 0x15d   : > { %v3640_v19 = vadd.f32 %v3595_v33, %v3275_v14  ;;  %v3639_v30 = vadd.f32 %v3594_v46, %v3274_v56  ;;  %v3820_v52 = vpack.c.bf16 %v3783_v26, %v3782_v23  ;;  %v2234_v14 = vld [vmem:[%s14027_s14 + $0x96] sm:$0xff]  ;;  %v2236_v23 = vld [vmem:[%s14027_s14 + $0xa6] sm:$0xff] }
 0x15e   : > { %v14597_v47 = vpop.permute.xlu1 %871  ;;  %v14599_v22 = vpop.permute.xlu0 %866  ;;  %v14647_v56 = vld [vmem:[%s14027_s14 + $0xb1] sm:$0xff] }
 0x15f   : > { %v3685_v36 = vmax.f32 %v3640_v19, 0.0  ;;  %v3684_v6 = vmax.f32 %v3639_v30, 0.0  ;;  %3426 = vperm.xlu1 %13720, %v14476_v44   ;;  %3421 = vperm.xlu0 %13719, %v14462_v49   ;;  %v1872_v44 = vld [vmem:[%s14027_s14 + $0xad] sm:$0xff]  ;;  %v1871_v49 = vld [vmem:[%s14027_s14 + $0xa5] sm:$0xff] }
 0x160   : > { %12148 = vmatprep.mubr.msk.bf16.mxu0 %vm3723_vm0, %v3820_v52  ;;  %v14662_v30 = vld [vmem:[%s14027_s14 + $0xaa] sm:$0xff] }
 0x161   : > { %3731 = vst.msk [vmem:[#allocation2 + $0x38] sm:$0xff] %vm3723_vm0, %v3685_v36  ;;  %3730 = vst.msk [vmem:[#allocation2 + $0x30] sm:$0xff] %vm3723_vm0, %v3684_v6 }
 0x162   : > { %v14610_v48 = vpop.permute.xlu1 %2311  ;;  %v14612_v21 = vpop.permute.xlu0 %2306 }
 0x163   : > { %556 = vperm.xlu1 %13720, %v14605_v5   ;;  %551 = vperm.xlu0 %13719, %v415_v13  }
 0x166   : > { %v14617_v45 = vpop.permute.xlu1 %881  ;;  %v14619_v37 = vpop.permute.xlu0 %876 }
 0x167   : > { %1996 = vperm.xlu1 %13720, %v1872_v44   ;;  %1991 = vperm.xlu0 %13719, %v1871_v49   ;;  %v677_v49 = vmul.f32 %v14222_v9, %v14307_v34 }
 0x168   : > { %v3784_v4 = vld [vmem:[#allocation2 + $0x30] sm:$0xff]  ;;  %v3785_v55 = vld [vmem:[#allocation2 + $0x38] sm:$0xff] }
 0x169   : > { %v3821_v41 = vpack.c.bf16 %v3785_v55, %v3784_v4  ;;  %v14673_v4 = vld [vmem:[%s14027_s14 + $0xba] sm:$0xff]  ;;  %v14676_v55 = vld [vmem:[%s14027_s14 + $0xb2] sm:$0xff]  ;;  %v722_v34 = vadd.f32 %v14248_v25, %v677_v49 }
 0x16a   : > { %v14622_v11 = vpop.permute.xlu1 %2321  ;;  %v14624_v28 = vpop.permute.xlu0 %2316 }
 0x16b   : > { %3436 = vperm.xlu1 %13720, %v3328_v7   ;;  %3431 = vperm.xlu0 %13719, %v14473_v53  }
 0x16c   : > { %12149 = vmatmul.mubr.msk.bf16.gmra.mrb[4].mxu0 %vm3723_vm0, %v3821_v41  ;;  %v676_v41 = vmul.f32 %v14222_v9, %v14309_v39  ;;  %v1407_v39 = vmul.f32 %v14243_v38, %v14431_v10 }
 0x16e   : > { %v14631_v35 = vpop.permute.xlu1 %1236  ;;  %v14633_v54 = vpop.permute.xlu0 %1231 }
 0x16f   : > { %911 = vperm.xlu1 %13720, %v14629_v16   ;;  %906 = vperm.xlu0 %13719, %v14560_v58   ;;  %v2237_v58 = vld [vmem:[%s14027_s14 + $0xae] sm:$0xff] }
 0x172   : > { %v14639_v20 = vpop.permute.xlu1 %2676  ;;  %v14641_v53 = vpop.permute.xlu0 %2671 }
 0x173   : > { %2351 = vperm.xlu1 %13720, %v2235_v61   ;;  %2346 = vperm.xlu0 %13719, %v2234_v14   ;;  %v1042_v61 = vmul.f32 %v14227_v18, %v14397_v29  ;;  %v721_v29 = vadd.f32 %v14248_v25, %v676_v41  ;;  %v1509_v41 = vld [vmem:[%s14027_s14 + $0xbc] sm:$0xff] }
 0x176   : > { %v14649_v33 = vpop.permute.xlu1 %1246  ;;  %v14651_v46 = vpop.permute.xlu0 %1241 }
 0x177   : > { %17795 = vst [vmem:[#allocation10_spill] sm:$0xff] %v14649_v33  ;;  %17796 = vst [vmem:[#allocation11_spill] sm:$0xff] %v14651_v46  ;;  %921 = vperm.xlu1 %13720, %v14644_v40   ;;  %916 = vperm.xlu0 %13719, %v14647_v56   ;;  %v1771_v46 = vmul.f32 %v14261_v42, %v14466_v50 }
 0x17a   : > { %v14657_v26 = vpop.permute.xlu1 %2686  ;;  %v14659_v19 = vpop.permute.xlu0 %2681 }
 0x17b   : > { %2361 = vperm.xlu1 %13720, %v2237_v58   ;;  %2356 = vperm.xlu0 %13719, %v2236_v23   ;;  %v1406_v58 = vmul.f32 %v14243_v38, %v14433_v24  ;;  %v1087_v23 = vadd.f32 %v1042_v61, %v722_v34  ;;  %v2137_v24 = vmul.f32 %v14277_v59, %v14536_v27  ;;  %v1508_v61 = vld [vmem:[%s14027_s14 + $0xb4] sm:$0xff] }
 0x17c   : > { %v2501_v27 = vmul.f32 %v14290_v8, %v14612_v21  ;;  %v1043_v21 = vmul.f32 %v14227_v18, %v14419_v43 }
 0x17d   : > { %v1452_v10 = vadd.f32 %v1407_v39, %v1087_v23  ;;  %v1044_v23 = vmul.f32 %v14227_v18, %v14417_v31 }
 0x17e   : > { %v14664_v52 = vpop.permute.xlu1 %1601  ;;  %v14666_v36 = vpop.permute.xlu0 %1596 }
 0x17f   : > { %1276 = vperm.xlu1 %13720, %v14662_v30   ;;  %1271 = vperm.xlu0 %13719, %v3328_v7  }
 0x182   : > { %v3042_v6 = vpop.permute.xlu1 %3041  ;;  %v3037_v44 = vpop.permute.xlu0 %3036 }
 0x183   : > { %2716 = vperm.xlu1 %13720, %v415_v13   ;;  %2711 = vperm.xlu0 %13719, %v14577_v60   ;;  %v1041_v60 = vmul.f32 %v14227_v18, %v14399_v63  ;;  %v14694_v13 = vld [vmem:[%s14027_s14 + $0xc0] sm:$0xff]  ;;  %v1772_v63 = vmul.f32 %v14261_v42, %v14464_v17  ;;  %v2136_v17 = vmul.f32 %v14277_v59, %v14538_v62 }
 0x184   : > { %v678_v62 = vmul.f32 %v14222_v9, %v14368_v51  ;;  %v3231_v31 = vmul.f32 %v14318_v1, %v3037_v44  ;;  %v17801_v44 = vld [vmem:[#allocation18_spill] sm:$0xff] }
 0x185   : > { %v1086_v49 = vadd.f32 %v1041_v60, %v721_v29  ;;  %v1817_v33 = vadd.f32 %v1772_v63, %v1452_v10  ;;  %v2502_v60 = vmul.f32 %v14290_v8, %v14610_v48  ;;  %v2867_v48 = vmul.f32 %v14303_v15, %v14639_v20  ;;  %v17799_v10 = vld [vmem:[#allocation16_spill] sm:$0xff] }
 0x186   : > { %v14682_v7 = vpop.permute.xlu1 %1611  ;;  %v14684_v14 = vpop.permute.xlu0 %1606  ;;  %v1409_v18 = vmul.f32 %v14243_v38, %v17799_v10 }
 0x187   : > { %17797 = vst [vmem:[#allocation12_spill] sm:$0xff] %v14682_v7  ;;  %17798 = vst [vmem:[#allocation13_spill] sm:$0xff] %v14684_v14  ;;  %1286 = vperm.xlu1 %13720, %v14673_v4   ;;  %1281 = vperm.xlu0 %13719, %v14676_v55   ;;  %v1451_v34 = vadd.f32 %v1406_v58, %v1086_v49  ;;  %v2182_v58 = vadd.f32 %v2137_v24, %v1817_v33  ;;  %v1510_v24 = vld [vmem:[%s14027_s14 + $0xc4] sm:$0xff] }
 0x188   : > { %v3232_v49 = vmul.f32 %v14318_v1, %v3042_v6  ;;  %v1511_v6 = vld [vmem:[%s14027_s14 + $0xcc] sm:$0xff] }
 0x189   : > { %v1816_v39 = vadd.f32 %v1771_v46, %v1451_v34  ;;  %v2547_v46 = vadd.f32 %v2502_v60, %v2182_v58 }
 0x18a   : > { %v14701_v14 = vpop.permute.xlu1 %3051  ;;  %v14703_v7 = vpop.permute.xlu0 %3046 }
 0x18b   : > { %2726 = vperm.xlu1 %13720, %v14694_v13   ;;  %2721 = vperm.xlu0 %13719, %v14605_v5   ;;  %v679_v5 = vmul.f32 %v14222_v9, %v14366_v3  ;;  %v2181_v63 = vadd.f32 %v2136_v17, %v1816_v39  ;;  %v2866_v3 = vmul.f32 %v14303_v15, %v14641_v53 }
 0x18c   : > { %v723_v53 = vadd.f32 %v14248_v25, %v678_v62  ;;  %v2912_v43 = vadd.f32 %v2867_v48, %v2547_v46 }
 0x18d   : > { %v724_v20 = vadd.f32 %v14248_v25, %v679_v5  ;;  %v2546_v33 = vadd.f32 %v2501_v27, %v2181_v63  ;;  %v17802_v5 = vld [vmem:[#allocation19_spill] sm:$0xff] }
 0x18e   : > { %v14717_v29 = vpop.permute.xlu1 %526  ;;  %v14719_v50 = vpop.permute.xlu0 %521  ;;  %v1088_v60 = vadd.f32 %v1043_v21, %v723_v53  ;;  %v3277_v25 = vadd.f32 %v3232_v49, %v2912_v43  ;;  %v14760_v63 = vld [vmem:[%s14027_s14 + $0xc1] sm:$0xff] }
 0x18f   : > { %1641 = vperm.xlu1 %13720, %v1509_v41   ;;  %1636 = vperm.xlu0 %13719, %v1508_v61   ;;  %v1089_v41 = vadd.f32 %v1044_v23, %v724_v20  ;;  %v17800_v61 = vld [vmem:[#allocation17_spill] sm:$0xff]  ;;  %v2911_v17 = vadd.f32 %v2866_v3, %v2546_v33  ;;  %v2504_v20 = vmul.f32 %v14290_v8, %v14622_v11  ;;  %v14777_v11 = vld [vmem:[%s14027_s14 + $0xc8] sm:$0xff] }
 0x190   : > { %v1408_v34 = vmul.f32 %v14243_v38, %v17800_v61  ;;  %v2139_v38 = vmul.f32 %v14277_v59, %v14585_v57  ;;  %v2503_v57 = vmul.f32 %v14290_v8, %v14624_v28  ;;  %v3234_v28 = vmul.f32 %v14318_v1, %v14701_v14  ;;  %v1873_v61 = vld [vmem:[%s14027_s14 + $0xb5] sm:$0xff] }
 0x191   : > { %v3276_v62 = vadd.f32 %v3231_v31, %v2911_v17  ;;  %v1454_v23 = vadd.f32 %v1409_v18, %v1089_v41  ;;  %v3233_v41 = vmul.f32 %v14318_v1, %v14703_v7 }
 0x192   : > { %v14736_v9 = vpop.permute.xlu1 %1966  ;;  %v14738_v51 = vpop.permute.xlu0 %1961  ;;  %v1453_v3 = vadd.f32 %v1408_v34, %v1088_v60 }
 0x193   : > { %3081 = vperm.xlu1 %13720, %v14647_v56   ;;  %3076 = vperm.xlu0 %13719, %v14629_v16   ;;  %v1774_v56 = vmul.f32 %v14261_v42, %v17801_v44  ;;  %v1773_v16 = vmul.f32 %v14261_v42, %v17802_v5  ;;  %v2138_v42 = vmul.f32 %v14277_v59, %v14587_v0 }
 0x194   : > { %v2869_v0 = vmul.f32 %v14303_v15, %v14657_v26 }
 0x195   : > { %v1819_v49 = vadd.f32 %v1774_v56, %v1454_v23  ;;  %v1818_v53 = vadd.f32 %v1773_v16, %v1453_v3 }
 0x196   : > { %v3407_v39 = vpop.permute.xlu1 %3406  ;;  %v3402_v27 = vpop.permute.xlu0 %3401 }
 0x197   : > { %v3597_v58 = vmul.f32 %v14345_v12, %v3407_v39  ;;  %v3596_v48 = vmul.f32 %v14345_v12, %v3402_v27  ;;  %1651 = vperm.xlu1 %13720, %v1511_v6   ;;  %1646 = vperm.xlu0 %13719, %v1510_v24   ;;  %v2184_v59 = vadd.f32 %v2139_v38, %v1819_v49 }
 0x198   : > { %v2183_v43 = vadd.f32 %v2138_v42, %v1818_v53  ;;  %v2868_v6 = vmul.f32 %v14303_v15, %v14659_v19  ;;  %v1874_v19 = vld [vmem:[%s14027_s14 + $0xbd] sm:$0xff] }
 0x199   : > { %v3642_v21 = vadd.f32 %v3597_v58, %v3277_v25  ;;  %v3641_v46 = vadd.f32 %v3596_v48, %v3276_v62  ;;  %v2549_v8 = vadd.f32 %v2504_v20, %v2184_v59  ;;  %v419_v48 = vld [vmem:[%s14027_s14 + $0xd0] sm:$0xff] }
 0x19a   : > { %v14766_v33 = vpop.permute.xlu1 %536  ;;  %v14768_v31 = vpop.permute.xlu0 %531  ;;  %v2548_v26 = vadd.f32 %v2503_v57, %v2183_v43  ;;  %v2238_v43 = vld [vmem:[%s14027_s14 + $0xb6] sm:$0xff] }
 0x19b   : > { %v3687_v10 = vmax.f32 %v3642_v21, 0.0  ;;  %v3686_v18 = vmax.f32 %v3641_v46, 0.0  ;;  %3091 = vperm.xlu1 %13720, %v14760_v63   ;;  %3086 = vperm.xlu0 %13719, %v14644_v40   ;;  %v2914_v15 = vadd.f32 %v2869_v0, %v2549_v8  ;;  %v3332_v21 = vld [vmem:[%s14027_s14 + $0xc2] sm:$0xff]  ;;  %v14844_v8 = vld [vmem:[%s14027_s14 + $0xd9] sm:$0xff] }
 0x19c   : > { %v2913_v34 = vadd.f32 %v2868_v6, %v2548_v26  ;;  %v2239_v0 = vld [vmem:[%s14027_s14 + $0xbe] sm:$0xff] }
 0x19d   : > { %3733 = vst.msk [vmem:[#allocation2 + $0x48] sm:$0xff] %vm3723_vm0, %v3687_v10  ;;  %3732 = vst.msk [vmem:[#allocation2 + $0x40] sm:$0xff] %vm3723_vm0, %v3686_v18  ;;  %v3279_v17 = vadd.f32 %v3234_v28, %v2914_v15  ;;  %v14829_v10 = vld [vmem:[%s14027_s14 + $0xc9] sm:$0xff]  ;;  %v14847_v28 = vld [vmem:[%s14027_s14 + $0xd1] sm:$0xff] }
 0x19e   : > { %v14785_v40 = vpop.permute.xlu1 %1976  ;;  %v14787_v24 = vpop.permute.xlu0 %1971  ;;  %v3278_v14 = vadd.f32 %v3233_v41, %v2913_v34  ;;  %v2240_v15 = vld [vmem:[%s14027_s14 + $0xc6] sm:$0xff] }
 0x19f   : > { %566 = vperm.xlu1 %13720, %v14777_v11   ;;  %561 = vperm.xlu0 %13719, %v14694_v13   ;;  %v14862_v34 = vld [vmem:[%s14027_s14 + $0xca] sm:$0xff] }
 0x1a2   : > { %v3417_v60 = vpop.permute.xlu1 %3416  ;;  %v3412_v44 = vpop.permute.xlu0 %3411 }
 0x1a3   : > { %v3599_v56 = vmul.f32 %v14345_v12, %v3417_v60  ;;  %v3598_v5 = vmul.f32 %v14345_v12, %v3412_v44  ;;  %2006 = vperm.xlu1 %13720, %v1874_v19   ;;  %2001 = vperm.xlu0 %13719, %v1873_v61   ;;  %v14805_v12 = vld [vmem:[%s14027_s14 + $0xd8] sm:$0xff] }
 0x1a4   : > { %v3786_v1 = vld [vmem:[#allocation2 + $0x40] sm:$0xff]  ;;  %v3787_v7 = vld [vmem:[#allocation2 + $0x48] sm:$0xff] }
 0x1a5   : > { %v3644_v16 = vadd.f32 %v3599_v56, %v3279_v17  ;;  %v3643_v13 = vadd.f32 %v3598_v5, %v3278_v14  ;;  %v3822_v25 = vpack.c.bf16 %v3787_v7, %v3786_v1  ;;  %v14875_v56 = vld [vmem:[%s17712_s1] ss:$0 sm:$0xff]  ;;  %v17804_v5 = vld [vmem:[#allocation20_spill] sm:$0xff] }
 0x1a6   : > { %v14797_v39 = vpop.permute.xlu1 %891  ;;  %v14799_v27 = vpop.permute.xlu0 %886  ;;  %v681_v1 = vmul.f32 %v14875_v56, %v17804_v5  ;;  %v14880_v7 = vld [vmem:[%s14027_s14 + $0xda] sm:$0xff] }
 0x1a7   : > { %v3689_v62 = vmax.f32 %v3644_v16, 0.0  ;;  %v3688_v58 = vmax.f32 %v3643_v13, 0.0  ;;  %3446 = vperm.xlu1 %13720, %v14676_v55   ;;  %3441 = vperm.xlu0 %13719, %v14662_v30   ;;  %v1876_v55 = vld [vmem:[%s14027_s14 + $0xcd] sm:$0xff]  ;;  %v1875_v30 = vld [vmem:[%s14027_s14 + $0xc5] sm:$0xff] }
 0x1a8   : > { %12152 = vmatprep.mubr.msk.bf16.mxu0 %vm3723_vm0, %v3822_v25  ;;  %v14883_v16 = vld [vmem:[%s14027_s14 + $0xd2] sm:$0xff] }
 0x1a9   : > { %3735 = vst.msk [vmem:[#allocation2 + $0x58] sm:$0xff] %vm3723_vm0, %v3689_v62  ;;  %3734 = vst.msk [vmem:[#allocation2 + $0x50] sm:$0xff] %vm3723_vm0, %v3688_v58  ;;  %v17805_v13 = vld [vmem:[#allocation21_spill] sm:$0xff] }
 0x1aa   : > { %v14810_v23 = vpop.permute.xlu1 %2331  ;;  %v14812_v38 = vpop.permute.xlu0 %2326  ;;  %v680_v25 = vmul.f32 %v14875_v56, %v17805_v13  ;;  %v14939_v13 = vld [vmem:[%s17712_s1 + $0x4] ss:$0 sm:$0xff] }
 0x1ab   : > { %576 = vperm.xlu1 %13720, %v14805_v12   ;;  %571 = vperm.xlu0 %13719, %v419_v48  }
 0x1ae   : > { %v14817_v3 = vpop.permute.xlu1 %901  ;;  %v14819_v42 = vpop.permute.xlu0 %896 }
 0x1af   : > { %2016 = vperm.xlu1 %13720, %v1876_v55   ;;  %2011 = vperm.xlu0 %13719, %v1875_v30   ;;  %v14905_v30 = vld [vmem:[%s17713_s2] ss:$0 sm:$0xff] }
 0x1b0   : > { %v3788_v46 = vld [vmem:[#allocation2 + $0x50] sm:$0xff]  ;;  %v3789_v49 = vld [vmem:[#allocation2 + $0x58] sm:$0xff] }
 0x1b1   : > { %v3823_v20 = vpack.c.bf16 %v3789_v49, %v3788_v46  ;;  %v725_v49 = vadd.f32 %v14905_v30, %v680_v25  ;;  %v1513_v25 = vld [vmem:[%s14027_s14 + $0xdc] sm:$0xff] }
 0x1b2   : > { %v14822_v53 = vpop.permute.xlu1 %2341  ;;  %v14824_v57 = vpop.permute.xlu0 %2336 }
 0x1b3   : > { %3456 = vperm.xlu1 %13720, %v3332_v21   ;;  %3451 = vperm.xlu0 %13719, %v14673_v4  }
 0x1b4   : > { %12153 = vmatmul.mubr.msk.bf16.gmra.mrb[8].mxu0 %vm3723_vm0, %v3823_v20 }
 0x1b6   : > { %v14831_v18 = vpop.permute.xlu1 %1256  ;;  %v14833_v59 = vpop.permute.xlu0 %1251 }
 0x1b7   : > { %931 = vperm.xlu1 %13720, %v14829_v10   ;;  %926 = vperm.xlu0 %13719, %v14760_v63   ;;  %v2241_v63 = vld [vmem:[%s14027_s14 + $0xce] sm:$0xff] }
 0x1ba   : > { %v14839_v6 = vpop.permute.xlu1 %2696  ;;  %v14841_v4 = vpop.permute.xlu0 %2691 }
 0x1bb   : > { %2371 = vperm.xlu1 %13720, %v2239_v0   ;;  %2366 = vperm.xlu0 %13719, %v2238_v43   ;;  %v14924_v43 = vld [vmem:[%s17712_s1 + $0x3] ss:$0 sm:$0xff] }
 0x1be   : > { %v14849_v26 = vpop.permute.xlu1 %1266  ;;  %v14851_v41 = vpop.permute.xlu0 %1261 }
 0x1bf   : > { %17803 = vst [vmem:[#allocation14_spill] sm:$0xff] %v14851_v41  ;;  %941 = vperm.xlu1 %13720, %v14844_v8   ;;  %936 = vperm.xlu0 %13719, %v14847_v28  }
 0x1c2   : > { %v14857_v19 = vpop.permute.xlu1 %2706  ;;  %v14859_v61 = vpop.permute.xlu0 %2701 }
 0x1c3   : > { %2381 = vperm.xlu1 %13720, %v2241_v63   ;;  %2376 = vperm.xlu0 %13719, %v2240_v15   ;;  %v1776_v63 = vmul.f32 %v14924_v43, %v14664_v52  ;;  %v2141_v52 = vmul.f32 %v14939_v13, %v14736_v9  ;;  %v683_v9 = vmul.f32 %v14875_v56, %v14566_v32 }
 0x1c6   : > { %v14864_v17 = vpop.permute.xlu1 %1621  ;;  %v14866_v60 = vpop.permute.xlu0 %1616 }
 0x1c7   : > { %1296 = vperm.xlu1 %13720, %v14862_v34   ;;  %1291 = vperm.xlu0 %13719, %v3332_v21   ;;  %v726_v21 = vadd.f32 %v14905_v30, %v681_v1  ;;  %v1775_v1 = vmul.f32 %v14924_v43, %v14666_v36 }
 0x1ca   : > { %v3062_v44 = vpop.permute.xlu1 %3061  ;;  %v14869_v14 = vpop.permute.xlu0 %3056 }
 0x1cb   : > { %2736 = vperm.xlu1 %13720, %v419_v48   ;;  %2731 = vperm.xlu0 %13719, %v14777_v11   ;;  %v14890_v11 = vld [vmem:[%s17712_s1 + $0x1] ss:$0 sm:$0xff] }
 0x1cc   : > { %v1046_v62 = vmul.f32 %v14890_v11, %v14597_v47  ;;  %v1045_v55 = vmul.f32 %v14890_v11, %v14599_v22  ;;  %v14911_v47 = vld [vmem:[%s17712_s1 + $0x2] ss:$0 sm:$0xff]  ;;  %v1048_v32 = vmul.f32 %v14890_v11, %v14617_v45 }
 0x1cd   : > { %v1411_v46 = vmul.f32 %v14911_v47, %v14631_v35  ;;  %v14916_v22 = vld [vmem:[%s14027_s14 + $0xe0] sm:$0xff]  ;;  %v1410_v20 = vmul.f32 %v14911_v47, %v14633_v54 }
 0x1ce   : > { %v14894_v58 = vpop.permute.xlu1 %1631  ;;  %v14896_v48 = vpop.permute.xlu0 %1626  ;;  %v1091_v0 = vadd.f32 %v1046_v62, %v726_v21  ;;  %v1090_v5 = vadd.f32 %v1045_v55, %v725_v49  ;;  %v1512_v62 = vld [vmem:[%s14027_s14 + $0xd4] sm:$0xff]  ;;  %v2140_v55 = vmul.f32 %v14939_v13, %v14738_v51 }
 0x1cf   : > { %17806 = vst [vmem:[#allocation15_spill] sm:$0xff] %v14894_v58  ;;  %17807 = vst [vmem:[#allocation16_spill] sm:$0xff] %v14896_v48  ;;  %1306 = vperm.xlu1 %13720, %v14880_v7   ;;  %1301 = vperm.xlu0 %13719, %v14883_v16   ;;  %v17813_v48 = vld [vmem:[#allocation13_spill] sm:$0xff] }
 0x1d0   : > { %v1456_v54 = vadd.f32 %v1411_v46, %v1091_v0  ;;  %v1455_v21 = vadd.f32 %v1410_v20, %v1090_v5 }
 0x1d2   : > { %v14928_v15 = vpop.permute.xlu1 %3071  ;;  %v14930_v35 = vpop.permute.xlu0 %3066  ;;  %v1821_v36 = vadd.f32 %v1776_v63, %v1456_v54  ;;  %v1820_v20 = vadd.f32 %v1775_v1, %v1455_v21  ;;  %v682_v63 = vmul.f32 %v14875_v56, %v14568_v2  ;;  %v1047_v2 = vmul.f32 %v14890_v11, %v14619_v37 }
 0x1d3   : > { %2746 = vperm.xlu1 %13720, %v14916_v22   ;;  %2741 = vperm.xlu0 %13719, %v14805_v12   ;;  %v14950_v12 = vld [vmem:[%s17712_s1 + $0x5] ss:$0 sm:$0xff]  ;;  %v728_v21 = vadd.f32 %v14905_v30, %v683_v9 }
 0x1d4   : > { %v2506_v46 = vmul.f32 %v14950_v12, %v14810_v23  ;;  %v2505_v51 = vmul.f32 %v14950_v12, %v14812_v38  ;;  %v2186_v5 = vadd.f32 %v2141_v52, %v1821_v36  ;;  %v14967_v23 = vld [vmem:[%s17712_s1 + $0x6] ss:$0 sm:$0xff]  ;;  %v2185_v1 = vadd.f32 %v2140_v55, %v1820_v20  ;;  %v17810_v36 = vld [vmem:[#allocation10_spill] sm:$0xff]  ;;  %v1515_v20 = vld [vmem:[%s14027_s14 + $0xec] sm:$0xff] }
 0x1d5   : > { %v2871_v54 = vmul.f32 %v14967_v23, %v14839_v6  ;;  %v2870_v38 = vmul.f32 %v14967_v23, %v14841_v4  ;;  %v727_v37 = vadd.f32 %v14905_v30, %v682_v63 }
 0x1d6   : > { %v14954_v49 = vpop.permute.xlu1 %546  ;;  %v14956_v0 = vpop.permute.xlu0 %541  ;;  %v2551_v52 = vadd.f32 %v2506_v46, %v2186_v5  ;;  %v2550_v55 = vadd.f32 %v2505_v51, %v2185_v1  ;;  %v1413_v46 = vmul.f32 %v14911_v47, %v17810_v36  ;;  %v1514_v5 = vld [vmem:[%s14027_s14 + $0xe4] sm:$0xff] }
 0x1d7   : > { %17808 = vst [vmem:[#allocation17_spill] sm:$0xff] %v14954_v49  ;;  %17809 = vst [vmem:[#allocation18_spill] sm:$0xff] %v14956_v0  ;;  %1661 = vperm.xlu1 %13720, %v1513_v25   ;;  %1656 = vperm.xlu0 %13719, %v1512_v62   ;;  %v14980_v25 = vld [vmem:[%s17712_s1 + $0x7] ss:$0 sm:$0xff]  ;;  %v1093_v0 = vadd.f32 %v1048_v32, %v728_v21  ;;  %v1092_v1 = vadd.f32 %v1047_v2, %v727_v37 }
 0x1d8   : > { %v3236_v6 = vmul.f32 %v14980_v25, %v3062_v44  ;;  %v3235_v4 = vmul.f32 %v14980_v25, %v14869_v14  ;;  %v2916_v44 = vadd.f32 %v2871_v54, %v2551_v52  ;;  %v17811_v49 = vld [vmem:[#allocation11_spill] sm:$0xff]  ;;  %v2915_v51 = vadd.f32 %v2870_v38, %v2550_v55  ;;  %v17812_v14 = vld [vmem:[#allocation12_spill] sm:$0xff] }
 0x1d9   : > { %v1412_v9 = vmul.f32 %v14911_v47, %v17811_v49  ;;  %v15006_v54 = vld [vmem:[%s17712_s1 + $0x8] ss:$0 sm:$0xff]  ;;  %v1458_v38 = vadd.f32 %v1413_v46, %v1093_v0  ;;  %v2143_v2 = vmul.f32 %v14939_v13, %v14785_v40  ;;  %v2507_v40 = vmul.f32 %v14950_v12, %v14824_v57 }
 0x1da   : > { %v14983_v62 = vpop.permute.xlu1 %1986  ;;  %v14985_v45 = vpop.permute.xlu0 %1981  ;;  %v3281_v63 = vadd.f32 %v3236_v6, %v2916_v44  ;;  %v3280_v36 = vadd.f32 %v3235_v4, %v2915_v51  ;;  %v2142_v6 = vmul.f32 %v14939_v13, %v14787_v24  ;;  %v2872_v51 = vmul.f32 %v14967_v23, %v14859_v61 }
 0x1db   : > { %3101 = vperm.xlu1 %13720, %v14847_v28   ;;  %3096 = vperm.xlu0 %13719, %v14829_v10   ;;  %v1778_v28 = vmul.f32 %v14924_v43, %v17812_v14  ;;  %v1777_v10 = vmul.f32 %v14924_v43, %v17813_v48  ;;  %v15013_v48 = vld [vmem:[%s14027_s14 + $0xe1] sm:$0xff]  ;;  %v1457_v52 = vadd.f32 %v1412_v9, %v1092_v1 }
 0x1dc   : > { %v3238_v1 = vmul.f32 %v14980_v25, %v14928_v15 }
 0x1dd   : > { %v1823_v4 = vadd.f32 %v1778_v28, %v1458_v38  ;;  %v1822_v37 = vadd.f32 %v1777_v10, %v1457_v52  ;;  %v3237_v28 = vmul.f32 %v14980_v25, %v14930_v35  ;;  %v1879_v52 = vld [vmem:[%s14027_s14 + $0xe5] sm:$0xff] }
 0x1de   : > { %v3427_v58 = vpop.permute.xlu1 %3426  ;;  %v3422_v41 = vpop.permute.xlu0 %3421 }
 0x1df   : > { %v3601_v49 = vmul.f32 %v15006_v54, %v3427_v58  ;;  %v3600_v32 = vmul.f32 %v15006_v54, %v3422_v41  ;;  %1671 = vperm.xlu1 %13720, %v1515_v20   ;;  %1666 = vperm.xlu0 %13719, %v1514_v5   ;;  %v2508_v41 = vmul.f32 %v14950_v12, %v14822_v53  ;;  %v1878_v5 = vld [vmem:[%s14027_s14 + $0xdd] sm:$0xff]  ;;  %v1877_v53 = vld [vmem:[%s14027_s14 + $0xd5] sm:$0xff] }
 0x1e0   : > { %v2188_v24 = vadd.f32 %v2143_v2, %v1823_v4  ;;  %v2873_v20 = vmul.f32 %v14967_v23, %v14857_v19  ;;  %v2187_v9 = vadd.f32 %v2142_v6, %v1822_v37  ;;  %v1880_v2 = vld [vmem:[%s14027_s14 + $0xed] sm:$0xff] }
 0x1e1   : > { %v3646_v21 = vadd.f32 %v3601_v49, %v3281_v63  ;;  %v3645_v55 = vadd.f32 %v3600_v32, %v3280_v36 }
 0x1e2   : > { %v15019_v58 = vpop.permute.xlu1 %556  ;;  %v15021_v0 = vpop.permute.xlu0 %551  ;;  %v2553_v57 = vadd.f32 %v2508_v41, %v2188_v24  ;;  %v2552_v19 = vadd.f32 %v2507_v40, %v2187_v9  ;;  %v2243_v24 = vld [vmem:[%s14027_s14 + $0xde] sm:$0xff]  ;;  %v2245_v9 = vld [vmem:[%s14027_s14 + $0xee] sm:$0xff] }
 0x1e3   : > { %17814 = vst [vmem:[#allocation19_spill] sm:$0xff] %v15019_v58  ;;  %17815 = vst [vmem:[#allocation20_spill] sm:$0xff] %v15021_v0  ;;  %v3691_v46 = vmax.f32 %v3646_v21, 0.0  ;;  %v3690_v44 = vmax.f32 %v3645_v55, 0.0  ;;  %3111 = vperm.xlu1 %13720, %v15013_v48   ;;  %3106 = vperm.xlu0 %13719, %v14844_v8  }
 0x1e4   : > { %v2918_v61 = vadd.f32 %v2873_v20, %v2553_v57  ;;  %v2917_v10 = vadd.f32 %v2872_v51, %v2552_v19  ;;  %v2242_v20 = vld [vmem:[%s14027_s14 + $0xd6] sm:$0xff]  ;;  %v2244_v51 = vld [vmem:[%s14027_s14 + $0xe6] sm:$0xff] }
 0x1e5   : > { %3737 = vst.msk [vmem:[#allocation2 + $0x68] sm:$0xff] %vm3723_vm0, %v3691_v46  ;;  %3736 = vst.msk [vmem:[#allocation2 + $0x60] sm:$0xff] %vm3723_vm0, %v3690_v44 }
 0x1e6   : > { %v15037_v14 = vpop.permute.xlu1 %1996  ;;  %v15039_v8 = vpop.permute.xlu0 %1991  ;;  %v3283_v63 = vadd.f32 %v3238_v1, %v2918_v61  ;;  %v3282_v32 = vadd.f32 %v3237_v28, %v2917_v10  ;;  %v15079_v61 = vld [vmem:[%s14027_s14 + $0xf0] sm:$0xff]  ;;  %v15082_v10 = vld [vmem:[%s14027_s14 + $0xe8] sm:$0xff] }
 0x1e7   : > { %2026 = vperm.xlu1 %13720, %v1878_v5   ;;  %2021 = vperm.xlu0 %13719, %v1877_v53  }
 0x1ea   : > { %v3437_v36 = vpop.permute.xlu1 %3436  ;;  %v3432_v49 = vpop.permute.xlu0 %3431 }
 0x1eb   : > { %v3603_v15 = vmul.f32 %v15006_v54, %v3437_v36  ;;  %v3602_v38 = vmul.f32 %v15006_v54, %v3432_v49  ;;  %3466 = vperm.xlu1 %13720, %v14883_v16   ;;  %3461 = vperm.xlu0 %13719, %v14862_v34   ;;  %v15055_v34 = vld [vmem:[%s14027_s14 + $0xe2] sm:$0xff] }
 0x1ec   : > { %v3790_v35 = vld [vmem:[#allocation2 + $0x60] sm:$0xff]  ;;  %v3791_v6 = vld [vmem:[#allocation2 + $0x68] sm:$0xff] }
 0x1ed   : > { %v3648_v21 = vadd.f32 %v3603_v15, %v3283_v63  ;;  %v3647_v55 = vadd.f32 %v3602_v38, %v3282_v32  ;;  %v3824_v4 = vpack.c.bf16 %v3791_v6, %v3790_v35  ;;  %v15091_v49 = vld [vmem:[%s14027_s14 + $0x100] sm:$0xff]  ;;  %v15094_v32 = vld [vmem:[%s14027_s14 + $0xf8] sm:$0xff] }
 0x1ee   : > { %v15049_v41 = vpop.permute.xlu1 %911  ;;  %v15051_v37 = vpop.permute.xlu0 %906 }
 0x1ef   : > { %v3693_v40 = vmax.f32 %v3648_v21, 0.0  ;;  %v3692_v46 = vmax.f32 %v3647_v55, 0.0  ;;  %2036 = vperm.xlu1 %13720, %v1880_v2   ;;  %2031 = vperm.xlu0 %13719, %v1879_v52   ;;  %v15103_v2 = vld [vmem:[%s14027_s14 + $0xf1] sm:$0xff]  ;;  %v15106_v52 = vld [vmem:[%s14027_s14 + $0xe9] sm:$0xff]  ;;  %v15115_v21 = vld [vmem:[%s14027_s14 + $0x101] sm:$0xff] }
 0x1f0   : > { %12156 = vmatprep.mubr.msk.bf16.mxu0 %vm3723_vm0, %v3824_v4  ;;  %v15118_v55 = vld [vmem:[%s14027_s14 + $0xf9] sm:$0xff] }
 0x1f1   : > { %3739 = vst.msk [vmem:[#allocation2 + $0x78] sm:$0xff] %vm3723_vm0, %v3693_v40  ;;  %3738 = vst.msk [vmem:[#allocation2 + $0x70] sm:$0xff] %vm3723_vm0, %v3692_v46  ;;  %v15127_v46 = vld [vmem:[%s14027_s14 + $0xf2] sm:$0xff] }
 0x1f2   : > { %v15059_v16 = vpop.permute.xlu1 %2351  ;;  %v15061_v44 = vpop.permute.xlu0 %2346 }
 0x1f3   : > { %3476 = vperm.xlu1 %13720, %v15055_v34   ;;  %3471 = vperm.xlu0 %13719, %v14880_v7  }
 0x1f6   : > { %v15067_v5 = vpop.permute.xlu1 %921  ;;  %v15069_v53 = vpop.permute.xlu0 %916 }
 0x1f7   : > { %17816 = vst [vmem:[#allocation21_spill] sm:$0xff] %v15067_v5  ;;  %17817 = vst [vmem:[#allocation10_spill] sm:$0xff] %v15069_v53  ;;  %2391 = vperm.xlu1 %13720, %v2243_v24   ;;  %2386 = vperm.xlu0 %13719, %v2242_v20   ;;  %v15130_v24 = vld [vmem:[%s14027_s14 + $0xea] sm:$0xff]  ;;  %v1050_v53 = vmul.f32 %v14890_v11, %v14797_v39  ;;  %v1414_v39 = vmul.f32 %v14911_v47, %v14833_v59 }
 0x1f8   : > { %v3792_v57 = vld [vmem:[#allocation2 + $0x70] sm:$0xff]  ;;  %v3793_v1 = vld [vmem:[#allocation2 + $0x78] sm:$0xff] }
 0x1f9   : > { %v3825_v19 = vpack.c.bf16 %v3793_v1, %v3792_v57  ;;  %v15142_v57 = vld [vmem:[%s14027_s14 + $0xfa] sm:$0xff] }
 0x1fa   : > { %v15073_v28 = vpop.permute.xlu1 %2361  ;;  %v15075_v7 = vpop.permute.xlu0 %2356 }
 0x1fb   : > { %2401 = vperm.xlu1 %13720, %v2245_v9   ;;  %2396 = vperm.xlu0 %13719, %v2244_v51   ;;  %v15139_v51 = vld [vmem:[%s14027_s14 + $0x102] sm:$0xff] }
 0x1fc   : > { %12157 = vmatmul.mubr.msk.bf16.gmra.mrb[12].mxu0 %vm3723_vm0, %v3825_v19 }
 0x1fe   : > { %v15084_v63 = vpop.permute.xlu1 %1276  ;;  %v15086_v36 = vpop.permute.xlu0 %1271 }
 0x1ff   : > { %17818 = vst [vmem:[#allocation11_spill] sm:$0xff] %v15086_v36  ;;  %2756 = vperm.xlu1 %13720, %v15079_v61   ;;  %2751 = vperm.xlu0 %13719, %v15082_v10  }
 0x202   : > { %v15096_v15 = vpop.permute.xlu1 %2716  ;;  %v15098_v38 = vpop.permute.xlu0 %2711 }
 0x203   : > { %2766 = vperm.xlu1 %13720, %v15091_v49   ;;  %2761 = vperm.xlu0 %13719, %v15094_v32  }
 0x206   : > { %v15108_v35 = vpop.permute.xlu1 %1286  ;;  %v15110_v6 = vpop.permute.xlu0 %1281 }
 0x207   : > { %17819 = vst [vmem:[#allocation12_spill] sm:$0xff] %v15108_v35  ;;  %17820 = vst [vmem:[#allocation13_spill] sm:$0xff] %v15110_v6  ;;  %3121 = vperm.xlu1 %13720, %v15103_v2   ;;  %3116 = vperm.xlu0 %13719, %v15106_v52   ;;  %v685_v6 = vmul.f32 %v14875_v56, %v14717_v29  ;;  %v684_v35 = vmul.f32 %v14875_v56, %v14719_v50  ;;  %v1516_v50 = vld [vmem:[%s14027_s14 + $0xf4] sm:$0xff] }
 0x208   : > { %v1415_v29 = vmul.f32 %v14911_v47, %v14831_v18 }
 0x209   : > { %v729_v58 = vadd.f32 %v14905_v30, %v684_v35  ;;  %v2145_v35 = vmul.f32 %v14939_v13, %v14983_v62  ;;  %v686_v62 = vmul.f32 %v14875_v56, %v14768_v31 }
 0x20a   : > { %v15120_v4 = vpop.permute.xlu1 %2726  ;;  %v15122_v40 = vpop.permute.xlu0 %2721 }
 0x20b   : > { %3131 = vperm.xlu1 %13720, %v15115_v21   ;;  %3126 = vperm.xlu0 %13719, %v15118_v55  }
 0x20e   : > { %v15132_v20 = vpop.permute.xlu1 %1641  ;;  %v15134_v9 = vpop.permute.xlu0 %1636 }
 0x20f   : > { %17821 = vst [vmem:[#allocation22_spill] sm:$0xff] %v15132_v20  ;;  %17822 = vst [vmem:[#allocation23_spill] sm:$0xff] %v15134_v9  ;;  %3486 = vperm.xlu1 %13720, %v15127_v46   ;;  %3481 = vperm.xlu0 %13719, %v15130_v24   ;;  %v1049_v9 = vmul.f32 %v14890_v11, %v14799_v27  ;;  %v730_v20 = vadd.f32 %v14905_v30, %v685_v6 }
 0x210   : > { %v1779_v6 = vmul.f32 %v14924_v43, %v14866_v60  ;;  %v687_v60 = vmul.f32 %v14875_v56, %v14766_v33  ;;  %v2874_v33 = vmul.f32 %v14967_v23, %v15098_v38  ;;  %v1417_v38 = vmul.f32 %v14911_v47, %v14849_v26  ;;  %v13724_v26 = vld [vmem:[%s17714_s3 + $0x18] sm:$0xff]  }
 0x212   : > { %v3082_v1 = vpop.permute.xlu1 %3081  ;;  %v3077_v19 = vpop.permute.xlu0 %3076 }
 0x213   : > { %3496 = vperm.xlu1 %13720, %v15139_v51   ;;  %3491 = vperm.xlu0 %13719, %v15142_v57  }
 0x216   : > { %v15152_v5 = vpop.permute.xlu1 %1651  ;;  %v15154_v0 = vpop.permute.xlu0 %1646 }
 0x217   : > { %17823 = vst [vmem:[#allocation24_spill] sm:$0xff] %v15152_v5  ;;  %17824 = vst [vmem:[#allocation25_spill] sm:$0xff] %v15154_v0  ;;  %946 = vperm.xlu1 %13720, %v15013_v48   ;;  %581 = vperm.xlu0 %13719, %v14916_v22   ;;  %v1095_v5 = vadd.f32 %v1050_v53, %v730_v20  ;;  %v1780_v0 = vmul.f32 %v14924_v43, %v14864_v17 }
 0x218   : > { %v1094_v22 = vadd.f32 %v1049_v9, %v729_v58  ;;  %v2144_v53 = vmul.f32 %v14939_v13, %v14985_v45  ;;  %v2510_v20 = vmul.f32 %v14950_v12, %v15059_v16  ;;  %v1052_v16 = vmul.f32 %v14890_v11, %v14817_v3 }
 0x219   : > { %v1460_v18 = vadd.f32 %v1415_v29, %v1095_v5  ;;  %v2509_v5 = vmul.f32 %v14950_v12, %v15061_v44  ;;  %v1051_v44 = vmul.f32 %v14890_v11, %v14819_v42  ;;  %v732_v3 = vadd.f32 %v14905_v30, %v687_v60 }
 0x21a   : > { %v15169_v27 = vpop.permute.xlu1 %3091  ;;  %v15171_v48 = vpop.permute.xlu0 %3086  ;;  %v1459_v59 = vadd.f32 %v1414_v39, %v1094_v22  ;;  %v3239_v39 = vmul.f32 %v14980_v25, %v3077_v19  ;;  %v731_v42 = vadd.f32 %v14905_v30, %v686_v62  ;;  %v1881_v22 = vld [vmem:[%s14027_s14 + $0xf5] sm:$0xff]  ;;  %v17826_v19 = vld [vmem:[#allocation15_spill] sm:$0xff] }
 0x21b   : > { %1676 = vperm.xlu1 %13720, %v1516_v50   ;;  %1311 = vperm.xlu0 %13719, %v15055_v34   ;;  %v1825_v17 = vadd.f32 %v1780_v0, %v1460_v18  ;;  %v2875_v0 = vmul.f32 %v14967_v23, %v15096_v15  ;;  %v13723_v15 = vld [vmem:[%s17714_s3 + $0x10] sm:$0xff]   ;;  %v17825_v18 = vld [vmem:[#allocation14_spill] sm:$0xff] }
 0x21c   : > { %v1824_v34 = vadd.f32 %v1779_v6, %v1459_v59  ;;  %12184 = vmatprep.subr.bf16.mxu0 %v13723_v15  ;;  %v1097_v6 = vadd.f32 %v1052_v16, %v732_v3  ;;  %v2147_v16 = vmul.f32 %v14939_v13, %v15037_v14  ;;  %v2511_v14 = vmul.f32 %v14950_v12, %v15075_v7 }
 0x21d   : > { %v2190_v45 = vadd.f32 %v2145_v35, %v1825_v17  ;;  %v1416_v35 = vmul.f32 %v14911_v47, %v17825_v18  ;;  %12185 = vmatpush3.bf16.msra.mxu0 %v13723_v15  ;;  %v17827_v17 = vld [vmem:[#allocation16_spill] sm:$0xff]  ;;  %v2512_v15 = vmul.f32 %v14950_v12, %v15073_v28 }
 0x21e   : > { %v15182_v36 = vpop.permute.xlu1 %566  ;;  %v15184_v58 = vpop.permute.xlu0 %561  ;;  %v2189_v9 = vadd.f32 %v2144_v53, %v1824_v34  ;;  %v1096_v53 = vadd.f32 %v1051_v44, %v731_v42  ;;  %12186 = vmatprep.subr.bf16.mxu0 %v13724_v26 }
 0x21f   : > { %591 = vperm.xlu1 %13720, %v15079_v61   ;;  %586 = vperm.xlu0 %13719, %v15082_v10   ;;  %v2555_v61 = vadd.f32 %v2510_v20, %v2190_v45  ;;  %v3240_v10 = vmul.f32 %v14980_v25, %v3082_v1 }
 0x220   : > { %v2554_v50 = vadd.f32 %v2509_v5, %v2189_v9  ;;  %v1461_v9 = vadd.f32 %v1416_v35, %v1096_v53 }
 0x221   : > { %v2920_v1 = vadd.f32 %v2875_v0, %v2555_v61  ;;  %v1462_v0 = vadd.f32 %v1417_v38, %v1097_v6  ;;  %12187 = vmatpush3.bf16.msra.mxu0 %v13724_v26  ;;  %v2877_v38 = vmul.f32 %v14967_v23, %v15120_v4  ;;  %v3242_v6 = vmul.f32 %v14980_v25, %v15169_v27 }
 0x222   : > { %v15203_v29 = vpop.permute.xlu1 %2006  ;;  %v15205_v31 = vpop.permute.xlu0 %2001  ;;  %v2919_v59 = vadd.f32 %v2874_v33, %v2554_v50  ;;  %v2146_v33 = vmul.f32 %v14939_v13, %v15039_v8  ;;  %v3241_v4 = vmul.f32 %v14980_v25, %v15171_v48 }
 0x223   : > { %601 = vperm.xlu1 %13720, %v15091_v49   ;;  %596 = vperm.xlu0 %13719, %v15094_v32   ;;  %v1782_v49 = vmul.f32 %v14924_v43, %v17826_v19  ;;  %v1781_v32 = vmul.f32 %v14924_v43, %v17827_v17  ;;  %v3285_v20 = vadd.f32 %v3240_v10, %v2920_v1  ;;  %v2246_v1 = vld [vmem:[%s14027_s14 + $0xf6] sm:$0xff] }
 0x224   : > { %v3284_v5 = vadd.f32 %v3239_v39, %v2919_v59 }
 0x225   : > { %v1827_v10 = vadd.f32 %v1782_v49, %v1462_v0  ;;  %v1826_v50 = vadd.f32 %v1781_v32, %v1461_v9 }
 0x226   : > { %v3447_v60 = vpop.permute.xlu1 %3446  ;;  %v3442_v34 = vpop.permute.xlu0 %3441 }
 0x227   : > { %v3605_v62 = vmul.f32 %v15006_v54, %v3447_v60  ;;  %v3604_v45 = vmul.f32 %v15006_v54, %v3442_v34  ;;  %951 = vperm.xlu1 %13720, %v15106_v52   ;;  %2041 = vperm.xlu0 %13719, %v1881_v22   ;;  %v2192_v8 = vadd.f32 %v2147_v16, %v1827_v10  ;;  %v1519_v16 = vld [vmem:[%s14027_s14 + $0x10c] sm:$0xff] }
 0x228   : > { %v2191_v28 = vadd.f32 %v2146_v33, %v1826_v50  ;;  %v2876_v22 = vmul.f32 %v14967_v23, %v15122_v40  ;;  %v2976_v33 = vld [vmem:[%s14027_s14 + $0x109] sm:$0xff] }
 0x229   : > { %v3650_v44 = vadd.f32 %v3605_v62, %v3285_v20  ;;  %v3649_v61 = vadd.f32 %v3604_v45, %v3284_v5  ;;  %v2557_v7 = vadd.f32 %v2512_v15, %v2192_v8 }
 0x22a   : > { %v15236_v3 = vpop.permute.xlu1 %576  ;;  %v15238_v52 = vpop.permute.xlu0 %571  ;;  %v2556_v18 = vadd.f32 %v2511_v14, %v2191_v28 }
 0x22b   : > { %v3695_v39 = vmax.f32 %v3650_v44, 0.0  ;;  %v3694_v42 = vmax.f32 %v3649_v61, 0.0  ;;  %961 = vperm.xlu1 %13720, %v15118_v55   ;;  %956 = vperm.xlu0 %13719, %v15103_v2   ;;  %v2922_v40 = vadd.f32 %v2877_v38, %v2557_v7  ;;  %v1520_v44 = vld [vmem:[%s14027_s14 + $0x114] sm:$0xff]  ;;  %v1883_v38 = vld [vmem:[%s14027_s14 + $0x105] sm:$0xff] }
 0x22c   : > { %v2921_v35 = vadd.f32 %v2876_v22, %v2556_v18  ;;  %v15307_v7 = vld [vmem:[%s14027_s14 + $0x120] sm:$0xff] }
 0x22d   : > { %3741 = vst.msk [vmem:[#allocation2 + $0x88] sm:$0xff] %vm3723_vm0, %v3695_v39  ;;  %3740 = vst.msk [vmem:[#allocation2 + $0x80] sm:$0xff] %vm3723_vm0, %v3694_v42  ;;  %v3287_v59 = vadd.f32 %v3242_v6, %v2922_v40  ;;  %v15293_v39 = vld [vmem:[%s14027_s14 + $0x110] sm:$0xff]  ;;  %v15310_v6 = vld [vmem:[%s14027_s14 + $0x118] sm:$0xff] }
 0x22e   : > { %v15253_v55 = vpop.permute.xlu1 %2016  ;;  %v15255_v2 = vpop.permute.xlu0 %2011  ;;  %v3286_v49 = vadd.f32 %v3241_v4, %v2921_v35  ;;  %v1885_v40 = vld [vmem:[%s14027_s14 + $0x115] sm:$0xff]  ;;  %v1884_v35 = vld [vmem:[%s14027_s14 + $0x10d] sm:$0xff] }
 0x22f   : > { %2406 = vperm.xlu1 %13720, %v2246_v1   ;;  %966 = vperm.xlu0 %13719, %v15115_v21   ;;  %v1882_v1 = vld [vmem:[%s14027_s14 + $0xfd] sm:$0xff] }
 0x232   : > { %v3457_v53 = vpop.permute.xlu1 %3456  ;;  %v3452_v19 = vpop.permute.xlu0 %3451 }
 0x233   : > { %v3607_v17 = vmul.f32 %v15006_v54, %v3457_v53  ;;  %v3606_v27 = vmul.f32 %v15006_v54, %v3452_v19  ;;  %1321 = vperm.xlu1 %13720, %v15127_v46   ;;  %1316 = vperm.xlu0 %13719, %v15130_v24   ;;  %v1517_v46 = vld [vmem:[%s14027_s14 + $0xfc] sm:$0xff]  ;;  %v2611_v24 = vld [vmem:[%s14027_s14 + $0x108] sm:$0xff] }
 0x234   : > { %v3794_v48 = vld [vmem:[#allocation2 + $0x80] sm:$0xff]  ;;  %v3795_v32 = vld [vmem:[#allocation2 + $0x88] sm:$0xff] }
 0x235   : > { %v3652_v20 = vadd.f32 %v3607_v17, %v3287_v59  ;;  %v3651_v21 = vadd.f32 %v3606_v27, %v3286_v49  ;;  %v3826_v60 = vpack.c.bf16 %v3795_v32, %v3794_v48  ;;  %v15325_v19 = vld [vmem:[%s14027_s14 + $0x10a] sm:$0xff]  ;;  %v17831_v27 = vld [vmem:[#allocation17_spill] sm:$0xff]  ;;  %v2247_v32 = vld [vmem:[%s14027_s14 + $0xfe] sm:$0xff] }
 0x236   : > { %v15264_v34 = vpop.permute.xlu1 %931  ;;  %v15266_v26 = vpop.permute.xlu0 %926  ;;  %v689_v48 = vmul.f32 %v14875_v56, %v17831_v27 }
 0x237   : > { %v3697_v5 = vmax.f32 %v3652_v20, 0.0  ;;  %v3696_v62 = vmax.f32 %v3651_v21, 0.0  ;;  %1331 = vperm.xlu1 %13720, %v15139_v51   ;;  %1326 = vperm.xlu0 %13719, %v15142_v57   ;;  %v1518_v51 = vld [vmem:[%s14027_s14 + $0x104] sm:$0xff]  ;;  %v15336_v20 = vld [vmem:[%s14027_s14 + $0x111] sm:$0xff]  ;;  %v17832_v21 = vld [vmem:[#allocation18_spill] sm:$0xff] }
 0x238   : > { %12160 = vmatprep.mubr.msk.bf16.mxu0 %vm3723_vm0, %v3826_v60  ;;  %v688_v60 = vmul.f32 %v14875_v56, %v17832_v21  ;;  %v17839_v21 = vld [vmem:[#allocation20_spill] sm:$0xff] }
 0x239   : > { %3743 = vst.msk [vmem:[#allocation2 + $0x98] sm:$0xff] %vm3723_vm0, %v3697_v5  ;;  %3742 = vst.msk [vmem:[#allocation2 + $0x90] sm:$0xff] %vm3723_vm0, %v3696_v62  ;;  %v1054_v5 = vmul.f32 %v14890_v11, %v15049_v41 }
 0x23a   : > { %v15275_v45 = vpop.permute.xlu1 %2371  ;;  %v15277_v0 = vpop.permute.xlu0 %2366  ;;  %v733_v41 = vadd.f32 %v14905_v30, %v688_v60  ;;  %v690_v60 = vmul.f32 %v14875_v56, %v17839_v21 }
 0x23b   : > { %1681 = vperm.xlu1 %13720, %v1517_v46   ;;  %2771 = vperm.xlu0 %13719, %v2611_v24  }
 0x23e   : > { %v15281_v57 = vpop.permute.xlu1 %941  ;;  %v15283_v9 = vpop.permute.xlu0 %936 }
 0x23f   : > { %1691 = vperm.xlu1 %13720, %v1519_v16   ;;  %1686 = vperm.xlu0 %13719, %v1518_v51   ;;  %v734_v16 = vadd.f32 %v14905_v30, %v689_v48  ;;  %v1419_v51 = vmul.f32 %v14911_v47, %v15084_v63  ;;  %v17838_v48 = vld [vmem:[#allocation23_spill] sm:$0xff] }
 0x240   : > { %v3796_v61 = vld [vmem:[#allocation2 + $0x90] sm:$0xff]  ;;  %v3797_v10 = vld [vmem:[#allocation2 + $0x98] sm:$0xff] }
 0x241   : > { %v3827_v15 = vpack.c.bf16 %v3797_v10, %v3796_v61  ;;  %v17833_v61 = vld [vmem:[#allocation11_spill] sm:$0xff] }
 0x242   : > { %v15287_v50 = vpop.permute.xlu1 %2381  ;;  %v15289_v14 = vpop.permute.xlu0 %2376  ;;  %v1418_v10 = vmul.f32 %v14911_v47, %v17833_v61 }
 0x243   : > { %3136 = vperm.xlu1 %13720, %v2976_v33   ;;  %1696 = vperm.xlu0 %13719, %v1520_v44   ;;  %v2248_v44 = vld [vmem:[%s14027_s14 + $0x106] sm:$0xff] }
 0x244   : > { %12161 = vmatmul.mubr.msk.bf16.gmra.mrb[16].mxu0 %vm3723_vm0, %v3827_v15  ;;  %v17834_v15 = vld [vmem:[#allocation19_spill] sm:$0xff] }
 0x246   : > { %v15295_v42 = vpop.permute.xlu1 %1296  ;;  %v15297_v8 = vpop.permute.xlu0 %1291 }
 0x247   : > { %611 = vperm.xlu1 %13720, %v15293_v39   ;;  %606 = vperm.xlu0 %13719, %v2611_v24   ;;  %v1053_v24 = vmul.f32 %v14890_v11, %v15051_v37  ;;  %v691_v37 = vmul.f32 %v14875_v56, %v17834_v15  ;;  %v15372_v15 = vld [vmem:[%s14027_s14 + $0x121] sm:$0xff] }
 0x248   : > { %17840 = vst [vmem:[#allocation11_spill] sm:$0xff] %v15372_v15 }
 0x249   : > { %v1098_v27 = vadd.f32 %v1053_v24, %v733_v41  ;;  %v2148_v41 = vmul.f32 %v14939_v13, %v15205_v31  ;;  %v735_v31 = vadd.f32 %v14905_v30, %v690_v60 }
 0x24a   : > { %v15302_v28 = vpop.permute.xlu1 %2736  ;;  %v15304_v22 = vpop.permute.xlu0 %2731 }
 0x24b   : > { %2051 = vperm.xlu1 %13720, %v1883_v38   ;;  %2046 = vperm.xlu0 %13719, %v1882_v1   ;;  %v1099_v38 = vadd.f32 %v1054_v5, %v734_v16  ;;  %v17835_v1 = vld [vmem:[#allocation22_spill] sm:$0xff]  ;;  %v2149_v5 = vmul.f32 %v14939_v13, %v15203_v29  ;;  %v2249_v16 = vld [vmem:[%s14027_s14 + $0x10e] sm:$0xff]  ;;  %v1463_v24 = vadd.f32 %v1418_v10, %v1098_v27 }
 0x24c   : > { %v2514_v29 = vmul.f32 %v14950_v12, %v15275_v45  ;;  %v2513_v10 = vmul.f32 %v14950_v12, %v15277_v0  ;;  %v2879_v45 = vmul.f32 %v14967_v23, %v15302_v28  ;;  %v2878_v0 = vmul.f32 %v14967_v23, %v15304_v22 }
 0x24d   : > { %v1464_v61 = vadd.f32 %v1419_v51, %v1099_v38  ;;  %v2151_v22 = vmul.f32 %v14939_v13, %v15253_v55 }
 0x24e   : > { %v15312_v18 = vpop.permute.xlu1 %1306  ;;  %v15314_v4 = vpop.permute.xlu0 %1301 }
 0x24f   : > { %17828 = vst [vmem:[#allocation14_spill] sm:$0xff] %v15314_v4  ;;  %621 = vperm.xlu1 %13720, %v15307_v7   ;;  %616 = vperm.xlu0 %13719, %v15310_v6   ;;  %v17843_v4 = vld [vmem:[#allocation12_spill] sm:$0xff] }
 0x252   : > { %v15320_v59 = vpop.permute.xlu1 %2746  ;;  %v15322_v53 = vpop.permute.xlu0 %2741 }
 0x253   : > { %2061 = vperm.xlu1 %13720, %v1885_v40   ;;  %2056 = vperm.xlu0 %13719, %v1884_v35   ;;  %v1784_v40 = vmul.f32 %v14924_v43, %v17835_v1  ;;  %v17841_v1 = vld [vmem:[#allocation21_spill] sm:$0xff] }
 0x255   : > { %v1829_v51 = vadd.f32 %v1784_v40, %v1464_v61  ;;  %v2250_v61 = vld [vmem:[%s14027_s14 + $0x116] sm:$0xff] }
 0x256   : > { %v15327_v49 = vpop.permute.xlu1 %1661  ;;  %v15329_v17 = vpop.permute.xlu0 %1656 }
 0x257   : > { %17829 = vst [vmem:[#allocation15_spill] sm:$0xff] %v15327_v49  ;;  %17830 = vst [vmem:[#allocation16_spill] sm:$0xff] %v15329_v17  ;;  %971 = vperm.xlu1 %13720, %v2976_v33   ;;  %3501 = vperm.xlu0 %13719, %v15325_v19   ;;  %v15349_v33 = vld [vmem:[%s14027_s14 + $0x119] sm:$0xff]  ;;  %v1421_v17 = vmul.f32 %v14911_v47, %v17843_v4  ;;  %v2194_v27 = vadd.f32 %v2149_v5, %v1829_v51  ;;  %v17845_v49 = vld [vmem:[#allocation24_spill] sm:$0xff] }
 0x258   : > { %v1786_v4 = vmul.f32 %v14924_v43, %v17845_v49 }
 0x25a   : > { %v3102_v62 = vpop.permute.xlu1 %3101  ;;  %v3097_v46 = vpop.permute.xlu0 %3096 }
 0x25b   : > { %2411 = vperm.xlu1 %13720, %v2247_v32   ;;  %976 = vperm.xlu0 %13719, %v15336_v20   ;;  %v1783_v32 = vmul.f32 %v14924_v43, %v17838_v48  ;;  %v17842_v48 = vld [vmem:[#allocation10_spill] sm:$0xff]  ;;  %v3244_v5 = vmul.f32 %v14980_v25, %v3102_v62  ;;  %v3243_v49 = vmul.f32 %v14980_v25, %v3097_v46 }
 0x25c   : > { %v1055_v21 = vmul.f32 %v14890_v11, %v17842_v48  ;;  %v2150_v62 = vmul.f32 %v14939_v13, %v15255_v2  ;;  %v2516_v46 = vmul.f32 %v14950_v12, %v15287_v50  ;;  %v2881_v2 = vmul.f32 %v14967_v23, %v15320_v59  ;;  %v15425_v50 = vld [vmem:[%s14027_s14 + $0x11a] sm:$0xff] }
 0x25e   : > { %v15359_v35 = vpop.permute.xlu1 %1671  ;;  %v15361_v63 = vpop.permute.xlu0 %1666 }
 0x25f   : > { %17836 = vst [vmem:[#allocation17_spill] sm:$0xff] %v15359_v35  ;;  %17837 = vst [vmem:[#allocation18_spill] sm:$0xff] %v15361_v63  ;;  %981 = vperm.xlu1 %13720, %v15349_v33   ;;  %2416 = vperm.xlu0 %13719, %v2248_v44   ;;  %v1056_v63 = vmul.f32 %v14890_v11, %v17841_v1  ;;  %v736_v44 = vadd.f32 %v14905_v30, %v691_v37  ;;  %v17844_v37 = vld [vmem:[#allocation13_spill] sm:$0xff] }
 0x260   : > { %v1828_v1 = vadd.f32 %v1783_v32, %v1463_v24  ;;  %v1420_v40 = vmul.f32 %v14911_v47, %v17844_v37  ;;  %v17846_v24 = vld [vmem:[#allocation25_spill] sm:$0xff] }
 0x261   : > { %v1101_v48 = vadd.f32 %v1056_v63, %v736_v44  ;;  %v1785_v60 = vmul.f32 %v14924_v43, %v17846_v24 }
 0x262   : > { %v3112_v38 = vpop.permute.xlu1 %3111  ;;  %v3107_v35 = vpop.permute.xlu0 %3106  ;;  %v2193_v32 = vadd.f32 %v2148_v41, %v1828_v1  ;;  %v15410_v1 = vld [vmem:[%s14027_s14 + $0x112] sm:$0xff] }
 0x263   : > { %2421 = vperm.xlu1 %13720, %v2249_v16   ;;  %986 = vperm.xlu0 %13719, %v15372_v15   ;;  %v1100_v16 = vadd.f32 %v1055_v21, %v735_v31  ;;  %v2559_v15 = vadd.f32 %v2514_v29, %v2194_v27  ;;  %v1466_v63 = vadd.f32 %v1421_v17, %v1101_v48 }
 0x264   : > { %v2558_v44 = vadd.f32 %v2513_v10, %v2193_v32 }
 0x265   : > { %v1465_v41 = vadd.f32 %v1420_v40, %v1100_v16  ;;  %v2924_v21 = vadd.f32 %v2879_v45, %v2559_v15  ;;  %v1831_v29 = vadd.f32 %v1786_v4, %v1466_v63  ;;  %v3246_v4 = vmul.f32 %v14980_v25, %v3112_v38 }
 0x266   : > { %v15401_v51 = vpop.permute.xlu1 %2026  ;;  %v15403_v28 = vpop.permute.xlu0 %2021  ;;  %v2923_v31 = vadd.f32 %v2878_v0, %v2558_v44  ;;  %v3245_v16 = vmul.f32 %v14980_v25, %v3107_v35 }
 0x267   : > { %1336 = vperm.xlu1 %13720, %v15325_v19   ;;  %2426 = vperm.xlu0 %13719, %v2250_v61   ;;  %v1830_v17 = vadd.f32 %v1785_v60, %v1465_v41  ;;  %v2515_v19 = vmul.f32 %v14950_v12, %v15289_v14  ;;  %v3289_v10 = vadd.f32 %v3244_v5, %v2924_v21 }
 0x268   : > { %v3288_v55 = vadd.f32 %v3243_v49, %v2923_v31  ;;  %v2196_v13 = vadd.f32 %v2151_v22, %v1831_v29  ;;  %v2880_v14 = vmul.f32 %v14967_v23, %v15322_v53  ;;  %v15438_v53 = vld [vmem:[%s14027_s14 + $0x122] sm:$0xff] }
 0x269   : > { %v2195_v12 = vadd.f32 %v2150_v62, %v1830_v17  ;;  %v15448_v49 = vld [vmem:[%s14027_s14 + $0x128] sm:$0xff] }
 0x26a   : > { %v3467_v37 = vpop.permute.xlu1 %3466  ;;  %v3462_v40 = vpop.permute.xlu0 %3461  ;;  %v2561_v48 = vadd.f32 %v2516_v46, %v2196_v13 }
 0x26b   : > { %v3609_v15 = vmul.f32 %v15006_v54, %v3467_v37  ;;  %v3608_v27 = vmul.f32 %v15006_v54, %v3462_v40  ;;  %2776 = vperm.xlu1 %13720, %v15293_v39   ;;  %1341 = vperm.xlu0 %13719, %v15410_v1   ;;  %v2560_v0 = vadd.f32 %v2515_v19, %v2195_v12  ;;  %v1523_v40 = vld [vmem:[%s14027_s14 + $0x12c] sm:$0xff]  ;;  %v1524_v12 = vld [vmem:[%s14027_s14 + $0x134] sm:$0xff] }
 0x26c   : > { %v2926_v23 = vadd.f32 %v2881_v2, %v2561_v48  ;;  %v693_v37 = vmul.f32 %v14875_v56, %v15182_v36  ;;  %v1057_v36 = vmul.f32 %v14890_v11, %v15266_v26  ;;  %v1422_v26 = vmul.f32 %v14911_v47, %v15297_v8  ;;  %v17847_v48 = vld [vmem:[#allocation15_spill] sm:$0xff] }
 0x26d   : > { %v3654_v45 = vadd.f32 %v3609_v15, %v3289_v10  ;;  %v3653_v61 = vadd.f32 %v3608_v27, %v3288_v55  ;;  %v2925_v60 = vadd.f32 %v2880_v14, %v2560_v0  ;;  %v692_v55 = vmul.f32 %v14875_v56, %v15184_v58 }
 0x26e   : > { %v15430_v32 = vpop.permute.xlu1 %2036  ;;  %v15432_v39 = vpop.permute.xlu0 %2031  ;;  %v3291_v38 = vadd.f32 %v3246_v4, %v2926_v23  ;;  %v695_v15 = vmul.f32 %v14875_v56, %v15236_v3  ;;  %v1058_v27 = vmul.f32 %v14890_v11, %v15264_v34  ;;  %v738_v58 = vadd.f32 %v14905_v30, %v693_v37 }
 0x26f   : > { %v3699_v59 = vmax.f32 %v3654_v45, 0.0  ;;  %v3698_v24 = vmax.f32 %v3653_v61, 0.0  ;;  %1346 = vperm.xlu1 %13720, %v15425_v50   ;;  %2781 = vperm.xlu0 %13719, %v15310_v6   ;;  %v3290_v25 = vadd.f32 %v3245_v16, %v2925_v60  ;;  %v1521_v6 = vld [vmem:[%s14027_s14 + $0x11c] sm:$0xff]  ;;  %v1060_v3 = vmul.f32 %v14890_v11, %v15281_v57 }
 0x270   : > { %v1423_v34 = vmul.f32 %v14911_v47, %v15295_v42  ;;  %v737_v61 = vadd.f32 %v14905_v30, %v692_v55  ;;  %v15499_v57 = vld [vmem:[%s17713_s2] ss:$0 sm:$0xff]  ;;  %v1103_v30 = vadd.f32 %v1058_v27, %v738_v58  ;;  %v1788_v47 = vmul.f32 %v14924_v43, %v17847_v48  ;;  %v17849_v60 = vld [vmem:[#allocation11_spill] sm:$0xff] }
 0x271   : > { %3745 = vst.msk [vmem:[#allocation2 + $0xa8] sm:$0xff] %vm3723_vm0, %v3699_v59  ;;  %3744 = vst.msk [vmem:[#allocation2 + $0xa0] sm:$0xff] %vm3723_vm0, %v3698_v24  ;;  %v740_v42 = vadd.f32 %v15499_v57, %v695_v15  ;;  %v15515_v59 = vld [vmem:[%s17712_s1 + $0x3] ss:$0 sm:$0xff]  ;;  %v17848_v24 = vld [vmem:[#allocation16_spill] sm:$0xff] }
 0x272   : > { %v3477_v5 = vpop.permute.xlu1 %3476  ;;  %v3472_v63 = vpop.permute.xlu0 %3471  ;;  %v1102_v16 = vadd.f32 %v1057_v36, %v737_v61  ;;  %v1787_v23 = vmul.f32 %v15515_v59, %v17848_v24  ;;  %v1887_v48 = vld [vmem:[%s14027_s14 + $0x125] sm:$0xff] }
 0x273   : > { %v3611_v35 = vmul.f32 %v15006_v54, %v3477_v5  ;;  %v3610_v44 = vmul.f32 %v15006_v54, %v3472_v63  ;;  %2786 = vperm.xlu1 %13720, %v15307_v7   ;;  %1351 = vperm.xlu0 %13719, %v15438_v53   ;;  %v1522_v54 = vld [vmem:[%s14027_s14 + $0x124] sm:$0xff]  ;;  %v17850_v5 = vld [vmem:[#allocation14_spill] sm:$0xff] }
 0x274   : > { %v15525_v63 = vld [vmem:[%s17712_s1 + $0x4] ss:$0 sm:$0xff] }
 0x275   : > { %v3656_v41 = vadd.f32 %v3611_v35, %v3291_v38  ;;  %v3655_v22 = vadd.f32 %v3610_v44, %v3290_v25  ;;  %v1468_v38 = vadd.f32 %v1423_v34, %v1103_v30  ;;  %v2153_v25 = vmul.f32 %v15525_v63, %v15401_v51  ;;  %v15531_v35 = vld [vmem:[%s14027_s14 + $0x129] sm:$0xff]  ;;  %v15542_v51 = vld [vmem:[%s17712_s1 + $0x5] ss:$0 sm:$0xff] }
 0x276   : > { %v15450_v21 = vpop.permute.xlu1 %2391  ;;  %v15452_v29 = vpop.permute.xlu0 %2386  ;;  %v2154_v36 = vmul.f32 %v15525_v63, %v15432_v39 }
 0x277   : > { %v3701_v62 = vmax.f32 %v3656_v41, 0.0  ;;  %v3700_v31 = vmax.f32 %v3655_v22, 0.0  ;;  %1701 = vperm.xlu1 %13720, %v1521_v6   ;;  %2791 = vperm.xlu0 %13719, %v15448_v49   ;;  %v1467_v6 = vadd.f32 %v1422_v26, %v1102_v16  ;;  %v17851_v41 = vld [vmem:[#allocation17_spill] sm:$0xff]  ;;  %v2517_v15 = vmul.f32 %v15542_v51, %v15452_v29 }
 0x278   : > { %v3798_v17 = vld [vmem:[#allocation2 + $0xa0] sm:$0xff]  ;;  %v3799_v7 = vld [vmem:[#allocation2 + $0xa8] sm:$0xff]  ;;  %v1790_v22 = vmul.f32 %v15515_v59, %v17851_v41 }
 0x279   : > { %3747 = vst.msk [vmem:[#allocation2 + $0xb8] sm:$0xff] %vm3723_vm0, %v3701_v62  ;;  %3746 = vst.msk [vmem:[#allocation2 + $0xb0] sm:$0xff] %vm3723_vm0, %v3700_v31  ;;  %v3828_v46 = vpack.c.bf16 %v3799_v7, %v3798_v17  ;;  %v2152_v62 = vmul.f32 %v15525_v63, %v15403_v28  ;;  %v17852_v17 = vld [vmem:[#allocation18_spill] sm:$0xff]  ;;  %v1832_v55 = vadd.f32 %v1787_v23, %v1467_v6 }
 0x27a   : > { %v15458_v19 = vpop.permute.xlu1 %2401  ;;  %v15460_v10 = vpop.permute.xlu0 %2396  ;;  %v1789_v7 = vmul.f32 %v15515_v59, %v17852_v17  ;;  %v2155_v28 = vmul.f32 %v15525_v63, %v15430_v32  ;;  %v1886_v32 = vld [vmem:[%s14027_s14 + $0x11d] sm:$0xff] }
 0x27b   : > { %3141 = vperm.xlu1 %13720, %v15336_v20   ;;  %1706 = vperm.xlu0 %13719, %v1522_v54   ;;  %v694_v20 = vmul.f32 %v14875_v56, %v15238_v52  ;;  %v15490_v56 = vld [vmem:[%s17712_s1 + $0x1] ss:$0 sm:$0xff]  ;;  %v1833_v54 = vadd.f32 %v1788_v47, %v1468_v38  ;;  %v2197_v34 = vadd.f32 %v2152_v62, %v1832_v55  ;;  %v15592_v6 = vld [vmem:[%s14027_s14 + $0x138] sm:$0xff]  ;;  %v1888_v55 = vld [vmem:[%s14027_s14 + $0x12d] sm:$0xff] }
 0x27c   : > { %12164 = vmatprep.mubr.msk.bf16.mxu0 %vm3723_vm0, %v3828_v46  ;;  %v1059_v52 = vmul.f32 %v15490_v56, %v15283_v9  ;;  %v2518_v46 = vmul.f32 %v15542_v51, %v15450_v21  ;;  %v15557_v21 = vld [vmem:[%s17712_s1 + $0x6] ss:$0 sm:$0xff] }
 0x27d   : > { %v739_v0 = vadd.f32 %v15499_v57, %v694_v20  ;;  %v2198_v20 = vadd.f32 %v2153_v25, %v1833_v54 }
 0x27e   : > { %v2757_v13 = vpop.permute.xlu1 %2756  ;;  %v15473_v2 = vpop.permute.xlu0 %2751 }
 0x27f   : > { %1711 = vperm.xlu1 %13720, %v1523_v40   ;;  %3146 = vperm.xlu0 %13719, %v15349_v33   ;;  %v15505_v33 = vld [vmem:[%s17712_s1 + $0x2] ss:$0 sm:$0xff]  ;;  %v1104_v44 = vadd.f32 %v1059_v52, %v739_v0  ;;  %v2883_v58 = vmul.f32 %v15557_v21, %v2757_v13  ;;  %v2563_v39 = vadd.f32 %v2518_v46, %v2198_v20  ;;  %v15573_v13 = vld [vmem:[%s17712_s1 + $0x7] ss:$0 sm:$0xff] }
 0x280   : > { %v3800_v14 = vld [vmem:[#allocation2 + $0xb0] sm:$0xff]  ;;  %v3801_v45 = vld [vmem:[#allocation2 + $0xb8] sm:$0xff]  ;;  %v1425_v9 = vmul.f32 %v15505_v33, %v15312_v18  ;;  %v1105_v18 = vadd.f32 %v1060_v3, %v740_v42  ;;  %v1424_v43 = vmul.f32 %v15505_v33, %v17850_v5 }
 0x281   : > { %v3829_v11 = vpack.c.bf16 %v3801_v45, %v3800_v14  ;;  %v15562_v3 = vld [vmem:[%s14027_s14 + $0x130] sm:$0xff]  ;;  %v2519_v45 = vmul.f32 %v15542_v51, %v15460_v10  ;;  %v2928_v30 = vadd.f32 %v2883_v58, %v2563_v39 }
 0x282   : > { %v2767_v8 = vpop.permute.xlu1 %2766  ;;  %v2762_v4 = vpop.permute.xlu0 %2761  ;;  %v1470_v31 = vadd.f32 %v1425_v9, %v1105_v18  ;;  %v1469_v27 = vadd.f32 %v1424_v43, %v1104_v44  ;;  %v15586_v43 = vld [vmem:[%s17712_s1 + $0x8] ss:$0 sm:$0xff] }
 0x283   : > { %3151 = vperm.xlu1 %13720, %v17849_v60   ;;  %1716 = vperm.xlu0 %13719, %v1524_v12   ;;  %v2882_v12 = vmul.f32 %v15557_v21, %v15473_v2  ;;  %v2885_v10 = vmul.f32 %v15557_v21, %v2767_v8  ;;  %v2884_v9 = vmul.f32 %v15557_v21, %v2762_v4 }
 0x284   : > { %12165 = vmatmul.mubr.msk.bf16.gmra.mrb[20].mxu0 %vm3723_vm0, %v3829_v11  ;;  %v1835_v29 = vadd.f32 %v1790_v22, %v1470_v31  ;;  %v1834_v14 = vadd.f32 %v1789_v7, %v1469_v27 }
 0x286   : > { %v3122_v37 = vpop.permute.xlu1 %3121  ;;  %v3117_v40 = vpop.permute.xlu0 %3116  ;;  %v2200_v11 = vadd.f32 %v2155_v28, %v1835_v29  ;;  %v2199_v2 = vadd.f32 %v2154_v36, %v1834_v14 }
 0x287   : > { %626 = vperm.xlu1 %13720, %v15448_v49   ;;  %3156 = vperm.xlu0 %13719, %v15531_v35   ;;  %v2520_v49 = vmul.f32 %v15542_v51, %v15458_v19  ;;  %v3248_v61 = vmul.f32 %v15573_v13, %v3122_v37  ;;  %v2562_v19 = vadd.f32 %v2517_v15, %v2197_v34  ;;  %v15615_v34 = vld [vmem:[%s14027_s14 + $0x131] sm:$0xff] }
 0x288   : > { %v3247_v42 = vmul.f32 %v15573_v13, %v3117_v40  ;;  %v2564_v16 = vadd.f32 %v2519_v45, %v2199_v2  ;;  %v1889_v40 = vld [vmem:[%s14027_s14 + $0x135] sm:$0xff] }
 0x289   : > { %v2565_v47 = vadd.f32 %v2520_v49, %v2200_v11  ;;  %v2927_v0 = vadd.f32 %v2882_v12, %v2562_v19  ;;  %v3293_v24 = vadd.f32 %v3248_v61, %v2928_v30  ;;  %v2252_v61 = vld [vmem:[%s14027_s14 + $0x126] sm:$0xff] }
 0x28a   : > { %v3132_v52 = vpop.permute.xlu1 %3131  ;;  %v3127_v26 = vpop.permute.xlu0 %3126  ;;  %v2929_v44 = vadd.f32 %v2884_v9, %v2564_v16  ;;  %v4147_v30 = vld [vmem:[#allocation2 + $0x1] sm:$0xff]  ;;  %v15633_v9 = vld [vmem:[%s14027_s14 + $0x139] sm:$0xff] }
 0x28b   : > { %2066 = vperm.xlu1 %13720, %v1886_v32   ;;  %631 = vperm.xlu0 %13719, %v15562_v3   ;;  %v3250_v23 = vmul.f32 %v15573_v13, %v3132_v52  ;;  %v3249_v60 = vmul.f32 %v15573_v13, %v3127_v26  ;;  %v3292_v5 = vadd.f32 %v3247_v42, %v2927_v0  ;;  %v3345_v32 = vld [vmem:[%s14027_s14 + $0x12a] sm:$0xff]  ;;  %v4150_v0 = vld [vmem:[#allocation2 + $0x19] sm:$0xff] }
 0x28c   : > { %v2930_v25 = vadd.f32 %v2885_v10, %v2565_v47  ;;  %v4148_v52 = vld [vmem:[#allocation2 + $0x9] sm:$0xff]  ;;  %v2254_v16 = vld [vmem:[%s14027_s14 + $0x136] sm:$0xff] }
 0x28d   : > { %v3294_v31 = vadd.f32 %v3249_v60, %v2929_v44  ;;  %v4187_v10 = vpack.c.bf16 %v4148_v52, %v4147_v30  ;;  %v4162_v30 = vld [vmem:[#allocation2 + $0x79] sm:$0xff] }
 0x28e   : > { %v3487_v18 = vpop.permute.xlu1 %3486  ;;  %v3482_v38 = vpop.permute.xlu0 %3481  ;;  %v3295_v62 = vadd.f32 %v3250_v23, %v2930_v25  ;;  %v4149_v23 = vld [vmem:[#allocation2 + $0x11] sm:$0xff] }
 0x28f   : > { %v3613_v8 = vmul.f32 %v15586_v43, %v3487_v18  ;;  %v3612_v4 = vmul.f32 %v15586_v43, %v3482_v38  ;;  %3506 = vperm.xlu1 %13720, %v15410_v1   ;;  %2071 = vperm.xlu0 %13719, %v1887_v48   ;;  %v4188_v38 = vpack.c.bf16 %v4150_v0, %v4149_v23  ;;  %v4164_v0 = vld [vmem:[#allocation2 + $0x89] sm:$0xff] }
 0x291   : > { %v3658_v41 = vadd.f32 %v3613_v8, %v3293_v24  ;;  %v3657_v22 = vadd.f32 %v3612_v4, %v3292_v5  ;;  %v4152_v24 = vld [vmem:[#allocation2 + $0x29] sm:$0xff]  ;;  %v4151_v5 = vld [vmem:[#allocation2 + $0x21] sm:$0xff]  ;;  %v15648_v4 = vld [vmem:[%s14027_s14 + $0x132] sm:$0xff] }
 0x292   : > { %v3497_v54 = vpop.permute.xlu1 %3496  ;;  %v3492_v17 = vpop.permute.xlu0 %3491  ;;  %v4189_v8 = vpack.c.bf16 %v4152_v24, %v4151_v5  ;;  %v4163_v5 = vld [vmem:[#allocation2 + $0x81] sm:$0xff] }
 0x293   : > { %v3703_v7 = vmax.f32 %v3658_v41, 0.0  ;;  %v3702_v46 = vmax.f32 %v3657_v22, 0.0  ;;  %v3615_v37 = vmul.f32 %v15586_v43, %v3497_v54  ;;  %v3614_v1 = vmul.f32 %v15586_v43, %v3492_v17  ;;  %636 = vperm.xlu1 %13720, %v15592_v6   ;;  %3511 = vperm.xlu0 %13719, %v15425_v50   ;;  %v4154_v41 = vld [vmem:[#allocation2 + $0x39] sm:$0xff] }
 0x294   : > { %v15658_v22 = vld [vmem:[%s14027_s14 + $0x13a] sm:$0xff] }
 0x295   : > { %3749 = vst.msk [vmem:[#allocation2 + $0xc8] sm:$0xff] %vm3723_vm0, %v3703_v7  ;;  %3748 = vst.msk [vmem:[#allocation2 + $0xc0] sm:$0xff] %vm3723_vm0, %v3702_v46  ;;  %v3660_v28 = vadd.f32 %v3615_v37, %v3295_v62  ;;  %v3659_v15 = vadd.f32 %v3614_v1, %v3294_v31  ;;  %v4156_v62 = vld [vmem:[#allocation2 + $0x49] sm:$0xff]  ;;  %v4153_v31 = vld [vmem:[#allocation2 + $0x31] sm:$0xff] }
 0x296   : > { %v15602_v27 = vpop.permute.xlu1 %946  ;;  %v15604_v20 = vpop.permute.xlu0 %581  ;;  %v4190_v7 = vpack.c.bf16 %v4154_v41, %v4153_v31  ;;  %v4155_v46 = vld [vmem:[#allocation2 + $0x41] sm:$0xff] }
 0x297   : > { %v3705_v36 = vmax.f32 %v3660_v28, 0.0  ;;  %v3704_v58 = vmax.f32 %v3659_v15, 0.0  ;;  %2081 = vperm.xlu1 %13720, %v1889_v40   ;;  %2076 = vperm.xlu0 %13719, %v1888_v55   ;;  %v15668_v37 = vld [vmem:[%s14027_s14 + $0x148] sm:$0xff]  ;;  %v15671_v1 = vld [vmem:[%s14027_s14 + $0x140] sm:$0xff]  ;;  %v1061_v41 = vmul.f32 %v15490_v56, %v15602_v27 }
 0x298   : > { %v13725_v40 = vld [vmem:[%s17714_s3 + $0x20] sm:$0xff]  }
 0x299   : > { %3751 = vst.msk [vmem:[#allocation2 + $0xd8] sm:$0xff] %vm3723_vm0, %v3705_v36  ;;  %3750 = vst.msk [vmem:[#allocation2 + $0xd0] sm:$0xff] %vm3723_vm0, %v3704_v58  ;;  %v1526_v15 = vld [vmem:[%s14027_s14 + $0x144] sm:$0xff]  ;;  %v1525_v36 = vld [vmem:[%s14027_s14 + $0x13c] sm:$0xff]  ;;  %12228 = vmatprep.subr.bf16.mxu0 %v13725_v40 }
 0x29a   : > { %v15609_v50 = vpop.permute.xlu1 %1676  ;;  %v15611_v29 = vpop.permute.xlu0 %1311  ;;  %v4160_v58 = vld [vmem:[#allocation2 + $0x69] sm:$0xff] }
 0x29b   : > { %3521 = vperm.xlu1 %13720, %v3345_v32   ;;  %3516 = vperm.xlu0 %13719, %v15438_v53   ;;  %v2251_v53 = vld [vmem:[%s14027_s14 + $0x11e] sm:$0xff] }
 0x29c   : > { %v3802_v49 = vld [vmem:[#allocation2 + $0xc0] sm:$0xff]  ;;  %v3803_v12 = vld [vmem:[#allocation2 + $0xc8] sm:$0xff] }
 0x29d   : > { %v3830_v14 = vpack.c.bf16 %v3803_v12, %v3802_v49 }
 0x29e   : > { %v15617_v39 = vpop.permute.xlu1 %591  ;;  %v15619_v45 = vpop.permute.xlu0 %586 }
 0x29f   : > { %996 = vperm.xlu1 %13720, %v15615_v34   ;;  %991 = vperm.xlu0 %13719, %v15531_v35   ;;  %v2253_v35 = vld [vmem:[%s14027_s14 + $0x12e] sm:$0xff] }
 0x2a0   : > { %12168 = vmatprep.mubr.msk.bf16.mxu0 %vm3723_vm0, %v3830_v14  ;;  %v3804_v26 = vld [vmem:[#allocation2 + $0xd0] sm:$0xff]  ;;  %v3805_v11 = vld [vmem:[#allocation2 + $0xd8] sm:$0xff] }
 0x2a1   : > { %v3831_v19 = vpack.c.bf16 %v3805_v11, %v3804_v26  ;;  %v15698_v11 = vld [vmem:[%s17712_s1] ss:$0 sm:$0xff] }
 0x2a2   : > { %v15626_v42 = vpop.permute.xlu1 %601  ;;  %v15628_v2 = vpop.permute.xlu0 %596 }
 0x2a3   : > { %2436 = vperm.xlu1 %13720, %v2252_v61   ;;  %2431 = vperm.xlu0 %13719, %v2251_v53   ;;  %v4159_v61 = vld [vmem:[#allocation2 + $0x61] sm:$0xff] }
 0x2a4   : > { %12169 = vmatmul.mubr.msk.bf16.gmra.mrb[24].mxu0 %vm3723_vm0, %v3831_v19  ;;  %v4193_v52 = vpack.c.bf16 %v4160_v58, %v4159_v61  ;;  %v696_v19 = vmul.f32 %v15698_v11, %v15604_v20  ;;  %v4195_v20 = vpack.c.bf16 %v4164_v0, %v4163_v5  ;;  %v1892_v61 = vld [vmem:[%s14027_s14 + $0x14d] sm:$0xff] }
 0x2a5   : > { %12188 = vmatprep.mubr.msk.bf16.mxu0 %vm3723_vm0, %v4187_v10  ;;  %v15705_v10 = vld [vmem:[%s14027_s14 + $0x141] sm:$0xff] }
 0x2a6   : > { %v15636_v48 = vpop.permute.xlu1 %951  ;;  %v15638_v47 = vpop.permute.xlu0 %2041 }
 0x2a7   : > { %2441 = vperm.xlu1 %13720, %v2253_v35   ;;  %1001 = vperm.xlu0 %13719, %v15633_v9   ;;  %v1527_v35 = vld [vmem:[%s14027_s14 + $0x14c] sm:$0xff] }
 0x2aa   : > { %v15642_v60 = vpop.permute.xlu1 %961  ;;  %v15644_v18 = vpop.permute.xlu0 %956 }
 0x2ab   : > { %1356 = vperm.xlu1 %13720, %v3345_v32   ;;  %2446 = vperm.xlu0 %13719, %v2254_v16   ;;  %v4157_v32 = vld [vmem:[#allocation2 + $0x51] sm:$0xff] }
 0x2ac   : > { %12189 = vmatmul.mubr.msk.bf16.vlgmr.msra.gmra.mrb[0].mxu0 %vm3723_vm0, %v4188_v38  ;;  %v4161_v16 = vld [vmem:[#allocation2 + $0x71] sm:$0xff] }
 0x2ad   : > { %12192 = vmatprep.mubr.msk.bf16.mxu0 %vm3723_vm0, %v4189_v8  ;;  %12229 = vmatpush3.bf16.msra.mxu0 %v13725_v40  ;;  %v4194_v38 = vpack.c.bf16 %v4162_v30, %v4161_v16  ;;  %v741_v8 = vadd.f32 %v15499_v57, %v696_v19  ;;  %v1891_v40 = vld [vmem:[%s14027_s14 + $0x145] sm:$0xff]  ;;  %v2156_v19 = vmul.f32 %v15525_v63, %v15638_v47  ;;  %v4170_v16 = vld [vmem:[#allocation2 + $0xb9] sm:$0xff] }
 0x2ae   : > { %v15651_v25 = vpop.permute.xlu1 %2406  ;;  %v15653_v44 = vpop.permute.xlu0 %966  ;;  %v4172_v47 = vld [vmem:[#allocation2 + $0xc9] sm:$0xff] }
 0x2af   : > { %2796 = vperm.xlu1 %13720, %v15562_v3   ;;  %1361 = vperm.xlu0 %13719, %v15648_v4   ;;  %v4191_v3 = vpack.c.bf16 %v4156_v62, %v4155_v46  ;;  %v1426_v46 = vmul.f32 %v15505_v33, %v15611_v29 }
 0x2b2   : > { %v15660_v54 = vpop.permute.xlu1 %1321  ;;  %v15662_v17 = vpop.permute.xlu0 %1316 }
 0x2b3   : > { %1366 = vperm.xlu1 %13720, %v15658_v22   ;;  %2801 = vperm.xlu0 %13719, %v15592_v6   ;;  %v4158_v6 = vld [vmem:[#allocation2 + $0x59] sm:$0xff] }
 0x2b4   : > { %12193 = vmatmul.mubr.msk.bf16.gmra.mrb[4].mxu0 %vm3723_vm0, %v4190_v7  ;;  %v4192_v14 = vpack.c.bf16 %v4158_v6, %v4157_v32  ;;  %v1106_v7 = vadd.f32 %v1061_v41, %v741_v8  ;;  %v4168_v6 = vld [vmem:[#allocation2 + $0xa9] sm:$0xff]  ;;  %v4167_v32 = vld [vmem:[#allocation2 + $0xa1] sm:$0xff] }
 0x2b5   : > { %12196 = vmatprep.mubr.msk.bf16.mxu0 %vm3723_vm0, %v4191_v3  ;;  %v4166_v3 = vld [vmem:[#allocation2 + $0x99] sm:$0xff]  ;;  %v4197_v29 = vpack.c.bf16 %v4168_v6, %v4167_v32 }
 0x2b6   : > { %v15677_v55 = vpop.permute.xlu1 %1331  ;;  %v15679_v28 = vpop.permute.xlu0 %1326 }
 0x2b7   : > { %2811 = vperm.xlu1 %13720, %v15668_v37   ;;  %2806 = vperm.xlu0 %13719, %v15671_v1  }
 0x2ba   : > { %v15685_v49 = vpop.permute.xlu1 %1681  ;;  %v15687_v12 = vpop.permute.xlu0 %2771 }
 0x2bb   : > { %1726 = vperm.xlu1 %13720, %v1526_v15   ;;  %1721 = vperm.xlu0 %13719, %v1525_v36   ;;  %v4165_v15 = vld [vmem:[#allocation2 + $0x91] sm:$0xff]  ;;  %v2886_v8 = vmul.f32 %v15557_v21, %v15687_v12  ;;  %v2256_v12 = vld [vmem:[%s14027_s14 + $0x146] sm:$0xff] }
 0x2bc   : > { %12197 = vmatmul.mubr.msk.bf16.gmra.mrb[8].mxu0 %vm3723_vm0, %v4192_v14  ;;  %v4196_v58 = vpack.c.bf16 %v4166_v3, %v4165_v15  ;;  %v1471_v14 = vadd.f32 %v1426_v46, %v1106_v7  ;;  %v4171_v7 = vld [vmem:[#allocation2 + $0xc1] sm:$0xff] }
 0x2bd   : > { %12200 = vmatprep.mubr.msk.bf16.mxu0 %vm3723_vm0, %v4193_v52  ;;  %v1791_v52 = vmul.f32 %v15515_v59, %v15609_v50  ;;  %v15751_v50 = vld [vmem:[%s14027_s14 + $0x142] sm:$0xff]  ;;  %v4199_v3 = vpack.c.bf16 %v4172_v47, %v4171_v7 }
 0x2be   : > { %v15691_v53 = vpop.permute.xlu1 %1691  ;;  %v15693_v26 = vpop.permute.xlu0 %1686  ;;  %v13726_v47 = vld [vmem:[%s17714_s3 + $0x28] sm:$0xff]  }
 0x2bf   : > { %3166 = vperm.xlu1 %13720, %v15633_v9   ;;  %3161 = vperm.xlu0 %13719, %v15615_v34   ;;  %v1890_v34 = vld [vmem:[%s14027_s14 + $0x13d] sm:$0xff]  ;;  %v15715_v9 = vld [vmem:[%s14027_s14 + $0x149] sm:$0xff]  ;;  %v1836_v0 = vadd.f32 %v1791_v52, %v1471_v14 }
 0x2c0   : > { %v15770_v14 = vld [vmem:[%s14027_s14 + $0x150] sm:$0xff]  ;;  %12230 = vmatprep.subr.bf16.mxu0 %v13726_v47 }
 0x2c1   : > { %v2201_v5 = vadd.f32 %v2156_v19, %v1836_v0  ;;  %12231 = vmatpush3.bf16.msra.mxu0 %v13726_v47 }
 0x2c2   : > { %v3137_v24 = vpop.permute.xlu1 %3136  ;;  %v15708_v23 = vpop.permute.xlu0 %1696 }
 0x2c3   : > { %3171 = vperm.xlu1 %13720, %v15705_v10   ;;  %1731 = vperm.xlu0 %13719, %v1527_v35   ;;  %v3251_v46 = vmul.f32 %v15573_v13, %v3137_v24 }
 0x2c4   : > { %12201 = vmatmul.mubr.msk.bf16.gmra.mrb[12].mxu0 %vm3723_vm0, %v4194_v38  ;;  %v15748_v38 = vld [vmem:[%s14027_s14 + $0x14a] sm:$0xff] }
 0x2c5   : > { %12204 = vmatprep.mubr.msk.bf16.mxu0 %vm3723_vm0, %v4195_v20  ;;  %v4169_v20 = vld [vmem:[#allocation2 + $0xb1] sm:$0xff] }
 0x2c6   : > { %v15720_v62 = vpop.permute.xlu1 %611  ;;  %v15722_v31 = vpop.permute.xlu0 %606 }
 0x2c7   : > { %2086 = vperm.xlu1 %13720, %v1890_v34   ;;  %3176 = vperm.xlu0 %13719, %v15715_v9  }
 0x2ca   : > { %v15728_v36 = vpop.permute.xlu1 %2051  ;;  %v15730_v27 = vpop.permute.xlu0 %2046 }
 0x2cb   : > { %3526 = vperm.xlu1 %13720, %v15648_v4   ;;  %2091 = vperm.xlu0 %13719, %v1891_v40   ;;  %v2521_v4 = vmul.f32 %v15542_v51, %v15651_v25  ;;  %v4198_v25 = vpack.c.bf16 %v4170_v16, %v4169_v20  ;;  %v2255_v40 = vld [vmem:[%s14027_s14 + $0x13e] sm:$0xff] }
 0x2cc   : > { %12205 = vmatmul.mubr.msk.bf16.gmra.mrb[16].mxu0 %vm3723_vm0, %v4196_v58  ;;  %v15780_v16 = vld [vmem:[%s14027_s14 + $0x158] sm:$0xff] }
 0x2cd   : > { %12208 = vmatprep.mubr.msk.bf16.mxu0 %vm3723_vm0, %v4197_v29  ;;  %v2257_v29 = vld [vmem:[%s14027_s14 + $0x14e] sm:$0xff]  ;;  %v15792_v20 = vld [vmem:[%s14027_s14 + $0x159] sm:$0xff] }
 0x2ce   : > { %v15740_v30 = vpop.permute.xlu1 %621  ;;  %v15742_v35 = vpop.permute.xlu0 %616 }
 0x2cf   : > { %17853 = vst [vmem:[#allocation19_spill] sm:$0xff] %v15740_v30  ;;  %17854 = vst [vmem:[#allocation22_spill] sm:$0xff] %v15742_v35  ;;  %2096 = vperm.xlu1 %13720, %v1892_v61   ;;  %3531 = vperm.xlu0 %13719, %v15658_v22   ;;  %v2566_v22 = vadd.f32 %v2521_v4, %v2201_v5  ;;  %v2622_v4 = vld [vmem:[%s14027_s14 + $0x160] sm:$0xff]  ;;  %v2624_v35 = vld [vmem:[%s14027_s14 + $0x170] sm:$0xff] }
 0x2d1   : > { %v2931_v6 = vadd.f32 %v2886_v8, %v2566_v22 }
 0x2d2   : > { %v15755_v34 = vpop.permute.xlu1 %2061  ;;  %v15757_v41 = vpop.permute.xlu0 %2056 }
 0x2d3   : > { %3541 = vperm.xlu1 %13720, %v15748_v38   ;;  %3536 = vperm.xlu0 %13719, %v15751_v50   ;;  %v3296_v32 = vadd.f32 %v3251_v46, %v2931_v6  ;;  %v15804_v46 = vld [vmem:[%s14027_s14 + $0x152] sm:$0xff] }
 0x2d4   : > { %12209 = vmatmul.mubr.msk.bf16.gmra.mrb[20].mxu0 %vm3723_vm0, %v4198_v25  ;;  %v15795_v25 = vld [vmem:[%s14027_s14 + $0x151] sm:$0xff] }
 0x2d5   : > { %12212 = vmatprep.mubr.msk.bf16.mxu0 %vm3723_vm0, %v4199_v3  ;;  %v2987_v3 = vld [vmem:[%s14027_s14 + $0x161] sm:$0xff] }
 0x2d6   : > { %v15766_v15 = vpop.permute.xlu1 %971  ;;  %v3502_v58 = vpop.permute.xlu0 %3501 }
 0x2d7   : > { %v3616_v24 = vmul.f32 %v15586_v43, %v3502_v58  ;;  %2456 = vperm.xlu1 %13720, %v2256_v12   ;;  %2451 = vperm.xlu0 %13719, %v2255_v40   ;;  %v4173_v12 = vld [vmem:[#allocation2 + $0xd1] sm:$0xff] }
 0x2d9   : > { %v3661_v61 = vadd.f32 %v3616_v24, %v3296_v32  ;;  %v3352_v24 = vld [vmem:[%s14027_s14 + $0x162] sm:$0xff] }
 0x2da   : > { %v15773_v52 = vpop.permute.xlu1 %2411  ;;  %v15775_v19 = vpop.permute.xlu0 %976 }
 0x2db   : > { %v3706_v0 = vmax.f32 %v3661_v61, 0.0  ;;  %2816 = vperm.xlu1 %13720, %v15770_v14   ;;  %2461 = vperm.xlu0 %13719, %v2257_v29   ;;  %v15815_v29 = vld [vmem:[%s14027_s14 + $0x15a] sm:$0xff] }
 0x2dd   : > { %3752 = vst.msk [vmem:[#allocation2 + $0xe0] sm:$0xff] %vm3723_vm0, %v3706_v0 }
 0x2de   : > { %v15786_v5 = vpop.permute.xlu1 %981  ;;  %v15788_v8 = vpop.permute.xlu0 %2416 }
 0x2df   : > { %17855 = vst [vmem:[#allocation23_spill] sm:$0xff] %v15786_v5  ;;  %2826 = vperm.xlu1 %13720, %v2622_v4   ;;  %2821 = vperm.xlu0 %13719, %v15780_v16  }
 0x2e2   : > { %v15797_v7 = vpop.permute.xlu1 %2421  ;;  %v15799_v22 = vpop.permute.xlu0 %986 }
 0x2e3   : > { %17856 = vst [vmem:[#allocation20_spill] sm:$0xff] %v15799_v22  ;;  %3186 = vperm.xlu1 %13720, %v15792_v20   ;;  %3181 = vperm.xlu0 %13719, %v15795_v25  }
 0x2e4   : > { %v4174_v40 = vld [vmem:[#allocation2 + $0xd9] sm:$0xff] }
 0x2e5   : > { %v4200_v6 = vpack.c.bf16 %v4174_v40, %v4173_v12 }
 0x2e6   : > { %v15807_v58 = vpop.permute.xlu1 %1336  ;;  %v15809_v32 = vpop.permute.xlu0 %2426 }
 0x2e7   : > { %3546 = vperm.xlu1 %13720, %v15804_v46   ;;  %3191 = vperm.xlu0 %13719, %v2987_v3  }
 0x2e8   : > { %12213 = vmatmul.mubr.msk.bf16.gmra.mrb[24].mxu0 %vm3723_vm0, %v4200_v6 }
 0x2ea   : > { %v15817_v61 = vpop.permute.xlu1 %2776  ;;  %v15819_v0 = vpop.permute.xlu0 %1341 }
 0x2eb   : > { %17857 = vst [vmem:[#allocation21_spill] sm:$0xff] %v15819_v0  ;;  %3556 = vperm.xlu1 %13720, %v3352_v24   ;;  %3551 = vperm.xlu0 %13719, %v15815_v29  }
 0x2ee   : > { %v15822_v4 = vpop.permute.xlu1 %1346  ;;  %v15824_v47 = vpop.permute.xlu0 %2781 }
 0x2ef   : > { %17858 = vst [vmem:[#allocation10_spill] sm:$0xff] %v15822_v4  ;;  %646 = vperm.xlu1 %13720, %v15668_v37   ;;  %641 = vperm.xlu0 %13719, %v15671_v1   ;;  %v1529_v37 = vld [vmem:[%s14027_s14 + $0x15c] sm:$0xff]  ;;  %v1528_v1 = vld [vmem:[%s14027_s14 + $0x154] sm:$0xff] }
 0x2f2   : > { %v15828_v3 = vpop.permute.xlu1 %2786  ;;  %v15830_v12 = vpop.permute.xlu0 %1351 }
 0x2f3   : > { %17859 = vst [vmem:[#allocation12_spill] sm:$0xff] %v15830_v12  ;;  %1011 = vperm.xlu1 %13720, %v15715_v9   ;;  %1006 = vperm.xlu0 %13719, %v15705_v10   ;;  %v1894_v9 = vld [vmem:[%s14027_s14 + $0x15d] sm:$0xff]  ;;  %v1893_v12 = vld [vmem:[%s14027_s14 + $0x155] sm:$0xff]  ;;  %v697_v10 = vmul.f32 %v15698_v11, %v15619_v45  ;;  %v1427_v45 = vmul.f32 %v15505_v33, %v15662_v17  ;;  %v2623_v17 = vld [vmem:[%s14027_s14 + $0x168] sm:$0xff] }
 0x2f6   : > { %v15834_v40 = vpop.permute.xlu1 %1701  ;;  %v15836_v6 = vpop.permute.xlu0 %2791 }
 0x2f7   : > { %1376 = vperm.xlu1 %13720, %v15748_v38   ;;  %1371 = vperm.xlu0 %13719, %v15751_v50   ;;  %v1062_v38 = vmul.f32 %v15490_v56, %v15636_v48  ;;  %v698_v50 = vmul.f32 %v15698_v11, %v15617_v39 }
 0x2f9   : > { %v743_v39 = vadd.f32 %v15499_v57, %v698_v50 }
 0x2fa   : > { %v3142_v24 = vpop.permute.xlu1 %3141  ;;  %v15842_v4 = vpop.permute.xlu0 %1706 }
 0x2fb   : > { %17860 = vst [vmem:[#allocation13_spill] sm:$0xff] %v15842_v4  ;;  %1741 = vperm.xlu1 %13720, %v1529_v37   ;;  %1736 = vperm.xlu0 %13719, %v1528_v1   ;;  %v2259_v37 = vld [vmem:[%s14027_s14 + $0x15e] sm:$0xff]  ;;  %v2258_v1 = vld [vmem:[%s14027_s14 + $0x156] sm:$0xff]  ;;  %v742_v4 = vadd.f32 %v15499_v57, %v697_v10  ;;  %v1428_v10 = vmul.f32 %v15505_v33, %v15660_v54 }
 0x2fe   : > { %v15848_v22 = vpop.permute.xlu1 %1711  ;;  %v15850_v5 = vpop.permute.xlu0 %3146 }
 0x2ff   : > { %17861 = vst [vmem:[#allocation24_spill] sm:$0xff] %v15848_v22  ;;  %2106 = vperm.xlu1 %13720, %v1894_v9   ;;  %2101 = vperm.xlu0 %13719, %v1893_v12   ;;  %v1063_v22 = vmul.f32 %v15490_v56, %v15644_v18  ;;  %v1107_v9 = vadd.f32 %v1062_v38, %v742_v4  ;;  %v15879_v4 = vld [vmem:[%s17714_s3 + $0x30] sm:$0xff]  }
 0x300   : > { %v1792_v12 = vmul.f32 %v15515_v59, %v15685_v49  ;;  %v2157_v18 = vmul.f32 %v15525_v63, %v15730_v27  ;;  %v1793_v38 = vmul.f32 %v15515_v59, %v15693_v26  ;;  %v2522_v27 = vmul.f32 %v15542_v51, %v15773_v52  ;;  %12272 = vmatprep.subr.bf16.mxu0 %v15879_v4 }
 0x301   : > { %v1472_v30 = vadd.f32 %v1427_v45, %v1107_v9  ;;  %v1108_v49 = vadd.f32 %v1063_v22, %v743_v39  ;;  %v700_v45 = vmul.f32 %v15698_v11, %v15626_v42  ;;  %v2158_v26 = vmul.f32 %v15525_v63, %v15728_v36  ;;  %v2989_v9 = vld [vmem:[%s14027_s14 + $0x171] sm:$0xff]  ;;  %v2988_v39 = vld [vmem:[%s14027_s14 + $0x169] sm:$0xff] }
 0x302   : > { %v15863_v0 = vpop.permute.xlu1 %3151  ;;  %v15865_v48 = vpop.permute.xlu0 %1716  ;;  %v1065_v42 = vmul.f32 %v15490_v56, %v15653_v44  ;;  %v2523_v36 = vmul.f32 %v15542_v51, %v15788_v8  ;;  %v1429_v44 = vmul.f32 %v15505_v33, %v15679_v28  ;;  %v3253_v28 = vmul.f32 %v15573_v13, %v15850_v5 }
 0x303   : > { %2471 = vperm.xlu1 %13720, %v2259_v37   ;;  %2466 = vperm.xlu0 %13719, %v2258_v1   ;;  %v699_v37 = vmul.f32 %v15698_v11, %v15628_v2  ;;  %v1837_v1 = vadd.f32 %v1792_v12, %v1472_v30  ;;  %v1473_v22 = vadd.f32 %v1428_v10, %v1108_v49  ;;  %v3354_v49 = vld [vmem:[%s14027_s14 + $0x172] sm:$0xff] }
 0x304   : > { %v1064_v2 = vmul.f32 %v15490_v56, %v15642_v60  ;;  %v1430_v56 = vmul.f32 %v15505_v33, %v15677_v55  ;;  %v2524_v5 = vmul.f32 %v15542_v51, %v15797_v7  ;;  %v1530_v7 = vld [vmem:[%s14027_s14 + $0x164] sm:$0xff] }
 0x305   : > { %v2202_v30 = vadd.f32 %v2157_v18, %v1837_v1  ;;  %v1838_v52 = vadd.f32 %v1793_v38, %v1473_v22  ;;  %v3252_v18 = vmul.f32 %v15573_v13, %v3142_v24  ;;  %v3353_v38 = vld [vmem:[%s14027_s14 + $0x16a] sm:$0xff]  ;;  %v1794_v24 = vmul.f32 %v15515_v59, %v15691_v53 }
 0x306   : > { %v15883_v50 = vpop.permute.xlu1 %626  ;;  %v15885_v54 = vpop.permute.xlu0 %3156  ;;  %v2159_v53 = vmul.f32 %v15525_v63, %v15757_v41 }
 0x307   : > { %2836 = vperm.xlu1 %13720, %v2624_v35   ;;  %2831 = vperm.xlu0 %13719, %v2623_v17   ;;  %v2887_v35 = vmul.f32 %v15557_v21, %v15817_v61  ;;  %v744_v17 = vadd.f32 %v15499_v57, %v699_v37  ;;  %v2567_v60 = vadd.f32 %v2522_v27, %v2202_v30 }
 0x308   : > { %v745_v61 = vadd.f32 %v15499_v57, %v700_v45  ;;  %v2203_v8 = vadd.f32 %v2158_v26, %v1838_v52  ;;  %v2888_v37 = vmul.f32 %v15557_v21, %v15824_v47  ;;  %v1795_v57 = vmul.f32 %v15515_v59, %v15708_v23 }
 0x309   : > { %v1109_v1 = vadd.f32 %v1064_v2, %v744_v17  ;;  %v2932_v22 = vadd.f32 %v2887_v35, %v2567_v60  ;;  %v2160_v59 = vmul.f32 %v15525_v63, %v15755_v34  ;;  %v2889_v34 = vmul.f32 %v15557_v21, %v15828_v3 }
 0x30a   : > { %v15906_v12 = vpop.permute.xlu1 %2066  ;;  %v15908_v10 = vpop.permute.xlu0 %631  ;;  %v1110_v27 = vadd.f32 %v1065_v42, %v745_v61  ;;  %v2568_v45 = vadd.f32 %v2523_v36, %v2203_v8  ;;  %v2525_v36 = vmul.f32 %v15542_v51, %v15809_v32  ;;  %v2890_v61 = vmul.f32 %v15557_v21, %v15836_v6  ;;  %v2260_v6 = vld [vmem:[%s14027_s14 + $0x166] sm:$0xff] }
 0x30b   : > { %3201 = vperm.xlu1 %13720, %v2989_v9   ;;  %3196 = vperm.xlu0 %13719, %v2988_v39   ;;  %v3297_v33 = vadd.f32 %v3252_v18, %v2932_v22  ;;  %v1474_v39 = vadd.f32 %v1429_v44, %v1109_v1  ;;  %v3255_v3 = vmul.f32 %v15573_v13, %v15885_v54  ;;  %v2990_v54 = vld [vmem:[%s14027_s14 + $0x179] sm:$0xff] }
 0x30c   : > { %v1475_v47 = vadd.f32 %v1430_v56, %v1110_v27  ;;  %v2933_v23 = vadd.f32 %v2888_v37, %v2568_v45 }
 0x30d   : > { %v1839_v30 = vadd.f32 %v1794_v24, %v1474_v39  ;;  %v3806_v24 = vld [vmem:[#allocation2 + $0xe0] sm:$0xff] }
 0x30e   : > { %v3507_v55 = vpop.permute.xlu1 %3506  ;;  %v15925_v9 = vpop.permute.xlu0 %2071  ;;  %v1840_v35 = vadd.f32 %v1795_v57, %v1475_v47  ;;  %v3298_v17 = vadd.f32 %v3253_v28, %v2933_v23 }
 0x30f   : > { %v3617_v26 = vmul.f32 %v15586_v43, %v3507_v55  ;;  %3566 = vperm.xlu1 %13720, %v3354_v49   ;;  %3561 = vperm.xlu0 %13719, %v3353_v38   ;;  %v2204_v63 = vadd.f32 %v2159_v53, %v1839_v30  ;;  %v1895_v49 = vld [vmem:[%s14027_s14 + $0x165] sm:$0xff] }
 0x310   : > { %v2205_v18 = vadd.f32 %v2160_v59, %v1840_v35  ;;  %v3355_v59 = vld [vmem:[%s14027_s14 + $0x17a] sm:$0xff] }
 0x311   : > { %v3662_v2 = vadd.f32 %v3617_v26, %v3297_v33  ;;  %v2569_v32 = vadd.f32 %v2524_v5, %v2204_v63  ;;  %v2625_v33 = vld [vmem:[%s14027_s14 + $0x178] sm:$0xff]  ;;  %v437_v35 = vld [vmem:[%s14027_s14 + $0x160] sm:$0x3f] }
 0x312   : > { %v15936_v42 = vpop.permute.xlu1 %636  ;;  %v3512_v52 = vpop.permute.xlu0 %3511  ;;  %v2570_v44 = vadd.f32 %v2525_v36, %v2205_v18  ;;  %v802_v63 = vld [vmem:[%s14027_s14 + $0x161] sm:$0x3f] }
 0x313   : > { %v3707_v60 = vmax.f32 %v3662_v2, 0.0  ;;  %v3618_v41 = vmul.f32 %v15586_v43, %v3512_v52  ;;  %1016 = vperm.xlu1 %13720, %v15795_v25   ;;  %651 = vperm.xlu0 %13719, %v15770_v14   ;;  %v3254_v25 = vmul.f32 %v15573_v13, %v15863_v0  ;;  %v2934_v21 = vadd.f32 %v2889_v34, %v2569_v32 }
 0x314   : > { %v2935_v38 = vadd.f32 %v2890_v61, %v2570_v44  ;;  %v1167_v61 = vld [vmem:[%s14027_s14 + $0x162] sm:$0x3f]  ;;  %v1532_v44 = vld [vmem:[%s14027_s14 + $0x174] sm:$0x3f] }
 0x315   : > { %3753 = vst.msk [vmem:[#allocation2 + $0xe8] sm:$0xff] %vm3723_vm0, %v3707_v60  ;;  %v3663_v51 = vadd.f32 %v3618_v41, %v3298_v17  ;;  %v3299_v0 = vadd.f32 %v3254_v25, %v2934_v21  ;;  %v1896_v25 = vld [vmem:[%s14027_s14 + $0x16d] sm:$0xff]  ;;  %v1897_v21 = vld [vmem:[%s14027_s14 + $0x175] sm:$0x3f] }
 0x316   : > { %v15951_v56 = vpop.permute.xlu1 %2081  ;;  %v15953_v14 = vpop.permute.xlu0 %2076  ;;  %v3300_v37 = vadd.f32 %v3255_v3, %v2935_v38  ;;  %v2626_v38 = vld [vmem:[%s14027_s14 + $0x180] sm:$0xff] }
 0x317   : > { %v3708_v8 = vmax.f32 %v3663_v51, 0.0  ;;  %1746 = vperm.xlu1 %13720, %v1530_v7   ;;  %1381 = vperm.xlu0 %13719, %v15804_v46  }
 0x319   : > { %3754 = vst.msk [vmem:[#allocation2 + $0xf0] sm:$0xff] %vm3723_vm0, %v3708_v8  ;;  %v2261_v8 = vld [vmem:[%s14027_s14 + $0x16e] sm:$0xff] }
 0x31a   : > { %v3522_v1 = vpop.permute.xlu1 %3521  ;;  %v3517_v22 = vpop.permute.xlu0 %3516 }
 0x31b   : > { %v3620_v27 = vmul.f32 %v15586_v43, %v3522_v1  ;;  %v3619_v13 = vmul.f32 %v15586_v43, %v3517_v22  ;;  %2476 = vperm.xlu1 %13720, %v2260_v6   ;;  %2111 = vperm.xlu0 %13719, %v1895_v49   ;;  %v2262_v1 = vld [vmem:[%s14027_s14 + $0x176] sm:$0x3f] }
 0x31c   : > { %v3807_v46 = vld [vmem:[#allocation2 + $0xe8] sm:$0xff] }
 0x31d   : > { %v3665_v57 = vadd.f32 %v3620_v27, %v3300_v37  ;;  %v3664_v45 = vadd.f32 %v3619_v13, %v3299_v0  ;;  %v3832_v55 = vpack.c.bf16 %v3807_v46, %v3806_v24  ;;  %v4175_v43 = vld [vmem:[#allocation2 + $0xe1] sm:$0xff]  ;;  %v701_v0 = vmul.f32 %v15698_v11, %v15722_v31  ;;  %v16032_v31 = vld [vmem:[%s17713_s2] ss:$0 sm:$0xff] }
 0x31e   : > { %v15965_v28 = vpop.permute.xlu1 %996  ;;  %v15967_v26 = vpop.permute.xlu0 %991  ;;  %v16022_v27 = vld [vmem:[%s17712_s1 + $0x1] ss:$0 sm:$0xff]  ;;  %v702_v24 = vmul.f32 %v15698_v11, %v15720_v62 }
 0x31f   : > { %v3710_v47 = vmax.f32 %v3665_v57, 0.0  ;;  %v3709_v39 = vmax.f32 %v3664_v45, 0.0  ;;  %3206 = vperm.xlu1 %13720, %v2990_v54   ;;  %12172 = vmatprep.mubr.msk.bf16.mxu1 %vm3723_vm0, %v3832_v55  ;;  %v1066_v13 = vmul.f32 %v16022_v27, %v15766_v15  ;;  %v2991_v54 = vld [vmem:[%s14027_s14 + $0x181] sm:$0xff]  ;;  %v746_v46 = vadd.f32 %v16032_v31, %v701_v0 }
 0x320   : > { %2841 = vperm.xlu0 %13719, %v2625_v33   ;;  %v4176_v53 = vld [vmem:[#allocation2 + $0xe9] sm:$0xff]  ;;  %v16038_v57 = vld [vmem:[%s17712_s1 + $0x2] ss:$0 sm:$0xff] }
 0x321   : > { %3756 = vst.msk [vmem:[#allocation2 + $0x100] sm:$0xff] %vm3723_vm0, %v3710_v47  ;;  %3755 = vst.msk [vmem:[#allocation2 + $0xf8] sm:$0xff] %vm3723_vm0, %v3709_v39  ;;  %v4201_v23 = vpack.c.bf16 %v4176_v53, %v4175_v43  ;;  %v3808_v36 = vld [vmem:[#allocation2 + $0xf0] sm:$0xff]  ;;  %v1431_v15 = vmul.f32 %v16038_v57, %v15807_v58  ;;  %v2627_v45 = vld [vmem:[%s14027_s14 + $0x188] sm:$0x3f]  ;;  %v1111_v33 = vadd.f32 %v1066_v13, %v746_v46 }
 0x322   : > { %v15973_v2 = vpop.permute.xlu1 %2436  ;;  %v15975_v30 = vpop.permute.xlu0 %2431  ;;  %v1067_v47 = vmul.f32 %v16022_v27, %v15775_v19  ;;  %v16050_v39 = vld [vmem:[%s17712_s1 + $0x3] ss:$0 sm:$0xff] }
 0x323   : > { %656 = vperm.xlu1 %13720, %v15780_v16   ;;  %12216 = vmatprep.mubr.msk.bf16.mxu0 %vm3723_vm0, %v4201_v23  ;;  %v1796_v43 = vmul.f32 %v16050_v39, %v15834_v40  ;;  %v17862_v53 = vld [vmem:[#allocation19_spill] sm:$0xff]  ;;  %v1476_v19 = vadd.f32 %v1431_v15, %v1111_v33  ;;  %v17869_v15 = vld [vmem:[#allocation12_spill] sm:$0xff] }
 0x324   : > { %3571 = vperm.xlu0 %13719, %v3355_v59   ;;  %v704_v58 = vmul.f32 %v15698_v11, %v17862_v53  ;;  %v17863_v59 = vld [vmem:[#allocation22_spill] sm:$0xff] }
 0x325   : > { %v703_v23 = vmul.f32 %v15698_v11, %v17863_v59 }
 0x326   : > { %v15980_v5 = vpop.permute.xlu1 %2441  ;;  %v15982_v52 = vpop.permute.xlu0 %1001  ;;  %v749_v13 = vadd.f32 %v16032_v31, %v704_v58  ;;  %v3357_v58 = vld [vmem:[%s14027_s14 + $0x18a] sm:$0x3f] }
 0x327   : > { %1021 = vperm.xlu1 %13720, %v15792_v20   ;;  %v1531_v20 = vld [vmem:[%s14027_s14 + $0x16c] sm:$0xff] }
 0x328   : > { %661 = vperm.xlu0 %13719, %v437_v35   ;;  %v3809_v17 = vld [vmem:[#allocation2 + $0xf8] sm:$0xff]  ;;  %v3356_v35 = vld [vmem:[%s14027_s14 + $0x182] sm:$0xff] }
 0x329   : > { %v4177_v60 = vld [vmem:[#allocation2 + $0xf1] sm:$0xff]  ;;  %v4178_v41 = vld [vmem:[#allocation2 + $0xf9] sm:$0xff]  ;;  %v3833_v16 = vpack.c.bf16 %v3809_v17, %v3808_v36  ;;  %v747_v36 = vadd.f32 %v16032_v31, %v702_v24 }
 0x32a   : > { %v4202_v34 = vpack.c.bf16 %v4178_v41, %v4177_v60  ;;  %v15986_v7 = vpop.permute.xlu1 %1356  ;;  %v15988_v18 = vpop.permute.xlu0 %2446  ;;  %v17864_v17 = vld [vmem:[#allocation21_spill] sm:$0xff]  ;;  %v16065_v41 = vld [vmem:[%s17712_s1 + $0x4] ss:$0 sm:$0xff]  ;;  %v17868_v24 = vld [vmem:[#allocation10_spill] sm:$0xff] }
 0x32b   : > { %1386 = vperm.xlu1 %13720, %v15815_v29   ;;  %12173 = vmatmul.mubr.msk.bf16.vlgmr.msra.gmra.mrb[0].mxu1 %vm3723_vm0, %v3833_v16  ;;  %v1432_v60 = vmul.f32 %v16038_v57, %v17864_v17  ;;  %v2161_v40 = vmul.f32 %v16065_v41, %v15906_v12  ;;  %v17865_v16 = vld [vmem:[#allocation23_spill] sm:$0xff]  ;;  %v1433_v46 = vmul.f32 %v16038_v57, %v17868_v24 }
 0x32c   : > { %1026 = vperm.xlu0 %13719, %v802_v63   ;;  %12217 = vmatmul.mubr.msk.bf16.gmra.mrb[28].mxu0 %vm3723_vm0, %v4202_v34  ;;  %v2992_v63 = vld [vmem:[%s14027_s14 + $0x189] sm:$0x3f]  ;;  %v1068_v34 = vmul.f32 %v16022_v27, %v17865_v16  ;;  %v16081_v12 = vld [vmem:[%s17712_s1 + $0x5] ss:$0 sm:$0xff]  ;;  %s377_s14 = sand.u32 1, %s13899_s18  }
 0x32d   : > { %s378_s16 = scalar_lea.vmem [#allocation7], %s377_s14  ;;  %s11066_s30 = scalar_lea.sflag [#allocation8], %s377_s14 }
 0x32e   : > { %v15995_v51 = vpop.permute.xlu1 %2796  ;;  %v15997_v32 = vpop.permute.xlu0 %1361  ;;  %s11078_s22 = sshll.u32 %s378_s16, 4  ;;  %s17670_s22 = int_to_ptr.vmem [resolvable:$true] %s11078_s22 }
 0x32f   : > { %1751 = vperm.xlu1 %13720, %v1531_v20   ;;  %v17866_v20 = vld [vmem:[#allocation20_spill] sm:$0xff]  ;;  %s13845_s12 = scalar_lea.vmem %s17670_s22, 16  ;;  %p13852_p0 = scmp.lt.s32.totalorder %s17670_s22, %s13850_s13 }
 0x330   : > { %1391 = vperm.xlu0 %13719, %v1167_v61   ;;  %v1069_v61 = vmul.f32 %v16022_v27, %v17866_v20  ;;  %p13846_p11 = scmp.ne.s32.totalorder %s17670_s22, %s13845_s12  ;;  %p13853_p1 = scmp.lt.s32.totalorder %s13851_s0, %s13845_s12 }
 0x332   : > { %v16001_v29 = vpop.permute.xlu1 %1366  ;;  %v16003_v3 = vpop.permute.xlu0 %2801  ;;  %p13847_p12 = pnand %p13846_p11, %p14012_p5  ;;  %p13854_p2 = por %p13853_p1, %p13852_p0 }
 0x333   : > { %2116 = vperm.xlu1 %13720, %v1896_v25  }
 0x334   : > { %1756 = vperm.xlu0 %13719, %v1532_v44   ;;  %p13848_p13 = pneg %p13847_p12 }
 0x336   : > { %v16007_v6 = vpop.permute.xlu1 %2811  ;;  %v16009_v49 = vpop.permute.xlu0 %2806  ;;  %p13855_p3 = pnand %p13854_p2, %p13848_p13 }
 0x337   : > { %2481 = vperm.xlu1 %13720, %v2261_v8   ;;  %v1112_v8 = vadd.f32 %v1067_v47, %v747_v36 }
 0x338   : > { %2121 = vperm.xlu0 %13719, %v1897_v21   ;;  %v1841_v21 = vadd.f32 %v1796_v43, %v1476_v19  ;;  %v2162_v43 = vmul.f32 %v16065_v41, %v15925_v9  ;;  %v1799_v19 = vmul.f32 %v16050_v39, %v15865_v48  ;;  %v2164_v48 = vmul.f32 %v16065_v41, %v15951_v56 }
 0x339   : > { %v1477_v33 = vadd.f32 %v1432_v60, %v1112_v8 }
 0x33a   : > { %v16015_v22 = vpop.permute.xlu1 %1726  ;;  %v16017_v37 = vpop.permute.xlu0 %1721  ;;  %v2206_v47 = vadd.f32 %v2161_v40, %v1841_v21  ;;  %v2527_v40 = vmul.f32 %v16081_v12, %v15973_v2 }
 0x33b   : > { %2846 = vperm.xlu1 %13720, %v2626_v38   ;;  %v17867_v38 = vld [vmem:[#allocation13_spill] sm:$0xff] }
 0x33c   : > { %2486 = vperm.xlu0 %13719, %v2262_v1   ;;  %v1797_v0 = vmul.f32 %v16050_v39, %v17867_v38  ;;  %v2526_v1 = vmul.f32 %v16081_v12, %v15975_v30  ;;  %v16096_v30 = vld [vmem:[%s17712_s1 + $0x6] ss:$0 sm:$0xff] }
 0x33d   : > { %v2891_v53 = vmul.f32 %v16096_v30, %v15995_v51  ;;  %v16112_v51 = vld [vmem:[%s17712_s1 + $0x7] ss:$0 sm:$0xff]  ;;  %v2892_v2 = vmul.f32 %v16096_v30, %v16003_v3  ;;  %v16132_v3 = vld [vmem:[%s17712_s1 + $0x8] ss:$0 sm:$0xff] }
 0x33e   : > { %v16043_v55 = vpop.permute.xlu1 %3166  ;;  %v3162_v62 = vpop.permute.xlu0 %3161  ;;  %v1842_v60 = vadd.f32 %v1797_v0, %v1477_v33  ;;  %v2894_v33 = vmul.f32 %v16096_v30, %v16007_v6 }
 0x33f   : > { %3211 = vperm.xlu1 %13720, %v2991_v54   ;;  %v748_v54 = vadd.f32 %v16032_v31, %v703_v23  ;;  %v1114_v23 = vadd.f32 %v1069_v61, %v749_v13  ;;  %v3256_v16 = vmul.f32 %v16112_v51, %v3162_v62  ;;  %v2163_v61 = vmul.f32 %v16065_v41, %v15953_v14 }
 0x340   : > { %2851 = vperm.xlu0 %13719, %v2627_v45   ;;  %v1434_v45 = vmul.f32 %v16038_v57, %v17869_v15  ;;  %v2207_v8 = vadd.f32 %v2162_v43, %v1842_v60  ;;  %v2529_v62 = vmul.f32 %v16081_v12, %v15988_v18  ;;  %v3257_v14 = vmul.f32 %v16112_v51, %v16043_v55 }
 0x341   : > { %v1113_v59 = vadd.f32 %v1068_v34, %v748_v54  ;;  %v2893_v18 = vmul.f32 %v16096_v30, %v16009_v49 }
 0x342   : > { %v3172_v25 = vpop.permute.xlu1 %3171  ;;  %v16074_v44 = vpop.permute.xlu0 %1731  ;;  %v1479_v20 = vadd.f32 %v1434_v45, %v1114_v23  ;;  %v2572_v56 = vadd.f32 %v2527_v40, %v2207_v8 }
 0x343   : > { %3576 = vperm.xlu1 %13720, %v3356_v35   ;;  %v17870_v35 = vld [vmem:[#allocation24_spill] sm:$0xff]  ;;  %v1478_v34 = vadd.f32 %v1433_v46, %v1113_v59 }
 0x344   : > { %3216 = vperm.xlu0 %13719, %v2992_v63   ;;  %v1798_v36 = vmul.f32 %v16050_v39, %v17870_v35  ;;  %v2571_v63 = vadd.f32 %v2526_v1, %v2206_v47  ;;  %v1844_v0 = vadd.f32 %v1799_v19, %v1479_v20  ;;  %v2528_v1 = vmul.f32 %v16081_v12, %v15980_v5 }
 0x345   : > { %v2937_v45 = vadd.f32 %v2892_v2, %v2572_v56 }
 0x346   : > { %v16105_v17 = vpop.permute.xlu1 %2086  ;;  %v3177_v9 = vpop.permute.xlu0 %3176  ;;  %v2936_v21 = vadd.f32 %v2891_v53, %v2571_v63  ;;  %v1843_v38 = vadd.f32 %v1798_v36, %v1478_v34  ;;  %v2209_v15 = vadd.f32 %v2164_v48, %v1844_v0  ;;  %v3258_v53 = vmul.f32 %v16112_v51, %v3172_v25 }
 0x347   : > { %v3302_v23 = vadd.f32 %v3257_v14, %v2937_v45  ;;  %v3259_v35 = vmul.f32 %v16112_v51, %v3177_v9  ;;  %v705_v9 = vmul.f32 %v15698_v11, %v15883_v50  ;;  %v706_v0 = vmul.f32 %v15698_v11, %v15908_v10  ;;  %v3810_v14 = vld [vmem:[#allocation2 + $0x100] sm:$0xff] }
 0x348   : > { %3581 = vperm.xlu0 %13719, %v3357_v58   ;;  %v3301_v24 = vadd.f32 %v3256_v16, %v2936_v21  ;;  %v2208_v5 = vadd.f32 %v2163_v61, %v1843_v38  ;;  %v2574_v55 = vadd.f32 %v2529_v62, %v2209_v15  ;;  %v1070_v21 = vmul.f32 %v16022_v27, %v15967_v26 }
 0x349   : > { %v750_v56 = vadd.f32 %v16032_v31, %v705_v9  ;;  %v1435_v50 = vmul.f32 %v16038_v57, %v15986_v7  ;;  %v1071_v26 = vmul.f32 %v16022_v27, %v15965_v28  ;;  %v751_v7 = vadd.f32 %v16032_v31, %v706_v0 }
 0x34a   : > { %v3527_v13 = vpop.permute.xlu1 %3526  ;;  %v16125_v54 = vpop.permute.xlu0 %2091  ;;  %v2573_v43 = vadd.f32 %v2528_v1, %v2208_v5  ;;  %v2939_v49 = vadd.f32 %v2894_v33, %v2574_v55  ;;  %v707_v1 = vmul.f32 %v15698_v11, %v15936_v42  ;;  %v1072_v11 = vmul.f32 %v16022_v27, %v15982_v52 }
 0x34b   : > { %v3621_v46 = vmul.f32 %v16132_v3, %v3527_v13  ;;  %v1800_v42 = vmul.f32 %v16050_v39, %v16017_v37  ;;  %v1436_v45 = vmul.f32 %v16038_v57, %v15997_v32  ;;  %v1437_v33 = vmul.f32 %v16038_v57, %v16001_v29 }
 0x34c   : > { %v2938_v60 = vadd.f32 %v2893_v18, %v2573_v43  ;;  %v3304_v34 = vadd.f32 %v3259_v35, %v2939_v49  ;;  %v752_v18 = vadd.f32 %v16032_v31, %v707_v1  ;;  %v2165_v52 = vmul.f32 %v16065_v41, %v16105_v17 }
 0x34d   : > { %v3666_v47 = vadd.f32 %v3621_v46, %v3301_v24  ;;  %v1115_v46 = vadd.f32 %v1070_v21, %v750_v56  ;;  %v1116_v43 = vadd.f32 %v1071_v26, %v751_v7  ;;  %v1802_v35 = vmul.f32 %v16050_v39, %v16074_v44 }
 0x34e   : > { %v16140_v58 = vpop.permute.xlu1 %2096  ;;  %v3532_v59 = vpop.permute.xlu0 %3531  ;;  %v3303_v6 = vadd.f32 %v3258_v53, %v2938_v60  ;;  %v1117_v53 = vadd.f32 %v1072_v11, %v752_v18 }
 0x34f   : > { %v3711_v36 = vmax.f32 %v3666_v47, 0.0  ;;  %v3622_v19 = vmul.f32 %v16132_v3, %v3532_v59  ;;  %v1480_v28 = vadd.f32 %v1435_v50, %v1115_v46  ;;  %v1801_v59 = vmul.f32 %v16050_v39, %v16015_v22 }
 0x350   : > { %v1481_v17 = vadd.f32 %v1436_v45, %v1116_v43  ;;  %v1482_v60 = vadd.f32 %v1437_v33, %v1117_v53 }
 0x351   : > { %3757 = vst.msk [vmem:[#allocation2 + $0x108] sm:$0xff] %vm3723_vm0, %v3711_v36  ;;  %v3667_v40 = vadd.f32 %v3622_v19, %v3302_v23  ;;  %v1845_v23 = vadd.f32 %v1800_v42, %v1480_v28 }
 0x352   : > { %v3542_v63 = vpop.permute.xlu1 %3541  ;;  %v3537_v16 = vpop.permute.xlu0 %3536 }
 0x353   : > { %v3712_v20 = vmax.f32 %v3667_v40, 0.0  ;;  %v3624_v25 = vmul.f32 %v16132_v3, %v3542_v63  ;;  %v3623_v48 = vmul.f32 %v16132_v3, %v3537_v16  ;;  %v2210_v49 = vadd.f32 %v2165_v52, %v1845_v23 }
 0x354   : > { %v2166_v40 = vmul.f32 %v16065_v41, %v16125_v54  ;;  %v2167_v16 = vmul.f32 %v16065_v41, %v16140_v58 }
 0x355   : > { %3758 = vst.msk [vmem:[#allocation2 + $0x110] sm:$0xff] %vm3723_vm0, %v3712_v20  ;;  %v3669_v61 = vadd.f32 %v3624_v25, %v3304_v34  ;;  %v3668_v8 = vadd.f32 %v3623_v48, %v3303_v6  ;;  %v1846_v25 = vadd.f32 %v1801_v59, %v1481_v17  ;;  %v1847_v48 = vadd.f32 %v1802_v35, %v1482_v60 }
 0x356   : > { %v2457_v2 = vpop.permute.xlu1 %2456  ;;  %v2452_v38 = vpop.permute.xlu0 %2451 }
 0x357   : > { %v3714_v62 = vmax.f32 %v3669_v61, 0.0  ;;  %v3713_v13 = vmax.f32 %v3668_v8, 0.0  ;;  %v2530_v19 = vmul.f32 %v16081_v12, %v2452_v38  ;;  %v2531_v9 = vmul.f32 %v16081_v12, %v2457_v2 }
 0x358   : > { %v3811_v24 = vld [vmem:[#allocation2 + $0x108] sm:$0xff]  ;;  %v2211_v58 = vadd.f32 %v2166_v40, %v1846_v25  ;;  %v2212_v1 = vadd.f32 %v2167_v16, %v1847_v48 }
 0x359   : > { %3760 = vst.msk [vmem:[#allocation2 + $0x120] sm:$0xff] %vm3723_vm0, %v3714_v62  ;;  %3759 = vst.msk [vmem:[#allocation2 + $0x118] sm:$0xff] %vm3723_vm0, %v3713_v13  ;;  %v3834_v10 = vpack.c.bf16 %v3811_v24, %v3810_v14  ;;  %v4179_v47 = vld [vmem:[#allocation2 + $0x101] sm:$0xff]  ;;  %v2575_v21 = vadd.f32 %v2530_v19, %v2210_v49  ;;  %v4518_v49 = vld [vmem:[#allocation2 + $0xa] sm:$0xff] }
 0x35a   : > { %v2817_v15 = vpop.permute.xlu1 %2816  ;;  %v2462_v5 = vpop.permute.xlu0 %2461  ;;  %v2576_v56 = vadd.f32 %v2531_v9, %v2211_v58  ;;  %v4517_v9 = vld [vmem:[#allocation2 + $0x2] sm:$0xff] }
 0x35b   : > { %12176 = vmatprep.mubr.msk.bf16.mxu1 %vm3723_vm0, %v3834_v10  ;;  %v2895_v44 = vmul.f32 %v16096_v30, %v2817_v15  ;;  %v2532_v38 = vmul.f32 %v16081_v12, %v2462_v5 }
 0x35c   : > { %v4180_v37 = vld [vmem:[#allocation2 + $0x109] sm:$0xff] }
 0x35d   : > { %v4203_v55 = vpack.c.bf16 %v4180_v37, %v4179_v47  ;;  %v3812_v29 = vld [vmem:[#allocation2 + $0x110] sm:$0xff]  ;;  %v2940_v62 = vadd.f32 %v2895_v44, %v2575_v21  ;;  %v2577_v24 = vadd.f32 %v2532_v38, %v2212_v1 }
 0x35e   : > { %v2827_v36 = vpop.permute.xlu1 %2826  ;;  %v2822_v32 = vpop.permute.xlu0 %2821 }
 0x35f   : > { %12220 = vmatprep.mubr.msk.bf16.mxu0 %vm3723_vm0, %v4203_v55  ;;  %v2896_v0 = vmul.f32 %v16096_v30, %v2822_v32  ;;  %v2897_v13 = vmul.f32 %v16096_v30, %v2827_v36 }
 0x360   : > { %v3813_v6 = vld [vmem:[#allocation2 + $0x118] sm:$0xff]  ;;  %v3814_v36 = vld [vmem:[#allocation2 + $0x120] sm:$0xff] }
 0x361   : > { %v4181_v63 = vld [vmem:[#allocation2 + $0x111] sm:$0xff]  ;;  %v4182_v22 = vld [vmem:[#allocation2 + $0x119] sm:$0xff]  ;;  %v3835_v34 = vpack.c.bf16 %v3813_v6, %v3812_v29  ;;  %v2941_v11 = vadd.f32 %v2896_v0, %v2576_v56  ;;  %v2942_v42 = vadd.f32 %v2897_v13, %v2577_v24 }
 0x362   : > { %v4204_v20 = vpack.c.bf16 %v4182_v22, %v4181_v63  ;;  %v3187_v61 = vpop.permute.xlu1 %3186  ;;  %v3182_v8 = vpop.permute.xlu0 %3181  ;;  %v4519_v24 = vld [vmem:[#allocation2 + $0x12] sm:$0xff] }
 0x363   : > { %v3260_v54 = vmul.f32 %v16112_v51, %v3182_v8  ;;  %12177 = vmatmul.mubr.msk.bf16.gmra.mrb[4].mxu1 %vm3723_vm0, %v3835_v34  ;;  %v3261_v2 = vmul.f32 %v16112_v51, %v3187_v61  ;;  %v4557_v61 = vpack.c.bf16 %v4518_v49, %v4517_v9  ;;  %v16208_v8 = vld [vmem:[%s17712_s1] ss:$0 sm:$0xff]  ;;  %v4525_v49 = vld [vmem:[#allocation2 + $0x42] sm:$0xff] }
 0x364   : > { %12221 = vmatmul.mubr.msk.bf16.gmra.mrb[32].mxu0 %vm3723_vm0, %v4204_v20 }
 0x365   : > { %v3305_v26 = vadd.f32 %v3260_v54, %v2940_v62  ;;  %v3306_v5 = vadd.f32 %v3261_v2, %v2941_v11  ;;  %v4520_v62 = vld [vmem:[#allocation2 + $0x1a] sm:$0xff]  ;;  %v4522_v2 = vld [vmem:[#allocation2 + $0x2a] sm:$0xff] }
 0x366   : > { %v3547_v50 = vpop.permute.xlu1 %3546  ;;  %v3192_v14 = vpop.permute.xlu0 %3191  ;;  %v4558_v11 = vpack.c.bf16 %v4520_v62, %v4519_v24  ;;  %v4529_v24 = vld [vmem:[#allocation2 + $0x62] sm:$0xff] }
 0x367   : > { %v3625_v10 = vmul.f32 %v16132_v3, %v3547_v50  ;;  %v3262_v46 = vmul.f32 %v16112_v51, %v3192_v14 }
 0x369   : > { %v3670_v15 = vadd.f32 %v3625_v10, %v3305_v26  ;;  %v3307_v45 = vadd.f32 %v3262_v46, %v2942_v42  ;;  %v4521_v42 = vld [vmem:[#allocation2 + $0x22] sm:$0xff] }
 0x36a   : > { %v3557_v7 = vpop.permute.xlu1 %3556  ;;  %v3552_v18 = vpop.permute.xlu0 %3551 }
 0x36b   : > { %v3715_v28 = vmax.f32 %v3670_v15, 0.0  ;;  %v3627_v33 = vmul.f32 %v16132_v3, %v3557_v7  ;;  %v3626_v52 = vmul.f32 %v16132_v3, %v3552_v18  ;;  %v13728_v15 = vld [vmem:[%s17714_s3 + $0x38] sm:$0xff]  }
 0x36d   : > { %3761 = vst.msk [vmem:[#allocation2 + $0x128] sm:$0xff] %vm3723_vm0, %v3715_v28  ;;  %v3672_v47 = vadd.f32 %v3627_v33, %v3307_v45  ;;  %v3671_v37 = vadd.f32 %v3626_v52, %v3306_v5  ;;  %v4559_v28 = vpack.c.bf16 %v4522_v2, %v4521_v42 }
 0x36e   : > { %v647_v43 = vpop.permute.xlu1 %646  ;;  %v642_v55 = vpop.permute.xlu0 %641 }
 0x36f   : > { %v3717_v53 = vmax.f32 %v3672_v47, 0.0  ;;  %v3716_v59 = vmax.f32 %v3671_v37, 0.0  ;;  %v709_v21 = vmul.f32 %v16208_v8, %v647_v43  ;;  %v708_v38 = vmul.f32 %v16208_v8, %v642_v55  ;;  %v16233_v55 = vld [vmem:[%s17714_s3 + $0x40] sm:$0xff]  }
 0x371   : > { %3763 = vst.msk [vmem:[#allocation2 + $0x138] sm:$0xff] %vm3723_vm0, %v3717_v53  ;;  %3762 = vst.msk [vmem:[#allocation2 + $0x130] sm:$0xff] %vm3723_vm0, %v3716_v59  ;;  %v754_v13 = vadd.f32 %v16032_v31, %v709_v21  ;;  %v753_v50 = vadd.f32 %v16032_v31, %v708_v38 }
 0x372   : > { %v1012_v23 = vpop.permute.xlu1 %1011  ;;  %v1007_v35 = vpop.permute.xlu0 %1006 }
 0x373   : > { %v1074_v54 = vmul.f32 %v16022_v27, %v1012_v23  ;;  %v1073_v1 = vmul.f32 %v16022_v27, %v1007_v35 }
 0x374   : > { %v3815_v32 = vld [vmem:[#allocation2 + $0x128] sm:$0xff] }
 0x375   : > { %v3836_v19 = vpack.c.bf16 %v3815_v32, %v3814_v36  ;;  %v4183_v60 = vld [vmem:[#allocation2 + $0x121] sm:$0xff]  ;;  %v1119_v26 = vadd.f32 %v1074_v54, %v754_v13  ;;  %v1118_v5 = vadd.f32 %v1073_v1, %v753_v50  ;;  %v4526_v32 = vld [vmem:[#allocation2 + $0x4a] sm:$0xff] }
 0x376   : > { %v1377_v29 = vpop.permute.xlu1 %1376  ;;  %v1372_v17 = vpop.permute.xlu0 %1371  ;;  %v4524_v36 = vld [vmem:[#allocation2 + $0x3a] sm:$0xff]  ;;  %v4530_v1 = vld [vmem:[#allocation2 + $0x6a] sm:$0xff] }
 0x377   : > { %12180 = vmatprep.mubr.msk.bf16.mxu1 %vm3723_vm0, %v3836_v19  ;;  %v1439_v56 = vmul.f32 %v16038_v57, %v1377_v29  ;;  %v1438_v14 = vmul.f32 %v16038_v57, %v1372_v17 }
 0x378   : > { %v3816_v40 = vld [vmem:[#allocation2 + $0x130] sm:$0xff]  ;;  %v3817_v6 = vld [vmem:[#allocation2 + $0x138] sm:$0xf] }
 0x379   : > { %v4184_v63 = vld [vmem:[#allocation2 + $0x129] sm:$0xff]  ;;  %v3837_v22 = vpack.c.bf16 %v3817_v6, %v3816_v40  ;;  %v4185_v44 = vld [vmem:[#allocation2 + $0x131] sm:$0xff]  ;;  %v4186_v34 = vld [vmem:[#allocation2 + $0x139] sm:$0xf]  ;;  %v1484_v45 = vadd.f32 %v1439_v56, %v1119_v26  ;;  %v1483_v33 = vadd.f32 %v1438_v14, %v1118_v5 }
 0x37a   : > { %v4205_v16 = vpack.c.bf16 %v4184_v63, %v4183_v60  ;;  %v1742_v20 = vpop.permute.xlu1 %1741  ;;  %v1737_v25 = vpop.permute.xlu0 %1736  ;;  %v4206_v48 = vpack.c.bf16 %v4186_v34, %v4185_v44  ;;  %v4523_v60 = vld [vmem:[#allocation2 + $0x32] sm:$0xff] }
 0x37b   : > { %12181 = vmatmul.mubr.msk.bf16.gmra.mrb[8].mxu1 %vm3723_vm0, %v3837_v22  ;;  %v1804_v7 = vmul.f32 %v16050_v39, %v1742_v20  ;;  %v1803_v18 = vmul.f32 %v16050_v39, %v1737_v25  ;;  %v4560_v63 = vpack.c.bf16 %v4524_v36, %v4523_v60  ;;  %v4561_v22 = vpack.c.bf16 %v4526_v32, %v4525_v49  ;;  %v4527_v56 = vld [vmem:[#allocation2 + $0x52] sm:$0xff]  ;;  %v4536_v49 = vld [vmem:[#allocation2 + $0x9a] sm:$0xff] }
 0x37c   : > { %12224 = vmatprep.mubr.msk.bf16.mxu0 %vm3723_vm0, %v4205_v16 }
 0x37d   : > { %12225 = vmatmul.mubr.msk.bf16.gmra.mrb[36].mxu0 %vm3723_vm0, %v4206_v48  ;;  %v1849_v53 = vadd.f32 %v1804_v7, %v1484_v45  ;;  %v1848_v59 = vadd.f32 %v1803_v18, %v1483_v33  ;;  %v4532_v45 = vld [vmem:[#allocation2 + $0x7a] sm:$0xff]  ;;  %v4534_v33 = vld [vmem:[#allocation2 + $0x8a] sm:$0xff] }
 0x37e   : > { %12232 = vmatprep.mubr.msk.bf16.mxu0 %vm3723_vm0, %v4557_v61  ;;  %v2107_v58 = vpop.permute.xlu1 %2106  ;;  %v2102_v0 = vpop.permute.xlu0 %2101 }
 0x37f   : > { %v2169_v52 = vmul.f32 %v16065_v41, %v2107_v58  ;;  %v2168_v47 = vmul.f32 %v16065_v41, %v2102_v0  ;;  %v4528_v0 = vld [vmem:[#allocation2 + $0x5a] sm:$0xff] }
 0x380   : > { %v4562_v14 = vpack.c.bf16 %v4528_v0, %v4527_v56 }
 0x381   : > { %v2214_v19 = vadd.f32 %v2169_v52, %v1849_v53 }
 0x382   : > { %v2472_v10 = vpop.permute.xlu1 %2471  ;;  %v2467_v46 = vpop.permute.xlu0 %2466 }
 0x383   : > { %v2534_v23 = vmul.f32 %v16081_v12, %v2472_v10  ;;  %v2533_v35 = vmul.f32 %v16081_v12, %v2467_v46 }
 0x385   : > { %12233 = vmatmul.mubr.msk.bf16.vlgmr.msra.gmra.mrb[0].mxu0 %vm3723_vm0, %v4558_v11  ;;  %v2579_v16 = vadd.f32 %v2534_v23, %v2214_v19  ;;  %v4563_v11 = vpack.c.bf16 %v4530_v1, %v4529_v24  ;;  %v4533_v23 = vld [vmem:[#allocation2 + $0x82] sm:$0xff]  ;;  %v4542_v1 = vld [vmem:[#allocation2 + $0xca] sm:$0xff] }
 0x386   : > { %12273 = vmatpush3.bf16.msra.mxu0 %v15879_v4  ;;  %12236 = vmatprep.mubr.msk.bf16.mxu0 %vm3723_vm0, %v4559_v28  ;;  %v2837_v37 = vpop.permute.xlu1 %2836  ;;  %v2832_v43 = vpop.permute.xlu0 %2831  ;;  %v2213_v4 = vadd.f32 %v2168_v47, %v1848_v59  ;;  %v4565_v32 = vpack.c.bf16 %v4534_v33, %v4533_v23  ;;  %v4547_v23 = vld [vmem:[#allocation2 + $0xf2] sm:$0xff] }
 0x387   : > { %12274 = vmatprep.subr.bf16.mxu0 %v13728_v15  ;;  %v2899_v29 = vmul.f32 %v16096_v30, %v2837_v37  ;;  %v2898_v17 = vmul.f32 %v16096_v30, %v2832_v43  ;;  %v4531_v37 = vld [vmem:[#allocation2 + $0x72] sm:$0xff] }
 0x388   : > { %v2578_v44 = vadd.f32 %v2533_v35, %v2213_v4  ;;  %v4564_v59 = vpack.c.bf16 %v4532_v45, %v4531_v37 }
 0x389   : > { %v2944_v25 = vadd.f32 %v2899_v29, %v2579_v16 }
 0x38a   : > { %12275 = vmatpush3.bf16.msra.mxu0 %v13728_v15  ;;  %v3202_v40 = vpop.permute.xlu1 %3201  ;;  %v3197_v6 = vpop.permute.xlu0 %3196  ;;  %v2943_v48 = vadd.f32 %v2898_v17, %v2578_v44 }
 0x38b   : > { %12316 = vmatprep.subr.bf16.mxu0 %v16233_v55  ;;  %v3264_v34 = vmul.f32 %v16112_v51, %v3202_v40  ;;  %v3263_v20 = vmul.f32 %v16112_v51, %v3197_v6  ;;  %v4538_v6 = vld [vmem:[#allocation2 + $0xaa] sm:$0xff] }
 0x38d   : > { %12237 = vmatmul.mubr.msk.bf16.gmra.mrb[4].mxu0 %vm3723_vm0, %v4560_v63  ;;  %v3309_v21 = vadd.f32 %v3264_v34, %v2944_v25  ;;  %v3308_v38 = vadd.f32 %v3263_v20, %v2943_v48  ;;  %v4535_v63 = vld [vmem:[#allocation2 + $0x92] sm:$0xff]  ;;  %v4537_v20 = vld [vmem:[#allocation2 + $0xa2] sm:$0xff] }
 0x38e   : > { %12240 = vmatprep.mubr.msk.bf16.mxu0 %vm3723_vm0, %v4561_v22  ;;  %v3567_v9 = vpop.permute.xlu1 %3566  ;;  %v3562_v61 = vpop.permute.xlu0 %3561  ;;  %v4566_v34 = vpack.c.bf16 %v4536_v49, %v4535_v63  ;;  %v4567_v48 = vpack.c.bf16 %v4538_v6, %v4537_v20 }
 0x38f   : > { %v3629_v54 = vmul.f32 %v16132_v3, %v3567_v9  ;;  %v3628_v58 = vmul.f32 %v16132_v3, %v3562_v61 }
 0x391   : > { %v3674_v62 = vadd.f32 %v3629_v54, %v3309_v21  ;;  %v3673_v13 = vadd.f32 %v3628_v58, %v3308_v38  ;;  %v4540_v58 = vld [vmem:[#allocation2 + $0xba] sm:$0xff] }
 0x392   : > { %v1017_v2 = vpop.permute.xlu1 %1016  ;;  %v652_v50 = vpop.permute.xlu0 %651 }
 0x393   : > { %v3719_v26 = vmax.f32 %v3674_v62, 0.0  ;;  %v3718_v10 = vmax.f32 %v3673_v13, 0.0  ;;  %v710_v46 = vmul.f32 %v16208_v8, %v652_v50  ;;  %v1075_v42 = vmul.f32 %v16022_v27, %v1017_v2  ;;  %v4539_v62 = vld [vmem:[#allocation2 + $0xb2] sm:$0xff]  ;;  %v4541_v2 = vld [vmem:[#allocation2 + $0xc2] sm:$0xff] }
 0x394   : > { %v4568_v56 = vpack.c.bf16 %v4540_v58, %v4539_v62 }
 0x395   : > { %12241 = vmatmul.mubr.msk.bf16.gmra.mrb[8].mxu0 %vm3723_vm0, %v4562_v14  ;;  %3765 = vst.msk [vmem:[#allocation2 + $0x148] sm:$0xff] %vm3723_vm0, %v3719_v26  ;;  %3764 = vst.msk [vmem:[#allocation2 + $0x140] sm:$0xff] %vm3723_vm0, %v3718_v10  ;;  %v755_v15 = vadd.f32 %v16032_v31, %v710_v46  ;;  %v4569_v14 = vpack.c.bf16 %v4542_v1, %v4541_v2  ;;  %v4544_v10 = vld [vmem:[#allocation2 + $0xda] sm:$0xff]  ;;  %v4546_v46 = vld [vmem:[#allocation2 + $0xea] sm:$0xff] }
 0x396   : > { %12244 = vmatprep.mubr.msk.bf16.mxu0 %vm3723_vm0, %v4563_v11  ;;  %v1747_v5 = vpop.permute.xlu1 %1746  ;;  %v1382_v7 = vpop.permute.xlu0 %1381 }
 0x397   : > { %v1120_v18 = vadd.f32 %v1075_v42, %v755_v15  ;;  %v1440_v28 = vmul.f32 %v16038_v57, %v1382_v7  ;;  %v1805_v52 = vmul.f32 %v16050_v39, %v1747_v5  ;;  %v4543_v42 = vld [vmem:[#allocation2 + $0xd2] sm:$0xff]  ;;  %v4545_v7 = vld [vmem:[#allocation2 + $0xe2] sm:$0xff] }
 0x398   : > { %v4570_v5 = vpack.c.bf16 %v4544_v10, %v4543_v42  ;;  %v4571_v45 = vpack.c.bf16 %v4546_v46, %v4545_v7  ;;  %v4556_v42 = vld [vmem:[#allocation2 + $0x13a] sm:$0xf] }
 0x399   : > { %v1485_v47 = vadd.f32 %v1440_v28, %v1120_v18  ;;  %v4888_v7 = vld [vmem:[#allocation2 + $0x1c] sm:$0xff] }
 0x39a   : > { %v2477_v43 = vpop.permute.xlu1 %2476  ;;  %v2112_v53 = vpop.permute.xlu0 %2111 }
 0x39b   : > { %v1850_v35 = vadd.f32 %v1805_v52, %v1485_v47  ;;  %v2170_v36 = vmul.f32 %v16065_v41, %v2112_v53  ;;  %v2535_v19 = vmul.f32 %v16081_v12, %v2477_v43 }
 0x39d   : > { %12245 = vmatmul.mubr.msk.bf16.gmra.mrb[12].mxu0 %vm3723_vm0, %v4564_v59  ;;  %v2215_v4 = vadd.f32 %v2170_v36, %v1850_v35  ;;  %v4548_v35 = vld [vmem:[#allocation2 + $0xfa] sm:$0xff] }
 0x39e   : > { %12248 = vmatprep.mubr.msk.bf16.mxu0 %vm3723_vm0, %v4565_v32  ;;  %v3207_v29 = vpop.permute.xlu1 %3206  ;;  %v4550_v32 = vld [vmem:[#allocation2 + $0x10a] sm:$0xff]  ;;  %v4572_v49 = vpack.c.bf16 %v4548_v35, %v4547_v23 }
 0x39f   : > { %v2580_v17 = vadd.f32 %v2535_v19, %v2215_v4  ;;  %v2842_v60 = vpop.permute.xlu0 %2841  ;;  %v3265_v22 = vmul.f32 %v16112_v51, %v3207_v29  ;;  %v16305_v23 = vld [vmem:[%s17714_s3 + $0x50] sm:$0xff]  }
 0x3a0   : > { %v2900_v40 = vmul.f32 %v16096_v30, %v2842_v60  ;;  %v4894_v35 = vld [vmem:[#allocation2 + $0x4c] sm:$0xff] }
 0x3a2   : > { %v2945_v16 = vadd.f32 %v2900_v40, %v2580_v17  ;;  %v657_v44 = vpop.permute.xlu1 %656 }
 0x3a3   : > { %v3572_v25 = vpop.permute.xlu0 %3571  ;;  %v711_v11 = vmul.f32 %v16208_v8, %v657_v44 }
 0x3a4   : > { %v3310_v9 = vadd.f32 %v3265_v22, %v2945_v16  ;;  %v3630_v61 = vmul.f32 %v16132_v3, %v3572_v25 }
 0x3a5   : > { %12249 = vmatmul.mubr.msk.bf16.gmra.mrb[16].mxu0 %vm3723_vm0, %v4566_v34  ;;  %v756_v33 = vadd.f32 %v16032_v31, %v711_v11 }
 0x3a6   : > { %12252 = vmatprep.mubr.msk.bf16.mxu0 %vm3723_vm0, %v4567_v48  ;;  %v3675_v21 = vadd.f32 %v3630_v61, %v3310_v9  ;;  %v1022_v38 = vpop.permute.xlu1 %1021  ;;  %v4551_v61 = vld [vmem:[#allocation2 + $0x112] sm:$0xff] }
 0x3a7   : > { %v662_v54 = vpop.permute.xlu0 %661  ;;  %v1076_v18 = vmul.f32 %v16022_v27, %v1022_v38 }
 0x3a8   : > { %v3720_v0 = vmax.f32 %v3675_v21, 0.0  ;;  %v712_v47 = vmul.f32 %v16208_v8, %v662_v54  ;;  %v4549_v8 = vld [vmem:[#allocation2 + $0x102] sm:$0xff]  ;;  %v4552_v21 = vld [vmem:[#allocation2 + $0x11a] sm:$0xff]  ;;  %v4554_v54 = vld [vmem:[#allocation2 + $0x12a] sm:$0xff] }
 0x3a9   : > { %v1121_v43 = vadd.f32 %v1076_v18, %v756_v33  ;;  %v4573_v22 = vpack.c.bf16 %v4550_v32, %v4549_v8  ;;  %v4893_v32 = vld [vmem:[#allocation2 + $0x44] sm:$0xff]  ;;  %v4899_v8 = vld [vmem:[#allocation2 + $0x74] sm:$0xff] }
 0x3aa   : > { %3766 = vst.msk [vmem:[#allocation2 + $0x150] sm:$0xff] %vm3723_vm0, %v3720_v0  ;;  %v1387_v13 = vpop.permute.xlu1 %1386  ;;  %v757_v29 = vadd.f32 %v16032_v31, %v712_v47  ;;  %v4892_v47 = vld [vmem:[#allocation2 + $0x3c] sm:$0xff] }
 0x3ab   : > { %v1027_v50 = vpop.permute.xlu0 %1026  ;;  %v1441_v52 = vmul.f32 %v16038_v57, %v1387_v13  ;;  %v4574_v13 = vpack.c.bf16 %v4552_v21, %v4551_v61  ;;  %v4912_v61 = vld [vmem:[#allocation2 + $0xdc] sm:$0xff]  ;;  %v4909_v21 = vld [vmem:[#allocation2 + $0xc4] sm:$0xff] }
 0x3ac   : > { %v1077_v36 = vmul.f32 %v16022_v27, %v1027_v50 }
 0x3ad   : > { %12253 = vmatmul.mubr.msk.bf16.gmra.mrb[20].mxu0 %vm3723_vm0, %v4568_v56  ;;  %v1486_v19 = vadd.f32 %v1441_v52, %v1121_v43  ;;  %v4553_v56 = vld [vmem:[#allocation2 + $0x122] sm:$0xff]  ;;  %v4890_v52 = vld [vmem:[#allocation2 + $0x2c] sm:$0xff] }
 0x3ae   : > { %12256 = vmatprep.mubr.msk.bf16.mxu0 %vm3723_vm0, %v4569_v14  ;;  %v1752_v24 = vpop.permute.xlu1 %1751  ;;  %v1122_v16 = vadd.f32 %v1077_v36, %v757_v29  ;;  %v4575_v14 = vpack.c.bf16 %v4554_v54, %v4553_v56  ;;  %v4896_v36 = vld [vmem:[#allocation2 + $0x5c] sm:$0xff] }
 0x3af   : > { %v1392_v26 = vpop.permute.xlu0 %1391  ;;  %v1806_v53 = vmul.f32 %v16050_v39, %v1752_v24  ;;  %v4916_v56 = vld [vmem:[#allocation2 + $0xfc] sm:$0xff] }
 0x3b0   : > { %v1442_v17 = vmul.f32 %v16038_v57, %v1392_v26 }
 0x3b1   : > { %v1851_v40 = vadd.f32 %v1806_v53, %v1486_v19  ;;  %v4891_v53 = vld [vmem:[#allocation2 + $0x34] sm:$0xff]  ;;  %v4930_v19 = vpack.c.bf16 %v4894_v35, %v4893_v32  ;;  %v16343_v32 = vld [vmem:[%s17714_s3 + $0x60] sm:$0xff]  }
 0x3b2   : > { %v2117_v15 = vpop.permute.xlu1 %2116  ;;  %v1487_v31 = vadd.f32 %v1442_v17, %v1122_v16  ;;  %v4900_v17 = vld [vmem:[#allocation2 + $0x7c] sm:$0xff] }
 0x3b3   : > { %v1757_v28 = vpop.permute.xlu0 %1756  ;;  %v2171_v4 = vmul.f32 %v16065_v41, %v2117_v15  ;;  %v13732_v35 = vld [vmem:[%s17714_s3 + $0x58] sm:$0xff]  }
 0x3b4   : > { %v1807_v44 = vmul.f32 %v16050_v39, %v1757_v28 }
 0x3b5   : > { %12257 = vmatmul.mubr.msk.bf16.gmra.mrb[24].mxu0 %vm3723_vm0, %v4570_v5  ;;  %v2216_v27 = vadd.f32 %v2171_v4, %v1851_v40  ;;  %v4895_v4 = vld [vmem:[#allocation2 + $0x54] sm:$0xff]  ;;  %v4933_v40 = vpack.c.bf16 %v4900_v17, %v4899_v8  ;;  %v5267_v8 = vld [vmem:[#allocation2 + $0x65] sm:$0xff] }
 0x3b6   : > { %12260 = vmatprep.mubr.msk.bf16.mxu0 %vm3723_vm0, %v4571_v45  ;;  %v2482_v37 = vpop.permute.xlu1 %2481  ;;  %v1852_v38 = vadd.f32 %v1807_v44, %v1487_v31  ;;  %v4887_v45 = vld [vmem:[#allocation2 + $0x14] sm:$0xff]  ;;  %v4931_v29 = vpack.c.bf16 %v4896_v36, %v4895_v4  ;;  %v4908_v31 = vld [vmem:[#allocation2 + $0xbc] sm:$0xff] }
 0x3b7   : > { %v2122_v59 = vpop.permute.xlu0 %2121  ;;  %v2536_v6 = vmul.f32 %v16081_v12, %v2482_v37  ;;  %v4889_v37 = vld [vmem:[#allocation2 + $0x24] sm:$0xff]  ;;  %v4903_v44 = vld [vmem:[#allocation2 + $0x94] sm:$0xff] }
 0x3b8   : > { %v2172_v57 = vmul.f32 %v16065_v41, %v2122_v59  ;;  %v4928_v43 = vpack.c.bf16 %v4890_v52, %v4889_v37  ;;  %v4929_v59 = vpack.c.bf16 %v4892_v47, %v4891_v53  ;;  %v5257_v52 = vld [vmem:[#allocation2 + $0x15] sm:$0xff]  ;;  %v5260_v37 = vld [vmem:[#allocation2 + $0x2d] sm:$0xff]  ;;  %v5259_v53 = vld [vmem:[#allocation2 + $0x25] sm:$0xff] }
 0x3b9   : > { %v2581_v25 = vadd.f32 %v2536_v6, %v2216_v27  ;;  %v4902_v6 = vld [vmem:[#allocation2 + $0x8c] sm:$0xff]  ;;  %v5266_v4 = vld [vmem:[#allocation2 + $0x5d] sm:$0xff]  ;;  %v5265_v17 = vld [vmem:[#allocation2 + $0x55] sm:$0xff] }
 0x3ba   : > { %v2847_v60 = vpop.permute.xlu1 %2846  ;;  %v2217_v0 = vadd.f32 %v2172_v57, %v1852_v38  ;;  %v4905_v57 = vld [vmem:[#allocation2 + $0xa4] sm:$0xff] }
 0x3bb   : > { %v2487_v63 = vpop.permute.xlu0 %2486  ;;  %v2901_v34 = vmul.f32 %v16096_v30, %v2847_v60  ;;  %v4897_v60 = vld [vmem:[#allocation2 + $0x64] sm:$0xff] }
 0x3bc   : > { %v2537_v39 = vmul.f32 %v16081_v12, %v2487_v63  ;;  %v4904_v63 = vld [vmem:[#allocation2 + $0x9c] sm:$0xff] }
 0x3bd   : > { %12261 = vmatmul.mubr.msk.bf16.gmra.mrb[28].mxu0 %vm3723_vm0, %v4572_v49  ;;  %v2946_v58 = vadd.f32 %v2901_v34, %v2581_v25  ;;  %v4935_v27 = vpack.c.bf16 %v4904_v63, %v4903_v44  ;;  %v4906_v34 = vld [vmem:[#allocation2 + $0xac] sm:$0xff]  ;;  %v4907_v25 = vld [vmem:[#allocation2 + $0xb4] sm:$0xff] }
 0x3be   : > { %12264 = vmatprep.mubr.msk.bf16.mxu0 %vm3723_vm0, %v4573_v22  ;;  %v3212_v20 = vpop.permute.xlu1 %3211  ;;  %v2582_v24 = vadd.f32 %v2537_v39, %v2217_v0  ;;  %v4901_v22 = vld [vmem:[#allocation2 + $0x84] sm:$0xff]  ;;  %v4911_v39 = vld [vmem:[#allocation2 + $0xd4] sm:$0xff] }
 0x3bf   : > { %v3266_v48 = vmul.f32 %v16112_v51, %v3212_v20  ;;  %v2852_v9 = vpop.permute.xlu0 %2851  ;;  %v4934_v16 = vpack.c.bf16 %v4902_v6, %v4901_v22  ;;  %v4936_v20 = vpack.c.bf16 %v4906_v34, %v4905_v57  ;;  %v4939_v54 = vpack.c.bf16 %v4912_v61, %v4911_v39  ;;  %v5269_v6 = vld [vmem:[#allocation2 + $0x75] sm:$0xff]  ;;  %v5272_v44 = vld [vmem:[#allocation2 + $0x8d] sm:$0xff]  ;;  %v5274_v34 = vld [vmem:[#allocation2 + $0x9d] sm:$0xff] }
 0x3c0   : > { %v2902_v1 = vmul.f32 %v16096_v30, %v2852_v9  ;;  %v4555_v30 = vld [vmem:[#allocation2 + $0x132] sm:$0xff]  ;;  %v5271_v57 = vld [vmem:[#allocation2 + $0x85] sm:$0xff]  ;;  %v5278_v61 = vld [vmem:[#allocation2 + $0xbd] sm:$0xff] }
 0x3c1   : > { %v3311_v2 = vadd.f32 %v3266_v48, %v2946_v58  ;;  %v4576_v28 = vpack.c.bf16 %v4556_v42, %v4555_v30  ;;  %v4937_v48 = vpack.c.bf16 %v4908_v31, %v4907_v25  ;;  %v4910_v9 = vld [vmem:[#allocation2 + $0xcc] sm:$0xff]  ;;  %v4924_v42 = vld [vmem:[#allocation2 + $0x13c] sm:$0xff] }
 0x3c2   : > { %v3577_v62 = vpop.permute.xlu1 %3576  ;;  %v2947_v12 = vadd.f32 %v2902_v1, %v2582_v24  ;;  %v4938_v38 = vpack.c.bf16 %v4910_v9, %v4909_v21  ;;  %v4914_v1 = vld [vmem:[#allocation2 + $0xec] sm:$0xff]  ;;  %v5273_v25 = vld [vmem:[#allocation2 + $0x95] sm:$0xff] }
 0x3c3   : > { %v3631_v41 = vmul.f32 %v16132_v3, %v3577_v62  ;;  %v3217_v50 = vpop.permute.xlu0 %3216  ;;  %v4918_v24 = vld [vmem:[#allocation2 + $0x10c] sm:$0xff]  ;;  %v5277_v39 = vld [vmem:[#allocation2 + $0xb5] sm:$0xff] }
 0x3c4   : > { %v3267_v26 = vmul.f32 %v16112_v51, %v3217_v50  ;;  %v4927_v51 = vpack.c.bf16 %v4888_v7, %v4887_v45  ;;  %v4922_v30 = vld [vmem:[#allocation2 + $0x12c] sm:$0xff]  ;;  %v4923_v7 = vld [vmem:[#allocation2 + $0x134] sm:$0xff] }
 0x3c5   : > { %12265 = vmatmul.mubr.msk.bf16.gmra.mrb[32].mxu0 %vm3723_vm0, %v4574_v13  ;;  %v3676_v10 = vadd.f32 %v3631_v41, %v3311_v2  ;;  %v4915_v13 = vld [vmem:[#allocation2 + $0xf4] sm:$0xff]  ;;  %v4913_v41 = vld [vmem:[#allocation2 + $0xe4] sm:$0xff]  ;;  %v4926_v45 = vld [vmem:[#allocation2 + $0x14c] sm:$0xf] }
 0x3c6   : > { %12268 = vmatprep.mubr.msk.bf16.mxu0 %vm3723_vm0, %v4575_v14  ;;  %v3312_v15 = vadd.f32 %v3267_v26, %v2947_v12  ;;  %v4940_v50 = vpack.c.bf16 %v4914_v1, %v4913_v41  ;;  %v4941_v14 = vpack.c.bf16 %v4916_v56, %v4915_v13  ;;  %v4919_v26 = vld [vmem:[#allocation2 + $0x114] sm:$0xff]  ;;  %v4917_v12 = vld [vmem:[#allocation2 + $0x104] sm:$0xff] }
 0x3c7   : > { %v3721_v46 = vmax.f32 %v3676_v10, 0.0  ;;  %v3582_v11 = vpop.permute.xlu0 %3581  ;;  %v4920_v10 = vld [vmem:[#allocation2 + $0x11c] sm:$0xff]  ;;  %v5276_v9 = vld [vmem:[#allocation2 + $0xad] sm:$0xff]  ;;  %v5275_v21 = vld [vmem:[#allocation2 + $0xa5] sm:$0xff] }
 0x3c8   : > { %v3632_v5 = vmul.f32 %v16132_v3, %v3582_v11  ;;  %v13730_v3 = vld [vmem:[%s17714_s3 + $0x48] sm:$0xff]   ;;  %v4943_v11 = vpack.c.bf16 %v4920_v10, %v4919_v26  ;;  %v5282_v13 = vld [vmem:[#allocation2 + $0xdd] sm:$0xff] }
 0x3c9   : > { %3767 = vst.msk [vmem:[#allocation2 + $0x158] sm:$0xff] %vm3723_vm0, %v3721_v46  ;;  %v4942_v46 = vpack.c.bf16 %v4918_v24, %v4917_v12  ;;  %v5280_v1 = vld [vmem:[#allocation2 + $0xcd] sm:$0xff]  ;;  %v5279_v56 = vld [vmem:[#allocation2 + $0xc5] sm:$0xff] }
 0x3ca   : > { %v3677_v18 = vadd.f32 %v3632_v5, %v3312_v15  ;;  %v4921_v15 = vld [vmem:[#allocation2 + $0x124] sm:$0xff]  ;;  %v5308_v41 = vpack.c.bf16 %v5280_v1, %v5279_v56  ;;  %v5284_v10 = vld [vmem:[#allocation2 + $0xed] sm:$0xff]  ;;  %v5643_v56 = vld [vmem:[#allocation2 + $0x96] sm:$0xff] }
 0x3cb   : > { %v4944_v5 = vpack.c.bf16 %v4922_v30, %v4921_v15  ;;  %v5641_v1 = vld [vmem:[#allocation2 + $0x86] sm:$0xff] }
 0x3cc   : > { %v3722_v33 = vmax.f32 %v3677_v18, 0.0  ;;  %v4945_v18 = vpack.c.bf16 %v4924_v42, %v4923_v7  ;;  %v5283_v42 = vld [vmem:[#allocation2 + $0xe5] sm:$0xff]  ;;  %v5288_v7 = vld [vmem:[#allocation2 + $0x10d] sm:$0xff] }
 0x3cd   : > { %12269 = vmatmul.mubr.msk.bf16.gmra.mrb[36].mxu0 %vm3723_vm0, %v4576_v28  ;;  %v4925_v28 = vld [vmem:[#allocation2 + $0x144] sm:$0xff]  ;;  %v5310_v15 = vpack.c.bf16 %v5284_v10, %v5283_v42 }
 0x3ce   : > { %12276 = vmatprep.mubr.msk.bf16.mxu0 %vm3723_vm0, %v4927_v51  ;;  %3769 = vst.msk [vmem:[#allocation2 + $0x160] sm:$0x3f] %vm3768_vm1, %v3722_v33  ;;  %v5258_v51 = vld [vmem:[#allocation2 + $0x1d] sm:$0xff]  ;;  %v4946_v33 = vpack.c.bf16 %v4926_v45, %v4925_v28  ;;  %v5287_v45 = vld [vmem:[#allocation2 + $0x105] sm:$0xff] }
 0x3cf   : > { %v5297_v47 = vpack.c.bf16 %v5258_v51, %v5257_v52  ;;  %v5290_v28 = vld [vmem:[#allocation2 + $0x11d] sm:$0xff]  ;;  %v5312_v51 = vpack.c.bf16 %v5288_v7, %v5287_v45  ;;  %v5292_v52 = vld [vmem:[#allocation2 + $0x12d] sm:$0xff] }
 0x3d0   : > { %v5645_v10 = vld [vmem:[#allocation2 + $0xa6] sm:$0xff] }
 0x3d1   : > { %v5649_v7 = vld [vmem:[#allocation2 + $0xc6] sm:$0xff] }
 0x3d5   : > { %12277 = vmatmul.mubr.msk.bf16.vlgmr.msra.gmra.mrb[0].mxu0 %vm3723_vm0, %v4928_v43  ;;  %v5262_v43 = vld [vmem:[#allocation2 + $0x3d] sm:$0xff] }
 0x3d6   : > { %12317 = vmatpush3.bf16.msra.mxu0 %v16233_v55  ;;  %12280 = vmatprep.mubr.msk.bf16.mxu0 %vm3723_vm0, %v4929_v59  ;;  %v4898_v55 = vld [vmem:[#allocation2 + $0x6c] sm:$0xff]  ;;  %v5261_v59 = vld [vmem:[#allocation2 + $0x35] sm:$0xff] }
 0x3d7   : > { %12318 = vmatprep.subr.bf16.mxu0 %v13730_v3  ;;  %v4932_v49 = vpack.c.bf16 %v4898_v55, %v4897_v60  ;;  %v5299_v36 = vpack.c.bf16 %v5262_v43, %v5261_v59  ;;  %v5301_v60 = vpack.c.bf16 %v5266_v4, %v5265_v17  ;;  %v5296_v59 = vld [vmem:[#allocation2 + $0x14d] sm:$0xf]  ;;  %v5627_v4 = vld [vmem:[#allocation2 + $0x16] sm:$0xff]  ;;  %v5632_v17 = vld [vmem:[#allocation2 + $0x3e] sm:$0xff] }
 0x3da   : > { %12319 = vmatpush3.bf16.msra.mxu0 %v13730_v3  ;;  %v5298_v3 = vpack.c.bf16 %v5260_v37, %v5259_v53  ;;  %v5291_v37 = vld [vmem:[#allocation2 + $0x125] sm:$0xff]  ;;  %v5293_v53 = vld [vmem:[#allocation2 + $0x135] sm:$0xff] }
 0x3db   : > { %12360 = vmatprep.subr.bf16.mxu0 %v16305_v23  ;;  %v5314_v43 = vpack.c.bf16 %v5292_v52, %v5291_v37  ;;  %v5656_v52 = vld [vmem:[#allocation2 + $0xfe] sm:$0xff] }
 0x3dd   : > { %12281 = vmatmul.mubr.msk.bf16.gmra.mrb[4].mxu0 %vm3723_vm0, %v4930_v19  ;;  %v5264_v19 = vld [vmem:[#allocation2 + $0x4d] sm:$0xff] }
 0x3de   : > { %12284 = vmatprep.mubr.msk.bf16.mxu0 %vm3723_vm0, %v4931_v29  ;;  %v5263_v29 = vld [vmem:[#allocation2 + $0x45] sm:$0xff] }
 0x3df   : > { %v5300_v55 = vpack.c.bf16 %v5264_v19, %v5263_v29 }
 0x3e5   : > { %12285 = vmatmul.mubr.msk.bf16.gmra.mrb[8].mxu0 %vm3723_vm0, %v4932_v49  ;;  %v5270_v49 = vld [vmem:[#allocation2 + $0x7d] sm:$0xff] }
 0x3e6   : > { %12288 = vmatprep.mubr.msk.bf16.mxu0 %vm3723_vm0, %v4933_v40  ;;  %v5303_v63 = vpack.c.bf16 %v5270_v49, %v5269_v6  ;;  %v5631_v49 = vld [vmem:[#allocation2 + $0x36] sm:$0xff] }
 0x3e7   : > { %v16389_v6 = vld [vmem:[%s17714_s3 + $0x70] sm:$0xff]  }
 0x3ed   : > { %12289 = vmatmul.mubr.msk.bf16.gmra.mrb[12].mxu0 %vm3723_vm0, %v4934_v16 }
 0x3ee   : > { %12292 = vmatprep.mubr.msk.bf16.mxu0 %vm3723_vm0, %v4935_v27 }
 0x3f5   : > { %12293 = vmatmul.mubr.msk.bf16.gmra.mrb[16].mxu0 %vm3723_vm0, %v4936_v20  ;;  %v5304_v20 = vpack.c.bf16 %v5272_v44, %v5271_v57  ;;  %v5636_v44 = vld [vmem:[#allocation2 + $0x5e] sm:$0xff] }
 0x3f6   : > { %12296 = vmatprep.mubr.msk.bf16.mxu0 %vm3723_vm0, %v4937_v48  ;;  %v5305_v48 = vpack.c.bf16 %v5274_v34, %v5273_v25  ;;  %v5633_v34 = vld [vmem:[#allocation2 + $0x46] sm:$0xff] }
 0x3fd   : > { %12297 = vmatmul.mubr.msk.bf16.gmra.mrb[20].mxu0 %vm3723_vm0, %v4938_v38  ;;  %v5306_v38 = vpack.c.bf16 %v5276_v9, %v5275_v21  ;;  %v5637_v9 = vld [vmem:[#allocation2 + $0x66] sm:$0xff]  ;;  %v5639_v21 = vld [vmem:[#allocation2 + $0x76] sm:$0xff] }
 0x3fe   : > { %12300 = vmatprep.mubr.msk.bf16.mxu0 %vm3723_vm0, %v4939_v54  ;;  %v16318_v58 = vpop.f32.mrb[0].mxu1  ;;  %v5307_v54 = vpack.c.bf16 %v5278_v61, %v5277_v39  ;;  %v5642_v39 = vld [vmem:[#allocation2 + $0x8e] sm:$0xff] }
 0x3ff   : > { %v16320_v0 = vpop.f32.mrb[1].mxu1 }
 0x400   : > { %v16322_v62 = vpop.f32.mrb[2].mxu1 }
 0x401   : > { %v16324_v2 = vpop.f32.mrb[3].mxu1 }
 0x405   : > { %12301 = vmatmul.mubr.msk.bf16.gmra.mrb[24].mxu0 %vm3723_vm0, %v4940_v50  ;;  %v5281_v50 = vld [vmem:[#allocation2 + $0xd5] sm:$0xff] }
 0x406   : > { %12304 = vmatprep.mubr.msk.bf16.mxu0 %vm3723_vm0, %v4941_v14  ;;  %v5309_v14 = vpack.c.bf16 %v5282_v13, %v5281_v50  ;;  %v5674_v13 = vpack.c.bf16 %v5642_v39, %v5641_v1  ;;  %v5646_v50 = vld [vmem:[#allocation2 + $0xae] sm:$0xff] }
 0x407   : > { %v6006_v39 = vld [vmem:[#allocation2 + $0x70] sm:$0xff] }
 0x40d   : > { %12305 = vmatmul.mubr.msk.bf16.gmra.mrb[28].mxu0 %vm3723_vm0, %v4942_v46  ;;  %v5285_v46 = vld [vmem:[#allocation2 + $0xf5] sm:$0xff] }
 0x40e   : > { %12308 = vmatprep.mubr.msk.bf16.mxu0 %vm3723_vm0, %v4943_v11  ;;  %v5286_v11 = vld [vmem:[#allocation2 + $0xfd] sm:$0xff] }
 0x415   : > { %12309 = vmatmul.mubr.msk.bf16.gmra.mrb[32].mxu0 %vm3723_vm0, %v4944_v5  ;;  %v5311_v5 = vpack.c.bf16 %v5286_v11, %v5285_v46  ;;  %v5676_v46 = vpack.c.bf16 %v5646_v50, %v5645_v10  ;;  %v5647_v11 = vld [vmem:[#allocation2 + $0xb6] sm:$0xff]  ;;  %v6009_v10 = vld [vmem:[#allocation2 + $0x88] sm:$0xff] }
 0x416   : > { %12312 = vmatprep.mubr.msk.bf16.mxu0 %vm3723_vm0, %v4945_v18  ;;  %v5289_v18 = vld [vmem:[#allocation2 + $0x115] sm:$0xff] }
 0x417   : > { %v6007_v50 = vld [vmem:[#allocation2 + $0x78] sm:$0xff] }
 0x41d   : > { %12313 = vmatmul.mubr.msk.bf16.gmra.mrb[36].mxu0 %vm3723_vm0, %v4946_v33  ;;  %v5313_v33 = vpack.c.bf16 %v5290_v28, %v5289_v18  ;;  %v5651_v28 = vld [vmem:[#allocation2 + $0xd6] sm:$0xff] }
 0x41e   : > { %12320 = vmatprep.mubr.msk.bf16.mxu0 %vm3723_vm0, %v5297_v47  ;;  %v5294_v47 = vld [vmem:[#allocation2 + $0x13d] sm:$0xff] }
 0x425   : > { %12321 = vmatmul.mubr.msk.bf16.vlgmr.msra.gmra.mrb[0].mxu0 %vm3723_vm0, %v5298_v3  ;;  %v5315_v3 = vpack.c.bf16 %v5294_v47, %v5293_v53  ;;  %v5653_v47 = vld [vmem:[#allocation2 + $0xe6] sm:$0xff]  ;;  %v5658_v53 = vld [vmem:[#allocation2 + $0x10e] sm:$0xff] }
 0x426   : > { %12361 = vmatpush3.bf16.msra.mxu0 %v16305_v23  ;;  %12324 = vmatprep.mubr.msk.bf16.mxu0 %vm3723_vm0, %v5299_v36  ;;  %v5268_v23 = vld [vmem:[#allocation2 + $0x6d] sm:$0xff]  ;;  %v5295_v36 = vld [vmem:[#allocation2 + $0x145] sm:$0xff] }
 0x427   : > { %12362 = vmatprep.subr.bf16.mxu0 %v13732_v35  ;;  %v5302_v40 = vpack.c.bf16 %v5268_v23, %v5267_v8  ;;  %v5316_v19 = vpack.c.bf16 %v5296_v59, %v5295_v36  ;;  %v13734_v8 = vld [vmem:[%s17714_s3 + $0x68] sm:$0xff]   ;;  %v5660_v59 = vld [vmem:[#allocation2 + $0x11e] sm:$0xff] }
 0x42a   : > { %12363 = vmatpush3.bf16.msra.mxu0 %v13732_v35  ;;  %v5628_v35 = vld [vmem:[#allocation2 + $0x1e] sm:$0xff] }
 0x42b   : > { %12404 = vmatprep.subr.bf16.mxu0 %v16343_v32  ;;  %v5667_v29 = vpack.c.bf16 %v5628_v35, %v5627_v4  ;;  %v5657_v35 = vld [vmem:[#allocation2 + $0x106] sm:$0xff]  ;;  %v5662_v4 = vld [vmem:[#allocation2 + $0x12e] sm:$0xff] }
 0x42c   : > { %v5682_v36 = vpack.c.bf16 %v5658_v53, %v5657_v35  ;;  %v6019_v53 = vld [vmem:[#allocation2 + $0xd8] sm:$0xff] }
 0x42d   : > { %12325 = vmatmul.mubr.msk.bf16.gmra.mrb[4].mxu0 %vm3723_vm0, %v5300_v55  ;;  %v5630_v55 = vld [vmem:[#allocation2 + $0x2e] sm:$0xff] }
 0x42e   : > { %12328 = vmatprep.mubr.msk.bf16.mxu0 %vm3723_vm0, %v5301_v60  ;;  %v5629_v60 = vld [vmem:[#allocation2 + $0x26] sm:$0xff] }
 0x42f   : > { %v5668_v23 = vpack.c.bf16 %v5630_v55, %v5629_v60  ;;  %v5661_v55 = vld [vmem:[#allocation2 + $0x126] sm:$0xff]  ;;  %v5663_v60 = vld [vmem:[#allocation2 + $0x136] sm:$0xff] }
 0x435   : > { %12329 = vmatmul.mubr.msk.bf16.gmra.mrb[8].mxu0 %vm3723_vm0, %v5302_v40  ;;  %v5669_v40 = vpack.c.bf16 %v5632_v17, %v5631_v49  ;;  %v5684_v17 = vpack.c.bf16 %v5662_v4, %v5661_v55  ;;  %v5666_v49 = vld [vmem:[#allocation2 + $0x14e] sm:$0xf] }
 0x436   : > { %12332 = vmatprep.mubr.msk.bf16.mxu0 %vm3723_vm0, %v5303_v63  ;;  %v16350_v22 = vpop.f32.mrb[4].mxu1  ;;  %v5634_v63 = vld [vmem:[#allocation2 + $0x4e] sm:$0xff] }
 0x437   : > { %v16352_v16 = vpop.f32.mrb[5].mxu1  ;;  %v5670_v57 = vpack.c.bf16 %v5634_v63, %v5633_v34  ;;  %v6026_v4 = vld [vmem:[#allocation2 + $0x110] sm:$0xff]  ;;  %v6025_v55 = vld [vmem:[#allocation2 + $0x108] sm:$0xff] }
 0x438   : > { %v16354_v27 = vpop.f32.mrb[6].mxu1 }
 0x439   : > { %v16356_v31 = vpop.f32.mrb[7].mxu1 }
 0x43d   : > { %12333 = vmatmul.mubr.msk.bf16.gmra.mrb[12].mxu0 %vm3723_vm0, %v5304_v20  ;;  %v5635_v20 = vld [vmem:[#allocation2 + $0x56] sm:$0xff] }
 0x43e   : > { %12336 = vmatprep.mubr.msk.bf16.mxu0 %vm3723_vm0, %v5305_v48  ;;  %v5671_v25 = vpack.c.bf16 %v5636_v44, %v5635_v20  ;;  %v5640_v48 = vld [vmem:[#allocation2 + $0x7e] sm:$0xff]  ;;  %v5997_v44 = vld [vmem:[#allocation2 + $0x28] sm:$0xff]  ;;  %v6002_v20 = vld [vmem:[#allocation2 + $0x50] sm:$0xff] }
 0x445   : > { %12337 = vmatmul.mubr.msk.bf16.gmra.mrb[16].mxu0 %vm3723_vm0, %v5306_v38  ;;  %v5673_v38 = vpack.c.bf16 %v5640_v48, %v5639_v21  ;;  %v6001_v48 = vld [vmem:[#allocation2 + $0x48] sm:$0xff]  ;;  %v16419_v21 = vld [vmem:[%s17714_s3 + $0x80] sm:$0xff]  }
 0x446   : > { %12340 = vmatprep.mubr.msk.bf16.mxu0 %vm3723_vm0, %v5307_v54  ;;  %v5644_v54 = vld [vmem:[#allocation2 + $0x9e] sm:$0xff] }
 0x44d   : > { %12341 = vmatmul.mubr.msk.bf16.gmra.mrb[20].mxu0 %vm3723_vm0, %v5308_v41  ;;  %v5675_v41 = vpack.c.bf16 %v5644_v54, %v5643_v56  ;;  %v6003_v54 = vld [vmem:[#allocation2 + $0x58] sm:$0xff] }
 0x44e   : > { %12344 = vmatprep.mubr.msk.bf16.mxu0 %vm3723_vm0, %v5309_v14  ;;  %v16364_v24 = vpop.f32.mrb[8].mxu1  ;;  %v5648_v14 = vld [vmem:[#allocation2 + $0xbe] sm:$0xff] }
 0x44f   : > { %v16366_v26 = vpop.f32.mrb[9].mxu1  ;;  %v5677_v42 = vpack.c.bf16 %v5648_v14, %v5647_v11  ;;  %v6012_v11 = vld [vmem:[#allocation2 + $0xa0] sm:$0xff] }
 0x450   : > { %v16368_v12 = vpop.f32.mrb[10].mxu1 }
 0x451   : > { %v16370_v30 = vpop.f32.mrb[11].mxu1 }
 0x455   : > { %12345 = vmatmul.mubr.msk.bf16.gmra.mrb[24].mxu0 %vm3723_vm0, %v5310_v15  ;;  %v5650_v15 = vld [vmem:[#allocation2 + $0xce] sm:$0xff] }
 0x456   : > { %12348 = vmatprep.mubr.msk.bf16.mxu0 %vm3723_vm0, %v5311_v5  ;;  %v5652_v5 = vld [vmem:[#allocation2 + $0xde] sm:$0xff]  ;;  %v5678_v18 = vpack.c.bf16 %v5650_v15, %v5649_v7  ;;  %v6013_v7 = vld [vmem:[#allocation2 + $0xa8] sm:$0xff] }
 0x457   : > { %v5679_v45 = vpack.c.bf16 %v5652_v5, %v5651_v28  ;;  %v6011_v15 = vld [vmem:[#allocation2 + $0x98] sm:$0xff]  ;;  %v6016_v28 = vld [vmem:[#allocation2 + $0xc0] sm:$0xff] }
 0x458   : > { %v6044_v5 = vpack.c.bf16 %v6012_v11, %v6011_v15  ;;  %v6375_v11 = vld [vmem:[#allocation2 + $0x69] sm:$0xff] }
 0x45d   : > { %12349 = vmatmul.mubr.msk.bf16.gmra.mrb[28].mxu0 %vm3723_vm0, %v5312_v51  ;;  %v5654_v51 = vld [vmem:[#allocation2 + $0xee] sm:$0xff] }
 0x45e   : > { %12352 = vmatprep.mubr.msk.bf16.mxu0 %vm3723_vm0, %v5313_v33  ;;  %v5655_v33 = vld [vmem:[#allocation2 + $0xf6] sm:$0xff]  ;;  %v5680_v37 = vpack.c.bf16 %v5654_v51, %v5653_v47 }
 0x45f   : > { %v6015_v51 = vld [vmem:[#allocation2 + $0xb8] sm:$0xff] }
 0x465   : > { %12353 = vmatmul.mubr.msk.bf16.gmra.mrb[32].mxu0 %vm3723_vm0, %v5314_v43  ;;  %v5681_v43 = vpack.c.bf16 %v5656_v52, %v5655_v33  ;;  %v6046_v33 = vpack.c.bf16 %v6016_v28, %v6015_v51  ;;  %v6017_v52 = vld [vmem:[#allocation2 + $0xc8] sm:$0xff] }
 0x466   : > { %12356 = vmatprep.mubr.msk.bf16.mxu0 %vm3723_vm0, %v5315_v3  ;;  %v5659_v3 = vld [vmem:[#allocation2 + $0x116] sm:$0xff]  ;;  %v6379_v28 = vld [vmem:[#allocation2 + $0x89] sm:$0xff] }
 0x46d   : > { %12357 = vmatmul.mubr.msk.bf16.gmra.mrb[36].mxu0 %vm3723_vm0, %v5316_v19  ;;  %v5683_v19 = vpack.c.bf16 %v5660_v59, %v5659_v3  ;;  %v6021_v59 = vld [vmem:[#allocation2 + $0xe8] sm:$0xff] }
 0x46e   : > { %12364 = vmatprep.mubr.msk.bf16.mxu0 %vm3723_vm0, %v5667_v29  ;;  %v5664_v29 = vld [vmem:[#allocation2 + $0x13e] sm:$0xff] }
 0x475   : > { %12365 = vmatmul.mubr.msk.bf16.vlgmr.msra.gmra.mrb[0].mxu0 %vm3723_vm0, %v5668_v23  ;;  %v5685_v23 = vpack.c.bf16 %v5664_v29, %v5663_v60  ;;  %v6027_v60 = vld [vmem:[#allocation2 + $0x118] sm:$0xff] }
 0x476   : > { %12405 = vmatpush3.bf16.msra.mxu0 %v16343_v32  ;;  %12368 = vmatprep.mubr.msk.bf16.mxu0 %vm3723_vm0, %v5669_v40  ;;  %v5638_v32 = vld [vmem:[#allocation2 + $0x6e] sm:$0xff]  ;;  %v5665_v40 = vld [vmem:[#allocation2 + $0x146] sm:$0xff] }
 0x477   : > { %12406 = vmatprep.subr.bf16.mxu0 %v13734_v8  ;;  %v5672_v61 = vpack.c.bf16 %v5638_v32, %v5637_v9  ;;  %v5686_v63 = vpack.c.bf16 %v5666_v49, %v5665_v40  ;;  %v13736_v9 = vld [vmem:[%s17714_s3 + $0x78] sm:$0xff]   ;;  %v6030_v49 = vld [vmem:[#allocation2 + $0x130] sm:$0xff]  ;;  %v6029_v40 = vld [vmem:[#allocation2 + $0x128] sm:$0xff] }
 0x47a   : > { %12407 = vmatpush3.bf16.msra.mxu0 %v13734_v8  ;;  %v5998_v8 = vld [vmem:[#allocation2 + $0x30] sm:$0xff] }
 0x47b   : > { %12448 = vmatprep.subr.bf16.mxu0 %v16389_v6  ;;  %v6037_v34 = vpack.c.bf16 %v5998_v8, %v5997_v44  ;;  %v6032_v44 = vld [vmem:[#allocation2 + $0x140] sm:$0xff] }
 0x47d   : > { %12369 = vmatmul.mubr.msk.bf16.gmra.mrb[4].mxu0 %vm3723_vm0, %v5670_v57  ;;  %v6000_v57 = vld [vmem:[#allocation2 + $0x40] sm:$0xff] }
 0x47e   : > { %12372 = vmatprep.mubr.msk.bf16.mxu0 %vm3723_vm0, %v5671_v25  ;;  %v5999_v25 = vld [vmem:[#allocation2 + $0x38] sm:$0xff] }
 0x47f   : > { %v6038_v32 = vpack.c.bf16 %v6000_v57, %v5999_v25  ;;  %v6031_v57 = vld [vmem:[#allocation2 + $0x138] sm:$0xff]  ;;  %v6033_v25 = vld [vmem:[#allocation2 + $0x148] sm:$0xff] }
 0x485   : > { %12373 = vmatmul.mubr.msk.bf16.gmra.mrb[8].mxu0 %vm3723_vm0, %v5672_v61  ;;  %v6039_v61 = vpack.c.bf16 %v6002_v20, %v6001_v48  ;;  %v6054_v20 = vpack.c.bf16 %v6032_v44, %v6031_v57  ;;  %v6036_v48 = vld [vmem:[#allocation2 + $0x160] sm:$0xf] }
 0x486   : > { %12376 = vmatprep.mubr.msk.bf16.mxu0 %vm3723_vm0, %v5673_v38  ;;  %v6004_v38 = vld [vmem:[#allocation2 + $0x60] sm:$0xff] }
 0x487   : > { %v6040_v1 = vpack.c.bf16 %v6004_v38, %v6003_v54  ;;  %v6035_v38 = vld [vmem:[#allocation2 + $0x158] sm:$0xff] }
 0x48d   : > { %12377 = vmatmul.mubr.msk.bf16.gmra.mrb[12].mxu0 %vm3723_vm0, %v5674_v13  ;;  %v6005_v13 = vld [vmem:[#allocation2 + $0x68] sm:$0xff] }
 0x48e   : > { %12380 = vmatprep.mubr.msk.bf16.mxu0 %vm3723_vm0, %v5675_v41  ;;  %v6041_v56 = vpack.c.bf16 %v6006_v39, %v6005_v13  ;;  %v6010_v41 = vld [vmem:[#allocation2 + $0x90] sm:$0xff]  ;;  %v6056_v39 = vpack.c.bf16 %v6036_v48, %v6035_v38  ;;  %v6370_v13 = vld [vmem:[#allocation2 + $0x41] sm:$0xff]  ;;  %v6397_v48 = vld [vmem:[#allocation2 + $0x119] sm:$0xff] }
 0x48f   : > { %v6401_v38 = vld [vmem:[#allocation2 + $0x139] sm:$0xff] }
 0x495   : > { %12381 = vmatmul.mubr.msk.bf16.gmra.mrb[16].mxu0 %vm3723_vm0, %v5676_v46  ;;  %v6043_v46 = vpack.c.bf16 %v6010_v41, %v6009_v10  ;;  %v6373_v10 = vld [vmem:[#allocation2 + $0x59] sm:$0xff] }
 0x496   : > { %12384 = vmatprep.mubr.msk.bf16.mxu0 %vm3723_vm0, %v5677_v42  ;;  %v6014_v42 = vld [vmem:[#allocation2 + $0xb0] sm:$0xff] }
 0x49d   : > { %12385 = vmatmul.mubr.msk.bf16.gmra.mrb[20].mxu0 %vm3723_vm0, %v5678_v18  ;;  %v6045_v18 = vpack.c.bf16 %v6014_v42, %v6013_v7  ;;  %v6376_v42 = vld [vmem:[#allocation2 + $0x71] sm:$0xff]  ;;  %v6377_v7 = vld [vmem:[#allocation2 + $0x79] sm:$0xff] }
 0x49e   : > { %12388 = vmatprep.mubr.msk.bf16.mxu0 %vm3723_vm0, %v5679_v45  ;;  %v6018_v45 = vld [vmem:[#allocation2 + $0xd0] sm:$0xff] }
 0x49f   : > { %v6047_v47 = vpack.c.bf16 %v6018_v45, %v6017_v52  ;;  %v6380_v45 = vld [vmem:[#allocation2 + $0x91] sm:$0xff]  ;;  %v6382_v52 = vld [vmem:[#allocation2 + $0xa1] sm:$0xff] }
 0x4a5   : > { %12389 = vmatmul.mubr.msk.bf16.gmra.mrb[24].mxu0 %vm3723_vm0, %v5680_v37  ;;  %v6020_v37 = vld [vmem:[#allocation2 + $0xe0] sm:$0xff] }
 0x4a6   : > { %12392 = vmatprep.mubr.msk.bf16.mxu0 %vm3723_vm0, %v5681_v43  ;;  %v6022_v43 = vld [vmem:[#allocation2 + $0xf0] sm:$0xff]  ;;  %v6048_v3 = vpack.c.bf16 %v6020_v37, %v6019_v53 }
 0x4a7   : > { %v6049_v35 = vpack.c.bf16 %v6022_v43, %v6021_v59  ;;  %v6384_v37 = vld [vmem:[#allocation2 + $0xb1] sm:$0xff]  ;;  %v6386_v59 = vld [vmem:[#allocation2 + $0xc1] sm:$0xff] }
 0x4ad   : > { %12393 = vmatmul.mubr.msk.bf16.gmra.mrb[28].mxu0 %vm3723_vm0, %v5682_v36  ;;  %v6023_v36 = vld [vmem:[#allocation2 + $0xf8] sm:$0xff] }
 0x4ae   : > { %12396 = vmatprep.mubr.msk.bf16.mxu0 %vm3723_vm0, %v5683_v19  ;;  %v6024_v19 = vld [vmem:[#allocation2 + $0x100] sm:$0xff] }
 0x4af   : > { %v6050_v29 = vpack.c.bf16 %v6024_v19, %v6023_v36  ;;  %v6388_v36 = vld [vmem:[#allocation2 + $0xd1] sm:$0xff] }
 0x4b5   : > { %12397 = vmatmul.mubr.msk.bf16.gmra.mrb[32].mxu0 %vm3723_vm0, %v5684_v17  ;;  %v6051_v17 = vpack.c.bf16 %v6026_v4, %v6025_v55  ;;  %v6392_v55 = vld [vmem:[#allocation2 + $0xf1] sm:$0xff] }
 0x4b6   : > { %12400 = vmatprep.mubr.msk.bf16.mxu0 %vm3723_vm0, %v5685_v23  ;;  %v6028_v23 = vld [vmem:[#allocation2 + $0x120] sm:$0xff] }
 0x4b7   : > { %v6052_v8 = vpack.c.bf16 %v6028_v23, %v6027_v60  ;;  %v6391_v23 = vld [vmem:[#allocation2 + $0xe9] sm:$0xff] }
 0x4bd   : > { %12401 = vmatmul.mubr.msk.bf16.gmra.mrb[36].mxu0 %vm3723_vm0, %v5686_v63  ;;  %v6053_v63 = vpack.c.bf16 %v6030_v49, %v6029_v40  ;;  %v6419_v49 = vpack.c.bf16 %v6392_v55, %v6391_v23  ;;  %v6396_v40 = vld [vmem:[#allocation2 + $0x111] sm:$0xff] }
 0x4be   : > { %12408 = vmatprep.mubr.msk.bf16.mxu0 %vm3723_vm0, %v6037_v34  ;;  %v6034_v34 = vld [vmem:[#allocation2 + $0x150] sm:$0xff] }
 0x4bf   : > { %v6757_v23 = vld [vmem:[#allocation2 + $0xca] sm:$0xff] }
 0x4c5   : > { %12409 = vmatmul.mubr.msk.bf16.vlgmr.msra.gmra.mrb[0].mxu0 %vm3723_vm0, %v6038_v32  ;;  %v6055_v32 = vpack.c.bf16 %v6034_v34, %v6033_v25  ;;  %v6395_v34 = vld [vmem:[#allocation2 + $0x109] sm:$0xff] }
 0x4c6   : > { %12449 = vmatpush3.bf16.msra.mxu0 %v16389_v6  ;;  %12412 = vmatprep.mubr.msk.bf16.mxu0 %vm3723_vm0, %v6039_v61  ;;  %v6008_v6 = vld [vmem:[#allocation2 + $0x80] sm:$0xff]  ;;  %v6368_v61 = vld [vmem:[#allocation2 + $0x31] sm:$0xff]  ;;  %v6421_v57 = vpack.c.bf16 %v6396_v40, %v6395_v34  ;;  %v6399_v25 = vld [vmem:[#allocation2 + $0x129] sm:$0xff] }
 0x4c7   : > { %12450 = vmatprep.subr.bf16.mxu0 %v13736_v9  ;;  %v6042_v14 = vpack.c.bf16 %v6008_v6, %v6007_v50  ;;  %v6372_v6 = vld [vmem:[#allocation2 + $0x51] sm:$0xff]  ;;  %v13738_v50 = vld [vmem:[%s17714_s3 + $0x88] sm:$0xff]   ;;  %v6759_v34 = vld [vmem:[#allocation2 + $0xda] sm:$0xff] }
 0x4ca   : > { %12451 = vmatpush3.bf16.msra.mxu0 %v13736_v9  ;;  %v6367_v9 = vld [vmem:[#allocation2 + $0x29] sm:$0xff] }
 0x4cb   : > { %12492 = vmatprep.subr.bf16.mxu0 %v16419_v21  ;;  %v6407_v54 = vpack.c.bf16 %v6368_v61, %v6367_v9 }
 0x4cd   : > { %12413 = vmatmul.mubr.msk.bf16.gmra.mrb[4].mxu0 %vm3723_vm0, %v6040_v1  ;;  %v6369_v1 = vld [vmem:[#allocation2 + $0x39] sm:$0xff] }
 0x4ce   : > { %12416 = vmatprep.mubr.msk.bf16.mxu0 %vm3723_vm0, %v6041_v56  ;;  %v6371_v56 = vld [vmem:[#allocation2 + $0x49] sm:$0xff]  ;;  %v6408_v41 = vpack.c.bf16 %v6370_v13, %v6369_v1 }
 0x4cf   : > { %v6403_v13 = vld [vmem:[#allocation2 + $0x149] sm:$0xff] }
 0x4d5   : > { %12417 = vmatmul.mubr.msk.bf16.gmra.mrb[8].mxu0 %vm3723_vm0, %v6042_v14  ;;  %v6409_v14 = vpack.c.bf16 %v6372_v6, %v6371_v56  ;;  %v6405_v6 = vld [vmem:[#allocation2 + $0x159] sm:$0xff] }
 0x4d6   : > { %12420 = vmatprep.mubr.msk.bf16.mxu0 %vm3723_vm0, %v6043_v46  ;;  %v6374_v46 = vld [vmem:[#allocation2 + $0x61] sm:$0xff] }
 0x4d7   : > { %v6410_v15 = vpack.c.bf16 %v6374_v46, %v6373_v10 }
 0x4dd   : > { %12421 = vmatmul.mubr.msk.bf16.gmra.mrb[12].mxu0 %vm3723_vm0, %v6044_v5  ;;  %v6411_v5 = vpack.c.bf16 %v6376_v42, %v6375_v11  ;;  %v6739_v11 = vld [vmem:[#allocation2 + $0x3a] sm:$0xff]  ;;  %v6740_v42 = vld [vmem:[#allocation2 + $0x42] sm:$0xff] }
 0x4de   : > { %12424 = vmatprep.mubr.msk.bf16.mxu0 %vm3723_vm0, %v6045_v18  ;;  %v6378_v18 = vld [vmem:[#allocation2 + $0x81] sm:$0xff] }
 0x4df   : > { %v6412_v51 = vpack.c.bf16 %v6378_v18, %v6377_v7  ;;  %v6778_v7 = vpack.c.bf16 %v6740_v42, %v6739_v11  ;;  %v6773_v11 = vld [vmem:[#allocation2 + $0x14a] sm:$0xff] }
 0x4e5   : > { %12425 = vmatmul.mubr.msk.bf16.gmra.mrb[16].mxu0 %vm3723_vm0, %v6046_v33  ;;  %v6381_v33 = vld [vmem:[#allocation2 + $0x99] sm:$0xff] }
 0x4e6   : > { %12428 = vmatprep.mubr.msk.bf16.mxu0 %vm3723_vm0, %v6047_v47  ;;  %v6383_v47 = vld [vmem:[#allocation2 + $0xa9] sm:$0xff]  ;;  %v6414_v43 = vpack.c.bf16 %v6382_v52, %v6381_v33 }
 0x4e7   : > { %v6415_v53 = vpack.c.bf16 %v6384_v37, %v6383_v47  ;;  %v6747_v47 = vld [vmem:[#allocation2 + $0x7a] sm:$0xff]  ;;  %v6748_v37 = vld [vmem:[#allocation2 + $0x82] sm:$0xff] }
 0x4ed   : > { %12429 = vmatmul.mubr.msk.bf16.gmra.mrb[20].mxu0 %vm3723_vm0, %v6048_v3  ;;  %v6385_v3 = vld [vmem:[#allocation2 + $0xb9] sm:$0xff] }
 0x4ee   : > { %12432 = vmatprep.mubr.msk.bf16.mxu0 %vm3723_vm0, %v6049_v35  ;;  %v6387_v35 = vld [vmem:[#allocation2 + $0xc9] sm:$0xff]  ;;  %v6416_v19 = vpack.c.bf16 %v6386_v59, %v6385_v3  ;;  %v6782_v3 = vpack.c.bf16 %v6748_v37, %v6747_v47 }
 0x4ef   : > { %v6417_v4 = vpack.c.bf16 %v6388_v36, %v6387_v35  ;;  %v6751_v35 = vld [vmem:[#allocation2 + $0x9a] sm:$0xff]  ;;  %v6752_v36 = vld [vmem:[#allocation2 + $0xa2] sm:$0xff] }
 0x4f5   : > { %12433 = vmatmul.mubr.msk.bf16.gmra.mrb[24].mxu0 %vm3723_vm0, %v6050_v29  ;;  %v6390_v29 = vld [vmem:[#allocation2 + $0xe1] sm:$0xff] }
 0x4f6   : > { %12436 = vmatprep.mubr.msk.bf16.mxu0 %vm3723_vm0, %v6051_v17  ;;  %v6389_v17 = vld [vmem:[#allocation2 + $0xd9] sm:$0xff] }
 0x4f7   : > { %v6418_v60 = vpack.c.bf16 %v6390_v29, %v6389_v17  ;;  %v6784_v29 = vpack.c.bf16 %v6752_v36, %v6751_v35  ;;  %v6755_v17 = vld [vmem:[#allocation2 + $0xba] sm:$0xff] }
 0x4fd   : > { %12437 = vmatmul.mubr.msk.bf16.gmra.mrb[28].mxu0 %vm3723_vm0, %v6052_v8  ;;  %v6394_v8 = vld [vmem:[#allocation2 + $0x101] sm:$0xff] }
 0x4fe   : > { %12440 = vmatprep.mubr.msk.bf16.mxu0 %vm3723_vm0, %v6053_v63  ;;  %v6393_v63 = vld [vmem:[#allocation2 + $0xf9] sm:$0xff] }
 0x4ff   : > { %v6420_v44 = vpack.c.bf16 %v6394_v8, %v6393_v63  ;;  %v6760_v63 = vld [vmem:[#allocation2 + $0xe2] sm:$0xff] }
 0x505   : > { %12441 = vmatmul.mubr.msk.bf16.gmra.mrb[32].mxu0 %vm3723_vm0, %v6054_v20  ;;  %v6398_v20 = vld [vmem:[#allocation2 + $0x121] sm:$0xff] }
 0x506   : > { %12444 = vmatprep.mubr.msk.bf16.mxu0 %vm3723_vm0, %v6055_v32  ;;  %v6400_v32 = vld [vmem:[#allocation2 + $0x131] sm:$0xff]  ;;  %v6422_v9 = vpack.c.bf16 %v6398_v20, %v6397_v48 }
 0x507   : > { %v6423_v61 = vpack.c.bf16 %v6400_v32, %v6399_v25  ;;  %v6761_v20 = vld [vmem:[#allocation2 + $0xea] sm:$0xff]  ;;  %v6764_v32 = vld [vmem:[#allocation2 + $0x102] sm:$0xff]  ;;  %v6766_v48 = vld [vmem:[#allocation2 + $0x112] sm:$0xff] }
 0x50d   : > { %12445 = vmatmul.mubr.msk.bf16.gmra.mrb[36].mxu0 %vm3723_vm0, %v6056_v39  ;;  %v6402_v39 = vld [vmem:[#allocation2 + $0x141] sm:$0xff] }
 0x50e   : > { %12452 = vmatprep.mubr.msk.bf16.mxu0 %vm3723_vm0, %v6407_v54  ;;  %v6404_v54 = vld [vmem:[#allocation2 + $0x151] sm:$0xff]  ;;  %v6424_v1 = vpack.c.bf16 %v6402_v39, %v6401_v38 }
 0x50f   : > { %v6425_v56 = vpack.c.bf16 %v6404_v54, %v6403_v13  ;;  %v6765_v38 = vld [vmem:[#allocation2 + $0x10a] sm:$0xff]  ;;  %v6768_v54 = vld [vmem:[#allocation2 + $0x122] sm:$0xff]  ;;  %v6770_v13 = vld [vmem:[#allocation2 + $0x132] sm:$0xff] }
 0x510   : > { %v6791_v39 = vpack.c.bf16 %v6766_v48, %v6765_v38 }
 0x515   : > { %12453 = vmatmul.mubr.msk.bf16.vlgmr.msra.gmra.mrb[0].mxu0 %vm3723_vm0, %v6408_v41  ;;  %v6406_v41 = vld [vmem:[#allocation2 + $0x161] sm:$0xf] }
 0x516   : > { %12493 = vmatpush3.bf16.msra.mxu0 %v16419_v21  ;;  %12456 = vmatprep.mubr.msk.bf16.mxu0 %vm3723_vm0, %v6409_v14  ;;  %v6413_v21 = vpack.c.bf16 %v6380_v45, %v6379_v28  ;;  %v6738_v14 = vld [vmem:[#allocation2 + $0x32] sm:$0xff]  ;;  %v6426_v10 = vpack.c.bf16 %v6406_v41, %v6405_v6  ;;  %v6743_v28 = vld [vmem:[#allocation2 + $0x5a] sm:$0xff]  ;;  %v6744_v45 = vld [vmem:[#allocation2 + $0x62] sm:$0xff] }
 0x517   : > { %12494 = vmatprep.subr.bf16.mxu0 %v13738_v50  ;;  %v6780_v33 = vpack.c.bf16 %v6744_v45, %v6743_v28  ;;  %v13740_v28 = vld [vmem:[%s17716_s5 + $0x8] sm:$0xff]   ;;  %v13741_v45 = vld [vmem:[%s17716_s5 + $0x10] sm:$0xff]  }
 0x51a   : > { %12495 = vmatpush3.bf16.msra.mxu0 %v13738_v50  ;;  %v6737_v50 = vld [vmem:[#allocation2 + $0x2a] sm:$0xff] }
 0x51b   : > { %v6777_v46 = vpack.c.bf16 %v6738_v14, %v6737_v50  ;;  %v6771_v50 = vld [vmem:[#allocation2 + $0x13a] sm:$0xff]  ;;  %v6772_v14 = vld [vmem:[#allocation2 + $0x142] sm:$0xff] }
 0x51d   : > { %12457 = vmatmul.mubr.msk.bf16.gmra.mrb[4].mxu0 %vm3723_vm0, %v6410_v15  ;;  %v6741_v15 = vld [vmem:[#allocation2 + $0x4a] sm:$0xff] }
 0x51e   : > { %12460 = vmatprep.mubr.msk.bf16.mxu0 %vm3723_vm0, %v6411_v5  ;;  %v6742_v5 = vld [vmem:[#allocation2 + $0x52] sm:$0xff] }
 0x51f   : > { %v6779_v18 = vpack.c.bf16 %v6742_v5, %v6741_v15  ;;  %v6775_v15 = vld [vmem:[#allocation2 + $0x15a] sm:$0xff]  ;;  %v6776_v5 = vld [vmem:[#allocation2 + $0x162] sm:$0xf] }
 0x525   : > { %12461 = vmatmul.mubr.msk.bf16.gmra.mrb[8].mxu0 %vm3723_vm0, %v6412_v51  ;;  %v6745_v51 = vld [vmem:[#allocation2 + $0x6a] sm:$0xff] }
 0x526   : > { %12464 = vmatprep.mubr.msk.bf16.mxu0 %vm3723_vm0, %v6413_v21  ;;  %v6746_v21 = vld [vmem:[#allocation2 + $0x72] sm:$0xff] }
 0x527   : > { %v6781_v52 = vpack.c.bf16 %v6746_v21, %v6745_v51  ;;  %v13742_v51 = vld [vmem:[%s17716_s5 + $0x18] sm:$0xff]   ;;  %v16498_v21 = vld [vmem:[%s17716_s5 + $0x20] sm:$0xff]  }
 0x52d   : > { %12465 = vmatmul.mubr.msk.bf16.gmra.mrb[12].mxu0 %vm3723_vm0, %v6414_v43  ;;  %v6749_v43 = vld [vmem:[#allocation2 + $0x8a] sm:$0xff] }
 0x52e   : > { %12468 = vmatprep.mubr.msk.bf16.mxu0 %vm3723_vm0, %v6415_v53  ;;  %v6750_v53 = vld [vmem:[#allocation2 + $0x92] sm:$0xff] }
 0x52f   : > { %v6783_v59 = vpack.c.bf16 %v6750_v53, %v6749_v43 }
 0x535   : > { %12469 = vmatmul.mubr.msk.bf16.gmra.mrb[16].mxu0 %vm3723_vm0, %v6416_v19  ;;  %v6753_v19 = vld [vmem:[#allocation2 + $0xaa] sm:$0xff] }
 0x536   : > { %12472 = vmatprep.mubr.msk.bf16.mxu0 %vm3723_vm0, %v6417_v4  ;;  %v6754_v4 = vld [vmem:[#allocation2 + $0xb2] sm:$0xff] }
 0x537   : > { %v6785_v55 = vpack.c.bf16 %v6754_v4, %v6753_v19 }
 0x53d   : > { %12473 = vmatmul.mubr.msk.bf16.gmra.mrb[20].mxu0 %vm3723_vm0, %v6418_v60  ;;  %v6756_v60 = vld [vmem:[#allocation2 + $0xc2] sm:$0xff] }
 0x53e   : > { %12476 = vmatprep.mubr.msk.bf16.mxu0 %vm3723_vm0, %v6419_v49  ;;  %v6758_v49 = vld [vmem:[#allocation2 + $0xd2] sm:$0xff]  ;;  %v6786_v8 = vpack.c.bf16 %v6756_v60, %v6755_v17 }
 0x53f   : > { %v6787_v40 = vpack.c.bf16 %v6758_v49, %v6757_v23 }
 0x545   : > { %12477 = vmatmul.mubr.msk.bf16.gmra.mrb[24].mxu0 %vm3723_vm0, %v6420_v44  ;;  %v6762_v44 = vld [vmem:[#allocation2 + $0xf2] sm:$0xff] }
 0x546   : > { %12480 = vmatprep.mubr.msk.bf16.mxu0 %vm3723_vm0, %v6421_v57  ;;  %v6788_v57 = vpack.c.bf16 %v6760_v63, %v6759_v34  ;;  %v6789_v25 = vpack.c.bf16 %v6762_v44, %v6761_v20 }
 0x54d   : > { %12481 = vmatmul.mubr.msk.bf16.gmra.mrb[28].mxu0 %vm3723_vm0, %v6422_v9  ;;  %v6763_v9 = vld [vmem:[#allocation2 + $0xfa] sm:$0xff] }
 0x54e   : > { %12484 = vmatprep.mubr.msk.bf16.mxu0 %vm3723_vm0, %v6423_v61  ;;  %v6790_v61 = vpack.c.bf16 %v6764_v32, %v6763_v9 }
 0x555   : > { %12485 = vmatmul.mubr.msk.bf16.gmra.mrb[32].mxu0 %vm3723_vm0, %v6424_v1  ;;  %v6769_v1 = vld [vmem:[#allocation2 + $0x12a] sm:$0xff] }
 0x556   : > { %12488 = vmatprep.mubr.msk.bf16.mxu0 %vm3723_vm0, %v6425_v56  ;;  %v6767_v56 = vld [vmem:[#allocation2 + $0x11a] sm:$0xff]  ;;  %v6793_v41 = vpack.c.bf16 %v6770_v13, %v6769_v1 }
 0x557   : > { %v6792_v6 = vpack.c.bf16 %v6768_v54, %v6767_v56 }
 0x55d   : > { %12489 = vmatmul.mubr.msk.bf16.gmra.mrb[36].mxu0 %vm3723_vm0, %v6426_v10  ;;  %v6774_v10 = vld [vmem:[#allocation2 + $0x152] sm:$0xff] }
 0x55e   : > { %12496 = vmatprep.mubr.msk.bf16.mxu0 %vm3723_vm0, %v6777_v46  ;;  %v6794_v46 = vpack.c.bf16 %v6772_v14, %v6771_v50  ;;  %v6795_v42 = vpack.c.bf16 %v6774_v10, %v6773_v11 }
 0x565   : > { %12497 = vmatmul.mubr.msk.bf16.vlgmr.msra.gmra.mrb[0].mxu0 %vm3723_vm0, %v6778_v7  ;;  %v6796_v7 = vpack.c.bf16 %v6776_v5, %v6775_v15 }
 0x566   : > { %12500 = vmatprep.mubr.msk.bf16.mxu0 %vm3723_vm0, %v6779_v18  ;;  %v13739_v18 = vld [vmem:[%s17716_s5] sm:$0xff]  }
 0x567   : > { %12536 = vmatprep.subr.bf16.mxu1 %v13739_v18 }
 0x568   : > { %12537 = vmatpush3.bf16.msra.mxu1 %v13739_v18 }
 0x569   : > { %12538 = vmatprep.subr.bf16.mxu1 %v13740_v28 }
 0x56c   : > { %12539 = vmatpush3.bf16.msra.mxu1 %v13740_v28 }
 0x56d   : > { %12501 = vmatmul.mubr.msk.bf16.gmra.mrb[4].mxu0 %vm3723_vm0, %v6780_v33  ;;  %12540 = vmatprep.subr.bf16.mxu1 %v13741_v45  ;;  %v16504_v33 = vld [vmem:[%s17715_s4] ss:$0 sm:$0xff] }
 0x56e   : > { %12504 = vmatprep.mubr.msk.bf16.mxu0 %vm3723_vm0, %v6781_v52 }
 0x570   : > { %12541 = vmatpush3.bf16.msra.mxu1 %v13741_v45 }
 0x571   : > { %12542 = vmatprep.subr.bf16.mxu1 %v13742_v51 }
 0x574   : > { %12543 = vmatpush3.bf16.msra.mxu1 %v13742_v51 }
 0x575   : > { %12505 = vmatmul.mubr.msk.bf16.gmra.mrb[8].mxu0 %vm3723_vm0, %v6782_v3  ;;  %12572 = vmatprep.subr.bf16.mxu1 %v16498_v21 }
 0x576   : > { %12508 = vmatprep.mubr.msk.bf16.mxu0 %vm3723_vm0, %v6783_v59 }
 0x57d   : > { %12509 = vmatmul.mubr.msk.bf16.gmra.mrb[12].mxu0 %vm3723_vm0, %v6784_v29 }
 0x57e   : > { %12512 = vmatprep.mubr.msk.bf16.mxu0 %vm3723_vm0, %v6785_v55 }
 0x585   : > { %12513 = vmatmul.mubr.msk.bf16.gmra.mrb[16].mxu0 %vm3723_vm0, %v6786_v8 }
 0x586   : > { %12516 = vmatprep.mubr.msk.bf16.mxu0 %vm3723_vm0, %v6787_v40 }
 0x58d   : > { %12517 = vmatmul.mubr.msk.bf16.gmra.mrb[20].mxu0 %vm3723_vm0, %v6788_v57 }
 0x58e   : > { %12520 = vmatprep.mubr.msk.bf16.mxu0 %vm3723_vm0, %v6789_v25 }
 0x595   : > { %12521 = vmatmul.mubr.msk.bf16.gmra.mrb[24].mxu0 %vm3723_vm0, %v6790_v61 }
 0x596   : > { %12524 = vmatprep.mubr.msk.bf16.mxu0 %vm3723_vm0, %v6791_v39 }
 0x59d   : > { %12525 = vmatmul.mubr.msk.bf16.gmra.mrb[28].mxu0 %vm3723_vm0, %v6792_v6 }
 0x59e   : > { %12528 = vmatprep.mubr.msk.bf16.mxu0 %vm3723_vm0, %v6793_v41 }
 0x5a5   : > { %12529 = vmatmul.mubr.msk.bf16.gmra.mrb[32].mxu0 %vm3723_vm0, %v6794_v46 }
 0x5a6   : > { %12532 = vmatprep.mubr.msk.bf16.mxu0 %vm3723_vm0, %v6795_v42 }
 0x5ad   : > { %12533 = vmatmul.mubr.msk.bf16.gmra.mrb[36].mxu0 %vm3723_vm0, %v6796_v7 }
 0x638   : > { %v12498_v52 = vpop.f32.mrb[0].mxu0 }
 0x639   : > { %v13031_v47 = vadd.f32 %v12498_v52, %v16504_v33  ;;  %v6908_v37 = vpop.f32.mrb[1].mxu0 }
 0x63a   : > { %v13032_v43 = vadd.f32 %v16504_v33, %v6908_v37  ;;  %v12499_v53 = vpop.f32.mrb[2].mxu0 }
 0x63b   : > { %7110 = vst.msk [vmem:[#allocation3 + $0x10] sm:$0xff] %vm7107_vm2, %v13031_v47  ;;  %v13033_v3 = vadd.f32 %v12499_v53, %v16504_v33  ;;  %v6911_v59 = vpop.f32.mrb[3].mxu0 }
 0x63c   : > { %7108 = vst.msk [vmem:[#allocation3] sm:$0xff] %vm7107_vm2, %v13032_v43  ;;  %v13034_v35 = vadd.f32 %v16504_v33, %v6911_v59 }
 0x63d   : > { %7111 = vst.msk [vmem:[#allocation3 + $0x18] sm:$0xff] %vm7107_vm2, %v13033_v3 }
 0x63e   : > { %7109 = vst.msk [vmem:[#allocation3 + $0x8] sm:$0xff] %vm7107_vm2, %v13034_v35 }
 0x640   : > { %v12502_v36 = vpop.f32.mrb[4].mxu0 }
 0x641   : > { %v13035_v19 = vadd.f32 %v12502_v36, %v16504_v33  ;;  %v6924_v4 = vpop.f32.mrb[5].mxu0 }
 0x642   : > { %v13036_v29 = vadd.f32 %v16504_v33, %v6924_v4  ;;  %v12503_v55 = vpop.f32.mrb[6].mxu0  ;;  %v7151_v50 = vld [vmem:[#allocation3 + $0x10] sm:$0xff] }
 0x643   : > { %7114 = vst.msk [vmem:[#allocation3 + $0x30] sm:$0xff] %vm7107_vm2, %v13035_v19  ;;  %v13037_v17 = vadd.f32 %v12503_v55, %v16504_v33  ;;  %v6927_v60 = vpop.f32.mrb[7].mxu0  ;;  %v7149_v8 = vld [vmem:[#allocation3] sm:$0xff] }
 0x644   : > { %v7260_v23 = vld [vmem:[#allocation3 + $0x14] sm:$0xff]  ;;  %7112 = vst.msk [vmem:[#allocation3 + $0x20] sm:$0xff] %vm7107_vm2, %v13036_v29  ;;  %v13038_v49 = vadd.f32 %v16504_v33, %v6927_v60 }
 0x645   : > { %v7297_v40 = vld [vmem:[#allocation3 + $0x15] sm:$0xff]  ;;  %v7186_v63 = vld [vmem:[#allocation3 + $0x1] sm:$0xff]  ;;  %7115 = vst.msk [vmem:[#allocation3 + $0x38] sm:$0xff] %vm7107_vm2, %v13037_v17  ;;  %v7187_v9 = vld [vmem:[#allocation3 + $0x9] sm:$0xff] }
 0x646   : > { %v7334_v44 = vmax.f32 %v7260_v23, %v7297_v40  ;;  %v7223_v34 = vmax.f32 %v7149_v8, %v7186_v63  ;;  %7113 = vst.msk [vmem:[#allocation3 + $0x28] sm:$0xff] %vm7107_vm2, %v13038_v49  ;;  %v7150_v48 = vld [vmem:[#allocation3 + $0x8] sm:$0xff]  ;;  %v7188_v56 = vld [vmem:[#allocation3 + $0x11] sm:$0xff] }
 0x647   : > { %v7152_v14 = vld [vmem:[#allocation3 + $0x18] sm:$0xff]  ;;  %v7224_v10 = vmax.f32 %v7150_v48, %v7187_v9  ;;  %v7225_v43 = vmax.f32 %v7151_v50, %v7188_v56 }
 0x648   : > { %v7371_v57 = vmax.f32 %v7223_v34, %v7334_v44  ;;  %v12506_v20 = vpop.f32.mrb[8].mxu0 }
 0x649   : > { %v13039_v25 = vadd.f32 %v12506_v20, %v16504_v33  ;;  %v6940_v32 = vpop.f32.mrb[9].mxu0 }
 0x64a   : > { %v7408_v61 = vmax.f32 %v7371_v57, 0.0  ;;  %v13040_v38 = vadd.f32 %v16504_v33, %v6940_v32  ;;  %v12507_v39 = vpop.f32.mrb[10].mxu0  ;;  %v7155_v9 = vld [vmem:[#allocation3 + $0x30] sm:$0xff] }
 0x64b   : > { %v7261_v54 = vld [vmem:[#allocation3 + $0x1c] sm:$0xff]  ;;  %7118 = vst.msk [vmem:[#allocation3 + $0x50] sm:$0xff] %vm7107_vm2, %v13039_v25  ;;  %v13041_v1 = vadd.f32 %v12507_v39, %v16504_v33  ;;  %v6943_v13 = vpop.f32.mrb[11].mxu0 }
 0x64c   : > { %7445 = vst.msk [vmem:[#allocation4] sm:$0xff] %vm7107_vm2, %v7408_v61  ;;  %v7298_v6 = vld [vmem:[#allocation3 + $0x1d] sm:$0xff]  ;;  %7116 = vst.msk [vmem:[#allocation3 + $0x40] sm:$0xff] %vm7107_vm2, %v13040_v38  ;;  %v13042_v41 = vadd.f32 %v16504_v33, %v6943_v13  ;;  %v7264_v42 = vld [vmem:[#allocation3 + $0x34] sm:$0xff] }
 0x64d   : > { %v7189_v46 = vld [vmem:[#allocation3 + $0x19] sm:$0xff]  ;;  %v7335_v11 = vmax.f32 %v7261_v54, %v7298_v6  ;;  %7119 = vst.msk [vmem:[#allocation3 + $0x58] sm:$0xff] %vm7107_vm2, %v13041_v1  ;;  %v7190_v18 = vld [vmem:[#allocation3 + $0x21] sm:$0xff]  ;;  %v7263_v52 = vld [vmem:[#allocation3 + $0x2c] sm:$0xff] }
 0x64e   : > { %v7301_v15 = vld [vmem:[#allocation3 + $0x35] sm:$0xff]  ;;  %v7153_v5 = vld [vmem:[#allocation3 + $0x20] sm:$0xff]  ;;  %7117 = vst.msk [vmem:[#allocation3 + $0x48] sm:$0xff] %vm7107_vm2, %v13042_v41  ;;  %v7300_v37 = vld [vmem:[#allocation3 + $0x2d] sm:$0xff]  ;;  %v7226_v53 = vmax.f32 %v7152_v14, %v7189_v46 }
 0x64f   : > { %v7338_v7 = vmax.f32 %v7264_v42, %v7301_v15  ;;  %v7262_v28 = vld [vmem:[#allocation3 + $0x24] sm:$0xff]  ;;  %v7372_v45 = vmax.f32 %v7224_v10, %v7335_v11  ;;  %v7227_v51 = vmax.f32 %v7153_v5, %v7190_v18  ;;  %v7337_v59 = vmax.f32 %v7263_v52, %v7300_v37  ;;  %v7192_v57 = vld [vmem:[#allocation3 + $0x31] sm:$0xff] }
 0x650   : > { %v7299_v47 = vld [vmem:[#allocation3 + $0x25] sm:$0xff]  ;;  %v12510_v35 = vpop.f32.mrb[12].mxu0  ;;  %v7156_v61 = vld [vmem:[#allocation3 + $0x38] sm:$0xff]  ;;  %v7229_v15 = vmax.f32 %v7155_v9, %v7192_v57 }
 0x651   : > { %v7336_v3 = vmax.f32 %v7262_v28, %v7299_v47  ;;  %v7409_v36 = vmax.f32 %v7372_v45, 0.0  ;;  %v7375_v19 = vmax.f32 %v7227_v51, %v7338_v7  ;;  %v13043_v4 = vadd.f32 %v12510_v35, %v16504_v33  ;;  %v6956_v29 = vpop.f32.mrb[13].mxu0  ;;  %v7154_v55 = vld [vmem:[#allocation3 + $0x28] sm:$0xff] }
 0x652   : > { %v7191_v17 = vld [vmem:[#allocation3 + $0x29] sm:$0xff]  ;;  %v7374_v23 = vmax.f32 %v7226_v53, %v7337_v59  ;;  %v13044_v49 = vadd.f32 %v16504_v33, %v6956_v29  ;;  %v12511_v8 = vpop.f32.mrb[14].mxu0 }
 0x653   : > { %v7373_v60 = vmax.f32 %v7225_v43, %v7336_v3  ;;  %7446 = vst.msk [vmem:[#allocation4 + $0x8] sm:$0xff] %vm7107_vm2, %v7409_v36  ;;  %v7412_v40 = vmax.f32 %v7375_v19, 0.0  ;;  %v7265_v63 = vld [vmem:[#allocation3 + $0x3c] sm:$0xff]  ;;  %7122 = vst.msk [vmem:[#allocation3 + $0x70] sm:$0xff] %vm7107_vm2, %v13043_v4  ;;  %v13045_v44 = vadd.f32 %v12511_v8, %v16504_v33  ;;  %v6959_v34 = vpop.f32.mrb[15].mxu0  ;;  %v7228_v38 = vmax.f32 %v7154_v55, %v7191_v17 }
 0x654   : > { %v7411_v25 = vmax.f32 %v7374_v23, 0.0  ;;  %v7302_v32 = vld [vmem:[#allocation3 + $0x3d] sm:$0xff]  ;;  %7120 = vst.msk [vmem:[#allocation3 + $0x60] sm:$0xff] %vm7107_vm2, %v13044_v49  ;;  %v13046_v48 = vadd.f32 %v16504_v33, %v6959_v34  ;;  %v7268_v1 = vld [vmem:[#allocation3 + $0x54] sm:$0xff] }
 0x655   : > { %v7410_v20 = vmax.f32 %v7373_v60, 0.0  ;;  %7449 = vst.msk [vmem:[#allocation4 + $0x20] sm:$0xff] %vm7107_vm2, %v7412_v40  ;;  %v7193_v39 = vld [vmem:[#allocation3 + $0x39] sm:$0xff]  ;;  %v7339_v54 = vmax.f32 %v7265_v63, %v7302_v32  ;;  %7123 = vst.msk [vmem:[#allocation3 + $0x78] sm:$0xff] %vm7107_vm2, %v13045_v44  ;;  %v7194_v41 = vld [vmem:[#allocation3 + $0x41] sm:$0xff] }
 0x656   : > { %v7305_v13 = vld [vmem:[#allocation3 + $0x55] sm:$0xff]  ;;  %7448 = vst.msk [vmem:[#allocation4 + $0x18] sm:$0xff] %vm7107_vm2, %v7411_v25  ;;  %v7157_v56 = vld [vmem:[#allocation3 + $0x40] sm:$0xff]  ;;  %7121 = vst.msk [vmem:[#allocation3 + $0x68] sm:$0xff] %vm7107_vm2, %v13046_v48  ;;  %v7230_v5 = vmax.f32 %v7156_v61, %v7193_v39 }
 0x657   : > { %7447 = vst.msk [vmem:[#allocation4 + $0x10] sm:$0xff] %vm7107_vm2, %v7410_v20  ;;  %v7342_v6 = vmax.f32 %v7268_v1, %v7305_v13  ;;  %v7266_v50 = vld [vmem:[#allocation3 + $0x44] sm:$0xff]  ;;  %v7376_v14 = vmax.f32 %v7228_v38, %v7339_v54  ;;  %v7231_v10 = vmax.f32 %v7157_v56, %v7194_v41  ;;  %v7267_v46 = vld [vmem:[#allocation3 + $0x4c] sm:$0xff]  ;;  %v7160_v34 = vld [vmem:[#allocation3 + $0x58] sm:$0xff] }
 0x658   : > { %v7303_v11 = vld [vmem:[#allocation3 + $0x45] sm:$0xff]  ;;  %v7304_v42 = vld [vmem:[#allocation3 + $0x4d] sm:$0xff]  ;;  %v12514_v28 = vpop.f32.mrb[16].mxu0 }
 0x659   : > { %v7340_v7 = vmax.f32 %v7266_v50, %v7303_v11  ;;  %v7341_v18 = vmax.f32 %v7267_v46, %v7304_v42  ;;  %v7413_v45 = vmax.f32 %v7376_v14, 0.0  ;;  %v7158_v51 = vld [vmem:[#allocation3 + $0x48] sm:$0xff]  ;;  %v7379_v52 = vmax.f32 %v7231_v10, %v7342_v6  ;;  %v6972_v37 = vpop.f32.mrb[17].mxu0  ;;  %v7491_v36 = vld [vmem:[#allocation4] sm:$0xff]  ;;  %v7196_v23 = vld [vmem:[#allocation3 + $0x51] sm:$0xff] }
 0x65a   : > { %v13047_v47 = vadd.f32 %v12514_v28, %v16504_v33  ;;  %v7195_v43 = vld [vmem:[#allocation3 + $0x49] sm:$0xff]  ;;  %v13048_v59 = vadd.f32 %v16504_v33, %v6972_v37  ;;  %v12515_v35 = vpop.f32.mrb[18].mxu0 }
 0x65b   : > { %v7377_v53 = vmax.f32 %v7229_v15, %v7340_v7  ;;  %v7378_v3 = vmax.f32 %v7230_v5, %v7341_v18  ;;  %v7492_v19 = vld [vmem:[#allocation4 + $0x8] sm:$0xff]  ;;  %7450 = vst.msk [vmem:[#allocation4 + $0x28] sm:$0xff] %vm7107_vm2, %v7413_v45  ;;  %v7416_v4 = vmax.f32 %v7379_v52, 0.0  ;;  %v7269_v29 = vld [vmem:[#allocation3 + $0x5c] sm:$0xff]  ;;  %v13049_v55 = vadd.f32 %v12515_v35, %v16504_v33  ;;  %v6975_v17 = vpop.f32.mrb[19].mxu0  ;;  %v7159_v44 = vld [vmem:[#allocation3 + $0x50] sm:$0xff] }
 0x65c   : > { %7126 = vst.msk [vmem:[#allocation3 + $0x90] sm:$0xff] %vm7107_vm2, %v13047_v47  ;;  %v7518_v60 = vpack.c.bf16 %v7492_v19, %v7491_v36  ;;  %v7306_v40 = vld [vmem:[#allocation3 + $0x5d] sm:$0xff]  ;;  %7124 = vst.msk [vmem:[#allocation3 + $0x80] sm:$0xff] %vm7107_vm2, %v13048_v59  ;;  %v13050_v63 = vadd.f32 %v16504_v33, %v6975_v17  ;;  %v7232_v57 = vmax.f32 %v7158_v51, %v7195_v43  ;;  %v7272_v32 = vld [vmem:[#allocation3 + $0x74] sm:$0xff] }
 0x65d   : > { %v7414_v49 = vmax.f32 %v7377_v53, 0.0  ;;  %v7415_v8 = vmax.f32 %v7378_v3, 0.0  ;;  %7453 = vst.msk [vmem:[#allocation4 + $0x40] sm:$0xff] %vm7107_vm2, %v7416_v4  ;;  %v7197_v20 = vld [vmem:[#allocation3 + $0x59] sm:$0xff]  ;;  %v7343_v25 = vmax.f32 %v7269_v29, %v7306_v40  ;;  %7127 = vst.msk [vmem:[#allocation3 + $0x98] sm:$0xff] %vm7107_vm2, %v13049_v55  ;;  %v7198_v38 = vld [vmem:[#allocation3 + $0x61] sm:$0xff]  ;;  %v7233_v41 = vmax.f32 %v7159_v44, %v7196_v23 }
 0x65e   : > { %v7309_v48 = vld [vmem:[#allocation3 + $0x75] sm:$0xff]  ;;  %12544 = vmatprep.mubr.msk.bf16.mxu1 %vm7107_vm2, %v7518_v60  ;;  %v7161_v9 = vld [vmem:[#allocation3 + $0x60] sm:$0xff]  ;;  %7125 = vst.msk [vmem:[#allocation3 + $0x88] sm:$0xff] %vm7107_vm2, %v13050_v63  ;;  %v7271_v13 = vld [vmem:[#allocation3 + $0x6c] sm:$0xff]  ;;  %v7234_v50 = vmax.f32 %v7160_v34, %v7197_v20 }
 0x65f   : > { %7451 = vst.msk [vmem:[#allocation4 + $0x30] sm:$0xff] %vm7107_vm2, %v7414_v49  ;;  %7452 = vst.msk [vmem:[#allocation4 + $0x38] sm:$0xff] %vm7107_vm2, %v7415_v8  ;;  %v7346_v61 = vmax.f32 %v7272_v32, %v7309_v48  ;;  %v7270_v39 = vld [vmem:[#allocation3 + $0x64] sm:$0xff]  ;;  %v7380_v54 = vmax.f32 %v7232_v57, %v7343_v25  ;;  %v7235_v1 = vmax.f32 %v7161_v9, %v7198_v38  ;;  %v7308_v6 = vld [vmem:[#allocation3 + $0x6d] sm:$0xff] }
 0x660   : > { %v7307_v56 = vld [vmem:[#allocation3 + $0x65] sm:$0xff]  ;;  %v7345_v10 = vmax.f32 %v7271_v13, %v7308_v6  ;;  %v7493_v46 = vld [vmem:[#allocation4 + $0x10] sm:$0xff]  ;;  %v7494_v11 = vld [vmem:[#allocation4 + $0x18] sm:$0xff]  ;;  %v12518_v42 = vpop.f32.mrb[20].mxu0 }
 0x661   : > { %v7344_v14 = vmax.f32 %v7270_v39, %v7307_v56  ;;  %v7417_v15 = vmax.f32 %v7380_v54, 0.0  ;;  %v7162_v5 = vld [vmem:[#allocation3 + $0x68] sm:$0xff]  ;;  %v7383_v7 = vmax.f32 %v7235_v1, %v7346_v61  ;;  %v7519_v18 = vpack.c.bf16 %v7494_v11, %v7493_v46  ;;  %v6988_v45 = vpop.f32.mrb[21].mxu0  ;;  %v13744_v51 = vld [vmem:[%s17716_s5 + $0x28] sm:$0xff]   ;;  %v7200_v55 = vld [vmem:[#allocation3 + $0x71] sm:$0xff] }
 0x662   : > { %v13051_v28 = vadd.f32 %v12518_v42, %v16504_v33  ;;  %v7199_v52 = vld [vmem:[#allocation3 + $0x69] sm:$0xff]  ;;  %v7382_v37 = vmax.f32 %v7234_v50, %v7345_v10  ;;  %v13052_v43 = vadd.f32 %v16504_v33, %v6988_v45  ;;  %v12519_v53 = vpop.f32.mrb[22].mxu0  ;;  %v7495_v3 = vld [vmem:[#allocation4 + $0x20] sm:$0xff]  ;;  %v7164_v63 = vld [vmem:[#allocation3 + $0x78] sm:$0xff] }
 0x663   : > { %v7381_v47 = vmax.f32 %v7233_v41, %v7344_v14  ;;  %v16561_v59 = vld [vmem:[#allocation4 + $0x28] sm:$0xff]  ;;  %7454 = vst.msk [vmem:[#allocation4 + $0x48] sm:$0xff] %vm7107_vm2, %v7417_v15  ;;  %v7420_v35 = vmax.f32 %v7383_v7, 0.0  ;;  %v7273_v36 = vld [vmem:[#allocation3 + $0x7c] sm:$0xff]  ;;  %12545 = vmatmul.mubr.msk.bf16.vlgmr.msra.gmra.mrb[12].mxu1 %vm7107_vm2, %v7519_v18  ;;  %v13053_v19 = vadd.f32 %v12519_v53, %v16504_v33  ;;  %v6991_v4 = vpop.f32.mrb[23].mxu0  ;;  %v7163_v40 = vld [vmem:[#allocation3 + $0x70] sm:$0xff]  ;;  %v7236_v44 = vmax.f32 %v7162_v5, %v7199_v52 }
 0x664   : > { %7130 = vst.msk [vmem:[#allocation3 + $0xb0] sm:$0xff] %vm7107_vm2, %v13051_v28  ;;  %v7520_v29 = vpack.c.bf16 %v16561_v59, %v7495_v3  ;;  %v7419_v60 = vmax.f32 %v7382_v37, 0.0  ;;  %v7310_v23 = vld [vmem:[#allocation3 + $0x7d] sm:$0xff]  ;;  %12573 = vmatpush3.bf16.msra.mxu1 %v16498_v21  ;;  %7128 = vst.msk [vmem:[#allocation3 + $0xa0] sm:$0xff] %vm7107_vm2, %v13052_v43  ;;  %v13054_v49 = vadd.f32 %v16504_v33, %v6991_v4  ;;  %v16574_v8 = vld [vmem:[%s17716_s5 + $0x30] sm:$0xff]  }
 0x665   : > { %v7418_v17 = vmax.f32 %v7381_v47, 0.0  ;;  %7457 = vst.msk [vmem:[#allocation4 + $0x60] sm:$0xff] %vm7107_vm2, %v7420_v35  ;;  %v7201_v34 = vld [vmem:[#allocation3 + $0x79] sm:$0xff]  ;;  %v7347_v57 = vmax.f32 %v7273_v36, %v7310_v23  ;;  %7131 = vst.msk [vmem:[#allocation3 + $0xb8] sm:$0xff] %vm7107_vm2, %v13053_v19  ;;  %12574 = vmatprep.subr.bf16.mxu1 %v13744_v51  ;;  %v7202_v48 = vld [vmem:[#allocation3 + $0x81] sm:$0xff]  ;;  %v7237_v13 = vmax.f32 %v7163_v40, %v7200_v55 }
 0x666   : > { %v7276_v20 = vld [vmem:[#allocation3 + $0x94] sm:$0xff]  ;;  %12548 = vmatprep.mubr.msk.bf16.mxu1 %vm7107_vm2, %v7520_v29  ;;  %7456 = vst.msk [vmem:[#allocation4 + $0x58] sm:$0xff] %vm7107_vm2, %v7419_v60  ;;  %v7165_v21 = vld [vmem:[#allocation3 + $0x80] sm:$0xff]  ;;  %7129 = vst.msk [vmem:[#allocation3 + $0xa8] sm:$0xff] %vm7107_vm2, %v13054_v49  ;;  %v7238_v56 = vmax.f32 %v7164_v63, %v7201_v34  ;;  %v4137_v60 = vadd.f32 %v16318_v58, %v16504_v33 }
 0x667   : > { %v7313_v25 = vld [vmem:[#allocation3 + $0x95] sm:$0xff]  ;;  %7455 = vst.msk [vmem:[#allocation4 + $0x50] sm:$0xff] %vm7107_vm2, %v7418_v17  ;;  %v7274_v9 = vld [vmem:[#allocation3 + $0x84] sm:$0xff]  ;;  %v7384_v61 = vmax.f32 %v7236_v44, %v7347_v57  ;;  %v7239_v38 = vmax.f32 %v7165_v21, %v7202_v48  ;;  %v7275_v39 = vld [vmem:[#allocation3 + $0x8c] sm:$0xff] }
 0x668   : > { %v7350_v32 = vmax.f32 %v7276_v20, %v7313_v25  ;;  %v7311_v54 = vld [vmem:[#allocation3 + $0x85] sm:$0xff]  ;;  %v7312_v1 = vld [vmem:[#allocation3 + $0x8d] sm:$0xff]  ;;  %v16584_v14 = vld [vmem:[#allocation4 + $0x38] sm:$0xff]  ;;  %v12522_v10 = vpop.f32.mrb[24].mxu0  ;;  %12575 = vmatpush3.bf16.msra.mxu1 %v13744_v51 }
 0x669   : > { %v7348_v6 = vmax.f32 %v7274_v9, %v7311_v54  ;;  %v7349_v41 = vmax.f32 %v7275_v39, %v7312_v1  ;;  %v16582_v50 = vld [vmem:[#allocation4 + $0x30] sm:$0xff]  ;;  %v7421_v46 = vmax.f32 %v7384_v61, 0.0  ;;  %v7166_v11 = vld [vmem:[#allocation3 + $0x88] sm:$0xff]  ;;  %v13055_v7 = vadd.f32 %v12522_v10, %v16504_v33  ;;  %v7004_v18 = vpop.f32.mrb[25].mxu0  ;;  %12576 = vmatprep.subr.bf16.mxu1 %v16574_v8  ;;  %v16596_v37 = vld [vmem:[#allocation4 + $0x40] sm:$0xff] }
 0x66a   : > { %v7203_v42 = vld [vmem:[#allocation3 + $0x89] sm:$0xff]  ;;  %v7387_v15 = vmax.f32 %v7239_v38, %v7350_v32  ;;  %v7521_v5 = vpack.c.bf16 %v16584_v14, %v16582_v50  ;;  %v13056_v51 = vadd.f32 %v16504_v33, %v7004_v18  ;;  %v12523_v47 = vpop.f32.mrb[26].mxu0  ;;  %v16611_v29 = vld [vmem:[%s17716_s5 + $0x40] sm:$0xff]  }
 0x66b   : > { %v16593_v28 = vld [vmem:[%s17716_s5 + $0x38] sm:$0xff]   ;;  %v7385_v45 = vmax.f32 %v7237_v13, %v7348_v6  ;;  %v7386_v52 = vmax.f32 %v7238_v56, %v7349_v41  ;;  %v16598_v43 = vld [vmem:[#allocation4 + $0x48] sm:$0xff]  ;;  %7458 = vst.msk [vmem:[#allocation4 + $0x68] sm:$0xff] %vm7107_vm2, %v7421_v46  ;;  %v7277_v35 = vld [vmem:[#allocation3 + $0x9c] sm:$0xff]  ;;  %v13057_v36 = vadd.f32 %v12523_v47, %v16504_v33  ;;  %v7007_v19 = vpop.f32.mrb[27].mxu0  ;;  %v7240_v25 = vmax.f32 %v7166_v11, %v7203_v42 }
 0x66c   : > { %v16600_v53 = vld [vmem:[#allocation4 + $0x2a] sm:$0xff]  ;;  %v7424_v3 = vmax.f32 %v7387_v15, 0.0  ;;  %12549 = vmatmul.mubr.msk.bf16.gmra.mrb[16].mxu1 %vm7107_vm2, %v7521_v5  ;;  %7134 = vst.msk [vmem:[#allocation3 + $0xd0] sm:$0xff] %vm7107_vm2, %v13055_v7  ;;  %v7522_v4 = vpack.c.bf16 %v16598_v43, %v16596_v37  ;;  %v16613_v55 = vld [vmem:[#allocation4 + $0x32] sm:$0xff]  ;;  %v16615_v17 = vld [vmem:[#allocation4 + $0x42] sm:$0xff]  ;;  %v13058_v44 = vadd.f32 %v16504_v33, %v7007_v19  ;;  %v4135_v56 = vadd.f32 %v16504_v33, %v16320_v0 }
 0x66d   : > { %17871 = vst [vmem:[#allocation25_spill] sm:$0xff] %v16600_v53  ;;  %v7204_v23 = vld [vmem:[#allocation3 + $0x91] sm:$0xff]  ;;  %v7422_v49 = vmax.f32 %v7385_v45, 0.0  ;;  %v7423_v40 = vmax.f32 %v7386_v52, 0.0  ;;  %v7314_v63 = vld [vmem:[#allocation3 + $0x9d] sm:$0xff]  ;;  %7132 = vst.msk [vmem:[#allocation3 + $0xc0] sm:$0xff] %vm7107_vm2, %v13056_v51  ;;  %12577 = vmatpush3.bf16.msra.mxu1 %v16574_v8  ;;  %v4138_v6 = vadd.f32 %v16322_v62, %v16504_v33 }
 0x66e   : > { %v16622_v34 = vld [vmem:[#allocation4 + $0x3a] sm:$0xff]  ;;  %v7167_v57 = vld [vmem:[#allocation3 + $0x90] sm:$0xff]  ;;  %7461 = vst.msk [vmem:[#allocation4 + $0x80] sm:$0xff] %vm7107_vm2, %v7424_v3  ;;  %v7351_v32 = vmax.f32 %v7277_v35, %v7314_v63  ;;  %7135 = vst.msk [vmem:[#allocation3 + $0xd8] sm:$0xff] %vm7107_vm2, %v13057_v36  ;;  %12552 = vmatprep.mubr.msk.bf16.mxu1 %vm7107_vm2, %v7522_v4  ;;  %12578 = vmatprep.subr.bf16.mxu1 %v16593_v28  ;;  %v4136_v4 = vadd.f32 %v16504_v33, %v16324_v2 }
 0x66f   : > { %v7168_v20 = vld [vmem:[#allocation3 + $0x98] sm:$0xff]  ;;  %7459 = vst.msk [vmem:[#allocation4 + $0x70] sm:$0xff] %vm7107_vm2, %v7422_v49  ;;  %7460 = vst.msk [vmem:[#allocation4 + $0x78] sm:$0xff] %vm7107_vm2, %v7423_v40  ;;  %v7169_v9 = vld [vmem:[#allocation3 + $0xa0] sm:$0xff]  ;;  %v7241_v15 = vmax.f32 %v7167_v57, %v7204_v23 }
 0x670   : > { %v7205_v21 = vld [vmem:[#allocation3 + $0x99] sm:$0xff]  ;;  %v7206_v38 = vld [vmem:[#allocation3 + $0xa1] sm:$0xff]  ;;  %7133 = vst.msk [vmem:[#allocation3 + $0xc8] sm:$0xff] %vm7107_vm2, %v13058_v44  ;;  %v7388_v41 = vmax.f32 %v7240_v25, %v7351_v32  ;;  %v7279_v46 = vld [vmem:[#allocation3 + $0xac] sm:$0xff]  ;;  %v12526_v51 = vpop.f32.mrb[28].mxu0 }
 0x671   : > { %v7280_v58 = vld [vmem:[#allocation3 + $0xb4] sm:$0xff]  ;;  %v7278_v39 = vld [vmem:[#allocation3 + $0xa4] sm:$0xff]  ;;  %v7243_v10 = vmax.f32 %v7169_v9, %v7206_v38  ;;  %v7242_v5 = vmax.f32 %v7168_v20, %v7205_v21  ;;  %12579 = vmatpush3.bf16.msra.mxu1 %v16593_v28  ;;  %v13060_v36 = vadd.f32 %v12526_v51, %v4137_v60  ;;  %v7020_v19 = vpop.f32.mrb[29].mxu0 }
 0x672   : > { %v7317_v48 = vld [vmem:[#allocation3 + $0xb5] sm:$0xff]  ;;  %v7315_v11 = vld [vmem:[#allocation3 + $0xa5] sm:$0xff]  ;;  %v7316_v42 = vld [vmem:[#allocation3 + $0xad] sm:$0xff]  ;;  %v7425_v0 = vmax.f32 %v7388_v41, 0.0  ;;  %12608 = vmatprep.subr.bf16.mxu1 %v16611_v29  ;;  %v13062_v40 = vadd.f32 %v7020_v19, %v4135_v56  ;;  %v12527_v63 = vpop.f32.mrb[30].mxu0 }
 0x673   : > { %v7354_v61 = vmax.f32 %v7280_v58, %v7317_v48  ;;  %v7352_v7 = vmax.f32 %v7278_v39, %v7315_v11  ;;  %v7353_v18 = vmax.f32 %v7279_v46, %v7316_v42  ;;  %v16643_v45 = vld [vmem:[#allocation4 + $0x50] sm:$0xff]  ;;  %v16645_v52 = vld [vmem:[#allocation4 + $0x58] sm:$0xff]  ;;  %v7170_v47 = vld [vmem:[#allocation3 + $0xa8] sm:$0xff]  ;;  %7138 = vst.msk [vmem:[#allocation3 + $0xf0] sm:$0xff] %vm7107_vm2, %v13060_v36  ;;  %v13064_v25 = vadd.f32 %v12527_v63, %v4138_v6  ;;  %v7023_v2 = vpop.f32.mrb[31].mxu0 }
 0x674   : > { %v7207_v3 = vld [vmem:[#allocation3 + $0xa9] sm:$0xff]  ;;  %v7523_v35 = vpack.c.bf16 %v16645_v52, %v16643_v45  ;;  %v16653_v44 = vld [vmem:[#allocation4 + $0x60] sm:$0xff]  ;;  %7462 = vst.msk [vmem:[#allocation4 + $0x88] sm:$0xff] %vm7107_vm2, %v7425_v0  ;;  %v16664_v32 = vld [vmem:[#allocation4 + $0x52] sm:$0xff]  ;;  %v13066_v39 = vadd.f32 %v7023_v2, %v4136_v4  ;;  %v4139_v36 = vadd.f32 %v16504_v33, %v16352_v16 }
 0x675   : > { %v7391_v62 = vmax.f32 %v7243_v10, %v7354_v61  ;;  %v7389_v23 = vmax.f32 %v7241_v15, %v7352_v7  ;;  %v7390_v49 = vmax.f32 %v7242_v5, %v7353_v18  ;;  %v16655_v28 = vld [vmem:[#allocation4 + $0x68] sm:$0xff]  ;;  %v7281_v60 = vld [vmem:[#allocation3 + $0xbc] sm:$0xff]  ;;  %v7208_v48 = vld [vmem:[#allocation3 + $0xb1] sm:$0xff]  ;;  %7136 = vst.msk [vmem:[#allocation3 + $0xe0] sm:$0xff] %vm7107_vm2, %v13062_v40  ;;  %v7244_v6 = vmax.f32 %v7170_v47, %v7207_v3 }
 0x676   : > { %v16657_v57 = vld [vmem:[#allocation4 + $0x4a] sm:$0xff]  ;;  %12553 = vmatmul.mubr.msk.bf16.gmra.mrb[20].mxu1 %vm7107_vm2, %v7523_v35  ;;  %v7524_v21 = vpack.c.bf16 %v16655_v28, %v16653_v44  ;;  %v16666_v58 = vld [vmem:[#allocation4 + $0x62] sm:$0xff]  ;;  %v16669_v56 = vld [vmem:[#allocation4 + $0x5a] sm:$0xff]  ;;  %7139 = vst.msk [vmem:[#allocation3 + $0xf8] sm:$0xff] %vm7107_vm2, %v13064_v25  ;;  %v4141_v18 = vadd.f32 %v16350_v22, %v16504_v33  ;;  %v4142_v22 = vadd.f32 %v16354_v27, %v16504_v33 }
 0x677   : > { %v7428_v20 = vmax.f32 %v7391_v62, 0.0  ;;  %v7426_v9 = vmax.f32 %v7389_v23, 0.0  ;;  %v7427_v61 = vmax.f32 %v7390_v49, 0.0  ;;  %v7318_v38 = vld [vmem:[#allocation3 + $0xbd] sm:$0xff]  ;;  %v7171_v41 = vld [vmem:[#allocation3 + $0xb0] sm:$0xff]  ;;  %7137 = vst.msk [vmem:[#allocation3 + $0xe8] sm:$0xff] %vm7107_vm2, %v13066_v39 }
 0x678   : > { %v7172_v10 = vld [vmem:[#allocation3 + $0xb8] sm:$0xff]  ;;  %v7355_v11 = vmax.f32 %v7281_v60, %v7318_v38  ;;  %12556 = vmatprep.mubr.msk.bf16.mxu1 %vm7107_vm2, %v7524_v21  ;;  %v7173_v51 = vld [vmem:[#allocation3 + $0xc0] sm:$0xff]  ;;  %v7283_v23 = vld [vmem:[#allocation3 + $0xcc] sm:$0xff]  ;;  %v7245_v63 = vmax.f32 %v7171_v41, %v7208_v48  ;;  %v4140_v48 = vadd.f32 %v16504_v33, %v16356_v31 }
 0x679   : > { %7465 = vst.msk [vmem:[#allocation4 + $0xa0] sm:$0xff] %vm7107_vm2, %v7428_v20  ;;  %v7209_v46 = vld [vmem:[#allocation3 + $0xb9] sm:$0xff]  ;;  %7463 = vst.msk [vmem:[#allocation4 + $0x90] sm:$0xff] %vm7107_vm2, %v7426_v9  ;;  %v7210_v47 = vld [vmem:[#allocation3 + $0xc1] sm:$0xff]  ;;  %v12530_v9 = vpop.f32.mrb[32].mxu0 }
 0x67a   : > { %v7284_v42 = vld [vmem:[#allocation3 + $0xd4] sm:$0xff]  ;;  %7464 = vst.msk [vmem:[#allocation4 + $0x98] sm:$0xff] %vm7107_vm2, %v7427_v61  ;;  %v7282_v3 = vld [vmem:[#allocation3 + $0xc4] sm:$0xff]  ;;  %v7392_v19 = vmax.f32 %v7244_v6, %v7355_v11  ;;  %v7247_v4 = vmax.f32 %v7173_v51, %v7210_v47  ;;  %v7246_v20 = vmax.f32 %v7172_v10, %v7209_v46  ;;  %v13068_v6 = vadd.f32 %v12530_v9, %v4141_v18  ;;  %v7036_v11 = vpop.f32.mrb[33].mxu0 }
 0x67b   : > { %v7321_v15 = vld [vmem:[#allocation3 + $0xd5] sm:$0xff]  ;;  %v7319_v49 = vld [vmem:[#allocation3 + $0xc5] sm:$0xff]  ;;  %v7320_v40 = vld [vmem:[#allocation3 + $0xcd] sm:$0xff]  ;;  %v13070_v46 = vadd.f32 %v7036_v11, %v4139_v36 }
 0x67c   : > { %v7358_v0 = vmax.f32 %v7284_v42, %v7321_v15  ;;  %v7356_v60 = vmax.f32 %v7282_v3, %v7319_v49  ;;  %v7357_v25 = vmax.f32 %v7283_v23, %v7320_v40  ;;  %v16691_v2 = vld [vmem:[#allocation4 + $0x70] sm:$0xff]  ;;  %v16693_v21 = vld [vmem:[#allocation4 + $0x78] sm:$0xff]  ;;  %v7429_v61 = vmax.f32 %v7392_v19, 0.0  ;;  %v7174_v38 = vld [vmem:[#allocation3 + $0xc8] sm:$0xff]  ;;  %v12531_v42 = vpop.f32.mrb[34].mxu0  ;;  %7142 = vst.msk [vmem:[#allocation3 + $0x110] sm:$0xff] %vm7107_vm2, %v13068_v6 }
 0x67d   : > { %17872 = vst [vmem:[#allocation15_spill] sm:$0xff] %v16693_v21  ;;  %v7211_v16 = vld [vmem:[#allocation3 + $0xc9] sm:$0xff]  ;;  %v7525_v27 = vpack.c.bf16 %v16693_v21, %v16691_v2  ;;  %v16699_v15 = vld [vmem:[#allocation4 + $0x80] sm:$0xff]  ;;  %v13072_v18 = vadd.f32 %v12531_v42, %v4142_v22  ;;  %v7039_v31 = vpop.f32.mrb[35].mxu0  ;;  %v16712_v19 = vld [vmem:[#allocation4 + $0x72] sm:$0xff]  ;;  %v4145_v23 = vadd.f32 %v16364_v24, %v16504_v33 }
 0x67e   : > { %v7395_v39 = vmax.f32 %v7247_v4, %v7358_v0  ;;  %v7393_v41 = vmax.f32 %v7245_v63, %v7356_v60  ;;  %v7394_v10 = vmax.f32 %v7246_v20, %v7357_v25  ;;  %v16701_v51 = vld [vmem:[#allocation4 + $0x88] sm:$0xff]  ;;  %7466 = vst.msk [vmem:[#allocation4 + $0xa8] sm:$0xff] %vm7107_vm2, %v7429_v61  ;;  %v7285_v3 = vld [vmem:[#allocation3 + $0xdc] sm:$0xff]  ;;  %v7212_v49 = vld [vmem:[#allocation3 + $0xd1] sm:$0xff]  ;;  %v13074_v60 = vadd.f32 %v7039_v31, %v4140_v48 }
 0x67f   : > { %17873 = vst [vmem:[#allocation16_spill] sm:$0xff] %v16701_v51  ;;  %v16703_v47 = vld [vmem:[#allocation4 + $0x6a] sm:$0xff]  ;;  %12557 = vmatmul.mubr.msk.bf16.gmra.mrb[24].mxu1 %vm7107_vm2, %v7525_v27  ;;  %v16710_v36 = vpack.c.bf16 %v16701_v51, %v16699_v15  ;;  %v16714_v4 = vld [vmem:[#allocation4 + $0x82] sm:$0xff]  ;;  %7140 = vst.msk [vmem:[#allocation3 + $0x100] sm:$0xff] %vm7107_vm2, %v13070_v46  ;;  %v7248_v61 = vmax.f32 %v7174_v38, %v7211_v16  ;;  %v4143_v38 = vadd.f32 %v16504_v33, %v16366_v26 }
 0x680   : > { %v7432_v0 = vmax.f32 %v7395_v39, 0.0  ;;  %v7430_v40 = vmax.f32 %v7393_v41, 0.0  ;;  %v7431_v63 = vmax.f32 %v7394_v10, 0.0  ;;  %v7322_v20 = vld [vmem:[#allocation3 + $0xdd] sm:$0xff]  ;;  %v7175_v25 = vld [vmem:[#allocation3 + $0xd0] sm:$0xff]  ;;  %7143 = vst.msk [vmem:[#allocation3 + $0x118] sm:$0xff] %vm7107_vm2, %v13072_v18  ;;  %v4144_v26 = vadd.f32 %v16504_v33, %v16370_v30 }
 0x681   : > { %17874 = vst [vmem:[#allocation11_spill] sm:$0xff] %v16710_v36  ;;  %v16719_v22 = vld [vmem:[#allocation4 + $0x7a] sm:$0xff]  ;;  %v7359_v27 = vmax.f32 %v7285_v3, %v7322_v20  ;;  %12560 = vmatprep.mubr.msk.bf16.mxu1 %vm7107_vm2, %v16710_v36  ;;  %v7286_v46 = vld [vmem:[#allocation3 + $0xe4] sm:$0xff]  ;;  %7141 = vst.msk [vmem:[#allocation3 + $0x108] sm:$0xff] %vm7107_vm2, %v13074_v60  ;;  %v4146_v3 = vadd.f32 %v16368_v12, %v16504_v33 }
 0x682   : > { %v7176_v9 = vld [vmem:[#allocation3 + $0xd8] sm:$0xff]  ;;  %7469 = vst.msk [vmem:[#allocation4 + $0xc0] sm:$0xff] %vm7107_vm2, %v7432_v0  ;;  %7467 = vst.msk [vmem:[#allocation4 + $0xb0] sm:$0xff] %vm7107_vm2, %v7430_v40  ;;  %v7177_v16 = vld [vmem:[#allocation3 + $0xe0] sm:$0xff]  ;;  %v12534_v0 = vpop.f32.mrb[36].mxu0 }
 0x683   : > { %v7213_v39 = vld [vmem:[#allocation3 + $0xd9] sm:$0xff]  ;;  %7468 = vst.msk [vmem:[#allocation4 + $0xb8] sm:$0xff] %vm7107_vm2, %v7431_v63  ;;  %v7214_v10 = vld [vmem:[#allocation3 + $0xe1] sm:$0xff]  ;;  %v7396_v18 = vmax.f32 %v7248_v61, %v7359_v27  ;;  %v7287_v40 = vld [vmem:[#allocation3 + $0xec] sm:$0xff]  ;;  %v13076_v33 = vadd.f32 %v12534_v0, %v4145_v23  ;;  %v7052_v61 = vpop.f32.mrb[37].mxu0 }
 0x684   : > { %v7288_v6 = vld [vmem:[#allocation3 + $0xf4] sm:$0xff]  ;;  %v7251_v31 = vmax.f32 %v7177_v16, %v7214_v10  ;;  %v7323_v63 = vld [vmem:[#allocation3 + $0xe5] sm:$0xff] }
 0x685   : > { %v7325_v11 = vld [vmem:[#allocation3 + $0xf5] sm:$0xff]  ;;  %v7324_v20 = vld [vmem:[#allocation3 + $0xed] sm:$0xff]  ;;  %v7360_v60 = vmax.f32 %v7286_v46, %v7323_v63  ;;  %v7433_v13 = vmax.f32 %v7396_v18, 0.0  ;;  %7146 = vst.msk [vmem:[#allocation3 + $0x130] sm:$0xff] %vm7107_vm2, %v13076_v33  ;;  %v16766_v18 = vld [vmem:[#allocation4 + $0xa2] sm:$0xff] }
 0x686   : > { %v7362_v41 = vmax.f32 %v7288_v6, %v7325_v11  ;;  %v7249_v6 = vmax.f32 %v7175_v25, %v7212_v49  ;;  %v7250_v11 = vmax.f32 %v7176_v9, %v7213_v39  ;;  %v7361_v35 = vmax.f32 %v7287_v40, %v7324_v20  ;;  %v16742_v62 = vld [vmem:[#allocation4 + $0x90] sm:$0xff]  ;;  %v16744_v42 = vld [vmem:[#allocation4 + $0x98] sm:$0xff]  ;;  %v7178_v1 = vld [vmem:[#allocation3 + $0xe8] sm:$0xff]  ;;  %v12535_v9 = vpop.f32.mrb[38].mxu0 }
 0x687   : > { %17875 = vst [vmem:[#allocation14_spill] sm:$0xff] %v16742_v62  ;;  %17876 = vst [vmem:[#allocation17_spill] sm:$0xff] %v16744_v42  ;;  %v7215_v12 = vld [vmem:[#allocation3 + $0xe9] sm:$0xff]  ;;  %v16748_v30 = vpack.c.bf16 %v16744_v42, %v16742_v62  ;;  %v13078_v25 = vadd.f32 %v7052_v61, %v4143_v38  ;;  %v16750_v39 = vld [vmem:[#allocation4 + $0xa0] sm:$0xff]  ;;  %v13080_v23 = vadd.f32 %v12535_v9, %v4146_v3 }
 0x688   : > { %v7399_v48 = vmax.f32 %v7251_v31, %v7362_v41  ;;  %v7397_v27 = vmax.f32 %v7249_v6, %v7360_v60  ;;  %v7398_v49 = vmax.f32 %v7250_v11, %v7361_v35  ;;  %17878 = vst [vmem:[#allocation19_spill] sm:$0xff] %v16750_v39  ;;  %v16752_v16 = vld [vmem:[#allocation4 + $0xa8] sm:$0xff]  ;;  %7470 = vst.msk [vmem:[#allocation4 + $0xc8] sm:$0xff] %vm7107_vm2, %v7433_v13  ;;  %v7289_v46 = vld [vmem:[#allocation3 + $0xfc] sm:$0xff]  ;;  %v7055_v35 = vpop.f32.mrb[39].mxu0 }
 0x689   : > { %17877 = vst [vmem:[#allocation18_spill] sm:$0xff] %v16748_v30  ;;  %17879 = vst [vmem:[#allocation22_spill] sm:$0xff] %v16752_v16  ;;  %v16754_v10 = vld [vmem:[#allocation4 + $0x8a] sm:$0xff]  ;;  %12561 = vmatmul.mubr.msk.bf16.gmra.mrb[28].mxu1 %vm7107_vm2, %v16748_v30  ;;  %v16762_v38 = vpack.c.bf16 %v16752_v16, %v16750_v39  ;;  %v16764_v0 = vld [vmem:[#allocation4 + $0x92] sm:$0xff]  ;;  %v13082_v63 = vadd.f32 %v7055_v35, %v4144_v26  ;;  %v7252_v11 = vmax.f32 %v7178_v1, %v7215_v12 }
 0x68a   : > { %v7436_v41 = vmax.f32 %v7399_v48, 0.0  ;;  %v7216_v31 = vld [vmem:[#allocation3 + $0xf1] sm:$0xff]  ;;  %v7434_v40 = vmax.f32 %v7397_v27, 0.0  ;;  %v7435_v13 = vmax.f32 %v7398_v49, 0.0  ;;  %v7326_v48 = vld [vmem:[#allocation3 + $0xfd] sm:$0xff]  ;;  %7144 = vst.msk [vmem:[#allocation3 + $0x120] sm:$0xff] %vm7107_vm2, %v13078_v25 }
 0x68b   : > { %17880 = vst [vmem:[#allocation21_spill] sm:$0xff] %v16762_v38  ;;  %v16769_v20 = vld [vmem:[#allocation4 + $0x9a] sm:$0xff]  ;;  %v7179_v6 = vld [vmem:[#allocation3 + $0xf0] sm:$0xff]  ;;  %v7363_v33 = vmax.f32 %v7289_v46, %v7326_v48  ;;  %7148 = vst.msk [vmem:[#allocation3 + $0x138] sm:$0xf] %vm7147_vm3, %v13080_v23  ;;  %12564 = vmatprep.mubr.msk.bf16.mxu1 %vm7107_vm2, %v16762_v38 }
 0x68c   : > { %v7180_v3 = vld [vmem:[#allocation3 + $0xf8] sm:$0xff]  ;;  %7473 = vst.msk [vmem:[#allocation4 + $0xe0] sm:$0xff] %vm7107_vm2, %v7436_v41  ;;  %7472 = vst.msk [vmem:[#allocation4 + $0xd8] sm:$0xff] %vm7107_vm2, %v7435_v13  ;;  %v7181_v1 = vld [vmem:[#allocation3 + $0x100] sm:$0xff]  ;;  %v7253_v13 = vmax.f32 %v7179_v6, %v7216_v31 }
 0x68d   : > { %v7217_v60 = vld [vmem:[#allocation3 + $0xf9] sm:$0xff]  ;;  %7471 = vst.msk [vmem:[#allocation4 + $0xd0] sm:$0xff] %vm7107_vm2, %v7434_v40  ;;  %v7218_v49 = vld [vmem:[#allocation3 + $0x101] sm:$0xff]  ;;  %7145 = vst.msk [vmem:[#allocation3 + $0x128] sm:$0xff] %vm7107_vm2, %v13082_v63  ;;  %v7400_v23 = vmax.f32 %v7252_v11, %v7363_v33 }
 0x68e   : > { %v7292_v61 = vld [vmem:[#allocation3 + $0x114] sm:$0xff]  ;;  %v7290_v25 = vld [vmem:[#allocation3 + $0x104] sm:$0xff]  ;;  %v7255_v35 = vmax.f32 %v7181_v1, %v7218_v49  ;;  %v7291_v48 = vld [vmem:[#allocation3 + $0x10c] sm:$0xff]  ;;  %v7254_v24 = vmax.f32 %v7180_v3, %v7217_v60 }
 0x68f   : > { %v7329_v9 = vld [vmem:[#allocation3 + $0x115] sm:$0xff]  ;;  %v7327_v26 = vld [vmem:[#allocation3 + $0x105] sm:$0xff]  ;;  %v7328_v27 = vld [vmem:[#allocation3 + $0x10d] sm:$0xff]  ;;  %v7437_v41 = vmax.f32 %v7400_v23, 0.0 }
 0x690   : > { %v7366_v12 = vmax.f32 %v7292_v61, %v7329_v9  ;;  %v7182_v40 = vld [vmem:[#allocation3 + $0x108] sm:$0xff]  ;;  %v7364_v7 = vmax.f32 %v7290_v25, %v7327_v26  ;;  %v7365_v61 = vmax.f32 %v7291_v48, %v7328_v27  ;;  %v16786_v9 = vld [vmem:[#allocation4 + $0xb0] sm:$0xff]  ;;  %v16788_v5 = vld [vmem:[#allocation4 + $0xb8] sm:$0xff] }
 0x691   : > { %17881 = vst [vmem:[#allocation23_spill] sm:$0xff] %v16786_v9  ;;  %17882 = vst [vmem:[#allocation20_spill] sm:$0xff] %v16788_v5  ;;  %v16790_v63 = vld [vmem:[#allocation4 + $0xc0] sm:$0xff]  ;;  %v7220_v54 = vld [vmem:[#allocation3 + $0x111] sm:$0xff]  ;;  %v16794_v11 = vpack.c.bf16 %v16788_v5, %v16786_v9 }
 0x692   : > { %17883 = vst [vmem:[#allocation13_spill] sm:$0xff] %v16790_v63  ;;  %v7219_v8 = vld [vmem:[#allocation3 + $0x109] sm:$0xff]  ;;  %v7403_v46 = vmax.f32 %v7255_v35, %v7366_v12  ;;  %v16798_v31 = vld [vmem:[#allocation4 + $0xb2] sm:$0xff]  ;;  %v7401_v3 = vmax.f32 %v7253_v13, %v7364_v7  ;;  %v7402_v60 = vmax.f32 %v7254_v24, %v7365_v61  ;;  %v16804_v26 = vld [vmem:[#allocation4 + $0xba] sm:$0xff] }
 0x693   : > { %17884 = vst [vmem:[#allocation10_spill] sm:$0xff] %v16794_v11  ;;  %v16796_v33 = vld [vmem:[#allocation4 + $0xaa] sm:$0xff]  ;;  %17886 = vst [vmem:[#allocation24_spill] sm:$0xff] %v16804_v26  ;;  %v16806_v1 = vld [vmem:[#allocation4 + $0xc2] sm:$0xff]  ;;  %12565 = vmatmul.mubr.msk.bf16.gmra.mrb[32].mxu1 %vm7107_vm2, %v16794_v11  ;;  %v7256_v36 = vmax.f32 %v7182_v40, %v7219_v8 }
 0x694   : > { %v16802_v27 = vld [vmem:[#allocation4 + $0xc8] sm:$0xff]  ;;  %v7183_v12 = vld [vmem:[#allocation3 + $0x110] sm:$0xff]  ;;  %7474 = vst.msk [vmem:[#allocation4 + $0xe8] sm:$0xff] %vm7107_vm2, %v7437_v41  ;;  %v7184_v49 = vld [vmem:[#allocation3 + $0x118] sm:$0xff]  ;;  %v7440_v25 = vmax.f32 %v7403_v46, 0.0  ;;  %v7438_v61 = vmax.f32 %v7401_v3, 0.0 }
 0x695   : > { %17885 = vst [vmem:[#allocation12_spill] sm:$0xff] %v16802_v27  ;;  %v7185_v23 = vld [vmem:[#allocation3 + $0x120] sm:$0x7f]  ;;  %v16813_v7 = vpack.c.bf16 %v16802_v27, %v16790_v63  ;;  %v7439_v41 = vmax.f32 %v7402_v60, 0.0  ;;  %v7296_v30 = vld [vmem:[#allocation3 + $0x134] sm:$0x7f]  ;;  %v7257_v13 = vmax.f32 %v7183_v12, %v7220_v54 }
 0x696   : > { %v7221_v35 = vld [vmem:[#allocation3 + $0x119] sm:$0xff]  ;;  %v7222_v48 = vld [vmem:[#allocation3 + $0x121] sm:$0x7f]  ;;  %7477 = vst.msk [vmem:[#allocation4 + $0x100] sm:$0xff] %vm7107_vm2, %v7440_v25  ;;  %v7295_v27 = vld [vmem:[#allocation3 + $0x12c] sm:$0xff] }
 0x697   : > { %17887 = vst [vmem:[#allocation26_spill] sm:$0xff] %v16813_v7  ;;  %v7259_v6 = vmax.f32 %v7185_v23, %v7222_v48  ;;  %v7293_v46 = vld [vmem:[#allocation3 + $0x11c] sm:$0xff]  ;;  %v7333_v16 = vld [vmem:[#allocation3 + $0x135] sm:$0x7f]  ;;  %v7294_v9 = vld [vmem:[#allocation3 + $0x124] sm:$0xff]  ;;  %12568 = vmatprep.mubr.msk.bf16.mxu1 %vm7107_vm2, %v16813_v7  ;;  %v7258_v3 = vmax.f32 %v7184_v49, %v7221_v35 }
 0x698   : > { %v7330_v38 = vld [vmem:[#allocation3 + $0x11d] sm:$0xff]  ;;  %7475 = vst.msk [vmem:[#allocation4 + $0xf0] sm:$0xff] %vm7107_vm2, %v7438_v61  ;;  %7476 = vst.msk [vmem:[#allocation4 + $0xf8] sm:$0xff] %vm7107_vm2, %v7439_v41  ;;  %v7370_v60 = vmax.f32 %v7296_v30, %v7333_v16  ;;  %v7331_v8 = vld [vmem:[#allocation3 + $0x125] sm:$0xff] }
 0x699   : > { %v7367_v11 = vmax.f32 %v7293_v46, %v7330_v38  ;;  %v7332_v40 = vld [vmem:[#allocation3 + $0x12d] sm:$0xff]  ;;  %v7368_v23 = vmax.f32 %v7294_v9, %v7331_v8  ;;  %v7777_v24 = vld [vmem:[#allocation4 + $0x2] sm:$0xff]  ;;  %v7780_v61 = vld [vmem:[#allocation4 + $0x1a] sm:$0xff] }
 0x69a   : > { %v7517_v25 = vld [vmem:[#allocation4 + $0xd0] sm:$0x7]  ;;  %v7369_v48 = vmax.f32 %v7295_v27, %v7332_v40  ;;  %v7407_v63 = vmax.f32 %v7259_v6, %v7370_v60  ;;  %v16828_v12 = vld [vmem:[#allocation4 + $0x34] sm:$0xff]  ;;  %v16830_v16 = vld [vmem:[#allocation4 + $0x3c] sm:$0xff] }
 0x69b   : > { %v7404_v38 = vmax.f32 %v7256_v36, %v7367_v11  ;;  %v7531_v46 = vpack.c.bf16 %v7517_v25, %v7517_v25  ;;  %v7778_v5 = vld [vmem:[#allocation4 + $0xa] sm:$0xff]  ;;  %v7405_v42 = vmax.f32 %v7257_v13, %v7368_v23  ;;  %v16840_v27 = vld [vmem:[#allocation4 + $0x54] sm:$0xff]  ;;  %v16842_v13 = vld [vmem:[#allocation4 + $0x5c] sm:$0xff] }
 0x69c   : > { %v7406_v39 = vmax.f32 %v7258_v3, %v7369_v48  ;;  %v16826_v54 = vld [vmem:[#allocation4 + $0x2c] sm:$0xff]  ;;  %v7444_v49 = vmax.f32 %v7407_v63, 0.0  ;;  %v7804_v30 = vpack.c.bf16 %v7778_v5, %v7777_v24  ;;  %v16832_v35 = vld [vmem:[#allocation4 + $0x44] sm:$0xff]  ;;  %v16860_v3 = vld [vmem:[#allocation4 + $0x7c] sm:$0xff] }
 0x69d   : > { %v7441_v7 = vmax.f32 %v7404_v38, 0.0  ;;  %v16834_v36 = vld [vmem:[#allocation4 + $0x4c] sm:$0xff]  ;;  %v7442_v11 = vmax.f32 %v7405_v42, 0.0  ;;  %12569 = vmatmul.mubr.msk.bf16.gmra.mrb[36].mxu1 %vm7107_vm2, %v7531_v46  ;;  %v16844_v5 = vld [vmem:[#allocation4 + $0x64] sm:$0xff]  ;;  %v16868_v25 = vld [vmem:[#allocation4 + $0x94] sm:$0xff] }
 0x69e   : > { %v7443_v6 = vmax.f32 %v7406_v39, 0.0  ;;  %12580 = vmatprep.mubr.msk.bf16.mxu1 %vm7107_vm2, %v7804_v30  ;;  %v7779_v24 = vld [vmem:[#allocation4 + $0x12] sm:$0xff]  ;;  %7482 = vst.msk [vmem:[#allocation4 + $0x120] sm:$0x7f] %vm7481_vm4, %v7444_v49  ;;  %v16862_v60 = vld [vmem:[#allocation4 + $0x84] sm:$0xff]  ;;  %v16870_v38 = vld [vmem:[#allocation4 + $0x9c] sm:$0xff] }
 0x69f   : > { %7478 = vst.msk [vmem:[#allocation4 + $0x108] sm:$0xff] %vm7107_vm2, %v7441_v7  ;;  %v16849_v41 = vld [vmem:[#allocation4 + $0x6c] sm:$0xff]  ;;  %v16851_v7 = vld [vmem:[#allocation4 + $0x74] sm:$0xff]  ;;  %7479 = vst.msk [vmem:[#allocation4 + $0x110] sm:$0xff] %vm7107_vm2, %v7442_v11  ;;  %v7805_v42 = vpack.c.bf16 %v7780_v61, %v7779_v24 }
 0x6a0   : > { %7480 = vst.msk [vmem:[#allocation4 + $0x118] sm:$0xff] %vm7107_vm2, %v7443_v6  ;;  %v16864_v8 = vld [vmem:[#allocation4 + $0x8c] sm:$0xff]  ;;  %v16872_v23 = vld [vmem:[#allocation4 + $0xa4] sm:$0xff]  ;;  %v16878_v49 = vld [vmem:[#allocation4 + $0xb4] sm:$0xff] }
 0x6a1   : > { %v16876_v46 = vld [vmem:[#allocation4 + $0xac] sm:$0xff]  ;;  %v16884_v6 = vld [vmem:[#allocation4 + $0xbc] sm:$0xff]  ;;  %v16886_v40 = vld [vmem:[#allocation4 + $0xc4] sm:$0xff] }
 0x6a2   : > { %v7781_v63 = vld [vmem:[#allocation4 + $0x22] sm:$0xff]  ;;  %v16896_v51 = vld [vmem:[#allocation4 + $0xd0] sm:$0xff]  ;;  %v16898_v11 = vld [vmem:[#allocation4 + $0xd8] sm:$0xff] }
 0x6a3   : > { %v13748_v48 = vld [vmem:[%s17716_s5 + $0x48] sm:$0xff]   ;;  %v7806_v30 = vpack.c.bf16 %v16600_v53, %v7781_v63  ;;  %17888 = vst [vmem:[#allocation27_spill] sm:$0xff] %v16896_v51  ;;  %17889 = vst [vmem:[#allocation28_spill] sm:$0xff] %v16898_v11  ;;  %v16903_v39 = vld [vmem:[#allocation4 + $0xe8] sm:$0xff]  ;;  %v7808_v11 = vpack.c.bf16 %v16657_v57, %v16615_v17  ;;  %v16952_v51 = vpack.c.bf16 %v16669_v56, %v16664_v32 }
 0x6a4   : > { %v16901_v62 = vld [vmem:[#allocation4 + $0xe0] sm:$0xff]  ;;  %17891 = vst [vmem:[#allocation30_spill] sm:$0xff] %v16903_v39  ;;  %v16909_v61 = vld [vmem:[#allocation4 + $0xd2] sm:$0xff]  ;;  %v16920_v21 = vld [vmem:[#allocation4 + $0xea] sm:$0xff] }
 0x6a5   : > { %12581 = vmatmul.mubr.msk.bf16.vlgmr.msra.gmra.mrb[12].mxu1 %vm7107_vm2, %v7805_v42  ;;  %17890 = vst [vmem:[#allocation29_spill] sm:$0xff] %v16901_v62  ;;  %v16911_v63 = vld [vmem:[#allocation4 + $0xda] sm:$0xff]  ;;  %v13749_v42 = vld [vmem:[%s17716_s5 + $0x50] sm:$0xff]   ;;  %17894 = vst [vmem:[#allocation33_spill] sm:$0xff] %v16920_v21  ;;  %v16956_v62 = vpack.c.bf16 %v16703_v47, %v16666_v58 }
 0x6a6   : > { %12609 = vmatpush3.bf16.msra.mxu1 %v16611_v29  ;;  %12584 = vmatprep.mubr.msk.bf16.mxu1 %vm7107_vm2, %v7806_v30  ;;  %17892 = vst [vmem:[#allocation31_spill] sm:$0xff] %v16911_v63  ;;  %v16918_v53 = vld [vmem:[#allocation4 + $0xe2] sm:$0xff]  ;;  %v16924_v30 = vld [vmem:[#allocation4 + $0xd4] sm:$0xff]  ;;  %v16932_v39 = vld [vmem:[#allocation4 + $0xec] sm:$0xff]  ;;  %v7807_v29 = vpack.c.bf16 %v16622_v34, %v16613_v55 }
 0x6a7   : > { %12610 = vmatprep.subr.bf16.mxu1 %v13748_v48  ;;  %17893 = vst [vmem:[#allocation32_spill] sm:$0xff] %v16918_v53  ;;  %17895 = vst [vmem:[#allocation34_spill] sm:$0xff] %v16924_v30  ;;  %v16926_v24 = vld [vmem:[#allocation4 + $0xdc] sm:$0xff]  ;;  %v16930_v9 = vld [vmem:[#allocation4 + $0xe4] sm:$0xff] }
 0x6a8   : > { %17896 = vst [vmem:[#allocation35_spill] sm:$0xff] %v16926_v24  ;;  %17897 = vst [vmem:[#allocation36_spill] sm:$0xff] %v16930_v9  ;;  %v13750_v63 = vld [vmem:[%s17716_s5 + $0x58] sm:$0xff]   ;;  %v8067_v30 = vld [vmem:[#allocation4 + $0x1c] sm:$0xff] }
 0x6a9   : > { %17898 = vst [vmem:[#allocation37_spill] sm:$0xff] %v16932_v39  ;;  %17899 = vst [vmem:[#allocation38_spill] sm:$0xff] %v16952_v51  ;;  %v8066_v24 = vld [vmem:[#allocation4 + $0x14] sm:$0xff]  ;;  %v8068_v53 = vld [vmem:[#allocation4 + $0x24] sm:$0xff] }
 0x6aa   : > { %12611 = vmatpush3.bf16.msra.mxu1 %v13748_v48  ;;  %v13751_v48 = vld [vmem:[%s17716_s5 + $0x60] sm:$0xff]   ;;  %17900 = vst [vmem:[#allocation39_spill] sm:$0xff] %v16956_v62  ;;  %v8092_v21 = vpack.c.bf16 %v8067_v30, %v8066_v24  ;;  %v17029_v24 = vpack.c.bf16 %v16849_v41, %v16844_v5  ;;  %v17037_v30 = vpack.c.bf16 %v16860_v3, %v16851_v7 }
 0x6ab   : > { %12612 = vmatprep.subr.bf16.mxu1 %v13749_v42 }
 0x6ad   : > { %12585 = vmatmul.mubr.msk.bf16.gmra.mrb[16].mxu1 %vm7107_vm2, %v7807_v29  ;;  %v16980_v29 = vpack.c.bf16 %v16796_v33, %v16766_v18 }
 0x6ae   : > { %12588 = vmatprep.mubr.msk.bf16.mxu1 %vm7107_vm2, %v7808_v11  ;;  %12613 = vmatpush3.bf16.msra.mxu1 %v13749_v42  ;;  %v16964_v11 = vpack.c.bf16 %v16719_v22, %v16712_v19  ;;  %v16976_v42 = vpack.c.bf16 %v16769_v20, %v16764_v0 }
 0x6af   : > { %12614 = vmatprep.subr.bf16.mxu1 %v13750_v63  ;;  %17904 = vst [vmem:[#allocation43_spill] sm:$0xff] %v16980_v29 }
 0x6b0   : > { %17901 = vst [vmem:[#allocation40_spill] sm:$0xff] %v16964_v11  ;;  %17903 = vst [vmem:[#allocation42_spill] sm:$0xff] %v16976_v42 }
 0x6b2   : > { %12615 = vmatpush3.bf16.msra.mxu1 %v13750_v63  ;;  %v16968_v63 = vpack.c.bf16 %v16754_v10, %v16714_v4 }
 0x6b3   : > { %12644 = vmatprep.subr.bf16.mxu1 %v13751_v48 }
 0x6b4   : > { %17902 = vst [vmem:[#allocation41_spill] sm:$0xff] %v16968_v63 }
 0x6b5   : > { %12589 = vmatmul.mubr.msk.bf16.gmra.mrb[20].mxu1 %vm7107_vm2, %v16952_v51  ;;  %v8065_v51 = vld [vmem:[#allocation4 + $0xc] sm:$0xff] }
 0x6b6   : > { %12592 = vmatprep.mubr.msk.bf16.mxu1 %vm7107_vm2, %v16956_v62  ;;  %v16986_v62 = vld [vmem:[#allocation4 + $0xca] sm:$0xff] }
 0x6bd   : > { %12593 = vmatmul.mubr.msk.bf16.gmra.mrb[24].mxu1 %vm7107_vm2, %v16964_v11  ;;  %v16990_v11 = vpack.c.bf16 %v16804_v26, %v16798_v31  ;;  %v8093_v26 = vpack.c.bf16 %v16826_v54, %v8068_v53  ;;  %v8095_v53 = vpack.c.bf16 %v16834_v36, %v16832_v35 }
 0x6be   : > { %12596 = vmatprep.mubr.msk.bf16.mxu1 %vm7107_vm2, %v16968_v63  ;;  %v16994_v63 = vpack.c.bf16 %v16986_v62, %v16806_v1 }
 0x6bf   : > { %17905 = vst [vmem:[#allocation44_spill] sm:$0xff] %v16990_v11 }
 0x6c5   : > { %12597 = vmatmul.mubr.msk.bf16.gmra.mrb[28].mxu1 %vm7107_vm2, %v16976_v42  ;;  %v7803_v42 = vld [vmem:[#allocation4 + $0xd2] sm:$0x7] }
 0x6c6   : > { %12600 = vmatprep.mubr.msk.bf16.mxu1 %vm7107_vm2, %v16980_v29  ;;  %v7817_v39 = vpack.c.bf16 %v7803_v42, %v7803_v42  ;;  %v8064_v29 = vld [vmem:[#allocation4 + $0x4] sm:$0xff]  ;;  %v17053_v42 = vpack.c.bf16 %v16876_v46, %v16872_v23 }
 0x6c7   : > { %v8091_v9 = vpack.c.bf16 %v8065_v51, %v8064_v29  ;;  %v13753_v51 = vld [vmem:[%s17716_s5 + $0x70] sm:$0xff]  }
 0x6c8   : > { %17908 = vst [vmem:[#allocation47_spill] sm:$0xff] %v17053_v42  ;;  %v17059_v29 = vld [vmem:[#allocation4 + $0xcc] sm:$0xff] }
 0x6cd   : > { %12601 = vmatmul.mubr.msk.bf16.gmra.mrb[32].mxu1 %vm7107_vm2, %v16990_v11  ;;  %v13752_v11 = vld [vmem:[%s17716_s5 + $0x68] sm:$0xff]  }
 0x6ce   : > { %12604 = vmatprep.mubr.msk.bf16.mxu1 %vm7107_vm2, %v16994_v63 }
 0x6d5   : > { %12605 = vmatmul.mubr.msk.bf16.gmra.mrb[36].mxu1 %vm7107_vm2, %v7817_v39  ;;  %v13754_v39 = vld [vmem:[%s17716_s5 + $0x78] sm:$0xff]  }
 0x6d6   : > { %12616 = vmatprep.mubr.msk.bf16.mxu1 %vm7107_vm2, %v8091_v9  ;;  %v8094_v9 = vpack.c.bf16 %v16830_v16, %v16828_v12 }
 0x6dd   : > { %12617 = vmatmul.mubr.msk.bf16.vlgmr.msra.gmra.mrb[12].mxu1 %vm7107_vm2, %v8092_v21  ;;  %v13755_v21 = vld [vmem:[%s17716_s5 + $0x80] sm:$0xff]  }
 0x6de   : > { %12645 = vmatpush3.bf16.msra.mxu1 %v13751_v48  ;;  %12620 = vmatprep.mubr.msk.bf16.mxu1 %vm7107_vm2, %v8093_v26  ;;  %v17025_v26 = vpack.c.bf16 %v16842_v13, %v16840_v27  ;;  %v17041_v48 = vpack.c.bf16 %v16864_v8, %v16862_v60 }
 0x6df   : > { %12646 = vmatprep.subr.bf16.mxu1 %v13752_v11 }
 0x6e0   : > { %17906 = vst [vmem:[#allocation45_spill] sm:$0xff] %v17041_v48 }
 0x6e2   : > { %12647 = vmatpush3.bf16.msra.mxu1 %v13752_v11  ;;  %v17049_v11 = vpack.c.bf16 %v16870_v38, %v16868_v25 }
 0x6e3   : > { %12648 = vmatprep.subr.bf16.mxu1 %v13753_v51 }
 0x6e4   : > { %17907 = vst [vmem:[#allocation46_spill] sm:$0xff] %v17049_v11 }
 0x6e5   : > { %12621 = vmatmul.mubr.msk.bf16.gmra.mrb[16].mxu1 %vm7107_vm2, %v8094_v9  ;;  %v17067_v9 = vpack.c.bf16 %v17059_v29, %v16886_v40 }
 0x6e6   : > { %12624 = vmatprep.mubr.msk.bf16.mxu1 %vm7107_vm2, %v8095_v53  ;;  %12649 = vmatpush3.bf16.msra.mxu1 %v13753_v51  ;;  %v17063_v51 = vpack.c.bf16 %v16884_v6, %v16878_v49 }
 0x6e7   : > { %12650 = vmatprep.subr.bf16.mxu1 %v13754_v39 }
 0x6ea   : > { %12651 = vmatpush3.bf16.msra.mxu1 %v13754_v39  ;;  %v8090_v39 = vld [vmem:[#allocation4 + $0xd4] sm:$0x7] }
 0x6eb   : > { %12680 = vmatprep.subr.bf16.mxu1 %v13755_v21  ;;  %v8104_v53 = vpack.c.bf16 %v8090_v39, %v8090_v39  ;;  %v17911_v39 = vpack.c.bf16 %v16643_v45, %v16598_v43  ;;  %v13759_v43 = vld [vmem:[%s17716_s5 + $0xa0] sm:$0xff]  }
 0x6ec   : > { %v17914_v45 = vld [vmem:[#allocation15_spill] sm:$0xff] }
 0x6ed   : > { %12625 = vmatmul.mubr.msk.bf16.gmra.mrb[20].mxu1 %vm7107_vm2, %v17025_v26 }
 0x6ee   : > { %12628 = vmatprep.mubr.msk.bf16.mxu1 %vm7107_vm2, %v17029_v24 }
 0x6f5   : > { %12629 = vmatmul.mubr.msk.bf16.gmra.mrb[24].mxu1 %vm7107_vm2, %v17037_v30 }
 0x6f6   : > { %12632 = vmatprep.mubr.msk.bf16.mxu1 %vm7107_vm2, %v17041_v48  ;;  %v17910_v48 = vpack.c.bf16 %v16596_v37, %v16584_v14  ;;  %v17912_v14 = vpack.c.bf16 %v16653_v44, %v16645_v52  ;;  %v17913_v37 = vpack.c.bf16 %v16691_v2, %v16655_v28  ;;  %v17916_v52 = vld [vmem:[#allocation14_spill] sm:$0xff]  ;;  %v17917_v44 = vld [vmem:[#allocation16_spill] sm:$0xff]  ;;  %v17919_v28 = vld [vmem:[#allocation19_spill] sm:$0xff] }
 0x6f7   : > { %v17920_v2 = vld [vmem:[#allocation17_spill] sm:$0xff] }
 0x6fd   : > { %12633 = vmatmul.mubr.msk.bf16.gmra.mrb[28].mxu1 %vm7107_vm2, %v17049_v11  ;;  %v13756_v11 = vld [vmem:[%s17716_s5 + $0x88] sm:$0xff]  }
 0x6fe   : > { %12636 = vmatprep.mubr.msk.bf16.mxu1 %vm7107_vm2, %v17053_v42  ;;  %v17909_v42 = vpack.c.bf16 %v16582_v50, %v16561_v59  ;;  %v13757_v59 = vld [vmem:[%s17716_s5 + $0x90] sm:$0xff]   ;;  %v13758_v50 = vld [vmem:[%s17716_s5 + $0x98] sm:$0xff]  }
 0x705   : > { %12637 = vmatmul.mubr.msk.bf16.gmra.mrb[32].mxu1 %vm7107_vm2, %v17063_v51 }
 0x706   : > { %12640 = vmatprep.mubr.msk.bf16.mxu1 %vm7107_vm2, %v17067_v9 }
 0x70d   : > { %12641 = vmatmul.mubr.msk.bf16.gmra.mrb[36].mxu1 %vm7107_vm2, %v8104_v53  ;;  %v17923_v53 = vld [vmem:[#allocation22_spill] sm:$0xff] }
 0x70e   : > { %12652 = vmatprep.mubr.msk.bf16.mxu1 %vm7107_vm2, %v17909_v42  ;;  %v17922_v42 = vld [vmem:[#allocation23_spill] sm:$0xff] }
 0x715   : > { %12653 = vmatmul.mubr.msk.bf16.vlgmr.msra.gmra.mrb[12].mxu1 %vm7107_vm2, %v17910_v48  ;;  %v17918_v48 = vpack.c.bf16 %v17916_v52, %v17917_v44  ;;  %v17930_v52 = vld [vmem:[#allocation28_spill] sm:$0xff]  ;;  %v17931_v44 = vld [vmem:[#allocation29_spill] sm:$0xff] }
 0x716   : > { %12681 = vmatpush3.bf16.msra.mxu1 %v13755_v21  ;;  %12656 = vmatprep.mubr.msk.bf16.mxu1 %vm7107_vm2, %v17911_v39  ;;  %v17915_v21 = vpack.c.bf16 %v16699_v15, %v17914_v45  ;;  %v17924_v39 = vpack.c.bf16 %v17922_v42, %v17923_v53  ;;  %v17933_v53 = vld [vmem:[#allocation25_spill] sm:$0xff] }
 0x717   : > { %12682 = vmatprep.subr.bf16.mxu1 %v13756_v11 }
 0x71a   : > { %12683 = vmatpush3.bf16.msra.mxu1 %v13756_v11  ;;  %v17921_v11 = vpack.c.bf16 %v17919_v28, %v17920_v2  ;;  %v17932_v28 = vld [vmem:[#allocation30_spill] sm:$0xff] }
 0x71b   : > { %12684 = vmatprep.subr.bf16.mxu1 %v13757_v59 }
 0x71d   : > { %12657 = vmatmul.mubr.msk.bf16.gmra.mrb[16].mxu1 %vm7107_vm2, %v17912_v14  ;;  %v17927_v14 = vld [vmem:[#allocation13_spill] sm:$0xff] }
 0x71e   : > { %12660 = vmatprep.mubr.msk.bf16.mxu1 %vm7107_vm2, %v17913_v37  ;;  %12685 = vmatpush3.bf16.msra.mxu1 %v13757_v59  ;;  %v17925_v59 = vld [vmem:[#allocation12_spill] sm:$0xff] }
 0x71f   : > { %12686 = vmatprep.subr.bf16.mxu1 %v13758_v50  ;;  %v17928_v37 = vld [vmem:[#allocation20_spill] sm:$0xff] }
 0x720   : > { %v17929_v45 = vpack.c.bf16 %v17927_v14, %v17928_v37  ;;  %v17936_v14 = vpack.c.bf16 %v16664_v32, %v16657_v57  ;;  %v13762_v37 = vld [vmem:[%s17716_s5 + $0xb8] sm:$0xff]   ;;  %v13763_v57 = vld [vmem:[%s17716_s5 + $0xc0] sm:$0xff]   ;;  %v17939_v32 = vpack.c.bf16 %v16714_v4, %v16719_v22  ;;  %v17943_v4 = vld [vmem:[#allocation24_spill] sm:$0xff] }
 0x721   : > { %v17944_v22 = vpack.c.bf16 %v16806_v1, %v17943_v4  ;;  %v17948_v1 = vpack.c.bf16 %v16828_v12, %v16826_v54  ;;  %v13765_v54 = vld [vmem:[%s17716_s5 + $0xd0] sm:$0xff]   ;;  %v13766_v12 = vld [vmem:[%s17716_s5 + $0xd8] sm:$0xff]  }
 0x722   : > { %12687 = vmatpush3.bf16.msra.mxu1 %v13758_v50  ;;  %v17926_v50 = vld [vmem:[#allocation27_spill] sm:$0xff] }
 0x723   : > { %12716 = vmatprep.subr.bf16.mxu1 %v13759_v43  ;;  %v8388_v15 = vpack.c.bf16 %v17926_v50, %v17925_v59  ;;  %v13760_v59 = vld [vmem:[%s17716_s5 + $0xa8] sm:$0xff]   ;;  %v17967_v4 = vpack.c.bf16 %v17930_v52, %v17926_v50 }
 0x724   : > { %v9238_v50 = vld [vmem:[#allocation4 + $0x120] sm:$0x7] }
 0x725   : > { %12661 = vmatmul.mubr.msk.bf16.gmra.mrb[20].mxu1 %vm7107_vm2, %v17915_v21  ;;  %v17129_v21 = vld [vmem:[#allocation4 + $0xf0] sm:$0xff] }
 0x726   : > { %12664 = vmatprep.mubr.msk.bf16.mxu1 %vm7107_vm2, %v17918_v48  ;;  %v8389_v48 = vpack.c.bf16 %v17931_v44, %v17930_v52  ;;  %v8390_v2 = vpack.c.bf16 %v17129_v21, %v17932_v28  ;;  %v9252_v52 = vpack.c.bf16 %v9238_v50, %v9238_v50 }
 0x72d   : > { %12665 = vmatmul.mubr.msk.bf16.gmra.mrb[24].mxu1 %vm7107_vm2, %v17921_v11  ;;  %v8377_v11 = vld [vmem:[#allocation4 + $0xf8] sm:$0x7] }
 0x72e   : > { %12668 = vmatprep.mubr.msk.bf16.mxu1 %vm7107_vm2, %v17924_v39  ;;  %v8391_v42 = vpack.c.bf16 %v8377_v11, %v8377_v11  ;;  %v17934_v39 = vpack.c.bf16 %v16613_v55, %v17933_v53  ;;  %v13761_v55 = vld [vmem:[%s17716_s5 + $0xb0] sm:$0xff]  }
 0x72f   : > { %v17961_v11 = vld [vmem:[#allocation37_spill] sm:$0xff] }
 0x730   : > { %v9215_v53 = vld [vmem:[#allocation4 + $0x68] sm:$0xff] }
 0x735   : > { %12669 = vmatmul.mubr.msk.bf16.gmra.mrb[28].mxu1 %vm7107_vm2, %v17929_v45  ;;  %v13764_v45 = vld [vmem:[%s17716_s5 + $0xc8] sm:$0xff]  }
 0x736   : > { %12672 = vmatprep.mubr.msk.bf16.mxu1 %vm7107_vm2, %v8388_v15  ;;  %v17935_v15 = vpack.c.bf16 %v16615_v17, %v16622_v34  ;;  %v17937_v17 = vpack.c.bf16 %v16666_v58, %v16669_v56  ;;  %v17938_v34 = vpack.c.bf16 %v16712_v19, %v16703_v47  ;;  %v17940_v58 = vpack.c.bf16 %v16764_v0, %v16754_v10  ;;  %v17193_v10 = vld [vmem:[#allocation4 + $0xf2] sm:$0xff]  ;;  %v17945_v0 = vld [vmem:[#allocation31_spill] sm:$0xff] }
 0x737   : > { %v17941_v56 = vpack.c.bf16 %v16766_v18, %v16769_v20  ;;  %v17942_v47 = vpack.c.bf16 %v16798_v31, %v16796_v33  ;;  %v8675_v19 = vpack.c.bf16 %v16909_v61, %v16986_v62  ;;  %v17946_v18 = vld [vmem:[#allocation32_spill] sm:$0xff]  ;;  %v8664_v62 = vld [vmem:[#allocation4 + $0xfa] sm:$0x7] }
 0x738   : > { %v8676_v20 = vpack.c.bf16 %v17946_v18, %v17945_v0  ;;  %v8678_v31 = vpack.c.bf16 %v8664_v62, %v8664_v62  ;;  %v9235_v62 = vld [vmem:[#allocation4 + $0x108] sm:$0xff] }
 0x73d   : > { %12673 = vmatmul.mubr.msk.bf16.gmra.mrb[32].mxu1 %vm7107_vm2, %v8389_v48  ;;  %v17949_v48 = vpack.c.bf16 %v16832_v35, %v16830_v16  ;;  %v17951_v16 = vpack.c.bf16 %v16844_v5, %v16842_v13  ;;  %v17952_v35 = vpack.c.bf16 %v16851_v7, %v16849_v41  ;;  %v17954_v13 = vpack.c.bf16 %v16868_v25, %v16864_v8  ;;  %v17957_v7 = vld [vmem:[#allocation34_spill] sm:$0xff]  ;;  %v17959_v25 = vld [vmem:[#allocation35_spill] sm:$0xff] }
 0x73e   : > { %12676 = vmatprep.mubr.msk.bf16.mxu1 %vm7107_vm2, %v8390_v2  ;;  %v17950_v2 = vpack.c.bf16 %v16840_v27, %v16834_v36  ;;  %v13767_v36 = vld [vmem:[%s17716_s5 + $0xe0] sm:$0xff]   ;;  %v17953_v27 = vpack.c.bf16 %v16862_v60, %v16860_v3  ;;  %v17955_v5 = vpack.c.bf16 %v16872_v23, %v16870_v38  ;;  %v17956_v41 = vpack.c.bf16 %v16878_v49, %v16876_v46  ;;  %v17960_v38 = vld [vmem:[#allocation36_spill] sm:$0xff] }
 0x73f   : > { %v8962_v3 = vpack.c.bf16 %v17957_v7, %v17059_v29  ;;  %v17958_v60 = vpack.c.bf16 %v16886_v40, %v16884_v6  ;;  %v17257_v8 = vld [vmem:[#allocation4 + $0xf4] sm:$0xff]  ;;  %v8963_v23 = vpack.c.bf16 %v17960_v38, %v17959_v25  ;;  %v8951_v49 = vld [vmem:[#allocation4 + $0xfc] sm:$0x7] }
 0x740   : > { %v8964_v46 = vpack.c.bf16 %v17257_v8, %v17961_v11  ;;  %v9212_v29 = vld [vmem:[#allocation4 + $0x50] sm:$0xff]  ;;  %v8965_v40 = vpack.c.bf16 %v8951_v49, %v8951_v49 }
 0x741   : > { %v9523_v49 = vld [vmem:[#allocation4 + $0x112] sm:$0xff] }
 0x745   : > { %12677 = vmatmul.mubr.msk.bf16.gmra.mrb[36].mxu1 %vm7107_vm2, %v8391_v42  ;;  %v9213_v42 = vld [vmem:[#allocation4 + $0x58] sm:$0xff] }
 0x746   : > { %12688 = vmatprep.mubr.msk.bf16.mxu1 %vm7107_vm2, %v17934_v39  ;;  %v9239_v6 = vpack.c.bf16 %v9213_v42, %v9212_v29  ;;  %v9216_v39 = vld [vmem:[#allocation4 + $0x70] sm:$0xff]  ;;  %v9524_v29 = vld [vmem:[#allocation4 + $0x11a] sm:$0xff]  ;;  %v9521_v42 = vld [vmem:[#allocation4 + $0x102] sm:$0xff] }
 0x74d   : > { %12689 = vmatmul.mubr.msk.bf16.vlgmr.msra.gmra.mrb[12].mxu1 %vm7107_vm2, %v17935_v15  ;;  %v9214_v15 = vld [vmem:[#allocation4 + $0x60] sm:$0xff] }
 0x74e   : > { %12717 = vmatpush3.bf16.msra.mxu1 %v13759_v43  ;;  %12692 = vmatprep.mubr.msk.bf16.mxu1 %vm7107_vm2, %v17936_v14  ;;  %v17947_v43 = vld [vmem:[#allocation33_spill] sm:$0xff]  ;;  %v9240_v14 = vpack.c.bf16 %v9215_v53, %v9214_v15  ;;  %v9811_v15 = vld [vmem:[#allocation4 + $0x11c] sm:$0xff] }
 0x74f   : > { %12718 = vmatprep.subr.bf16.mxu1 %v13760_v59  ;;  %v8677_v33 = vpack.c.bf16 %v17193_v10, %v17947_v43 }
 0x752   : > { %12719 = vmatpush3.bf16.msra.mxu1 %v13760_v59  ;;  %v9217_v59 = vld [vmem:[#allocation4 + $0x78] sm:$0xff] }
 0x753   : > { %12720 = vmatprep.subr.bf16.mxu1 %v13761_v55 }
 0x755   : > { %12693 = vmatmul.mubr.msk.bf16.gmra.mrb[16].mxu1 %vm7107_vm2, %v17937_v17  ;;  %v13769_v17 = vld [vmem:[%s17716_s5 + $0xf0] sm:$0xff]  }
 0x756   : > { %12696 = vmatprep.mubr.msk.bf16.mxu1 %vm7107_vm2, %v17938_v34  ;;  %12721 = vmatpush3.bf16.msra.mxu1 %v13761_v55  ;;  %v13768_v55 = vld [vmem:[%s17716_s5 + $0xe8] sm:$0xff]   ;;  %v13770_v34 = vld [vmem:[%s17716_s5 + $0xf8] sm:$0xff]  }
 0x757   : > { %12722 = vmatprep.subr.bf16.mxu1 %v13762_v37 }
 0x75a   : > { %12723 = vmatpush3.bf16.msra.mxu1 %v13762_v37  ;;  %v9241_v37 = vpack.c.bf16 %v9217_v59, %v9216_v39  ;;  %v17982_v39 = vpack.c.bf16 %v17961_v11, %v17960_v38  ;;  %v9809_v59 = vld [vmem:[#allocation4 + $0x10c] sm:$0xff]  ;;  %v17393_v11 = vld [vmem:[%s17717_s6] ss:$0 sm:$0xff] }
 0x75b   : > { %12752 = vmatprep.subr.bf16.mxu1 %v13763_v57  ;;  %v13778_v38 = vld [vmem:[%s17718_s7 + $0x18] sm:$0xff]  }
 0x75d   : > { %12697 = vmatmul.mubr.msk.bf16.gmra.mrb[20].mxu1 %vm7107_vm2, %v17939_v32  ;;  %v17963_v32 = vld [vmem:[#allocation18_spill] sm:$0xff] }
 0x75e   : > { %12700 = vmatprep.mubr.msk.bf16.mxu1 %vm7107_vm2, %v17940_v58  ;;  %v13771_v58 = vld [vmem:[%s17716_s5 + $0x100] sm:$0xff]  }
 0x765   : > { %12701 = vmatmul.mubr.msk.bf16.gmra.mrb[24].mxu1 %vm7107_vm2, %v17941_v56  ;;  %v17964_v56 = vld [vmem:[#allocation21_spill] sm:$0xff] }
 0x766   : > { %12704 = vmatprep.mubr.msk.bf16.mxu1 %vm7107_vm2, %v17942_v47  ;;  %v17965_v47 = vld [vmem:[#allocation10_spill] sm:$0xff] }
 0x76d   : > { %12705 = vmatmul.mubr.msk.bf16.gmra.mrb[28].mxu1 %vm7107_vm2, %v17944_v22  ;;  %v9233_v22 = vld [vmem:[#allocation4 + $0xf8] sm:$0xff] }
 0x76e   : > { %12708 = vmatprep.mubr.msk.bf16.mxu1 %vm7107_vm2, %v8675_v19  ;;  %v17966_v19 = vld [vmem:[#allocation26_spill] sm:$0xff] }
 0x775   : > { %12709 = vmatmul.mubr.msk.bf16.gmra.mrb[32].mxu1 %vm7107_vm2, %v8676_v20  ;;  %v9249_v20 = vpack.c.bf16 %v9233_v22, %v17129_v21  ;;  %v17969_v21 = vld [vmem:[#allocation38_spill] sm:$0xff] }
 0x776   : > { %12712 = vmatprep.mubr.msk.bf16.mxu1 %vm7107_vm2, %v8677_v33  ;;  %v17968_v33 = vpack.c.bf16 %v17932_v28, %v17931_v44  ;;  %v13772_v44 = vld [vmem:[%s17716_s5 + $0x108] sm:$0xff]  }
 0x777   : > { %v17970_v28 = vld [vmem:[#allocation39_spill] sm:$0xff] }
 0x77d   : > { %12713 = vmatmul.mubr.msk.bf16.gmra.mrb[36].mxu1 %vm7107_vm2, %v8678_v31  ;;  %v9236_v31 = vld [vmem:[#allocation4 + $0x110] sm:$0xff] }
 0x77e   : > { %12724 = vmatprep.mubr.msk.bf16.mxu1 %vm7107_vm2, %v17948_v1  ;;  %v9237_v1 = vld [vmem:[#allocation4 + $0x118] sm:$0xff] }
 0x785   : > { %12725 = vmatmul.mubr.msk.bf16.vlgmr.msra.gmra.mrb[12].mxu1 %vm7107_vm2, %v17949_v48 }
 0x786   : > { %12753 = vmatpush3.bf16.msra.mxu1 %v13763_v57  ;;  %12728 = vmatprep.mubr.msk.bf16.mxu1 %vm7107_vm2, %v17950_v2  ;;  %v17962_v57 = vld [vmem:[#allocation11_spill] sm:$0xff]  ;;  %v9251_v2 = vpack.c.bf16 %v9237_v1, %v9236_v31 }
 0x787   : > { %12754 = vmatprep.subr.bf16.mxu1 %v13764_v45 }
 0x78a   : > { %12755 = vmatpush3.bf16.msra.mxu1 %v13764_v45  ;;  %v9234_v45 = vld [vmem:[#allocation4 + $0x100] sm:$0xff] }
 0x78b   : > { %12756 = vmatprep.subr.bf16.mxu1 %v13765_v54  ;;  %v9250_v48 = vpack.c.bf16 %v9235_v62, %v9234_v45 }
 0x78d   : > { %12729 = vmatmul.mubr.msk.bf16.gmra.mrb[16].mxu1 %vm7107_vm2, %v17951_v16  ;;  %v13774_v16 = vld [vmem:[%s17716_s5 + $0x118] sm:$0xff]  }
 0x78e   : > { %12732 = vmatprep.mubr.msk.bf16.mxu1 %vm7107_vm2, %v17952_v35  ;;  %12757 = vmatpush3.bf16.msra.mxu1 %v13765_v54  ;;  %v17971_v54 = vld [vmem:[#allocation40_spill] sm:$0xff]  ;;  %v17972_v35 = vld [vmem:[#allocation41_spill] sm:$0xff] }
 0x78f   : > { %12758 = vmatprep.subr.bf16.mxu1 %v13766_v12 }
 0x792   : > { %12759 = vmatpush3.bf16.msra.mxu1 %v13766_v12  ;;  %v13773_v12 = vld [vmem:[%s17716_s5 + $0x110] sm:$0xff]  }
 0x793   : > { %12788 = vmatprep.subr.bf16.mxu1 %v13767_v36 }
 0x795   : > { %12733 = vmatmul.mubr.msk.bf16.gmra.mrb[20].mxu1 %vm7107_vm2, %v17953_v27  ;;  %v13910_v27 = vmov 0.0  }
 0x796   : > { %12736 = vmatprep.mubr.msk.bf16.mxu1 %vm7107_vm2, %v17954_v13  ;;  %v17974_v13 = vld [vmem:[#allocation43_spill] sm:$0xff] }
 0x79d   : > { %12737 = vmatmul.mubr.msk.bf16.gmra.mrb[24].mxu1 %vm7107_vm2, %v17955_v5  ;;  %v17975_v5 = vld [vmem:[#allocation44_spill] sm:$0xff] }
 0x79e   : > { %12740 = vmatprep.mubr.msk.bf16.mxu1 %vm7107_vm2, %v17956_v41  ;;  %v17976_v41 = vpack.c.bf16 %v17945_v0, %v16909_v61  ;;  %v9525_v61 = vld [vmem:[#allocation4 + $0x122] sm:$0x7] }
 0x79f   : > { %v9539_v0 = vpack.c.bf16 %v9525_v61, %v9525_v61 }
 0x7a5   : > { %12741 = vmatmul.mubr.msk.bf16.gmra.mrb[28].mxu1 %vm7107_vm2, %v17958_v60 }
 0x7a6   : > { %12744 = vmatprep.mubr.msk.bf16.mxu1 %vm7107_vm2, %v8962_v3  ;;  %v9520_v3 = vld [vmem:[#allocation4 + $0xfa] sm:$0xff] }
 0x7a7   : > { %v9536_v60 = vpack.c.bf16 %v9520_v3, %v17193_v10  ;;  %v13775_v10 = vld [vmem:[%s17718_s7] sm:$0xff]  }
 0x7ad   : > { %12745 = vmatmul.mubr.msk.bf16.gmra.mrb[32].mxu1 %vm7107_vm2, %v8963_v23  ;;  %v17977_v23 = vpack.c.bf16 %v17947_v43, %v17946_v18  ;;  %v13776_v18 = vld [vmem:[%s17718_s7 + $0x8] sm:$0xff]   ;;  %v17979_v43 = vld [vmem:[#allocation46_spill] sm:$0xff] }
 0x7ae   : > { %12748 = vmatprep.mubr.msk.bf16.mxu1 %vm7107_vm2, %v8964_v46  ;;  %v9522_v46 = vld [vmem:[#allocation4 + $0x10a] sm:$0xff] }
 0x7b5   : > { %12749 = vmatmul.mubr.msk.bf16.gmra.mrb[36].mxu1 %vm7107_vm2, %v8965_v40  ;;  %v9538_v40 = vpack.c.bf16 %v9524_v29, %v9523_v49 }
 0x7b6   : > { %12760 = vmatprep.mubr.msk.bf16.mxu1 %vm7107_vm2, %v9239_v6  ;;  %v9807_v6 = vld [vmem:[#allocation4 + $0xfc] sm:$0xff] }
 0x7b7   : > { %v9823_v53 = vpack.c.bf16 %v9807_v6, %v17257_v8  ;;  %v13777_v8 = vld [vmem:[%s17718_s7 + $0x10] sm:$0xff]  }
 0x7bd   : > { %12761 = vmatmul.mubr.msk.bf16.vlgmr.msra.gmra.mrb[12].mxu1 %vm7107_vm2, %v9240_v14  ;;  %v9808_v14 = vld [vmem:[#allocation4 + $0x104] sm:$0xff] }
 0x7be   : > { %12789 = vmatpush3.bf16.msra.mxu1 %v13767_v36  ;;  %12764 = vmatprep.mubr.msk.bf16.mxu1 %vm7107_vm2, %v9241_v37  ;;  %v17973_v36 = vld [vmem:[#allocation42_spill] sm:$0xff] }
 0x7bf   : > { %12790 = vmatprep.subr.bf16.mxu1 %v13768_v55 }
 0x7c2   : > { %12791 = vmatpush3.bf16.msra.mxu1 %v13768_v55 }
 0x7c3   : > { %12792 = vmatprep.subr.bf16.mxu1 %v13769_v17 }
 0x7c5   : > { %12765 = vmatmul.mubr.msk.bf16.gmra.mrb[16].mxu1 %vm7107_vm2, %v17962_v57 }
 0x7c6   : > { %12768 = vmatprep.mubr.msk.bf16.mxu1 %vm7107_vm2, %v17963_v32  ;;  %12793 = vmatpush3.bf16.msra.mxu1 %v13769_v17 }
 0x7c7   : > { %12794 = vmatprep.subr.bf16.mxu1 %v13770_v34 }
 0x7ca   : > { %12795 = vmatpush3.bf16.msra.mxu1 %v13770_v34 }
 0x7cb   : > { %12824 = vmatprep.subr.bf16.mxu1 %v13771_v58 }
 0x7cd   : > { %12769 = vmatmul.mubr.msk.bf16.gmra.mrb[20].mxu1 %vm7107_vm2, %v17964_v56 }
 0x7ce   : > { %12772 = vmatprep.mubr.msk.bf16.mxu1 %vm7107_vm2, %v17965_v47 }
 0x7d5   : > { %12773 = vmatmul.mubr.msk.bf16.gmra.mrb[24].mxu1 %vm7107_vm2, %v17966_v19 }
 0x7d6   : > { %12776 = vmatprep.mubr.msk.bf16.mxu1 %vm7107_vm2, %v17967_v4 }
 0x7dd   : > { %12777 = vmatmul.mubr.msk.bf16.gmra.mrb[28].mxu1 %vm7107_vm2, %v17968_v33 }
 0x7de   : > { %12780 = vmatprep.mubr.msk.bf16.mxu1 %vm7107_vm2, %v9249_v20 }
 0x7e5   : > { %12781 = vmatmul.mubr.msk.bf16.gmra.mrb[32].mxu1 %vm7107_vm2, %v9250_v48 }
 0x7e6   : > { %12784 = vmatprep.mubr.msk.bf16.mxu1 %vm7107_vm2, %v9251_v2 }
 0x7ed   : > { %12785 = vmatmul.mubr.msk.bf16.gmra.mrb[36].mxu1 %vm7107_vm2, %v9252_v52 }
 0x7ee   : > { %12796 = vmatprep.mubr.msk.bf16.mxu1 %vm7107_vm2, %v17969_v21 }
 0x7f5   : > { %12797 = vmatmul.mubr.msk.bf16.vlgmr.msra.gmra.mrb[12].mxu1 %vm7107_vm2, %v17970_v28 }
 0x7f6   : > { %12825 = vmatpush3.bf16.msra.mxu1 %v13771_v58  ;;  %12800 = vmatprep.mubr.msk.bf16.mxu1 %vm7107_vm2, %v17971_v54 }
 0x7f7   : > { %12826 = vmatprep.subr.bf16.mxu1 %v13772_v44 }
 0x7fa   : > { %12827 = vmatpush3.bf16.msra.mxu1 %v13772_v44 }
 0x7fb   : > { %12828 = vmatprep.subr.bf16.mxu1 %v13773_v12 }
 0x7fd   : > { %12801 = vmatmul.mubr.msk.bf16.gmra.mrb[16].mxu1 %vm7107_vm2, %v17972_v35 }
 0x7fe   : > { %12804 = vmatprep.mubr.msk.bf16.mxu1 %vm7107_vm2, %v17973_v36  ;;  %12829 = vmatpush3.bf16.msra.mxu1 %v13773_v12 }
 0x7ff   : > { %12830 = vmatprep.subr.bf16.mxu1 %v13774_v16 }
 0x802   : > { %12831 = vmatpush3.bf16.msra.mxu1 %v13774_v16 }
 0x803   : > { %12860 = vmatprep.subr.bf16.mxu1 %v13910_v27 }
 0x805   : > { %12805 = vmatmul.mubr.msk.bf16.gmra.mrb[20].mxu1 %vm7107_vm2, %v17974_v13 }
 0x806   : > { %12808 = vmatprep.mubr.msk.bf16.mxu1 %vm7107_vm2, %v17975_v5 }
 0x80d   : > { %12809 = vmatmul.mubr.msk.bf16.gmra.mrb[24].mxu1 %vm7107_vm2, %v16994_v63  ;;  %v9537_v63 = vpack.c.bf16 %v9522_v46, %v9521_v42 }
 0x80e   : > { %12812 = vmatprep.mubr.msk.bf16.mxu1 %vm7107_vm2, %v17976_v41 }
 0x815   : > { %12813 = vmatmul.mubr.msk.bf16.gmra.mrb[28].mxu1 %vm7107_vm2, %v17977_v23 }
 0x816   : > { %12816 = vmatprep.mubr.msk.bf16.mxu1 %vm7107_vm2, %v9536_v60 }
 0x81d   : > { %12817 = vmatmul.mubr.msk.bf16.gmra.mrb[32].mxu1 %vm7107_vm2, %v9537_v63 }
 0x81e   : > { %12820 = vmatprep.mubr.msk.bf16.mxu1 %vm7107_vm2, %v9538_v40 }
 0x825   : > { %12821 = vmatmul.mubr.msk.bf16.gmra.mrb[36].mxu1 %vm7107_vm2, %v9539_v0 }
 0x826   : > { %12832 = vmatprep.mubr.msk.bf16.mxu1 %vm7107_vm2, %v17025_v26  ;;  %v17978_v26 = vld [vmem:[#allocation45_spill] sm:$0xff] }
 0x82d   : > { %12833 = vmatmul.mubr.msk.bf16.vlgmr.msra.gmra.mrb[12].mxu1 %vm7107_vm2, %v17029_v24  ;;  %v17980_v24 = vld [vmem:[#allocation47_spill] sm:$0xff] }
 0x82e   : > { %12836 = vmatprep.mubr.msk.bf16.mxu1 %vm7107_vm2, %v17037_v30  ;;  %12861 = vmatpush3.bf16.msra.mxu1 %v13775_v10  ;;  %v17981_v30 = vpack.c.bf16 %v17959_v25, %v17957_v7  ;;  %v9812_v7 = vld [vmem:[#allocation4 + $0x124] sm:$0x7] }
 0x82f   : > { %12862 = vmatprep.subr.bf16.mxu1 %v13910_v27  ;;  %v9826_v25 = vpack.c.bf16 %v9812_v7, %v9812_v7 }
 0x832   : > { %12863 = vmatpush3.bf16.msra.mxu1 %v13776_v18 }
 0x833   : > { %12864 = vmatprep.subr.bf16.mxu1 %v13910_v27 }
 0x835   : > { %12837 = vmatmul.mubr.msk.bf16.gmra.mrb[16].mxu1 %vm7107_vm2, %v17978_v26 }
 0x836   : > { %12840 = vmatprep.mubr.msk.bf16.mxu1 %vm7107_vm2, %v17979_v43  ;;  %12865 = vmatpush3.bf16.msra.mxu1 %v13777_v8 }
 0x837   : > { %12866 = vmatprep.subr.bf16.mxu1 %v13910_v27 }
 0x83a   : > { %12867 = vmatpush3.bf16.msra.mxu1 %v13778_v38 }
 0x83b   : > { %12872 = vmatprep.subr.bf16.mxu1 %v13910_v27 }
 0x83d   : > { %12841 = vmatmul.mubr.msk.bf16.gmra.mrb[20].mxu1 %vm7107_vm2, %v17980_v24 }
 0x83e   : > { %12844 = vmatprep.mubr.msk.bf16.mxu1 %vm7107_vm2, %v17063_v51  ;;  %v9810_v51 = vld [vmem:[#allocation4 + $0x114] sm:$0xff] }
 0x83f   : > { %v9825_v55 = vpack.c.bf16 %v9811_v15, %v9810_v51 }
 0x845   : > { %12845 = vmatmul.mubr.msk.bf16.gmra.mrb[24].mxu1 %vm7107_vm2, %v17067_v9  ;;  %v9824_v9 = vpack.c.bf16 %v9809_v59, %v9808_v14 }
 0x846   : > { %12848 = vmatprep.mubr.msk.bf16.mxu1 %vm7107_vm2, %v17981_v30 }
 0x84d   : > { %12849 = vmatmul.mubr.msk.bf16.gmra.mrb[28].mxu1 %vm7107_vm2, %v17982_v39 }
 0x84e   : > { %12852 = vmatprep.mubr.msk.bf16.mxu1 %vm7107_vm2, %v9823_v53 }
 0x855   : > { %12853 = vmatmul.mubr.msk.bf16.gmra.mrb[32].mxu1 %vm7107_vm2, %v9824_v9  ;;  %v13779_v9 = vld [vmem:[%s17718_s7 + $0x20] sm:$0xff]  }
 0x856   : > { %12856 = vmatprep.mubr.msk.bf16.mxu1 %vm7107_vm2, %v9825_v55 }
 0x85d   : > { %12857 = vmatmul.mubr.msk.bf16.gmra.mrb[36].mxu1 %vm7107_vm2, %v9826_v25 }
 0x85e   : > { %12868 = vmatprep.mubr.msk.bf16.mxu1 %vm13911_vm5, %v13910_v27 }
 0x900   : > { %v12834_v37 = vpop.f32.mrb[12].mxu1 }
 0x901   : > { %v13083_v17 = vadd.f32 %v12834_v37, %v17393_v11  ;;  %v9936_v34 = vpop.f32.mrb[13].mxu1 }
 0x902   : > { %v13084_v57 = vadd.f32 %v17393_v11, %v9936_v34  ;;  %v12835_v32 = vpop.f32.mrb[14].mxu1 }
 0x903   : > { %10075 = vst.msk [vmem:[#allocation5 + $0x10] sm:$0xff] %vm7107_vm2, %v13083_v17  ;;  %v13085_v58 = vadd.f32 %v12835_v32, %v17393_v11  ;;  %v9939_v56 = vpop.f32.mrb[15].mxu1 }
 0x904   : > { %10073 = vst.msk [vmem:[#allocation5] sm:$0xff] %vm7107_vm2, %v13084_v57  ;;  %v13086_v47 = vadd.f32 %v17393_v11, %v9939_v56  ;;  %v13780_v57 = vld [vmem:[%s17718_s7 + $0x28] sm:$0xff]  }
 0x905   : > { %10076 = vst.msk [vmem:[#allocation5 + $0x18] sm:$0xff] %vm7107_vm2, %v13085_v58 }
 0x906   : > { %10074 = vst.msk [vmem:[#allocation5 + $0x8] sm:$0xff] %vm7107_vm2, %v13086_v47 }
 0x908   : > { %v12838_v19 = vpop.f32.mrb[16].mxu1 }
 0x909   : > { %v13087_v4 = vadd.f32 %v12838_v19, %v17393_v11  ;;  %v9952_v22 = vpop.f32.mrb[17].mxu1 }
 0x90a   : > { %v13088_v20 = vadd.f32 %v17393_v11, %v9952_v22  ;;  %v12839_v33 = vpop.f32.mrb[18].mxu1 }
 0x90b   : > { %10079 = vst.msk [vmem:[#allocation5 + $0x30] sm:$0xff] %vm7107_vm2, %v13087_v4  ;;  %v13089_v62 = vadd.f32 %v12839_v33, %v17393_v11  ;;  %v9955_v31 = vpop.f32.mrb[19].mxu1  ;;  %v10101_v13 = vld [vmem:[#allocation5] sm:$0xff] }
 0x90c   : > { %10077 = vst.msk [vmem:[#allocation5 + $0x20] sm:$0xff] %vm7107_vm2, %v13088_v20  ;;  %v13090_v1 = vadd.f32 %v17393_v11, %v9955_v31 }
 0x90d   : > { %10080 = vst.msk [vmem:[#allocation5 + $0x38] sm:$0xff] %vm7107_vm2, %v13089_v62  ;;  %v10102_v50 = vld [vmem:[#allocation5 + $0x8] sm:$0xff]  ;;  %v13781_v62 = vld [vmem:[%s17718_s7 + $0x30] sm:$0xff]  }
 0x90e   : > { %10078 = vst.msk [vmem:[#allocation5 + $0x28] sm:$0xff] %vm7107_vm2, %v13090_v1  ;;  %v10124_v52 = vld [vmem:[#allocation5 + $0xa] sm:$0xff]  ;;  %v10123_v28 = vld [vmem:[#allocation5 + $0x2] sm:$0xff] }
 0x90f   : > { %v10146_v5 = vmax.f32 %v10102_v50, %v10124_v52  ;;  %v10145_v23 = vmax.f32 %v10101_v13, %v10123_v28  ;;  %v13782_v52 = vld [vmem:[%s17718_s7 + $0x38] sm:$0xff]  }
 0x910   : > { %v12842_v45 = vpop.f32.mrb[20].mxu1 }
 0x911   : > { %v13091_v48 = vadd.f32 %v12842_v45, %v17393_v11  ;;  %v9968_v2 = vpop.f32.mrb[21].mxu1 }
 0x912   : > { %v13092_v21 = vadd.f32 %v17393_v11, %v9968_v2  ;;  %v12843_v44 = vpop.f32.mrb[22].mxu1  ;;  %v10107_v16 = vld [vmem:[#allocation5 + $0x30] sm:$0xff] }
 0x913   : > { %10083 = vst.msk [vmem:[#allocation5 + $0x50] sm:$0xff] %vm7107_vm2, %v13091_v48  ;;  %v13093_v54 = vadd.f32 %v12843_v44, %v17393_v11  ;;  %v9971_v12 = vpop.f32.mrb[23].mxu1 }
 0x914   : > { %v10129_v35 = vld [vmem:[#allocation5 + $0x32] sm:$0xff]  ;;  %10081 = vst.msk [vmem:[#allocation5 + $0x40] sm:$0xff] %vm7107_vm2, %v13092_v21  ;;  %v13094_v36 = vadd.f32 %v17393_v11, %v9971_v12 }
 0x915   : > { %v10151_v41 = vmax.f32 %v10107_v16, %v10129_v35  ;;  %v10106_v3 = vld [vmem:[#allocation5 + $0x28] sm:$0xff]  ;;  %10084 = vst.msk [vmem:[#allocation5 + $0x58] sm:$0xff] %vm7107_vm2, %v13093_v54 }
 0x916   : > { %v10128_v60 = vld [vmem:[#allocation5 + $0x2a] sm:$0xff]  ;;  %10082 = vst.msk [vmem:[#allocation5 + $0x48] sm:$0xff] %vm7107_vm2, %v13094_v36 }
 0x917   : > { %v10150_v46 = vmax.f32 %v10106_v3, %v10128_v60  ;;  %v10186_v49 = vmax.f32 %v10146_v5, %v10151_v41  ;;  %v13783_v41 = vld [vmem:[%s17718_s7 + $0x40] sm:$0xff]  }
 0x918   : > { %v12846_v42 = vpop.f32.mrb[24].mxu1 }
 0x919   : > { %v10185_v29 = vmax.f32 %v10145_v23, %v10150_v46  ;;  %v10208_v63 = vmax.f32 %v10186_v49, 0.0  ;;  %v13095_v40 = vadd.f32 %v12846_v42, %v17393_v11  ;;  %v9984_v61 = vpop.f32.mrb[25].mxu1 }
 0x91a   : > { %v13096_v10 = vadd.f32 %v17393_v11, %v9984_v61  ;;  %v12847_v18 = vpop.f32.mrb[26].mxu1  ;;  %v10111_v24 = vld [vmem:[#allocation5 + $0x50] sm:$0xff] }
 0x91b   : > { %v10207_v0 = vmax.f32 %v10185_v29, 0.0  ;;  %10230 = vst.msk [vmem:[#allocation6 + $0x8] sm:$0xff] %vm7107_vm2, %v10208_v63  ;;  %10087 = vst.msk [vmem:[#allocation5 + $0x70] sm:$0xff] %vm7107_vm2, %v13095_v40  ;;  %v13097_v26 = vadd.f32 %v12847_v18, %v17393_v11  ;;  %v9987_v43 = vpop.f32.mrb[27].mxu1  ;;  %v13784_v29 = vld [vmem:[%s17718_s7 + $0x48] sm:$0xff]  }
 0x91c   : > { %v10133_v30 = vld [vmem:[#allocation5 + $0x52] sm:$0xff]  ;;  %10085 = vst.msk [vmem:[#allocation5 + $0x60] sm:$0xff] %vm7107_vm2, %v13096_v10  ;;  %v13098_v6 = vadd.f32 %v17393_v11, %v9987_v43  ;;  %v13785_v10 = vld [vmem:[%s17718_s7 + $0x50] sm:$0xff]  }
 0x91d   : > { %10229 = vst.msk [vmem:[#allocation6] sm:$0xff] %vm7107_vm2, %v10207_v0  ;;  %v10155_v53 = vmax.f32 %v10111_v24, %v10133_v30  ;;  %10088 = vst.msk [vmem:[#allocation5 + $0x78] sm:$0xff] %vm7107_vm2, %v13097_v26  ;;  %v10112_v55 = vld [vmem:[#allocation5 + $0x58] sm:$0xff] }
 0x91e   : > { %10086 = vst.msk [vmem:[#allocation5 + $0x68] sm:$0xff] %vm7107_vm2, %v13098_v6  ;;  %v13786_v6 = vld [vmem:[%s17718_s7 + $0x58] sm:$0xff]  }
 0x920   : > { %v12850_v39 = vpop.f32.mrb[28].mxu1 }
 0x921   : > { %v13099_v59 = vadd.f32 %v12850_v39, %v17393_v11  ;;  %v10000_v51 = vpop.f32.mrb[29].mxu1 }
 0x922   : > { %v13100_v15 = vadd.f32 %v17393_v11, %v10000_v51  ;;  %v12851_v14 = vpop.f32.mrb[30].mxu1  ;;  %v10410_v39 = vld [vmem:[#allocation6 + $0x8] sm:$0x1]  ;;  %v13787_v51 = vld [vmem:[%s17718_s7 + $0x60] sm:$0xff]  }
 0x923   : > { %v10134_v7 = vld [vmem:[#allocation5 + $0x5a] sm:$0xff]  ;;  %10091 = vst.msk [vmem:[#allocation5 + $0x90] sm:$0xff] %vm7107_vm2, %v13099_v59  ;;  %v13101_v25 = vadd.f32 %v12851_v14, %v17393_v11  ;;  %v10003_v8 = vpop.f32.mrb[31].mxu1 }
 0x924   : > { %v10253_v38 = vld [vmem:[#allocation6] sm:$0x1]  ;;  %v10156_v37 = vmax.f32 %v10112_v55, %v10134_v7  ;;  %10089 = vst.msk [vmem:[#allocation5 + $0x80] sm:$0xff] %vm7107_vm2, %v13100_v15  ;;  %v13102_v17 = vadd.f32 %v17393_v11, %v10003_v8  ;;  %v10331_v16 = vld [vmem:[#allocation6 + $0x4] sm:$0x1]  ;;  %v10411_v15 = vpack.c.bf16 %v10410_v39, %v10410_v39  ;;  %v13790_v55 = vld [vmem:[%s17718_s7 + $0x78] sm:$0xff]  }
 0x925   : > { %v10254_v34 = vpack.c.bf16 %v10253_v38, %v10253_v38  ;;  %10092 = vst.msk [vmem:[#allocation5 + $0x98] sm:$0xff] %vm7107_vm2, %v13101_v25  ;;  %v10116_v4 = vld [vmem:[#allocation5 + $0x78] sm:$0xff]  ;;  %v10332_v60 = vpack.c.bf16 %v10331_v16, %v10331_v16  ;;  %v13791_v25 = vld [vmem:[%s17718_s7 + $0x80] sm:$0xff]  }
 0x926   : > { %10090 = vst.msk [vmem:[#allocation5 + $0x88] sm:$0xff] %vm7107_vm2, %v13102_v17  ;;  %v13788_v14 = vld [vmem:[%s17718_s7 + $0x68] sm:$0xff]   ;;  %v13794_v17 = vld [vmem:[%s17718_s7 + $0x98] sm:$0xff]   ;;  %v10964_v16 = vld [vmem:[%s17720_s9] sm:$0xff] }
 0x927   : > { %12869 = vmatmul.mubr.msk.bf16.vlgmr.msra.gmra.mrb[40].mxu1 %vm7107_vm2, %v10254_v34  ;;  %v13792_v38 = vld [vmem:[%s17718_s7 + $0x88] sm:$0xff]   ;;  %v10252_v39 = vld [vmem:[%s17719_s8] sm:$0x1] }
 0x928   : > { %12873 = vmatpush3.bf16.msra.mxu1 %v13779_v9  ;;  %12880 = vmatprep.mubr.msk.bf16.mxu1 %vm13911_vm5, %v13910_v27  ;;  %v12854_v32 = vpop.f32.mrb[32].mxu1  ;;  %v13789_v9 = vld [vmem:[%s17718_s7 + $0x70] sm:$0xff]  }
 0x929   : > { %12874 = vmatprep.subr.bf16.mxu1 %v13910_v27  ;;  %v13103_v58 = vadd.f32 %v12854_v32, %v17393_v11  ;;  %v10016_v56 = vpop.f32.mrb[33].mxu1 }
 0x92a   : > { %v13104_v47 = vadd.f32 %v17393_v11, %v10016_v56  ;;  %v12855_v19 = vpop.f32.mrb[34].mxu1  ;;  %v13797_v56 = vld [vmem:[%s17718_s7 + $0xb0] sm:$0xff]  }
 0x92b   : > { %v10138_v22 = vld [vmem:[#allocation5 + $0x7a] sm:$0xff]  ;;  %10095 = vst.msk [vmem:[#allocation5 + $0xb0] sm:$0xff] %vm7107_vm2, %v13103_v58  ;;  %v13105_v20 = vadd.f32 %v12855_v19, %v17393_v11  ;;  %v10019_v33 = vpop.f32.mrb[35].mxu1 }
 0x92c   : > { %12875 = vmatpush3.bf16.msra.mxu1 %v13780_v57  ;;  %v10117_v31 = vld [vmem:[#allocation5 + $0x80] sm:$0xff]  ;;  %v10160_v1 = vmax.f32 %v10116_v4, %v10138_v22  ;;  %10093 = vst.msk [vmem:[#allocation5 + $0xa0] sm:$0xff] %vm7107_vm2, %v13104_v47  ;;  %v13106_v45 = vadd.f32 %v17393_v11, %v10019_v33  ;;  %v13795_v57 = vld [vmem:[%s17718_s7 + $0xa0] sm:$0xff]   ;;  %v13796_v58 = vld [vmem:[%s17718_s7 + $0xa8] sm:$0xff]  }
 0x92d   : > { %12876 = vmatprep.subr.bf16.mxu1 %v13910_v27  ;;  %v10139_v48 = vld [vmem:[#allocation5 + $0x82] sm:$0xff]  ;;  %10096 = vst.msk [vmem:[#allocation5 + $0xb8] sm:$0xff] %vm7107_vm2, %v13105_v20  ;;  %v13799_v4 = vld [vmem:[%s17718_s7 + $0xc0] sm:$0xff]   ;;  %v13800_v20 = vld [vmem:[%s17718_s7 + $0xc8] sm:$0xff]  }
 0x92e   : > { %v10195_v2 = vmax.f32 %v10155_v53, %v10160_v1  ;;  %v10161_v50 = vmax.f32 %v10117_v31, %v10139_v48  ;;  %10094 = vst.msk [vmem:[#allocation5 + $0xa8] sm:$0xff] %vm7107_vm2, %v13106_v45  ;;  %v13798_v47 = vld [vmem:[%s17718_s7 + $0xb8] sm:$0xff]   ;;  %v13801_v33 = vld [vmem:[%s17718_s7 + $0xd0] sm:$0xff]   ;;  %v13803_v1 = vld [vmem:[%s17718_s7 + $0xe0] sm:$0xff]  }
 0x92f   : > { %v13804_v48 = vld [vmem:[%s17718_s7 + $0xe8] sm:$0xff]  }
 0x930   : > { %12877 = vmatpush3.bf16.msra.mxu1 %v13781_v62  ;;  %v10217_v21 = vmax.f32 %v10195_v2, 0.0  ;;  %v10196_v44 = vmax.f32 %v10156_v37, %v10161_v50  ;;  %v12858_v28 = vpop.f32.mrb[36].mxu1  ;;  %v13793_v37 = vld [vmem:[%s17718_s7 + $0x90] sm:$0xff]   ;;  %v13802_v62 = vld [vmem:[%s17718_s7 + $0xd8] sm:$0xff]  }
 0x931   : > { %12878 = vmatprep.subr.bf16.mxu1 %v13910_v27  ;;  %v13107_v54 = vadd.f32 %v12858_v28, %v17393_v11  ;;  %v10032_v12 = vpop.f32.mrb[37].mxu1  ;;  %v13805_v2 = vld [vmem:[%s17718_s7 + $0xf0] sm:$0xff]   ;;  %v13806_v50 = vld [vmem:[%s17718_s7 + $0xf8] sm:$0xff]   ;;  %v13808_v28 = vld [vmem:[%s17718_s7 + $0x108] sm:$0xff]  }
 0x932   : > { %10239 = vst.msk [vmem:[#allocation6 + $0x50] sm:$0xff] %vm7107_vm2, %v10217_v21  ;;  %v10218_v35 = vmax.f32 %v10196_v44, 0.0  ;;  %v13108_v36 = vadd.f32 %v17393_v11, %v10032_v12  ;;  %v12859_v13 = vpop.f32.mrb[38].mxu1  ;;  %v13807_v21 = vld [vmem:[%s17718_s7 + $0x100] sm:$0xff]   ;;  %v13810_v12 = vld [vmem:[%s17718_s7 + $0x118] sm:$0xff]  }
 0x933   : > { %10100 = vst.msk [vmem:[#allocation5 + $0xd0] sm:$0x7] %vm10099_vm6, %v13107_v54  ;;  %v10035_v5 = vpop.f32.mrb[39].mxu1  ;;  %v10121_v23 = vld [vmem:[#allocation5 + $0xa0] sm:$0xff] }
 0x934   : > { %12879 = vmatpush3.bf16.msra.mxu1 %v13782_v52  ;;  %10240 = vst.msk [vmem:[#allocation6 + $0x58] sm:$0xff] %vm7107_vm2, %v10218_v35  ;;  %10097 = vst.msk [vmem:[#allocation5 + $0xc0] sm:$0xff] %vm7107_vm2, %v13108_v36  ;;  %v13109_v3 = vadd.f32 %v17393_v11, %v10035_v5  ;;  %v13809_v54 = vld [vmem:[%s17718_s7 + $0x110] sm:$0xff]   ;;  %v10965_v35 = vld [vmem:[%s17720_s9 + $0x8] sm:$0xff] }
 0x935   : > { %12884 = vmatprep.subr.bf16.mxu1 %v13910_v27  ;;  %v10143_v46 = vld [vmem:[#allocation5 + $0xa2] sm:$0xff]  ;;  %v10144_v11 = vld [vmem:[#allocation5 + $0xaa] sm:$0x1]  ;;  %v13004_v13 = vpack.c.bf16 %v10965_v35, %v10964_v16 }
 0x936   : > { %v10165_v49 = vmax.f32 %v10121_v23, %v10143_v46  ;;  %10098 = vst.msk [vmem:[#allocation5 + $0xc8] sm:$0xff] %vm7107_vm2, %v13109_v3  ;;  %v10122_v42 = vld [vmem:[#allocation5 + $0xa8] sm:$0x1]  ;;  %v10966_v3 = vld [vmem:[%s17720_s9 + $0x10] sm:$0xff]  ;;  %v10968_v46 = vld [vmem:[%s17720_s9 + $0x20] sm:$0xff] }
 0x937   : > { %12881 = vmatmul.mubr.msk.bf16.vlgmr.msra.gmra.mrb[40].mxu1 %vm7107_vm2, %v10332_v60  ;;  %v10166_v61 = vmax.f32 %v10122_v42, %v10144_v11  ;;  %v10967_v60 = vld [vmem:[%s17720_s9 + $0x18] sm:$0xff]  ;;  %v10970_v42 = vld [vmem:[%s17720_s9 + $0x30] sm:$0xff] }
 0x938   : > { %12885 = vmatpush3.bf16.msra.mxu1 %v13783_v41  ;;  %12892 = vmatprep.mubr.msk.bf16.mxu1 %vm13911_vm5, %v13910_v27  ;;  %v13912_v41 = vmov 0.0|0.0   ;;  %v13007_v23 = vpack.c.bf16 %v10967_v60, %v10966_v3 }
 0x939   : > { %12886 = vmatprep.subr.bf16.mxu1 %v13910_v27  ;;  %v10489_v7 = vld [vmem:[#allocation6 + $0x50] sm:$0x1]  ;;  %v10568_v34 = vld [vmem:[#allocation6 + $0x54] sm:$0x1] }
 0x93a   : > { %v10172_v63 = vld [vmem:[#allocation5 + $0xd0] sm:$0x1]  ;;  %v10178_v40 = vld [vmem:[#allocation5 + $0xd2] sm:$0x1]  ;;  %v10490_v8 = vpack.c.bf16 %v10489_v7, %v10489_v7  ;;  %v10569_v32 = vpack.c.bf16 %v10568_v34, %v10568_v34 }
 0x93b   : > { %v10184_v0 = vmax.f32 %v10172_v63, %v10178_v40  ;;  %v10647_v19 = vld [vmem:[#allocation6 + $0x58] sm:$0x1]  ;;  %v10973_v40 = vld [vmem:[%s17720_s9 + $0x48] sm:$0xff] }
 0x93c   : > { %12887 = vmatpush3.bf16.msra.mxu1 %v13784_v29  ;;  %v10648_v22 = vpack.c.bf16 %v10647_v19, %v10647_v19  ;;  %v10972_v63 = vld [vmem:[%s17720_s9 + $0x40] sm:$0xff] }
 0x93d   : > { %12888 = vmatprep.subr.bf16.mxu1 %v13910_v27  ;;  %v10206_v18 = vmax.f32 %v10166_v61, %v10184_v0  ;;  %v10171_v26 = vld [vmem:[#allocation5 + $0xc8] sm:$0xff]  ;;  %v13016_v61 = vpack.c.bf16 %v10973_v40, %v10972_v63  ;;  %v10974_v0 = vld [vmem:[%s17720_s9 + $0x50] sm:$0xff]  ;;  %v10980_v7 = vld [vmem:[%s17721_s10] sm:$0x1] }
 0x93e   : > { %v10177_v43 = vld [vmem:[#allocation5 + $0xca] sm:$0xff] }
 0x93f   : > { %v10183_v24 = vmax.f32 %v10171_v26, %v10177_v43  ;;  %v10228_v30 = vmax.f32 %v10206_v18, 0.0  ;;  %v10976_v26 = vld [vmem:[%s17720_s9 + $0x60] sm:$0xff]  ;;  %v10977_v43 = vld [vmem:[%s17720_s9 + $0x68] sm:$0xff] }
 0x940   : > { %12889 = vmatpush3.bf16.msra.mxu1 %v13785_v10  ;;  %v10975_v10 = vld [vmem:[%s17720_s9 + $0x58] sm:$0xff] }
 0x941   : > { %v10205_v53 = vmax.f32 %v10165_v49, %v10183_v24  ;;  %12890 = vmatprep.subr.bf16.mxu1 %v13910_v27  ;;  %10251 = vst.msk [vmem:[#allocation6 + $0xa8] sm:$0x1] %vm10250_vm7, %v10228_v30  ;;  %v10969_v49 = vld [vmem:[%s17720_s9 + $0x28] sm:$0xff]  ;;  %v13019_v18 = vpack.c.bf16 %v10975_v10, %v10974_v0  ;;  %v13022_v24 = vpack.c.bf16 %v10977_v43, %v10976_v26  ;;  %v10978_v30 = vld [vmem:[%s17720_s9 + $0x70] sm:$0xff] }
 0x942   : > { %v13010_v29 = vpack.c.bf16 %v10969_v49, %v10968_v46 }
 0x943   : > { %v10227_v59 = vmax.f32 %v10205_v53, 0.0 }
 0x944   : > { %12891 = vmatpush3.bf16.msra.mxu1 %v13786_v6  ;;  %v10979_v6 = vld [vmem:[%s17720_s9 + $0x78] sm:$0xff] }
 0x945   : > { %10249 = vst.msk [vmem:[#allocation6 + $0xa0] sm:$0xff] %vm7107_vm2, %v10227_v59  ;;  %12896 = vmatprep.subr.bf16.mxu1 %v13910_v27  ;;  %v13025_v53 = vpack.c.bf16 %v10979_v6, %v10978_v30 }
 0x947   : > { %12893 = vmatmul.mubr.msk.bf16.vlgmr.msra.gmra.mrb[40].mxu1 %vm7107_vm2, %v10411_v15 }
 0x948   : > { %12897 = vmatpush3.bf16.msra.mxu1 %v13787_v51  ;;  %12904 = vmatprep.mubr.msk.bf16.mxu1 %vm13911_vm5, %v13910_v27  ;;  %v10884_v36 = vld [vmem:[#allocation6 + $0xa8] sm:$0x1] }
 0x949   : > { %12898 = vmatprep.subr.bf16.mxu1 %v13910_v27  ;;  %v10885_v5 = vpack.c.bf16 %v10884_v36, %v10884_v36 }
 0x94c   : > { %12899 = vmatpush3.bf16.msra.mxu1 %v13788_v14  ;;  %v10726_v31 = vld [vmem:[#allocation6 + $0xa0] sm:$0x1]  ;;  %v10805_v52 = vld [vmem:[#allocation6 + $0xa4] sm:$0x1] }
 0x94d   : > { %12900 = vmatprep.subr.bf16.mxu1 %v13910_v27  ;;  %v10727_v45 = vpack.c.bf16 %v10726_v31, %v10726_v31  ;;  %v10806_v44 = vpack.c.bf16 %v10805_v52, %v10805_v52 }
 0x950   : > { %12901 = vmatpush3.bf16.msra.mxu1 %v13789_v9 }
 0x951   : > { %12902 = vmatprep.subr.bf16.mxu1 %v13910_v27 }
 0x954   : > { %12903 = vmatpush3.bf16.msra.mxu1 %v13790_v55 }
 0x955   : > { %12908 = vmatprep.subr.bf16.mxu1 %v13910_v27 }
 0x957   : > { %12905 = vmatmul.mubr.msk.bf16.vlgmr.msra.gmra.mrb[40].mxu1 %vm7107_vm2, %v10490_v8 }
 0x958   : > { %12909 = vmatpush3.bf16.msra.mxu1 %v13791_v25  ;;  %12916 = vmatprep.mubr.msk.bf16.mxu1 %vm13911_vm5, %v13910_v27 }
 0x959   : > { %12910 = vmatprep.subr.bf16.mxu1 %v13910_v27 }
 0x95c   : > { %12911 = vmatpush3.bf16.msra.mxu1 %v13792_v38 }
 0x95d   : > { %12912 = vmatprep.subr.bf16.mxu1 %v13910_v27 }
 0x960   : > { %12913 = vmatpush3.bf16.msra.mxu1 %v13793_v37 }
 0x961   : > { %12914 = vmatprep.subr.bf16.mxu1 %v13910_v27 }
 0x964   : > { %12915 = vmatpush3.bf16.msra.mxu1 %v13794_v17 }
 0x965   : > { %12920 = vmatprep.subr.bf16.mxu1 %v13910_v27 }
 0x967   : > { %12917 = vmatmul.mubr.msk.bf16.vlgmr.msra.gmra.mrb[40].mxu1 %vm7107_vm2, %v10569_v32 }
 0x968   : > { %12921 = vmatpush3.bf16.msra.mxu1 %v13795_v57  ;;  %12928 = vmatprep.mubr.msk.bf16.mxu1 %vm13911_vm5, %v13910_v27 }
 0x969   : > { %12922 = vmatprep.subr.bf16.mxu1 %v13910_v27 }
 0x96c   : > { %12923 = vmatpush3.bf16.msra.mxu1 %v13796_v58 }
 0x96d   : > { %12924 = vmatprep.subr.bf16.mxu1 %v13910_v27 }
 0x970   : > { %12925 = vmatpush3.bf16.msra.mxu1 %v13797_v56 }
 0x971   : > { %12926 = vmatprep.subr.bf16.mxu1 %v13910_v27 }
 0x974   : > { %12927 = vmatpush3.bf16.msra.mxu1 %v13798_v47 }
 0x975   : > { %12932 = vmatprep.subr.bf16.mxu1 %v13910_v27 }
 0x977   : > { %12929 = vmatmul.mubr.msk.bf16.vlgmr.msra.gmra.mrb[40].mxu1 %vm7107_vm2, %v10648_v22 }
 0x978   : > { %12933 = vmatpush3.bf16.msra.mxu1 %v13799_v4  ;;  %12940 = vmatprep.mubr.msk.bf16.mxu1 %vm13911_vm5, %v13910_v27 }
 0x979   : > { %12934 = vmatprep.subr.bf16.mxu1 %v13910_v27 }
 0x97c   : > { %12935 = vmatpush3.bf16.msra.mxu1 %v13800_v20 }
 0x97d   : > { %12936 = vmatprep.subr.bf16.mxu1 %v13910_v27 }
 0x980   : > { %12937 = vmatpush3.bf16.msra.mxu1 %v13801_v33 }
 0x981   : > { %12938 = vmatprep.subr.bf16.mxu1 %v13910_v27 }
 0x984   : > { %12939 = vmatpush3.bf16.msra.mxu1 %v13802_v62 }
 0x985   : > { %12944 = vmatprep.subr.bf16.mxu1 %v13910_v27 }
 0x987   : > { %12941 = vmatmul.mubr.msk.bf16.vlgmr.msra.gmra.mrb[40].mxu1 %vm7107_vm2, %v10727_v45 }
 0x988   : > { %12945 = vmatpush3.bf16.msra.mxu1 %v13803_v1  ;;  %12952 = vmatprep.mubr.msk.bf16.mxu1 %vm13911_vm5, %v13910_v27 }
 0x989   : > { %12946 = vmatprep.subr.bf16.mxu1 %v13910_v27 }
 0x98c   : > { %12947 = vmatpush3.bf16.msra.mxu1 %v13804_v48 }
 0x98d   : > { %12948 = vmatprep.subr.bf16.mxu1 %v13910_v27 }
 0x990   : > { %12949 = vmatpush3.bf16.msra.mxu1 %v13805_v2 }
 0x991   : > { %12950 = vmatprep.subr.bf16.mxu1 %v13910_v27 }
 0x994   : > { %12951 = vmatpush3.bf16.msra.mxu1 %v13806_v50 }
 0x995   : > { %12956 = vmatprep.subr.bf16.mxu1 %v13910_v27 }
 0x997   : > { %12953 = vmatmul.mubr.msk.bf16.vlgmr.msra.gmra.mrb[40].mxu1 %vm7107_vm2, %v10806_v44 }
 0x998   : > { %12957 = vmatpush3.bf16.msra.mxu1 %v13807_v21  ;;  %12964 = vmatprep.mubr.msk.bf16.mxu1 %vm13911_vm5, %v13910_v27 }
 0x999   : > { %12958 = vmatprep.subr.bf16.mxu1 %v13910_v27 }
 0x99c   : > { %12959 = vmatpush3.bf16.msra.mxu1 %v13808_v28 }
 0x99d   : > { %12960 = vmatprep.subr.bf16.mxu1 %v13910_v27 }
 0x9a0   : > { %12961 = vmatpush3.bf16.msra.mxu1 %v13809_v54 }
 0x9a1   : > { %12962 = vmatprep.subr.bf16.mxu1 %v13910_v27 }
 0x9a4   : > { %12963 = vmatpush3.bf16.msra.mxu1 %v13810_v12 }
 0x9a5   : > { %13003 = vmatprep.subr.bf16.mxu1 %v13912_v41 }
 0x9a7   : > { %12965 = vmatmul.mubr.msk.bf16.vlgmr.msra.gmra.mrb[40].mxu1 %vm7107_vm2, %v10885_v5 }
 0x9a8   : > { %13005 = vmatpush3.bf16.msra.mxu1 %v13004_v13  ;;  %13000 = vmatprep.mubr.msk.f32.mxu1 %vm13911_vm5, %v13910_v27  ;;  %v10971_v27 = vld [vmem:[%s17720_s9 + $0x38] sm:$0xff] }
 0x9a9   : > { %13006 = vmatprep.subr.bf16.mxu1 %v13912_v41  ;;  %v13013_v11 = vpack.c.bf16 %v10971_v27, %v10970_v42 }
 0x9ac   : > { %13008 = vmatpush3.bf16.msra.mxu1 %v13007_v23 }
 0x9ad   : > { %13009 = vmatprep.subr.bf16.mxu1 %v13912_v41 }
 0x9b0   : > { %13011 = vmatpush3.bf16.msra.mxu1 %v13010_v29 }
 0x9b1   : > { %13012 = vmatprep.subr.bf16.mxu1 %v13912_v41 }
 0x9b4   : > { %13014 = vmatpush3.bf16.msra.mxu1 %v13013_v11 }
 0x9b5   : > { %13015 = vmatprep.subr.bf16.mxu1 %v13912_v41 }
 0x9b8   : > { %13017 = vmatpush3.bf16.msra.mxu1 %v13016_v61 }
 0x9b9   : > { %13018 = vmatprep.subr.bf16.mxu1 %v13912_v41 }
 0x9bc   : > { %13020 = vmatpush3.bf16.msra.mxu1 %v13019_v18 }
 0x9bd   : > { %13021 = vmatprep.subr.bf16.mxu1 %v13912_v41 }
 0x9c0   : > { %13023 = vmatpush3.bf16.msra.mxu1 %v13022_v24 }
 0x9c1   : > { %13024 = vmatprep.subr.bf16.mxu1 %v13912_v41 }
 0x9c4   : > { %13026 = vmatpush3.bf16.msra.mxu1 %v13025_v53 }
 0xa7a   : > { %v10956_v59 = vpop.f32.mrb[40].mxu1 }
 0xa7b   : > { %v13110_v51 = vadd.f32 %v10956_v59, %v10252_v39  ;;  %v12966_v15 = vpop.f32.mrb[41].mxu1 }
 0xa7c   : > { %v10959_v14 = vpop.f32.mrb[42].mxu1 }
 0xa7d   : > { %v10963_v9 = vmax.f32 %v13110_v51, 0.0  ;;  %v12967_v55 = vpop.f32.mrb[43].mxu1 }
 0xa7f   : > { %13001 = vmatmul.mubr.f32.vlgmr.msra.gmra.mrb[44].mxu1 %v10963_v9 }
 0xb52   : > { %v11047_v25 = vpop.f32.mrb[44].mxu1 }
 0xb53   : > { %v11048_v8 = vadd.f32 %v11047_v25, %v10980_v7  ;;  %v13002_v38 = vpop.f32.mrb[45].mxu1 }
 0xb55   : > { %v11052_v37 = vsel %vm11051_vm8, %v11048_v8, -inf }
 0xb56   : > { %11053 = vmax.xlane.f32.xlu1 %v11052_v37 }
 0xbe3   : > { %v11054_v17 = vpop.xlane.xlu1 %11053 }
 0xbe4   : > { %v11055_v34 = vsub.f32 %v11048_v8, %v11054_v17 }
 0xbe6   : > { %v11056_v57 = vmul.f32 1.442695, %v11055_v34 }
 0xbe8   : > { %13811 = vpow2.f32 %v11056_v57 }
 0xbf2   : > { %v13812_v32 = vpop.eup %13811 }
 0xbf3   : > { %v11058_v58 = vsel %vm11051_vm8, %v13812_v32, 0.0 }
 0xbf4   : > { %11059 = vadd.xlane.f32.xlu0 %v11058_v58 }
 0xc81   : > { %v11060_v56 = vpop.xlane.xlu0 %11059 }
 0xc82   : > { %13813 = vlog2.f32 %v11060_v56 }
 0xc8c   : > { %v13814_v47 = vpop.eup %13813 }
 0xc8d   : > { %v11062_v19 = vmul.f32 0.6931472, %v13814_v47 }
 0xc8f   : > { %v11063_v4 = vsub.f32 %v11055_v34, %v11062_v19 }
 0xc91   : > { %11064 = vst.msk [vmem:[%s378_s16] sm:$0x1] %vm11051_vm8, %v11063_v4 }
 0xc92   : > { %13858 = shalt.err (!%p13855_p3)
}
 0xc93   : > { %s13859_s14 = scalar_lea.hbm %s17668_s29, 16  ;;  %s13863_s24 = scalar_lea.hbm %s17722_s11, 32 }
 0xc94   : > { %p13860_p4 = scmp.ne.s32.totalorder %s17668_s29, %s13859_s14  ;;  %p13864_p9 = scmp.lt.u32.totalorder %s17668_s29, %s17722_s11 }
 0xc95   : > { %p13865_p10 = scmp.lt.u32.totalorder %s13863_s24, %s13859_s14  ;;  %p13867_p12 = scmp.lt.u32.totalorder %s13859_s14, %s17668_s29 }
 0xc96   : > { %p13861_p7 = pnand %p13860_p4, %p14012_p5 }
 0xc97   : > { %p13866_p11 = por %p13865_p10, %p13864_p9 }
 0xc98   : > { %p13862_p8 = pneg %p13861_p7 }
 0xc99   : > { %p13868_p13 = por %p13867_p12, %p13866_p11 }
 0xc9b   : > { %p13869_p0 = pnand %p13868_p13, %p13862_p8 }
 0xc9d   : > { %13872 = shalt.err (!%p13869_p0)
}
 0xc9e   : > { %13676 = dma.vmem_to_hbm [thread:$0]  (%p14012_p5), %s17670_s22, 16, %s17668_s29, %s11066_s30  }
 0xc9f PF: > { %p13682_p1 = scmp.ge.s32.totalorder %s13907_s20, 2  ;;  %s11090_s0 = sand.u32 1, %s13895_s17  }
 0xca0   : > { %s11091_s12 = scalar_lea.sflag [#allocation8], %s11090_s0 }
 0xca1   : > { %p13679_p2 = pnand %p13682_p1, %p14016_p6 }
 0xca3   : > { %13890 = dma.done.wait (!%p13679_p2), %s11091_s12, 16  }
 0xca4   : > { %13892 = vsyncadd (!%p13679_p2), %s11091_s12, 4294967280  ;;  %p21_p3 = scmp.ge.s32.totalorder %s13999_s23, 4   ;;  %s17983_s17 = smov %s13899_s18 }
 0xca5   : > { %s17984_s18 = smov %s13903_s19  ;;  %s17985_s19 = smov %s14010_s26 }
 0xca6   : > { %s17986_s20 = smov %s13999_s23  ;;  %23 = sbr.rel (!%p21_p3) target bundleno = 5 (0x5), region = 123 }
 0xcad   :  { %11095 = vsyncpa [#allocation8], 1 }
 0xcae   :  { %11097 = vsyncpa [#allocation8 + $0x1], 1 }

</bundles_post_ra>
